<compile_context>
chip_gen: v7x
topology: tpu7x:2x2x1
jax: 0.10.0
libtpu: 0.0.40
codegen_flags: <defaults>
</compile_context>

<pallas_src>
import functools

import jax
import jax.numpy as jnp
from jax.experimental import pallas as pl
from jax.experimental.pallas import tpu as pltpu


def _round_up(x, m):
    return (x + m - 1) // m * m


def _default_vmem_limit():
    """Per-generation scoped-VMEM limit (v5e/v6e: 128 MiB phys, v7x: 64 MiB)."""
    try:
        cap = int(pltpu.get_tpu_info().vmem_capacity_bytes)
    except Exception:
        return 32 * 1024 * 1024
    if cap >= 128 * 1024 * 1024:
        return 96 * 1024 * 1024
    return max(32 * 1024 * 1024, min(48 * 1024 * 1024, cap - 16 * 1024 * 1024))


_VMEM_LIMIT = _default_vmem_limit()


def _pick_row_tile(m, cap):
    """Largest multiple of 8 that divides m and is <= cap (m is a mult. of 8)."""
    t = min(cap, m)
    t -= t % 8
    t = max(t, 8)
    while m % t:
        t -= 8
    return t


def _pick_col_tile(n):
    """Lane tile: full width unless n is a large multiple of 128."""
    if n <= 512 or n % 128:
        return n
    t = 512
    while n % t:
        t -= 128
    return t


# -----------------------------------------------------------------------------
# Fused matmul + bias (+ ReLU): bf16 operands, f32 MXU accumulation
# -----------------------------------------------------------------------------
def _linear_kernel(x_ref, w_ref, b_ref, o_ref, *, act):
    y = jnp.dot(x_ref[...], w_ref[...], preferred_element_type=jnp.float32)
    y = y + b_ref[...]
    if act == "relu":
        y = jnp.maximum(y, 0.0)
    o_ref[...] = y.astype(o_ref.dtype)


def pallas_linear(x2d, w, b, act=None, out_dtype=jnp.bfloat16):
    """x2d: (M, K) bf16, w: (K, N) bf16 (pre-cast), b: (1, N) f32 -> (M, N).

    M is a multiple of 8 by construction (sequence padded at model level), so
    the activation is never padded/copied here.  K fits one block for this
    model (<= 1024).
    """
    # TODO(synk): add a k grid axis with an f32 accumulator if K ever exceeds
    # a single comfortable VMEM block (not needed for FastSpeech2 shapes).
    M, K = x2d.shape
    N = w.shape[1]
    tm = _pick_row_tile(M, 1024)
    tn = _pick_col_tile(N)
    return pl.pallas_call(
        functools.partial(_linear_kernel, act=act),
        out_shape=jax.ShapeDtypeStruct((M, N), out_dtype),
        grid=(M // tm, N // tn),
        in_specs=[
            pl.BlockSpec((tm, K), lambda i, j: (i, 0)),
            pl.BlockSpec((K, tn), lambda i, j: (0, j)),
            pl.BlockSpec((1, tn), lambda i, j: (0, j)),
        ],
        out_specs=pl.BlockSpec((tm, tn), lambda i, j: (i, j)),
        compiler_params=pltpu.CompilerParams(
            dimension_semantics=("parallel", "parallel"),
            vmem_limit_bytes=_VMEM_LIMIT),
    )(x2d.astype(jnp.bfloat16), w, b)


# -----------------------------------------------------------------------------
# Row-tiled (optionally grouped) LayerNorm, and fused residual+LN+mask variant
# -----------------------------------------------------------------------------
def _layernorm_kernel(x_ref, g_ref, b_ref, o_ref, *, eps, groups):
    x = x_ref[...].astype(jnp.float32)
    g = g_ref[...]
    b = b_ref[...]
    D = x.shape[-1]
    gd = D // groups
    for gi in range(groups):
        sl = slice(gi * gd, (gi + 1) * gd)
        xs = x[:, sl]
        mu = jnp.mean(xs, axis=-1, keepdims=True)
        var = jnp.mean(jnp.square(xs - mu), axis=-1, keepdims=True)
        y = (xs - mu) * jax.lax.rsqrt(var + eps)
        o_ref[:, sl] = (y * g[:, sl] + b[:, sl]).astype(o_ref.dtype)


def pallas_layernorm(x2d, gamma, beta, groups=1, eps=1e-5,
                     out_dtype=jnp.bfloat16):
    M, D = x2d.shape
    tm = _pick_row_tile(M, 1024)
    return pl.pallas_call(
        functools.partial(_layernorm_kernel, eps=eps, groups=groups),
        out_shape=jax.ShapeDtypeStruct((M, D), out_dtype),
        grid=(M // tm,),
        in_specs=[
            pl.BlockSpec((tm, D), lambda i: (i, 0)),
            pl.BlockSpec((1, D), lambda i: (0, 0)),
            pl.BlockSpec((1, D), lambda i: (0, 0)),
        ],
        out_specs=pl.BlockSpec((tm, D), lambda i: (i, 0)),
        compiler_params=pltpu.CompilerParams(
            dimension_semantics=("parallel",),
            vmem_limit_bytes=_VMEM_LIMIT),
    )(x2d, gamma, beta)


def _add_ln_mask_kernel(x_ref, r_ref, m_ref, g_ref, b_ref, o_ref, *, eps):
    x = x_ref[...].astype(jnp.float32) + r_ref[...].astype(jnp.float32)
    mu = jnp.mean(x, axis=-1, keepdims=True)
    var = jnp.mean(jnp.square(x - mu), axis=-1, keepdims=True)
    y = (x - mu) * jax.lax.rsqrt(var + eps)
    y = (y * g_ref[...] + b_ref[...]) * m_ref[...]
    o_ref[...] = y.astype(o_ref.dtype)


def pallas_add_ln_mask(x2d, res2d, mask_col, gamma, beta, eps=1e-5):
    """LayerNorm(x + residual) * mask, row-tiled, bf16 in/out, f32 math."""
    M, D = x2d.shape
    tm = _pick_row_tile(M, 1024)
    return pl.pallas_call(
        functools.partial(_add_ln_mask_kernel, eps=eps),
        out_shape=jax.ShapeDtypeStruct((M, D), jnp.bfloat16),
        grid=(M // tm,),
        in_specs=[
            pl.BlockSpec((tm, D), lambda i: (i, 0)),
            pl.BlockSpec((tm, D), lambda i: (i, 0)),
            pl.BlockSpec((tm, 1), lambda i: (i, 0)),
            pl.BlockSpec((1, D), lambda i: (0, 0)),
            pl.BlockSpec((1, D), lambda i: (0, 0)),
        ],
        out_specs=pl.BlockSpec((tm, D), lambda i: (i, 0)),
        compiler_params=pltpu.CompilerParams(
            dimension_semantics=("parallel",),
            vmem_limit_bytes=_VMEM_LIMIT),
    )(x2d, res2d, mask_col, gamma, beta)


# -----------------------------------------------------------------------------
# Flash-style multi-head self-attention: packed heads, additive key-pad bias,
# online softmax over kv tiles (no (T, T) score slab in VMEM).
# -----------------------------------------------------------------------------
def _attn_kernel(q_ref, kv_ref, bias_ref, o_ref, m_sc, l_sc, acc_sc,
                 *, n_head, d_k, d_v):
    kv_step = pl.program_id(2)

    @pl.when(kv_step == 0)
    def _():
        m_sc[...] = jnp.full_like(m_sc, -jnp.inf)
        l_sc[...] = jnp.zeros_like(l_sc)
        acc_sc[...] = jnp.zeros_like(acc_sc)

    q = q_ref[...]          # (tq, H*dk) bf16, 1/sqrt(dk) folded into the weights
    kvb = kv_ref[...]       # (tk, H*dk + H*dv) bf16
    bias = bias_ref[...]    # (1, tk)  f32, 0 for real keys / -1e9 for pad keys
    Hdk = n_head * d_k

    for h in range(n_head):
        qh = q[:, h * d_k:(h + 1) * d_k]
        kh = kvb[:, h * d_k:(h + 1) * d_k]
        vh = kvb[:, Hdk + h * d_v:Hdk + (h + 1) * d_v]
        s = jnp.dot(qh, kh.T, preferred_element_type=jnp.float32) + bias
        m_prev = m_sc[:, h:h + 1]
        m_new = jnp.maximum(m_prev, jnp.max(s, axis=-1, keepdims=True))
        alpha = jnp.exp(m_prev - m_new)
        p = jnp.exp(s - m_new)
        l_sc[:, h:h + 1] = alpha * l_sc[:, h:h + 1] + jnp.sum(p, axis=-1,
                                                              keepdims=True)
        acc_sc[:, h * d_v:(h + 1) * d_v] = (
            alpha * acc_sc[:, h * d_v:(h + 1) * d_v]
            + jnp.dot(p.astype(kvb.dtype), vh,
                      preferred_element_type=jnp.float32))
        m_sc[:, h:h + 1] = m_new

    @pl.when(kv_step == pl.num_programs(2) - 1)
    def _():
        for h in range(n_head):
            inv = pl.reciprocal(l_sc[:, h:h + 1], approx=True)
            o_ref[:, h * d_v:(h + 1) * d_v] = (
                acc_sc[:, h * d_v:(h + 1) * d_v] * inv).astype(o_ref.dtype)


def pallas_attention(q, kv, key_bias, n_head, d_k, d_v, seq_tile):
    """q: (B, T, H*dk) bf16, kv: (B, T, H*dk + H*dv) bf16 (packed K|V),
    key_bias: (B, 1, T) f32 additive mask.  T is a multiple of seq_tile."""
    B, T, Hdk = q.shape
    Hdv = n_head * d_v
    tq = tk = seq_tile
    return pl.pallas_call(
        functools.partial(_attn_kernel, n_head=n_head, d_k=d_k, d_v=d_v),
        out_shape=jax.ShapeDtypeStruct((B, T, Hdv), jnp.bfloat16),
        grid=(B, T // tq, T // tk),
        in_specs=[
            pl.BlockSpec((None, tq, Hdk), lambda b, i, j: (b, i, 0)),
            pl.BlockSpec((None, tk, Hdk + Hdv), lambda b, i, j: (b, j, 0)),
            pl.BlockSpec((None, 1, tk), lambda b, i, j: (b, 0, j)),
        ],
        out_specs=pl.BlockSpec((None, tq, Hdv), lambda b, i, j: (b, i, 0)),
        scratch_shapes=[
            pltpu.VMEM((tq, n_head), jnp.float32),   # running max m
            pltpu.VMEM((tq, n_head), jnp.float32),   # running denom l
            pltpu.VMEM((tq, Hdv), jnp.float32),      # running accumulator
        ],
        compiler_params=pltpu.CompilerParams(
            dimension_semantics=("parallel", "parallel", "arbitrary"),
            vmem_limit_bytes=_VMEM_LIMIT),
    )(q, kv, key_bias)


# -----------------------------------------------------------------------------
# Conv-aware 1D convolution: K shifted matmuls accumulated in-register
# -----------------------------------------------------------------------------
def _conv1d_kernel(x_ref, w_ref, b_ref, o_ref, *, K, T, act):
    x = x_ref[0]                      # (T + K - 1, Cin) bf16
    w = w_ref[...]                    # (K, Cin, Cout) bf16
    cout = w.shape[-1]
    acc = jnp.zeros((T, cout), jnp.float32)
    # TODO(synk): replace per-tap sublane slices with pltpu.roll shifts (XLU)
    # so they don't materialize K copies of the activation slab in VMEM.
    for kk in range(K):
        acc = acc + jnp.dot(x[kk:kk + T, :], w[kk],
                            preferred_element_type=jnp.float32)
    acc = acc + b_ref[...]
    if act == "relu":
        acc = jnp.maximum(acc, 0.0)
    o_ref[0] = acc.astype(o_ref.dtype)


def conv1d(x, w_kio, b, act=None, out_dtype=jnp.bfloat16):
    """x: (B, T, Cin) bf16; w_kio: (K, Cin, Cout) bf16 (pre-cast, pre-transposed
    at init); b: (1, Cout) f32; 'same' padding (odd K)."""
    B, T, Cin = x.shape
    K, _, Cout = w_kio.shape
    pad = (K - 1) // 2
    # TODO(synk): move the halo pad in-kernel (and tile T with halos) to avoid
    # this HBM copy of the activation for very long mel sequences.
    xp = jnp.pad(x, ((0, 0), (pad, pad), (0, 0))) if pad else x
    Tp = T + 2 * pad
    return pl.pallas_call(
        functools.partial(_conv1d_kernel, K=K, T=T, act=act),
        out_shape=jax.ShapeDtypeStruct((B, T, Cout), out_dtype),
        grid=(B,),
        in_specs=[
            pl.BlockSpec((1, Tp, Cin), lambda b_: (b_, 0, 0)),
            pl.BlockSpec((K, Cin, Cout), lambda b_: (0, 0, 0)),
            pl.BlockSpec((1, Cout), lambda b_: (0, 0)),
        ],
        out_specs=pl.BlockSpec((1, T, Cout), lambda b_: (b_, 0, 0)),
        compiler_params=pltpu.CompilerParams(
            dimension_semantics=("parallel",),
            vmem_limit_bytes=_VMEM_LIMIT),
    )(xp, w_kio, b)


# -----------------------------------------------------------------------------
# Model building blocks
# -----------------------------------------------------------------------------
def fft_block(x, key_bias, non_pad_col, p, n_head, d_k, d_v, seq_tile):
    """One FFT block (self-attn + conv feed-forward), post-layernorm."""
    B, T, D = x.shape
    Hdk = n_head * d_k
    Hdv = n_head * d_v
    x2 = x.reshape(B * T, D)
    residual = x2

    # Q projection (scale folded into weights at init) and fused K|V projection.
    q = pallas_linear(x2, p["w_q"], p["b_q"]).reshape(B, T, Hdk)
    kv = pallas_linear(x2, p["w_kv"], p["b_kv"]).reshape(B, T, Hdk + Hdv)

    attn = pallas_attention(q, kv, key_bias, n_head, d_k, d_v, seq_tile)
    out = pallas_linear(attn.reshape(B * T, Hdv), p["wo"], p["bo"])
    x2 = pallas_add_ln_mask(out, residual, non_pad_col, p["ln1_g"], p["ln1_b"])

    residual = x2
    y = conv1d(x2.reshape(B, T, D), p["c1_w"], p["c1_b"], act="relu")
    F = y.shape[-1]
    # Kernel-size-1 conv == pointwise matmul -> tiled linear path.
    y2 = pallas_linear(y.reshape(B * T, F), p["c2_w"], p["c2_b"])
    x2 = pallas_add_ln_mask(y2, residual, non_pad_col, p["ln2_g"], p["ln2_b"])
    return x2.reshape(B, T, D)


def variance_predictors(x, pad_mask, p):
    """Fused duration / pitch / energy predictors.

    x: (B, T, D) bf16 -> three (B, T) f32 predictions (masked-fill 0 on pads).
    The three predictors share x, so conv1 output channels are concatenated,
    LayerNorm runs grouped (3 groups), conv2 / final linear weights are
    block-diagonal -> activation traffic is read once instead of three times.
    """
    B, T, D = x.shape
    y = conv1d(x, p["c1_w"], p["c1_b"], act="relu")            # (B, T, 3F)
    F3 = y.shape[-1]
    y = pallas_layernorm(y.reshape(B * T, F3), p["ln1_g"], p["ln1_b"], groups=3)
    y = conv1d(y.reshape(B, T, F3), p["c2_w"], p["c2_b"], act="relu")
    y = pallas_layernorm(y.reshape(B * T, F3), p["ln2_g"], p["ln2_b"], groups=3)
    out = pallas_linear(y, p["lin_w"], p["lin_b"], out_dtype=jnp.float32)
    out = out.reshape(B, T, 3)
    out = jnp.where(pad_mask[..., None], 0.0, out)
    return out[..., 0], out[..., 1], out[..., 2]


def length_regulate(x, durations, max_mel_len):
    """Expand x (B,T,D) by integer durations (B,T) to (B,max_mel_len,D)."""
    B, T, D = x.shape
    cum = jnp.cumsum(durations, axis=1)                               # (B, T)
    mel_len = cum[:, -1]                                              # (B,)
    frames = jnp.arange(max_mel_len, dtype=jnp.int32)                 # (M,)
    idx = jnp.sum(frames[None, :, None] >= cum[:, None, :], axis=-1)  # (B, M)
    idx = jnp.clip(idx, 0, T - 1)
    out = jnp.take_along_axis(x, idx[..., None], axis=1)
    valid = frames[None, :] < mel_len[:, None]
    out = out * valid[..., None].astype(x.dtype)
    mel_pos = jnp.where(valid, frames[None, :] + 1, 0).astype(jnp.int32)
    return out, mel_pos


def sinusoid_table(n_position, d_hid):
    positions = jnp.arange(n_position, dtype=jnp.float32)[:, None]
    i = jnp.arange(d_hid, dtype=jnp.float32)[None, :]
    div = jnp.power(10000.0, 2.0 * jnp.floor(i / 2.0) / d_hid)
    angles = positions / div
    table = jnp.where((jnp.arange(d_hid) % 2) == 0, jnp.sin(angles),
                      jnp.cos(angles))
    return table.at[0].set(0.0)  # padding_idx = 0


# -----------------------------------------------------------------------------
# Parameter init (deterministic, synthetic).  All matmul weights are stored
# bf16 (cast once here, never per call); biases / LN params stay f32.
# -----------------------------------------------------------------------------
def init_params(key, cfg):
    keys = iter(jax.random.split(key, 512))

    def rnd(shape, s=0.1):
        return s * jax.random.normal(next(keys), shape, jnp.float32)

    D = cfg["encoder_dim"]
    F = cfg["conv_filter_size"]
    n_head, d_k, d_v = cfg["n_head"], cfg["d_k"], cfg["d_v"]
    va = cfg["variance_adaptor"]
    n_pos = _round_up(max(cfg["max_seq_len"], cfg["max_mel_len"]), 512) + 1

    def fft_layer():
        Hdk, Hdv = n_head * d_k, n_head * d_v
        scale = 1.0 / float(d_k) ** 0.5
        return dict(
            # 1/sqrt(dk) folded into the Q projection.
            w_q=(rnd((D, Hdk)) * scale).astype(jnp.bfloat16),
            b_q=jnp.zeros((1, Hdk), jnp.float32),
            w_kv=rnd((D, Hdk + Hdv)).astype(jnp.bfloat16),
            b_kv=jnp.zeros((1, Hdk + Hdv), jnp.float32),
            wo=rnd((Hdv, D)).astype(jnp.bfloat16),
            bo=jnp.zeros((1, D), jnp.float32),
            ln1_g=jnp.ones((1, D), jnp.float32),
            ln1_b=jnp.zeros((1, D), jnp.float32),
            c1_w=rnd((9, D, F)).astype(jnp.bfloat16),     # (K, Cin, Cout)
            c1_b=jnp.zeros((1, F), jnp.float32),
            c2_w=rnd((F, D)).astype(jnp.bfloat16),        # K=1 conv -> linear
            c2_b=jnp.zeros((1, D), jnp.float32),
            ln2_g=jnp.ones((1, D), jnp.float32),
            ln2_b=jnp.zeros((1, D), jnp.float32),
        )

    Fv, Kv = va["filter_size"], va["kernel_size"]
    c2_blk = jnp.zeros((Kv, 3 * Fv, 3 * Fv), jnp.float32)
    lin_blk = jnp.zeros((3 * Fv, 3), jnp.float32)
    for i in range(3):
        c2_blk = c2_blk.at[:, i * Fv:(i + 1) * Fv,
                           i * Fv:(i + 1) * Fv].set(rnd((Kv, Fv, Fv)))
        lin_blk = lin_blk.at[i * Fv:(i + 1) * Fv, i].set(rnd((Fv,)))
    var_pred = dict(
        c1_w=rnd((Kv, D, 3 * Fv)).astype(jnp.bfloat16),
        c1_b=jnp.zeros((1, 3 * Fv), jnp.float32),
        ln1_g=jnp.ones((1, 3 * Fv), jnp.float32),
        ln1_b=jnp.zeros((1, 3 * Fv), jnp.float32),
        c2_w=c2_blk.astype(jnp.bfloat16),
        c2_b=jnp.zeros((1, 3 * Fv), jnp.float32),
        ln2_g=jnp.ones((1, 3 * Fv), jnp.float32),
        ln2_b=jnp.zeros((1, 3 * Fv), jnp.float32),
        lin_w=lin_blk.astype(jnp.bfloat16),
        # columns = [duration, pitch, energy]; duration head gets bias 1.0
        lin_b=jnp.array([[1.0, 0.0, 0.0]], jnp.float32),
    )

    params = dict(
        src_emb=rnd((cfg["vocab_size"], D)).at[0].set(0.0),  # padding_idx = 0
        pos_table=sinusoid_table(n_pos, D),
        enc_layers=[fft_layer() for _ in range(cfg["n_enc_layers"])],
        dec_layers=[fft_layer() for _ in range(cfg["n_dec_layers"])],
        var_pred=var_pred,
        pitch_emb=rnd((va["n_bins"], D)),
        energy_emb=rnd((va["n_bins"], D)),
        pitch_bins=jnp.linspace(va["pitch_min"], va["pitch_max"],
                                va["n_bins"] - 1),
        energy_bins=jnp.linspace(va["energy_min"], va["energy_max"],
                                 va["n_bins"] - 1),
        mel_w=rnd((cfg["decoder_dim"], cfg["num_mels"])).astype(jnp.bfloat16),
        mel_b=jnp.zeros((1, cfg["num_mels"]), jnp.float32),
    )
    return params


# -----------------------------------------------------------------------------
# FastSpeech2 forward (inference path; self.training == False branch)
# -----------------------------------------------------------------------------
# TODO(synk): training branch (teacher-forced targets + mask_tensor) not wired
# here; only the inference branch of FastSpeech2.forward is implemented.
def fastspeech2_forward(params, cfg, src_seq, src_pos, pitch_control=1.0,
                        energy_control=1.0, duration_control=1.0):
    B, T_in = src_seq.shape
    D = cfg["encoder_dim"]
    n_head, d_k, d_v = cfg["n_head"], cfg["d_k"], cfg["d_v"]

    # Pad the phoneme axis ONCE so every kernel tiles without per-call pads.
    st_enc = min(512, _round_up(T_in, 8))
    T = _round_up(T_in, st_enc)
    src_seq = jnp.pad(src_seq, ((0, 0), (0, T - T_in)))
    src_pos = jnp.pad(src_pos, ((0, 0), (0, T - T_in)))

    # ---------------- Encoder ----------------
    src_pad = (src_seq == 0)                                   # (B,T) True=pad
    non_pad_col = (~src_pad).astype(jnp.float32).reshape(B * T, 1)
    key_bias = jnp.where(src_pad, -1e9, 0.0).astype(jnp.float32)[:, None, :]
    x = (jnp.take(params["src_emb"], src_seq, axis=0)
         + jnp.take(params["pos_table"], src_pos, axis=0)).astype(jnp.bfloat16)
    for lp in params["enc_layers"]:
        x = fft_block(x, key_bias, non_pad_col, lp, n_head, d_k, d_v, st_enc)

    # ---------------- Variance adaptor ----------------
    log_dur, log_pitch, log_energy = variance_predictors(x, src_pad,
                                                         params["var_pred"])

    pitch = log_pitch * pitch_control
    energy = log_energy * energy_control
    p_idx = jnp.clip(jnp.digitize(pitch, params["pitch_bins"]),
                     0, params["pitch_emb"].shape[0] - 1)
    e_idx = jnp.clip(jnp.digitize(energy, params["energy_bins"]),
                     0, params["energy_emb"].shape[0] - 1)
    x = (x.astype(jnp.float32)
         + jnp.take(params["pitch_emb"], p_idx, axis=0)
         + jnp.take(params["energy_emb"], e_idx, axis=0)).astype(jnp.bfloat16)

    dur = jnp.clip(jnp.round((jnp.exp(log_dur) - 1.0) * duration_control), 0.0)
    dur = jnp.where(src_pad, 0.0, dur).astype(jnp.int32)

    M_out = cfg["max_mel_len"]
    st_dec = min(512, _round_up(M_out, 8))
    M = _round_up(M_out, st_dec)
    x, mel_pos = length_regulate(x, dur, M)

    # ---------------- Decoder ----------------
    mel_pad = (mel_pos == 0)
    mel_non_pad_col = (~mel_pad).astype(jnp.float32).reshape(B * M, 1)
    mel_key_bias = jnp.where(mel_pad, -1e9, 0.0).astype(jnp.float32)[:, None, :]
    x = (x.astype(jnp.float32)
         + jnp.take(params["pos_table"], mel_pos, axis=0)).astype(jnp.bfloat16)
    for lp in params["dec_layers"]:
        x = fft_block(x, mel_key_bias, mel_non_pad_col, lp, n_head, d_k, d_v,
                      st_dec)

    # ---------------- Mel linear ----------------
    mel = pallas_linear(x.reshape(B * M, D), params["mel_w"], params["mel_b"],
                        out_dtype=jnp.float32)
    mel = mel.reshape(B, M, cfg["num_mels"])[:, :M_out, :]

    return {
        "mel_predictions": mel,
        "log_duration_predictions": log_dur[:, :T_in],
        "log_pitch_predictions": log_pitch[:, :T_in],
        "log_energy_predictions": log_energy[:, :T_in],
    }


# -----------------------------------------------------------------------------
if __name__ == "__main__":
    cfg = dict(
        vocab_size=32,
        max_seq_len=64,
        encoder_dim=32,
        decoder_dim=32,
        n_enc_layers=1,
        n_dec_layers=1,
        n_head=2,
        d_k=16,
        d_v=16,
        conv_filter_size=64,
        num_mels=8,
        max_mel_len=48,
        variance_adaptor=dict(
            filter_size=32, kernel_size=3, n_bins=16,
            pitch_min=-1.0, pitch_max=1.0, energy_min=-1.0, energy_max=1.0),
    )

    key = jax.random.PRNGKey(0)
    pkey, dkey = jax.random.split(key)
    params = init_params(pkey, cfg)

    B, T = 2, 8
    lengths = jnp.array([8, 6], dtype=jnp.int32)
    ids = jnp.arange(T, dtype=jnp.int32)
    valid = ids[None, :] < lengths[:, None]
    src_seq = jnp.where(
        valid, 1 + jax.random.randint(dkey, (B, T), 0, cfg["vocab_size"] - 1), 0
    ).astype(jnp.int32)
    src_pos = jnp.where(valid, ids[None, :] + 1, 0).astype(jnp.int32)

    fwd = jax.jit(lambda p, s, sp: fastspeech2_forward(p, cfg, s, sp))
    out = fwd(params, src_seq, src_pos)
    out = jax.block_until_ready(out)

    assert out["mel_predictions"].shape == (B, cfg["max_mel_len"], cfg["num_mels"])
    assert out["log_duration_predictions"].shape == (B, T)
    assert out["log_pitch_predictions"].shape == (B, T)
    assert out["log_energy_predictions"].shape == (B, T)
    assert all(bool(jnp.isfinite(v).all()) for v in out.values())
    print("KERNEL_OK")
</pallas_src>

<mosaic_0001>
module attributes {stable_mosaic.version = 11 : i64} {
  func.func @_linear_kernel(%arg0: i32, %arg1: i32, %arg2: memref<16x32xbf16, #tpu.memory_space<vmem>>, %arg3: memref<32x64xbf16, #tpu.memory_space<vmem>>, %arg4: memref<1x64xf32, #tpu.memory_space<vmem>>, %arg5: memref<16x64xbf16, #tpu.memory_space<vmem>>) attributes {dimension_semantics = [#tpu.dimension_semantics<parallel>, #tpu.dimension_semantics<parallel>], iteration_bounds = array<i64: 1, 1>, scalar_prefetch = 0 : i64, scratch_operands = 0 : i64, tpu.core_type = #tpu.core_type<tc>, window_params = [{transform_indices = @transform_0, window_bounds = array<i64: 16, 32>}, {transform_indices = @transform_1, window_bounds = array<i64: 32, 64>}, {transform_indices = @transform_2, window_bounds = array<i64: 1, 64>}, {transform_indices = @transform_3, window_bounds = array<i64: 16, 64>}]} {
    %c0 = arith.constant 0 : index
    %c0_0 = arith.constant 0 : index
    %0 = vector.load %arg2[%c0, %c0_0] : memref<16x32xbf16, #tpu.memory_space<vmem>>, vector<16x32xbf16>
    %c0_1 = arith.constant 0 : index
    %c0_2 = arith.constant 0 : index
    %1 = vector.load %arg3[%c0_1, %c0_2] : memref<32x64xbf16, #tpu.memory_space<vmem>>, vector<32x64xbf16>
    %cst = arith.constant dense<0.000000e+00> : vector<16x64xf32>
    %2 = tpu.matmul %0, %1, %cst {dimension_numbers = #tpu.dot_dimension_numbers<[1], [0], [0], [1], [0, 0, 1, 1], [], []>} : vector<16x32xbf16>, vector<32x64xbf16>, vector<16x64xf32> -> vector<16x64xf32>
    %c0_3 = arith.constant 0 : index
    %c0_4 = arith.constant 0 : index
    %3 = vector.load %arg4[%c0_3, %c0_4] : memref<1x64xf32, #tpu.memory_space<vmem>>, vector<1x64xf32>
    %4 = vector.broadcast %3 : vector<1x64xf32> to vector<16x64xf32>
    %5 = arith.addf %2, %4 : vector<16x64xf32>
    %6 = arith.truncf %5 : vector<16x64xf32> to vector<16x64xbf16>
    %c0_5 = arith.constant 0 : index
    %c0_6 = arith.constant 0 : index
    %7 = vector.load %arg5[%c0_5, %c0_6] : memref<16x64xbf16, #tpu.memory_space<vmem>>, vector<16x64xbf16>
    tpu.vector_store %arg5[%c0_5, %c0_6], %6 {strides = array<i32>} : memref<16x64xbf16, #tpu.memory_space<vmem>>, vector<16x64xbf16>,
    return
  }
  func.func @transform_0(%arg0: i32, %arg1: i32) -> (i32, i32) {
    %c0_i32 = arith.constant 0 : i32
    %c0_i32_0 = arith.constant 0 : i32
    return %arg0, %c0_i32 : i32, i32
  }
  func.func @transform_1(%arg0: i32, %arg1: i32) -> (i32, i32) {
    %c0_i32 = arith.constant 0 : i32
    %c0_i32_0 = arith.constant 0 : i32
    return %c0_i32, %arg1 : i32, i32
  }
  func.func @transform_2(%arg0: i32, %arg1: i32) -> (i32, i32) {
    %c0_i32 = arith.constant 0 : i32
    %c0_i32_0 = arith.constant 0 : i32
    return %c0_i32, %arg1 : i32, i32
  }
  func.func @transform_3(%arg0: i32, %arg1: i32) -> (i32, i32) {
    %c0_i32 = arith.constant 0 : i32
    return %arg0, %arg1 : i32, i32
  }
}

module attributes {stable_mosaic.version = 11 : i64} {
  func.func @_linear_kernel(%arg0: i32, %arg1: i32, %arg2: memref<16x32xbf16, #tpu.memory_space<vmem>>, %arg3: memref<32x32xbf16, #tpu.memory_space<vmem>>, %arg4: memref<1x32xf32, #tpu.memory_space<vmem>>, %arg5: memref<16x32xbf16, #tpu.memory_space<vmem>>) attributes {dimension_semantics = [#tpu.dimension_semantics<parallel>, #tpu.dimension_semantics<parallel>], iteration_bounds = array<i64: 1, 1>, scalar_prefetch = 0 : i64, scratch_operands = 0 : i64, tpu.core_type = #tpu.core_type<tc>, window_params = [{transform_indices = @transform_0, window_bounds = array<i64: 16, 32>}, {transform_indices = @transform_1, window_bounds = array<i64: 32, 32>}, {transform_indices = @transform_2, window_bounds = array<i64: 1, 32>}, {transform_indices = @transform_3, window_bounds = array<i64: 16, 32>}]} {
    %c0 = arith.constant 0 : index
    %c0_0 = arith.constant 0 : index
    %0 = vector.load %arg2[%c0, %c0_0] : memref<16x32xbf16, #tpu.memory_space<vmem>>, vector<16x32xbf16>
    %c0_1 = arith.constant 0 : index
    %c0_2 = arith.constant 0 : index
    %1 = vector.load %arg3[%c0_1, %c0_2] : memref<32x32xbf16, #tpu.memory_space<vmem>>, vector<32x32xbf16>
    %cst = arith.constant dense<0.000000e+00> : vector<16x32xf32>
    %2 = tpu.matmul %0, %1, %cst {dimension_numbers = #tpu.dot_dimension_numbers<[1], [0], [0], [1], [0, 0, 1, 1], [], []>} : vector<16x32xbf16>, vector<32x32xbf16>, vector<16x32xf32> -> vector<16x32xf32>
    %c0_3 = arith.constant 0 : index
    %c0_4 = arith.constant 0 : index
    %3 = vector.load %arg4[%c0_3, %c0_4] : memref<1x32xf32, #tpu.memory_space<vmem>>, vector<1x32xf32>
    %4 = vector.broadcast %3 : vector<1x32xf32> to vector<16x32xf32>
    %5 = arith.addf %2, %4 : vector<16x32xf32>
    %6 = arith.truncf %5 : vector<16x32xf32> to vector<16x32xbf16>
    %c0_5 = arith.constant 0 : index
    %c0_6 = arith.constant 0 : index
    %7 = vector.load %arg5[%c0_5, %c0_6] : memref<16x32xbf16, #tpu.memory_space<vmem>>, vector<16x32xbf16>
    tpu.vector_store %arg5[%c0_5, %c0_6], %6 {strides = array<i32>} : memref<16x32xbf16, #tpu.memory_space<vmem>>, vector<16x32xbf16>,
    return
  }
  func.func @transform_0(%arg0: i32, %arg1: i32) -> (i32, i32) {
    %c0_i32 = arith.constant 0 : i32
    %c0_i32_0 = arith.constant 0 : i32
    return %arg0, %c0_i32 : i32, i32
  }
  func.func @transform_1(%arg0: i32, %arg1: i32) -> (i32, i32) {
    %c0_i32 = arith.constant 0 : i32
    %c0_i32_0 = arith.constant 0 : i32
    return %c0_i32, %arg1 : i32, i32
  }
  func.func @transform_2(%arg0: i32, %arg1: i32) -> (i32, i32) {
    %c0_i32 = arith.constant 0 : i32
    %c0_i32_0 = arith.constant 0 : i32
    return %c0_i32, %arg1 : i32, i32
  }
  func.func @transform_3(%arg0: i32, %arg1: i32) -> (i32, i32) {
    %c0_i32 = arith.constant 0 : i32
    return %arg0, %arg1 : i32, i32
  }
}

module attributes {stable_mosaic.version = 11 : i64} {
  func.func @_attn_kernel(%arg0: i32, %arg1: i32, %arg2: i32, %arg3: memref<1x8x32xbf16, #tpu.memory_space<vmem>>, %arg4: memref<1x8x64xbf16, #tpu.memory_space<vmem>>, %arg5: memref<1x1x8xf32, #tpu.memory_space<vmem>>, %arg6: memref<1x8x32xbf16, #tpu.memory_space<vmem>>, %arg7: memref<8x2xf32, #tpu.memory_space<vmem>>, %arg8: memref<8x2xf32, #tpu.memory_space<vmem>>, %arg9: memref<8x32xf32, #tpu.memory_space<vmem>>) attributes {dimension_semantics = [#tpu.dimension_semantics<parallel>, #tpu.dimension_semantics<parallel>, #tpu.dimension_semantics<arbitrary>], iteration_bounds = array<i64: 2, 1, 1>, scalar_prefetch = 0 : i64, scratch_operands = 3 : i64, tpu.core_type = #tpu.core_type<tc>, window_params = [{transform_indices = @transform_0, window_bounds = array<i64: 1, 8, 32>}, {transform_indices = @transform_1, window_bounds = array<i64: 1, 8, 64>}, {transform_indices = @transform_2, window_bounds = array<i64: 1, 1, 8>}, {transform_indices = @transform_3, window_bounds = array<i64: 1, 8, 32>}]} {
    %c0_i32 = arith.constant 0 : i32
    %0 = arith.cmpi eq, %arg2, %c0_i32 : i32
    %1 = arith.extui %0 : i1 to i32
    %c0_i32_0 = arith.constant 0 : i32
    %2 = arith.cmpi ne, %1, %c0_i32_0 : i32
    scf.if %2 {
      %cst_40 = arith.constant 0xFF800000 : f32
      %72 = vector.broadcast %cst_40 : f32 to vector<8x2xf32>
      %c0_41 = arith.constant 0 : index
      %c0_42 = arith.constant 0 : index
      %73 = vector.load %arg7[%c0_41, %c0_42] : memref<8x2xf32, #tpu.memory_space<vmem>>, vector<8x2xf32>
      tpu.vector_store %arg7[%c0_41, %c0_42], %72 {strides = array<i32>} : memref<8x2xf32, #tpu.memory_space<vmem>>, vector<8x2xf32>,
      %cst_43 = arith.constant 0.000000e+00 : f32
      %74 = vector.broadcast %cst_43 : f32 to vector<8x2xf32>
      %c0_44 = arith.constant 0 : index
      %c0_45 = arith.constant 0 : index
      %75 = vector.load %arg8[%c0_44, %c0_45] : memref<8x2xf32, #tpu.memory_space<vmem>>, vector<8x2xf32>
      tpu.vector_store %arg8[%c0_44, %c0_45], %74 {strides = array<i32>} : memref<8x2xf32, #tpu.memory_space<vmem>>, vector<8x2xf32>,
      %cst_46 = arith.constant 0.000000e+00 : f32
      %76 = vector.broadcast %cst_46 : f32 to vector<8x32xf32>
      %c0_47 = arith.constant 0 : index
      %c0_48 = arith.constant 0 : index
      %77 = vector.load %arg9[%c0_47, %c0_48] : memref<8x32xf32, #tpu.memory_space<vmem>>, vector<8x32xf32>
      tpu.vector_store %arg9[%c0_47, %c0_48], %76 {strides = array<i32>} : memref<8x32xf32, #tpu.memory_space<vmem>>, vector<8x32xf32>,
    } else {
    }
    %c0 = arith.constant 0 : index
    %c0_1 = arith.constant 0 : index
    %c0_2 = arith.constant 0 : index
    %3 = vector.load %arg3[%c0, %c0_1, %c0_2] : memref<1x8x32xbf16, #tpu.memory_space<vmem>>, vector<1x8x32xbf16>
    %4 = vector.shape_cast %3 : vector<1x8x32xbf16> to vector<8x32xbf16>
    %c0_3 = arith.constant 0 : index
    %c0_4 = arith.constant 0 : index
    %c0_5 = arith.constant 0 : index
    %5 = vector.load %arg4[%c0_3, %c0_4, %c0_5] : memref<1x8x64xbf16, #tpu.memory_space<vmem>>, vector<1x8x64xbf16>
    %6 = vector.shape_cast %5 : vector<1x8x64xbf16> to vector<8x64xbf16>
    %c0_6 = arith.constant 0 : index
    %c0_7 = arith.constant 0 : index
    %c0_8 = arith.constant 0 : index
    %7 = vector.load %arg5[%c0_6, %c0_7, %c0_8] : memref<1x1x8xf32, #tpu.memory_space<vmem>>, vector<1x1x8xf32>
    %8 = vector.shape_cast %7 : vector<1x1x8xf32> to vector<1x8xf32>
    %9 = vector.extract_strided_slice %4 {offsets = [0, 0], sizes = [8, 16], strides = [1, 1]} : vector<8x32xbf16> to vector<8x16xbf16>
    %10 = vector.extract_strided_slice %6 {offsets = [0, 0], sizes = [8, 16], strides = [1, 1]} : vector<8x64xbf16> to vector<8x16xbf16>
    %11 = vector.extract_strided_slice %6 {offsets = [0, 32], sizes = [8, 16], strides = [1, 1]} : vector<8x64xbf16> to vector<8x16xbf16>
    %12 = tpu.transpose %10, [1, 0] : vector<8x16xbf16> -> vector<16x8xbf16>
    %cst = arith.constant dense<0.000000e+00> : vector<8x8xf32>
    %13 = tpu.matmul %9, %12, %cst {dimension_numbers = #tpu.dot_dimension_numbers<[1], [0], [0], [1], [0, 0, 1, 1], [], []>} : vector<8x16xbf16>, vector<16x8xbf16>, vector<8x8xf32> -> vector<8x8xf32>
    %14 = vector.broadcast %8 : vector<1x8xf32> to vector<8x8xf32>
    %15 = arith.addf %13, %14 : vector<8x8xf32>
    %c0_9 = arith.constant 0 : index
    %c0_10 = arith.constant 0 : index
    %16 = vector.load %arg7[%c0_9, %c0_10] : memref<8x2xf32, #tpu.memory_space<vmem>>, vector<8x1xf32>
    %cst_11 = arith.constant dense<0xFF800000> : vector<8xf32>
    %17 = vector.multi_reduction <maximumf>, %15, %cst_11 [1] : vector<8x8xf32> to vector<8xf32>
    %18 = vector.shape_cast %17 : vector<8xf32> to vector<8x1xf32>
    %19 = arith.maximumf %16, %18 : vector<8x1xf32>
    %20 = arith.subf %16, %19 : vector<8x1xf32>
    %21 = math.exp %20 : vector<8x1xf32>
    %22 = vector.broadcast %19 : vector<8x1xf32> to vector<8x8xf32>
    %23 = arith.subf %15, %22 : vector<8x8xf32>
    %24 = math.exp %23 : vector<8x8xf32>
    %c0_12 = arith.constant 0 : index
    %c0_13 = arith.constant 0 : index
    %25 = vector.load %arg8[%c0_12, %c0_13] : memref<8x2xf32, #tpu.memory_space<vmem>>, vector<8x1xf32>
    %26 = arith.mulf %21, %25 : vector<8x1xf32>
    %cst_14 = arith.constant dense<0.000000e+00> : vector<8xf32>
    %27 = vector.multi_reduction <add>, %24, %cst_14 [1] : vector<8x8xf32> to vector<8xf32>
    %28 = vector.shape_cast %27 : vector<8xf32> to vector<8x1xf32>
    %29 = arith.addf %26, %28 : vector<8x1xf32>
    %c0_15 = arith.constant 0 : index
    %c0_16 = arith.constant 0 : index
    %30 = vector.load %arg8[%c0_15, %c0_16] : memref<8x2xf32, #tpu.memory_space<vmem>>, vector<8x1xf32>
    tpu.vector_store %arg8[%c0_15, %c0_16], %29 {strides = array<i32>} : memref<8x2xf32, #tpu.memory_space<vmem>>, vector<8x1xf32>,
    %c0_17 = arith.constant 0 : index
    %c0_18 = arith.constant 0 : index
    %31 = vector.load %arg9[%c0_17, %c0_18] : memref<8x32xf32, #tpu.memory_space<vmem>>, vector<8x16xf32>
    %32 = vector.broadcast %21 : vector<8x1xf32> to vector<8x16xf32>
    %33 = arith.mulf %32, %31 : vector<8x16xf32>
    %34 = arith.truncf %24 : vector<8x8xf32> to vector<8x8xbf16>
    %cst_19 = arith.constant dense<0.000000e+00> : vector<8x16xf32>
    %35 = tpu.matmul %34, %11, %cst_19 {dimension_numbers = #tpu.dot_dimension_numbers<[1], [0], [0], [1], [0, 0, 1, 1], [], []>} : vector<8x8xbf16>, vector<8x16xbf16>, vector<8x16xf32> -> vector<8x16xf32>
    %36 = arith.addf %33, %35 : vector<8x16xf32>
    %c0_20 = arith.constant 0 : index
    %c0_21 = arith.constant 0 : index
    %37 = vector.load %arg9[%c0_20, %c0_21] : memref<8x32xf32, #tpu.memory_space<vmem>>, vector<8x16xf32>
    tpu.vector_store %arg9[%c0_20, %c0_21], %36 {strides = array<i32>} : memref<8x32xf32, #tpu.memory_space<vmem>>, vector<8x16xf32>,
    %c0_22 = arith.constant 0 : index
    %c0_23 = arith.constant 0 : index
    %38 = vector.load %arg7[%c0_22, %c0_23] : memref<8x2xf32, #tpu.memory_space<vmem>>, vector<8x1xf32>
    tpu.vector_store %arg7[%c0_22, %c0_23], %19 {strides = array<i32>} : memref<8x2xf32, #tpu.memory_space<vmem>>, vector<8x1xf32>,
    %39 = vector.extract_strided_slice %4 {offsets = [0, 16], sizes = [8, 16], strides = [1, 1]} : vector<8x32xbf16> to vector<8x16xbf16>
    %40 = vector.extract_strided_slice %6 {offsets = [0, 16], sizes = [8, 16], strides = [1, 1]} : vector<8x64xbf16> to vector<8x16xbf16>
    %41 = vector.extract_strided_slice %6 {offsets = [0, 48], sizes = [8, 16], strides = [1, 1]} : vector<8x64xbf16> to vector<8x16xbf16>
    %42 = tpu.transpose %40, [1, 0] : vector<8x16xbf16> -> vector<16x8xbf16>
    %cst_24 = arith.constant dense<0.000000e+00> : vector<8x8xf32>
    %43 = tpu.matmul %39, %42, %cst_24 {dimension_numbers = #tpu.dot_dimension_numbers<[1], [0], [0], [1], [0, 0, 1, 1], [], []>} : vector<8x16xbf16>, vector<16x8xbf16>, vector<8x8xf32> -> vector<8x8xf32>
    %44 = vector.broadcast %8 : vector<1x8xf32> to vector<8x8xf32>
    %45 = arith.addf %43, %44 : vector<8x8xf32>
    %c0_25 = arith.constant 0 : index
    %c1 = arith.constant 1 : index
    %46 = vector.load %arg7[%c0_25, %c1] : memref<8x2xf32, #tpu.memory_space<vmem>>, vector<8x1xf32>
    %cst_26 = arith.constant dense<0xFF800000> : vector<8xf32>
    %47 = vector.multi_reduction <maximumf>, %45, %cst_26 [1] : vector<8x8xf32> to vector<8xf32>
    %48 = vector.shape_cast %47 : vector<8xf32> to vector<8x1xf32>
    %49 = arith.maximumf %46, %48 : vector<8x1xf32>
    %50 = arith.subf %46, %49 : vector<8x1xf32>
    %51 = math.exp %50 : vector<8x1xf32>
    %52 = vector.broadcast %49 : vector<8x1xf32> to vector<8x8xf32>
    %53 = arith.subf %45, %52 : vector<8x8xf32>
    %54 = math.exp %53 : vector<8x8xf32>
    %c0_27 = arith.constant 0 : index
    %c1_28 = arith.constant 1 : index
    %55 = vector.load %arg8[%c0_27, %c1_28] : memref<8x2xf32, #tpu.memory_space<vmem>>, vector<8x1xf32>
    %56 = arith.mulf %51, %55 : vector<8x1xf32>
    %cst_29 = arith.constant dense<0.000000e+00> : vector<8xf32>
    %57 = vector.multi_reduction <add>, %54, %cst_29 [1] : vector<8x8xf32> to vector<8xf32>
    %58 = vector.shape_cast %57 : vector<8xf32> to vector<8x1xf32>
    %59 = arith.addf %56, %58 : vector<8x1xf32>
    %c0_30 = arith.constant 0 : index
    %c1_31 = arith.constant 1 : index
    %60 = vector.load %arg8[%c0_30, %c1_31] : memref<8x2xf32, #tpu.memory_space<vmem>>, vector<8x1xf32>
    tpu.vector_store %arg8[%c0_30, %c1_31], %59 {strides = array<i32>} : memref<8x2xf32, #tpu.memory_space<vmem>>, vector<8x1xf32>,
    %c0_32 = arith.constant 0 : index
    %c16 = arith.constant 16 : index
    %61 = vector.load %arg9[%c0_32, %c16] : memref<8x32xf32, #tpu.memory_space<vmem>>, vector<8x16xf32>
    %62 = vector.broadcast %51 : vector<8x1xf32> to vector<8x16xf32>
    %63 = arith.mulf %62, %61 : vector<8x16xf32>
    %64 = arith.truncf %54 : vector<8x8xf32> to vector<8x8xbf16>
    %cst_33 = arith.constant dense<0.000000e+00> : vector<8x16xf32>
    %65 = tpu.matmul %64, %41, %cst_33 {dimension_numbers = #tpu.dot_dimension_numbers<[1], [0], [0], [1], [0, 0, 1, 1], [], []>} : vector<8x8xbf16>, vector<8x16xbf16>, vector<8x16xf32> -> vector<8x16xf32>
    %66 = arith.addf %63, %65 : vector<8x16xf32>
    %c0_34 = arith.constant 0 : index
    %c16_35 = arith.constant 16 : index
    %67 = vector.load %arg9[%c0_34, %c16_35] : memref<8x32xf32, #tpu.memory_space<vmem>>, vector<8x16xf32>
    tpu.vector_store %arg9[%c0_34, %c16_35], %66 {strides = array<i32>} : memref<8x32xf32, #tpu.memory_space<vmem>>, vector<8x16xf32>,
    %c0_36 = arith.constant 0 : index
    %c1_37 = arith.constant 1 : index
    %68 = vector.load %arg7[%c0_36, %c1_37] : memref<8x2xf32, #tpu.memory_space<vmem>>, vector<8x1xf32>
    tpu.vector_store %arg7[%c0_36, %c1_37], %49 {strides = array<i32>} : memref<8x2xf32, #tpu.memory_space<vmem>>, vector<8x1xf32>,
    %c0_i32_38 = arith.constant 0 : i32
    %69 = arith.cmpi eq, %arg2, %c0_i32_38 : i32
    %70 = arith.extui %69 : i1 to i32
    %c0_i32_39 = arith.constant 0 : i32
    %71 = arith.cmpi ne, %70, %c0_i32_39 : i32
    scf.if %71 {
      %c0_40 = arith.constant 0 : index
      %c0_41 = arith.constant 0 : index
      %72 = vector.load %arg8[%c0_40, %c0_41] : memref<8x2xf32, #tpu.memory_space<vmem>>, vector<8x1xf32>
      %73 = tpu.reciprocal %72 {approx = true} : vector<8x1xf32> -> vector<8x1xf32>
      %c0_42 = arith.constant 0 : index
      %c0_43 = arith.constant 0 : index
      %74 = vector.load %arg9[%c0_42, %c0_43] : memref<8x32xf32, #tpu.memory_space<vmem>>, vector<8x16xf32>
      %75 = vector.broadcast %73 : vector<8x1xf32> to vector<8x16xf32>
      %76 = arith.mulf %74, %75 : vector<8x16xf32>
      %77 = arith.truncf %76 : vector<8x16xf32> to vector<8x16xbf16>
      %c0_44 = arith.constant 0 : index
      %c0_45 = arith.constant 0 : index
      %c0_46 = arith.constant 0 : index
      %78 = vector.load %arg6[%c0_44, %c0_45, %c0_46] : memref<1x8x32xbf16, #tpu.memory_space<vmem>>, vector<1x8x16xbf16>
      %79 = vector.shape_cast %78 : vector<1x8x16xbf16> to vector<8x16xbf16>
      %80 = vector.shape_cast %77 : vector<8x16xbf16> to vector<1x8x16xbf16>
      tpu.vector_store %arg6[%c0_44, %c0_45, %c0_46], %80 {strides = array<i32>} : memref<1x8x32xbf16, #tpu.memory_space<vmem>>, vector<1x8x16xbf16>,
      %c0_47 = arith.constant 0 : index
      %c1_48 = arith.constant 1 : index
      %81 = vector.load %arg8[%c0_47, %c1_48] : memref<8x2xf32, #tpu.memory_space<vmem>>, vector<8x1xf32>
      %82 = tpu.reciprocal %81 {approx = true} : vector<8x1xf32> -> vector<8x1xf32>
      %c0_49 = arith.constant 0 : index
      %c16_50 = arith.constant 16 : index
      %83 = vector.load %arg9[%c0_49, %c16_50] : memref<8x32xf32, #tpu.memory_space<vmem>>, vector<8x16xf32>
      %84 = vector.broadcast %82 : vector<8x1xf32> to vector<8x16xf32>
      %85 = arith.mulf %83, %84 : vector<8x16xf32>
      %86 = arith.truncf %85 : vector<8x16xf32> to vector<8x16xbf16>
      %c0_51 = arith.constant 0 : index
      %c0_52 = arith.constant 0 : index
      %c16_53 = arith.constant 16 : index
      %87 = vector.load %arg6[%c0_51, %c0_52, %c16_53] : memref<1x8x32xbf16, #tpu.memory_space<vmem>>, vector<1x8x16xbf16>
      %88 = vector.shape_cast %87 : vector<1x8x16xbf16> to vector<8x16xbf16>
      %89 = vector.shape_cast %86 : vector<8x16xbf16> to vector<1x8x16xbf16>
      tpu.vector_store %arg6[%c0_51, %c0_52, %c16_53], %89 {strides = array<i32>} : memref<1x8x32xbf16, #tpu.memory_space<vmem>>, vector<1x8x16xbf16>,
    } else {
    }
    return
  }
  func.func @transform_0(%arg0: i32, %arg1: i32, %arg2: i32) -> (i32, i32, i32) {
    %c0_i32 = arith.constant 0 : i32
    %c0_i32_0 = arith.constant 0 : i32
    return %arg0, %arg1, %c0_i32 : i32, i32, i32
  }
  func.func @transform_1(%arg0: i32, %arg1: i32, %arg2: i32) -> (i32, i32, i32) {
    %c0_i32 = arith.constant 0 : i32
    %c0_i32_0 = arith.constant 0 : i32
    return %arg0, %arg2, %c0_i32 : i32, i32, i32
  }
  func.func @transform_2(%arg0: i32, %arg1: i32, %arg2: i32) -> (i32, i32, i32) {
    %c0_i32 = arith.constant 0 : i32
    %c0_i32_0 = arith.constant 0 : i32
    return %arg0, %c0_i32, %arg2 : i32, i32, i32
  }
  func.func @transform_3(%arg0: i32, %arg1: i32, %arg2: i32) -> (i32, i32, i32) {
    %c0_i32 = arith.constant 0 : i32
    %c0_i32_0 = arith.constant 0 : i32
    return %arg0, %arg1, %c0_i32 : i32, i32, i32
  }
}

module attributes {stable_mosaic.version = 11 : i64} {
  func.func @_add_ln_mask_kernel(%arg0: i32, %arg1: memref<16x32xbf16, #tpu.memory_space<vmem>>, %arg2: memref<16x32xbf16, #tpu.memory_space<vmem>>, %arg3: memref<16x1xf32, #tpu.memory_space<vmem>>, %arg4: memref<1x32xf32, #tpu.memory_space<vmem>>, %arg5: memref<1x32xf32, #tpu.memory_space<vmem>>, %arg6: memref<16x32xbf16, #tpu.memory_space<vmem>>) attributes {dimension_semantics = [#tpu.dimension_semantics<parallel>], iteration_bounds = array<i64: 1>, scalar_prefetch = 0 : i64, scratch_operands = 0 : i64, tpu.core_type = #tpu.core_type<tc>, window_params = [{transform_indices = @transform_0, window_bounds = array<i64: 16, 32>}, {transform_indices = @transform_1, window_bounds = array<i64: 16, 32>}, {transform_indices = @transform_2, window_bounds = array<i64: 16, 1>}, {pipeline_mode = #tpu.pipeline_mode<synchronous>, transform_indices = @transform_3, window_bounds = array<i64: 1, 32>}, {pipeline_mode = #tpu.pipeline_mode<synchronous>, transform_indices = @transform_4, window_bounds = array<i64: 1, 32>}, {transform_indices = @transform_5, window_bounds = array<i64: 16, 32>}]} {
    %c0 = arith.constant 0 : index
    %c0_0 = arith.constant 0 : index
    %0 = vector.load %arg1[%c0, %c0_0] : memref<16x32xbf16, #tpu.memory_space<vmem>>, vector<16x32xbf16>
    %1 = arith.extf %0 : vector<16x32xbf16> to vector<16x32xf32>
    %c0_1 = arith.constant 0 : index
    %c0_2 = arith.constant 0 : index
    %2 = vector.load %arg2[%c0_1, %c0_2] : memref<16x32xbf16, #tpu.memory_space<vmem>>, vector<16x32xbf16>
    %3 = arith.extf %2 : vector<16x32xbf16> to vector<16x32xf32>
    %4 = arith.addf %1, %3 : vector<16x32xf32>
    %cst = arith.constant dense<0.000000e+00> : vector<16xf32>
    %5 = vector.multi_reduction <add>, %4, %cst [1] : vector<16x32xf32> to vector<16xf32>
    %6 = vector.shape_cast %5 : vector<16xf32> to vector<16x1xf32>
    %cst_3 = arith.constant 3.200000e+01 : f32
    %7 = vector.broadcast %cst_3 : f32 to vector<16x1xf32>
    %8 = arith.divf %6, %7 : vector<16x1xf32>
    %9 = vector.broadcast %8 : vector<16x1xf32> to vector<16x32xf32>
    %10 = arith.subf %4, %9 : vector<16x32xf32>
    %11 = arith.mulf %10, %10 : vector<16x32xf32>
    %cst_4 = arith.constant dense<0.000000e+00> : vector<16xf32>
    %12 = vector.multi_reduction <add>, %11, %cst_4 [1] : vector<16x32xf32> to vector<16xf32>
    %13 = vector.shape_cast %12 : vector<16xf32> to vector<16x1xf32>
    %cst_5 = arith.constant 3.200000e+01 : f32
    %14 = vector.broadcast %cst_5 : f32 to vector<16x1xf32>
    %15 = arith.divf %13, %14 : vector<16x1xf32>
    %16 = vector.broadcast %8 : vector<16x1xf32> to vector<16x32xf32>
    %17 = arith.subf %4, %16 : vector<16x32xf32>
    %cst_6 = arith.constant 9.99999974E-6 : f32
    %18 = vector.broadcast %cst_6 : f32 to vector<16x1xf32>
    %19 = arith.addf %15, %18 : vector<16x1xf32>
    %20 = math.rsqrt %19 : vector<16x1xf32>
    %21 = vector.broadcast %20 : vector<16x1xf32> to vector<16x32xf32>
    %22 = arith.mulf %17, %21 : vector<16x32xf32>
    %c0_7 = arith.constant 0 : index
    %c0_8 = arith.constant 0 : index
    %23 = vector.load %arg4[%c0_7, %c0_8] : memref<1x32xf32, #tpu.memory_space<vmem>>, vector<1x32xf32>
    %24 = vector.broadcast %23 : vector<1x32xf32> to vector<16x32xf32>
    %25 = arith.mulf %22, %24 : vector<16x32xf32>
    %c0_9 = arith.constant 0 : index
    %c0_10 = arith.constant 0 : index
    %26 = vector.load %arg5[%c0_9, %c0_10] : memref<1x32xf32, #tpu.memory_space<vmem>>, vector<1x32xf32>
    %27 = vector.broadcast %26 : vector<1x32xf32> to vector<16x32xf32>
    %28 = arith.addf %25, %27 : vector<16x32xf32>
    %c0_11 = arith.constant 0 : index
    %c0_12 = arith.constant 0 : index
    %29 = vector.load %arg3[%c0_11, %c0_12] : memref<16x1xf32, #tpu.memory_space<vmem>>, vector<16x1xf32>
    %30 = vector.broadcast %29 : vector<16x1xf32> to vector<16x32xf32>
    %31 = arith.mulf %28, %30 : vector<16x32xf32>
    %32 = arith.truncf %31 : vector<16x32xf32> to vector<16x32xbf16>
    %c0_13 = arith.constant 0 : index
    %c0_14 = arith.constant 0 : index
    %33 = vector.load %arg6[%c0_13, %c0_14] : memref<16x32xbf16, #tpu.memory_space<vmem>>, vector<16x32xbf16>
    tpu.vector_store %arg6[%c0_13, %c0_14], %32 {strides = array<i32>} : memref<16x32xbf16, #tpu.memory_space<vmem>>, vector<16x32xbf16>,
    return
  }
  func.func @transform_0(%arg0: i32) -> (i32, i32) {
    %c0_i32 = arith.constant 0 : i32
    %c0_i32_0 = arith.constant 0 : i32
    return %arg0, %c0_i32 : i32, i32
  }
  func.func @transform_1(%arg0: i32) -> (i32, i32) {
    %c0_i32 = arith.constant 0 : i32
    %c0_i32_0 = arith.constant 0 : i32
    return %arg0, %c0_i32 : i32, i32
  }
  func.func @transform_2(%arg0: i32) -> (i32, i32) {
    %c0_i32 = arith.constant 0 : i32
    %c0_i32_0 = arith.constant 0 : i32
    return %arg0, %c0_i32 : i32, i32
  }
  func.func @transform_3(%arg0: i32) -> (i32, i32) {
    %c0_i32 = arith.constant 0 : i32
    %c0_i32_0 = arith.constant 0 : i32
    %c0_i32_1 = arith.constant 0 : i32
    return %c0_i32, %c0_i32_0 : i32, i32
  }
  func.func @transform_4(%arg0: i32) -> (i32, i32) {
    %c0_i32 = arith.constant 0 : i32
    %c0_i32_0 = arith.constant 0 : i32
    %c0_i32_1 = arith.constant 0 : i32
    return %c0_i32, %c0_i32_0 : i32, i32
  }
  func.func @transform_5(%arg0: i32) -> (i32, i32) {
    %c0_i32 = arith.constant 0 : i32
    %c0_i32_0 = arith.constant 0 : i32
    return %arg0, %c0_i32 : i32, i32
  }
}

module attributes {stable_mosaic.version = 11 : i64} {
  func.func @_conv1d_kernel(%arg0: i32, %arg1: memref<1x16x32xbf16, #tpu.memory_space<vmem>>, %arg2: memref<9x32x64xbf16, #tpu.memory_space<vmem>>, %arg3: memref<1x64xf32, #tpu.memory_space<vmem>>, %arg4: memref<1x8x64xbf16, #tpu.memory_space<vmem>>) attributes {dimension_semantics = [#tpu.dimension_semantics<parallel>], iteration_bounds = array<i64: 2>, scalar_prefetch = 0 : i64, scratch_operands = 0 : i64, tpu.core_type = #tpu.core_type<tc>, window_params = [{transform_indices = @transform_0, window_bounds = array<i64: 1, 16, 32>}, {pipeline_mode = #tpu.pipeline_mode<synchronous>, transform_indices = @transform_1, window_bounds = array<i64: 9, 32, 64>}, {pipeline_mode = #tpu.pipeline_mode<synchronous>, transform_indices = @transform_2, window_bounds = array<i64: 1, 64>}, {transform_indices = @transform_3, window_bounds = array<i64: 1, 8, 64>}]} {
    %c0 = arith.constant 0 : index
    %c0_0 = arith.constant 0 : index
    %c0_1 = arith.constant 0 : index
    %0 = vector.load %arg1[%c0, %c0_0, %c0_1] : memref<1x16x32xbf16, #tpu.memory_space<vmem>>, vector<1x16x32xbf16>
    %1 = vector.shape_cast %0 : vector<1x16x32xbf16> to vector<16x32xbf16>
    %c0_2 = arith.constant 0 : index
    %c0_3 = arith.constant 0 : index
    %c0_4 = arith.constant 0 : index
    %2 = vector.load %arg2[%c0_2, %c0_3, %c0_4] : memref<9x32x64xbf16, #tpu.memory_space<vmem>>, vector<9x32x64xbf16>
    %cst = arith.constant 0.000000e+00 : f32
    %3 = vector.broadcast %cst : f32 to vector<8x64xf32>
    %4 = vector.extract_strided_slice %1 {offsets = [0, 0], sizes = [8, 32], strides = [1, 1]} : vector<16x32xbf16> to vector<8x32xbf16>
    %5 = vector.extract_strided_slice %2 {offsets = [0, 0, 0], sizes = [1, 32, 64], strides = [1, 1, 1]} : vector<9x32x64xbf16> to vector<1x32x64xbf16>
    %6 = vector.shape_cast %5 : vector<1x32x64xbf16> to vector<32x64xbf16>
    %cst_5 = arith.constant dense<0.000000e+00> : vector<8x64xf32>
    %7 = tpu.matmul %4, %6, %cst_5 {dimension_numbers = #tpu.dot_dimension_numbers<[1], [0], [0], [1], [0, 0, 1, 1], [], []>} : vector<8x32xbf16>, vector<32x64xbf16>, vector<8x64xf32> -> vector<8x64xf32>
    %8 = arith.addf %3, %7 : vector<8x64xf32>
    %9 = vector.extract_strided_slice %1 {offsets = [1, 0], sizes = [8, 32], strides = [1, 1]} : vector<16x32xbf16> to vector<8x32xbf16>
    %10 = vector.extract_strided_slice %2 {offsets = [1, 0, 0], sizes = [1, 32, 64], strides = [1, 1, 1]} : vector<9x32x64xbf16> to vector<1x32x64xbf16>
    %11 = vector.shape_cast %10 : vector<1x32x64xbf16> to vector<32x64xbf16>
    %cst_6 = arith.constant dense<0.000000e+00> : vector<8x64xf32>
    %12 = tpu.matmul %9, %11, %cst_6 {dimension_numbers = #tpu.dot_dimension_numbers<[1], [0], [0], [1], [0, 0, 1, 1], [], []>} : vector<8x32xbf16>, vector<32x64xbf16>, vector<8x64xf32> -> vector<8x64xf32>
    %13 = arith.addf %8, %12 : vector<8x64xf32>
    %14 = vector.extract_strided_slice %1 {offsets = [2, 0], sizes = [8, 32], strides = [1, 1]} : vector<16x32xbf16> to vector<8x32xbf16>
    %15 = vector.extract_strided_slice %2 {offsets = [2, 0, 0], sizes = [1, 32, 64], strides = [1, 1, 1]} : vector<9x32x64xbf16> to vector<1x32x64xbf16>
    %16 = vector.shape_cast %15 : vector<1x32x64xbf16> to vector<32x64xbf16>
    %cst_7 = arith.constant dense<0.000000e+00> : vector<8x64xf32>
    %17 = tpu.matmul %14, %16, %cst_7 {dimension_numbers = #tpu.dot_dimension_numbers<[1], [0], [0], [1], [0, 0, 1, 1], [], []>} : vector<8x32xbf16>, vector<32x64xbf16>, vector<8x64xf32> -> vector<8x64xf32>
    %18 = arith.addf %13, %17 : vector<8x64xf32>
    %19 = vector.extract_strided_slice %1 {offsets = [3, 0], sizes = [8, 32], strides = [1, 1]} : vector<16x32xbf16> to vector<8x32xbf16>
    %20 = vector.extract_strided_slice %2 {offsets = [3, 0, 0], sizes = [1, 32, 64], strides = [1, 1, 1]} : vector<9x32x64xbf16> to vector<1x32x64xbf16>
    %21 = vector.shape_cast %20 : vector<1x32x64xbf16> to vector<32x64xbf16>
    %cst_8 = arith.constant dense<0.000000e+00> : vector<8x64xf32>
    %22 = tpu.matmul %19, %21, %cst_8 {dimension_numbers = #tpu.dot_dimension_numbers<[1], [0], [0], [1], [0, 0, 1, 1], [], []>} : vector<8x32xbf16>, vector<32x64xbf16>, vector<8x64xf32> -> vector<8x64xf32>
    %23 = arith.addf %18, %22 : vector<8x64xf32>
    %24 = vector.extract_strided_slice %1 {offsets = [4, 0], sizes = [8, 32], strides = [1, 1]} : vector<16x32xbf16> to vector<8x32xbf16>
    %25 = vector.extract_strided_slice %2 {offsets = [4, 0, 0], sizes = [1, 32, 64], strides = [1, 1, 1]} : vector<9x32x64xbf16> to vector<1x32x64xbf16>
    %26 = vector.shape_cast %25 : vector<1x32x64xbf16> to vector<32x64xbf16>
    %cst_9 = arith.constant dense<0.000000e+00> : vector<8x64xf32>
    %27 = tpu.matmul %24, %26, %cst_9 {dimension_numbers = #tpu.dot_dimension_numbers<[1], [0], [0], [1], [0, 0, 1, 1], [], []>} : vector<8x32xbf16>, vector<32x64xbf16>, vector<8x64xf32> -> vector<8x64xf32>
    %28 = arith.addf %23, %27 : vector<8x64xf32>
    %29 = vector.extract_strided_slice %1 {offsets = [5, 0], sizes = [8, 32], strides = [1, 1]} : vector<16x32xbf16> to vector<8x32xbf16>
    %30 = vector.extract_strided_slice %2 {offsets = [5, 0, 0], sizes = [1, 32, 64], strides = [1, 1, 1]} : vector<9x32x64xbf16> to vector<1x32x64xbf16>
    %31 = vector.shape_cast %30 : vector<1x32x64xbf16> to vector<32x64xbf16>
    %cst_10 = arith.constant dense<0.000000e+00> : vector<8x64xf32>
    %32 = tpu.matmul %29, %31, %cst_10 {dimension_numbers = #tpu.dot_dimension_numbers<[1], [0], [0], [1], [0, 0, 1, 1], [], []>} : vector<8x32xbf16>, vector<32x64xbf16>, vector<8x64xf32> -> vector<8x64xf32>
    %33 = arith.addf %28, %32 : vector<8x64xf32>
    %34 = vector.extract_strided_slice %1 {offsets = [6, 0], sizes = [8, 32], strides = [1, 1]} : vector<16x32xbf16> to vector<8x32xbf16>
    %35 = vector.extract_strided_slice %2 {offsets = [6, 0, 0], sizes = [1, 32, 64], strides = [1, 1, 1]} : vector<9x32x64xbf16> to vector<1x32x64xbf16>
    %36 = vector.shape_cast %35 : vector<1x32x64xbf16> to vector<32x64xbf16>
    %cst_11 = arith.constant dense<0.000000e+00> : vector<8x64xf32>
    %37 = tpu.matmul %34, %36, %cst_11 {dimension_numbers = #tpu.dot_dimension_numbers<[1], [0], [0], [1], [0, 0, 1, 1], [], []>} : vector<8x32xbf16>, vector<32x64xbf16>, vector<8x64xf32> -> vector<8x64xf32>
    %38 = arith.addf %33, %37 : vector<8x64xf32>
    %39 = vector.extract_strided_slice %1 {offsets = [7, 0], sizes = [8, 32], strides = [1, 1]} : vector<16x32xbf16> to vector<8x32xbf16>
    %40 = vector.extract_strided_slice %2 {offsets = [7, 0, 0], sizes = [1, 32, 64], strides = [1, 1, 1]} : vector<9x32x64xbf16> to vector<1x32x64xbf16>
    %41 = vector.shape_cast %40 : vector<1x32x64xbf16> to vector<32x64xbf16>
    %cst_12 = arith.constant dense<0.000000e+00> : vector<8x64xf32>
    %42 = tpu.matmul %39, %41, %cst_12 {dimension_numbers = #tpu.dot_dimension_numbers<[1], [0], [0], [1], [0, 0, 1, 1], [], []>} : vector<8x32xbf16>, vector<32x64xbf16>, vector<8x64xf32> -> vector<8x64xf32>
    %43 = arith.addf %38, %42 : vector<8x64xf32>
    %44 = vector.extract_strided_slice %1 {offsets = [8, 0], sizes = [8, 32], strides = [1, 1]} : vector<16x32xbf16> to vector<8x32xbf16>
    %45 = vector.extract_strided_slice %2 {offsets = [8, 0, 0], sizes = [1, 32, 64], strides = [1, 1, 1]} : vector<9x32x64xbf16> to vector<1x32x64xbf16>
    %46 = vector.shape_cast %45 : vector<1x32x64xbf16> to vector<32x64xbf16>
    %cst_13 = arith.constant dense<0.000000e+00> : vector<8x64xf32>
    %47 = tpu.matmul %44, %46, %cst_13 {dimension_numbers = #tpu.dot_dimension_numbers<[1], [0], [0], [1], [0, 0, 1, 1], [], []>} : vector<8x32xbf16>, vector<32x64xbf16>, vector<8x64xf32> -> vector<8x64xf32>
    %48 = arith.addf %43, %47 : vector<8x64xf32>
    %c0_14 = arith.constant 0 : index
    %c0_15 = arith.constant 0 : index
    %49 = vector.load %arg3[%c0_14, %c0_15] : memref<1x64xf32, #tpu.memory_space<vmem>>, vector<1x64xf32>
    %50 = vector.broadcast %49 : vector<1x64xf32> to vector<8x64xf32>
    %51 = arith.addf %48, %50 : vector<8x64xf32>
    %cst_16 = arith.constant 0.000000e+00 : f32
    %52 = vector.broadcast %cst_16 : f32 to vector<8x64xf32>
    %53 = arith.maximumf %51, %52 : vector<8x64xf32>
    %54 = arith.truncf %53 : vector<8x64xf32> to vector<8x64xbf16>
    %c0_17 = arith.constant 0 : index
    %c0_18 = arith.constant 0 : index
    %c0_19 = arith.constant 0 : index
    %55 = vector.load %arg4[%c0_17, %c0_18, %c0_19] : memref<1x8x64xbf16, #tpu.memory_space<vmem>>, vector<1x8x64xbf16>
    %56 = vector.shape_cast %55 : vector<1x8x64xbf16> to vector<8x64xbf16>
    %57 = vector.shape_cast %54 : vector<8x64xbf16> to vector<1x8x64xbf16>
    tpu.vector_store %arg4[%c0_17, %c0_18, %c0_19], %57 {strides = array<i32>} : memref<1x8x64xbf16, #tpu.memory_space<vmem>>, vector<1x8x64xbf16>,
    return
  }
  func.func @transform_0(%arg0: i32) -> (i32, i32, i32) {
    %c0_i32 = arith.constant 0 : i32
    %c0_i32_0 = arith.constant 0 : i32
    %c0_i32_1 = arith.constant 0 : i32
    return %arg0, %c0_i32, %c0_i32_0 : i32, i32, i32
  }
  func.func @transform_1(%arg0: i32) -> (i32, i32, i32) {
    %c0_i32 = arith.constant 0 : i32
    %c0_i32_0 = arith.constant 0 : i32
    %c0_i32_1 = arith.constant 0 : i32
    %c0_i32_2 = arith.constant 0 : i32
    return %c0_i32, %c0_i32_0, %c0_i32_1 : i32, i32, i32
  }
  func.func @transform_2(%arg0: i32) -> (i32, i32) {
    %c0_i32 = arith.constant 0 : i32
    %c0_i32_0 = arith.constant 0 : i32
    %c0_i32_1 = arith.constant 0 : i32
    return %c0_i32, %c0_i32_0 : i32, i32
  }
  func.func @transform_3(%arg0: i32) -> (i32, i32, i32) {
    %c0_i32 = arith.constant 0 : i32
    %c0_i32_0 = arith.constant 0 : i32
    %c0_i32_1 = arith.constant 0 : i32
    return %arg0, %c0_i32, %c0_i32_0 : i32, i32, i32
  }
}

module attributes {stable_mosaic.version = 11 : i64} {
  func.func @_linear_kernel(%arg0: i32, %arg1: i32, %arg2: memref<16x64xbf16, #tpu.memory_space<vmem>>, %arg3: memref<64x32xbf16, #tpu.memory_space<vmem>>, %arg4: memref<1x32xf32, #tpu.memory_space<vmem>>, %arg5: memref<16x32xbf16, #tpu.memory_space<vmem>>) attributes {dimension_semantics = [#tpu.dimension_semantics<parallel>, #tpu.dimension_semantics<parallel>], iteration_bounds = array<i64: 1, 1>, scalar_prefetch = 0 : i64, scratch_operands = 0 : i64, tpu.core_type = #tpu.core_type<tc>, window_params = [{transform_indices = @transform_0, window_bounds = array<i64: 16, 64>}, {transform_indices = @transform_1, window_bounds = array<i64: 64, 32>}, {transform_indices = @transform_2, window_bounds = array<i64: 1, 32>}, {transform_indices = @transform_3, window_bounds = array<i64: 16, 32>}]} {
    %c0 = arith.constant 0 : index
    %c0_0 = arith.constant 0 : index
    %0 = vector.load %arg2[%c0, %c0_0] : memref<16x64xbf16, #tpu.memory_space<vmem>>, vector<16x64xbf16>
    %c0_1 = arith.constant 0 : index
    %c0_2 = arith.constant 0 : index
    %1 = vector.load %arg3[%c0_1, %c0_2] : memref<64x32xbf16, #tpu.memory_space<vmem>>, vector<64x32xbf16>
    %cst = arith.constant dense<0.000000e+00> : vector<16x32xf32>
    %2 = tpu.matmul %0, %1, %cst {dimension_numbers = #tpu.dot_dimension_numbers<[1], [0], [0], [1], [0, 0, 1, 1], [], []>} : vector<16x64xbf16>, vector<64x32xbf16>, vector<16x32xf32> -> vector<16x32xf32>
    %c0_3 = arith.constant 0 : index
    %c0_4 = arith.constant 0 : index
    %3 = vector.load %arg4[%c0_3, %c0_4] : memref<1x32xf32, #tpu.memory_space<vmem>>, vector<1x32xf32>
    %4 = vector.broadcast %3 : vector<1x32xf32> to vector<16x32xf32>
    %5 = arith.addf %2, %4 : vector<16x32xf32>
    %6 = arith.truncf %5 : vector<16x32xf32> to vector<16x32xbf16>
    %c0_5 = arith.constant 0 : index
    %c0_6 = arith.constant 0 : index
    %7 = vector.load %arg5[%c0_5, %c0_6] : memref<16x32xbf16, #tpu.memory_space<vmem>>, vector<16x32xbf16>
    tpu.vector_store %arg5[%c0_5, %c0_6], %6 {strides = array<i32>} : memref<16x32xbf16, #tpu.memory_space<vmem>>, vector<16x32xbf16>,
    return
  }
  func.func @transform_0(%arg0: i32, %arg1: i32) -> (i32, i32) {
    %c0_i32 = arith.constant 0 : i32
    %c0_i32_0 = arith.constant 0 : i32
    return %arg0, %c0_i32 : i32, i32
  }
  func.func @transform_1(%arg0: i32, %arg1: i32) -> (i32, i32) {
    %c0_i32 = arith.constant 0 : i32
    %c0_i32_0 = arith.constant 0 : i32
    return %c0_i32, %arg1 : i32, i32
  }
  func.func @transform_2(%arg0: i32, %arg1: i32) -> (i32, i32) {
    %c0_i32 = arith.constant 0 : i32
    %c0_i32_0 = arith.constant 0 : i32
    return %c0_i32, %arg1 : i32, i32
  }
  func.func @transform_3(%arg0: i32, %arg1: i32) -> (i32, i32) {
    %c0_i32 = arith.constant 0 : i32
    return %arg0, %arg1 : i32, i32
  }
}

module attributes {stable_mosaic.version = 11 : i64} {
  func.func @_conv1d_kernel(%arg0: i32, %arg1: memref<1x10x32xbf16, #tpu.memory_space<vmem>>, %arg2: memref<3x32x96xbf16, #tpu.memory_space<vmem>>, %arg3: memref<1x96xf32, #tpu.memory_space<vmem>>, %arg4: memref<1x8x96xbf16, #tpu.memory_space<vmem>>) attributes {dimension_semantics = [#tpu.dimension_semantics<parallel>], iteration_bounds = array<i64: 2>, scalar_prefetch = 0 : i64, scratch_operands = 0 : i64, tpu.core_type = #tpu.core_type<tc>, window_params = [{transform_indices = @transform_0, window_bounds = array<i64: 1, 10, 32>}, {pipeline_mode = #tpu.pipeline_mode<synchronous>, transform_indices = @transform_1, window_bounds = array<i64: 3, 32, 96>}, {pipeline_mode = #tpu.pipeline_mode<synchronous>, transform_indices = @transform_2, window_bounds = array<i64: 1, 96>}, {transform_indices = @transform_3, window_bounds = array<i64: 1, 8, 96>}]} {
    %c0 = arith.constant 0 : index
    %c0_0 = arith.constant 0 : index
    %c0_1 = arith.constant 0 : index
    %0 = vector.load %arg1[%c0, %c0_0, %c0_1] : memref<1x10x32xbf16, #tpu.memory_space<vmem>>, vector<1x10x32xbf16>
    %1 = vector.shape_cast %0 : vector<1x10x32xbf16> to vector<10x32xbf16>
    %c0_2 = arith.constant 0 : index
    %c0_3 = arith.constant 0 : index
    %c0_4 = arith.constant 0 : index
    %2 = vector.load %arg2[%c0_2, %c0_3, %c0_4] : memref<3x32x96xbf16, #tpu.memory_space<vmem>>, vector<3x32x96xbf16>
    %cst = arith.constant 0.000000e+00 : f32
    %3 = vector.broadcast %cst : f32 to vector<8x96xf32>
    %4 = vector.extract_strided_slice %1 {offsets = [0, 0], sizes = [8, 32], strides = [1, 1]} : vector<10x32xbf16> to vector<8x32xbf16>
    %5 = vector.extract_strided_slice %2 {offsets = [0, 0, 0], sizes = [1, 32, 96], strides = [1, 1, 1]} : vector<3x32x96xbf16> to vector<1x32x96xbf16>
    %6 = vector.shape_cast %5 : vector<1x32x96xbf16> to vector<32x96xbf16>
    %cst_5 = arith.constant dense<0.000000e+00> : vector<8x96xf32>
    %7 = tpu.matmul %4, %6, %cst_5 {dimension_numbers = #tpu.dot_dimension_numbers<[1], [0], [0], [1], [0, 0, 1, 1], [], []>} : vector<8x32xbf16>, vector<32x96xbf16>, vector<8x96xf32> -> vector<8x96xf32>
    %8 = arith.addf %3, %7 : vector<8x96xf32>
    %9 = vector.extract_strided_slice %1 {offsets = [1, 0], sizes = [8, 32], strides = [1, 1]} : vector<10x32xbf16> to vector<8x32xbf16>
    %10 = vector.extract_strided_slice %2 {offsets = [1, 0, 0], sizes = [1, 32, 96], strides = [1, 1, 1]} : vector<3x32x96xbf16> to vector<1x32x96xbf16>
    %11 = vector.shape_cast %10 : vector<1x32x96xbf16> to vector<32x96xbf16>
    %cst_6 = arith.constant dense<0.000000e+00> : vector<8x96xf32>
    %12 = tpu.matmul %9, %11, %cst_6 {dimension_numbers = #tpu.dot_dimension_numbers<[1], [0], [0], [1], [0, 0, 1, 1], [], []>} : vector<8x32xbf16>, vector<32x96xbf16>, vector<8x96xf32> -> vector<8x96xf32>
    %13 = arith.addf %8, %12 : vector<8x96xf32>
    %14 = vector.extract_strided_slice %1 {offsets = [2, 0], sizes = [8, 32], strides = [1, 1]} : vector<10x32xbf16> to vector<8x32xbf16>
    %15 = vector.extract_strided_slice %2 {offsets = [2, 0, 0], sizes = [1, 32, 96], strides = [1, 1, 1]} : vector<3x32x96xbf16> to vector<1x32x96xbf16>
    %16 = vector.shape_cast %15 : vector<1x32x96xbf16> to vector<32x96xbf16>
    %cst_7 = arith.constant dense<0.000000e+00> : vector<8x96xf32>
    %17 = tpu.matmul %14, %16, %cst_7 {dimension_numbers = #tpu.dot_dimension_numbers<[1], [0], [0], [1], [0, 0, 1, 1], [], []>} : vector<8x32xbf16>, vector<32x96xbf16>, vector<8x96xf32> -> vector<8x96xf32>
    %18 = arith.addf %13, %17 : vector<8x96xf32>
    %c0_8 = arith.constant 0 : index
    %c0_9 = arith.constant 0 : index
    %19 = vector.load %arg3[%c0_8, %c0_9] : memref<1x96xf32, #tpu.memory_space<vmem>>, vector<1x96xf32>
    %20 = vector.broadcast %19 : vector<1x96xf32> to vector<8x96xf32>
    %21 = arith.addf %18, %20 : vector<8x96xf32>
    %cst_10 = arith.constant 0.000000e+00 : f32
    %22 = vector.broadcast %cst_10 : f32 to vector<8x96xf32>
    %23 = arith.maximumf %21, %22 : vector<8x96xf32>
    %24 = arith.truncf %23 : vector<8x96xf32> to vector<8x96xbf16>
    %c0_11 = arith.constant 0 : index
    %c0_12 = arith.constant 0 : index
    %c0_13 = arith.constant 0 : index
    %25 = vector.load %arg4[%c0_11, %c0_12, %c0_13] : memref<1x8x96xbf16, #tpu.memory_space<vmem>>, vector<1x8x96xbf16>
    %26 = vector.shape_cast %25 : vector<1x8x96xbf16> to vector<8x96xbf16>
    %27 = vector.shape_cast %24 : vector<8x96xbf16> to vector<1x8x96xbf16>
    tpu.vector_store %arg4[%c0_11, %c0_12, %c0_13], %27 {strides = array<i32>} : memref<1x8x96xbf16, #tpu.memory_space<vmem>>, vector<1x8x96xbf16>,
    return
  }
  func.func @transform_0(%arg0: i32) -> (i32, i32, i32) {
    %c0_i32 = arith.constant 0 : i32
    %c0_i32_0 = arith.constant 0 : i32
    %c0_i32_1 = arith.constant 0 : i32
    return %arg0, %c0_i32, %c0_i32_0 : i32, i32, i32
  }
  func.func @transform_1(%arg0: i32) -> (i32, i32, i32) {
    %c0_i32 = arith.constant 0 : i32
    %c0_i32_0 = arith.constant 0 : i32
    %c0_i32_1 = arith.constant 0 : i32
    %c0_i32_2 = arith.constant 0 : i32
    return %c0_i32, %c0_i32_0, %c0_i32_1 : i32, i32, i32
  }
  func.func @transform_2(%arg0: i32) -> (i32, i32) {
    %c0_i32 = arith.constant 0 : i32
    %c0_i32_0 = arith.constant 0 : i32
    %c0_i32_1 = arith.constant 0 : i32
    return %c0_i32, %c0_i32_0 : i32, i32
  }
  func.func @transform_3(%arg0: i32) -> (i32, i32, i32) {
    %c0_i32 = arith.constant 0 : i32
    %c0_i32_0 = arith.constant 0 : i32
    %c0_i32_1 = arith.constant 0 : i32
    return %arg0, %c0_i32, %c0_i32_0 : i32, i32, i32
  }
}

module attributes {stable_mosaic.version = 11 : i64} {
  func.func @_layernorm_kernel(%arg0: i32, %arg1: memref<16x96xbf16, #tpu.memory_space<vmem>>, %arg2: memref<1x96xf32, #tpu.memory_space<vmem>>, %arg3: memref<1x96xf32, #tpu.memory_space<vmem>>, %arg4: memref<16x96xbf16, #tpu.memory_space<vmem>>) attributes {dimension_semantics = [#tpu.dimension_semantics<parallel>], iteration_bounds = array<i64: 1>, scalar_prefetch = 0 : i64, scratch_operands = 0 : i64, tpu.core_type = #tpu.core_type<tc>, window_params = [{transform_indices = @transform_0, window_bounds = array<i64: 16, 96>}, {pipeline_mode = #tpu.pipeline_mode<synchronous>, transform_indices = @transform_1, window_bounds = array<i64: 1, 96>}, {pipeline_mode = #tpu.pipeline_mode<synchronous>, transform_indices = @transform_2, window_bounds = array<i64: 1, 96>}, {transform_indices = @transform_3, window_bounds = array<i64: 16, 96>}]} {
    %c0 = arith.constant 0 : index
    %c0_0 = arith.constant 0 : index
    %0 = vector.load %arg1[%c0, %c0_0] : memref<16x96xbf16, #tpu.memory_space<vmem>>, vector<16x96xbf16>
    %1 = arith.extf %0 : vector<16x96xbf16> to vector<16x96xf32>
    %c0_1 = arith.constant 0 : index
    %c0_2 = arith.constant 0 : index
    %2 = vector.load %arg2[%c0_1, %c0_2] : memref<1x96xf32, #tpu.memory_space<vmem>>, vector<1x96xf32>
    %c0_3 = arith.constant 0 : index
    %c0_4 = arith.constant 0 : index
    %3 = vector.load %arg3[%c0_3, %c0_4] : memref<1x96xf32, #tpu.memory_space<vmem>>, vector<1x96xf32>
    %4 = vector.extract_strided_slice %1 {offsets = [0, 0], sizes = [16, 32], strides = [1, 1]} : vector<16x96xf32> to vector<16x32xf32>
    %cst = arith.constant dense<0.000000e+00> : vector<16xf32>
    %5 = vector.multi_reduction <add>, %4, %cst [1] : vector<16x32xf32> to vector<16xf32>
    %6 = vector.shape_cast %5 : vector<16xf32> to vector<16x1xf32>
    %cst_5 = arith.constant 3.200000e+01 : f32
    %7 = vector.broadcast %cst_5 : f32 to vector<16x1xf32>
    %8 = arith.divf %6, %7 : vector<16x1xf32>
    %9 = vector.broadcast %8 : vector<16x1xf32> to vector<16x32xf32>
    %10 = arith.subf %4, %9 : vector<16x32xf32>
    %11 = arith.mulf %10, %10 : vector<16x32xf32>
    %cst_6 = arith.constant dense<0.000000e+00> : vector<16xf32>
    %12 = vector.multi_reduction <add>, %11, %cst_6 [1] : vector<16x32xf32> to vector<16xf32>
    %13 = vector.shape_cast %12 : vector<16xf32> to vector<16x1xf32>
    %cst_7 = arith.constant 3.200000e+01 : f32
    %14 = vector.broadcast %cst_7 : f32 to vector<16x1xf32>
    %15 = arith.divf %13, %14 : vector<16x1xf32>
    %16 = vector.broadcast %8 : vector<16x1xf32> to vector<16x32xf32>
    %17 = arith.subf %4, %16 : vector<16x32xf32>
    %cst_8 = arith.constant 9.99999974E-6 : f32
    %18 = vector.broadcast %cst_8 : f32 to vector<16x1xf32>
    %19 = arith.addf %15, %18 : vector<16x1xf32>
    %20 = math.rsqrt %19 : vector<16x1xf32>
    %21 = vector.broadcast %20 : vector<16x1xf32> to vector<16x32xf32>
    %22 = arith.mulf %17, %21 : vector<16x32xf32>
    %23 = vector.extract_strided_slice %2 {offsets = [0, 0], sizes = [1, 32], strides = [1, 1]} : vector<1x96xf32> to vector<1x32xf32>
    %24 = vector.broadcast %23 : vector<1x32xf32> to vector<16x32xf32>
    %25 = arith.mulf %22, %24 : vector<16x32xf32>
    %26 = vector.extract_strided_slice %3 {offsets = [0, 0], sizes = [1, 32], strides = [1, 1]} : vector<1x96xf32> to vector<1x32xf32>
    %27 = vector.broadcast %26 : vector<1x32xf32> to vector<16x32xf32>
    %28 = arith.addf %25, %27 : vector<16x32xf32>
    %29 = arith.truncf %28 : vector<16x32xf32> to vector<16x32xbf16>
    %c0_9 = arith.constant 0 : index
    %c0_10 = arith.constant 0 : index
    %30 = vector.load %arg4[%c0_9, %c0_10] : memref<16x96xbf16, #tpu.memory_space<vmem>>, vector<16x32xbf16>
    tpu.vector_store %arg4[%c0_9, %c0_10], %29 {strides = array<i32>} : memref<16x96xbf16, #tpu.memory_space<vmem>>, vector<16x32xbf16>,
    %31 = vector.extract_strided_slice %1 {offsets = [0, 32], sizes = [16, 32], strides = [1, 1]} : vector<16x96xf32> to vector<16x32xf32>
    %cst_11 = arith.constant dense<0.000000e+00> : vector<16xf32>
    %32 = vector.multi_reduction <add>, %31, %cst_11 [1] : vector<16x32xf32> to vector<16xf32>
    %33 = vector.shape_cast %32 : vector<16xf32> to vector<16x1xf32>
    %cst_12 = arith.constant 3.200000e+01 : f32
    %34 = vector.broadcast %cst_12 : f32 to vector<16x1xf32>
    %35 = arith.divf %33, %34 : vector<16x1xf32>
    %36 = vector.broadcast %35 : vector<16x1xf32> to vector<16x32xf32>
    %37 = arith.subf %31, %36 : vector<16x32xf32>
    %38 = arith.mulf %37, %37 : vector<16x32xf32>
    %cst_13 = arith.constant dense<0.000000e+00> : vector<16xf32>
    %39 = vector.multi_reduction <add>, %38, %cst_13 [1] : vector<16x32xf32> to vector<16xf32>
    %40 = vector.shape_cast %39 : vector<16xf32> to vector<16x1xf32>
    %cst_14 = arith.constant 3.200000e+01 : f32
    %41 = vector.broadcast %cst_14 : f32 to vector<16x1xf32>
    %42 = arith.divf %40, %41 : vector<16x1xf32>
    %43 = vector.broadcast %35 : vector<16x1xf32> to vector<16x32xf32>
    %44 = arith.subf %31, %43 : vector<16x32xf32>
    %cst_15 = arith.constant 9.99999974E-6 : f32
    %45 = vector.broadcast %cst_15 : f32 to vector<16x1xf32>
    %46 = arith.addf %42, %45 : vector<16x1xf32>
    %47 = math.rsqrt %46 : vector<16x1xf32>
    %48 = vector.broadcast %47 : vector<16x1xf32> to vector<16x32xf32>
    %49 = arith.mulf %44, %48 : vector<16x32xf32>
    %50 = vector.extract_strided_slice %2 {offsets = [0, 32], sizes = [1, 32], strides = [1, 1]} : vector<1x96xf32> to vector<1x32xf32>
    %51 = vector.broadcast %50 : vector<1x32xf32> to vector<16x32xf32>
    %52 = arith.mulf %49, %51 : vector<16x32xf32>
    %53 = vector.extract_strided_slice %3 {offsets = [0, 32], sizes = [1, 32], strides = [1, 1]} : vector<1x96xf32> to vector<1x32xf32>
    %54 = vector.broadcast %53 : vector<1x32xf32> to vector<16x32xf32>
    %55 = arith.addf %52, %54 : vector<16x32xf32>
    %56 = arith.truncf %55 : vector<16x32xf32> to vector<16x32xbf16>
    %c0_16 = arith.constant 0 : index
    %c32 = arith.constant 32 : index
    %57 = vector.load %arg4[%c0_16, %c32] : memref<16x96xbf16, #tpu.memory_space<vmem>>, vector<16x32xbf16>
    tpu.vector_store %arg4[%c0_16, %c32], %56 {strides = array<i32>} : memref<16x96xbf16, #tpu.memory_space<vmem>>, vector<16x32xbf16>,
    %58 = vector.extract_strided_slice %1 {offsets = [0, 64], sizes = [16, 32], strides = [1, 1]} : vector<16x96xf32> to vector<16x32xf32>
    %cst_17 = arith.constant dense<0.000000e+00> : vector<16xf32>
    %59 = vector.multi_reduction <add>, %58, %cst_17 [1] : vector<16x32xf32> to vector<16xf32>
    %60 = vector.shape_cast %59 : vector<16xf32> to vector<16x1xf32>
    %cst_18 = arith.constant 3.200000e+01 : f32
    %61 = vector.broadcast %cst_18 : f32 to vector<16x1xf32>
    %62 = arith.divf %60, %61 : vector<16x1xf32>
    %63 = vector.broadcast %62 : vector<16x1xf32> to vector<16x32xf32>
    %64 = arith.subf %58, %63 : vector<16x32xf32>
    %65 = arith.mulf %64, %64 : vector<16x32xf32>
    %cst_19 = arith.constant dense<0.000000e+00> : vector<16xf32>
    %66 = vector.multi_reduction <add>, %65, %cst_19 [1] : vector<16x32xf32> to vector<16xf32>
    %67 = vector.shape_cast %66 : vector<16xf32> to vector<16x1xf32>
    %cst_20 = arith.constant 3.200000e+01 : f32
    %68 = vector.broadcast %cst_20 : f32 to vector<16x1xf32>
    %69 = arith.divf %67, %68 : vector<16x1xf32>
    %70 = vector.broadcast %62 : vector<16x1xf32> to vector<16x32xf32>
    %71 = arith.subf %58, %70 : vector<16x32xf32>
    %cst_21 = arith.constant 9.99999974E-6 : f32
    %72 = vector.broadcast %cst_21 : f32 to vector<16x1xf32>
    %73 = arith.addf %69, %72 : vector<16x1xf32>
    %74 = math.rsqrt %73 : vector<16x1xf32>
    %75 = vector.broadcast %74 : vector<16x1xf32> to vector<16x32xf32>
    %76 = arith.mulf %71, %75 : vector<16x32xf32>
    %77 = vector.extract_strided_slice %2 {offsets = [0, 64], sizes = [1, 32], strides = [1, 1]} : vector<1x96xf32> to vector<1x32xf32>
    %78 = vector.broadcast %77 : vector<1x32xf32> to vector<16x32xf32>
    %79 = arith.mulf %76, %78 : vector<16x32xf32>
    %80 = vector.extract_strided_slice %3 {offsets = [0, 64], sizes = [1, 32], strides = [1, 1]} : vector<1x96xf32> to vector<1x32xf32>
    %81 = vector.broadcast %80 : vector<1x32xf32> to vector<16x32xf32>
    %82 = arith.addf %79, %81 : vector<16x32xf32>
    %83 = arith.truncf %82 : vector<16x32xf32> to vector<16x32xbf16>
    %c0_22 = arith.constant 0 : index
    %c64 = arith.constant 64 : index
    %84 = vector.load %arg4[%c0_22, %c64] : memref<16x96xbf16, #tpu.memory_space<vmem>>, vector<16x32xbf16>
    tpu.vector_store %arg4[%c0_22, %c64], %83 {strides = array<i32>} : memref<16x96xbf16, #tpu.memory_space<vmem>>, vector<16x32xbf16>,
    return
  }
  func.func @transform_0(%arg0: i32) -> (i32, i32) {
    %c0_i32 = arith.constant 0 : i32
    %c0_i32_0 = arith.constant 0 : i32
    return %arg0, %c0_i32 : i32, i32
  }
  func.func @transform_1(%arg0: i32) -> (i32, i32) {
    %c0_i32 = arith.constant 0 : i32
    %c0_i32_0 = arith.constant 0 : i32
    %c0_i32_1 = arith.constant 0 : i32
    return %c0_i32, %c0_i32_0 : i32, i32
  }
  func.func @transform_2(%arg0: i32) -> (i32, i32) {
    %c0_i32 = arith.constant 0 : i32
    %c0_i32_0 = arith.constant 0 : i32
    %c0_i32_1 = arith.constant 0 : i32
    return %c0_i32, %c0_i32_0 : i32, i32
  }
  func.func @transform_3(%arg0: i32) -> (i32, i32) {
    %c0_i32 = arith.constant 0 : i32
    %c0_i32_0 = arith.constant 0 : i32
    return %arg0, %c0_i32 : i32, i32
  }
}

module attributes {stable_mosaic.version = 11 : i64} {
  func.func @_conv1d_kernel(%arg0: i32, %arg1: memref<1x10x96xbf16, #tpu.memory_space<vmem>>, %arg2: memref<3x96x96xbf16, #tpu.memory_space<vmem>>, %arg3: memref<1x96xf32, #tpu.memory_space<vmem>>, %arg4: memref<1x8x96xbf16, #tpu.memory_space<vmem>>) attributes {dimension_semantics = [#tpu.dimension_semantics<parallel>], iteration_bounds = array<i64: 2>, scalar_prefetch = 0 : i64, scratch_operands = 0 : i64, tpu.core_type = #tpu.core_type<tc>, window_params = [{transform_indices = @transform_0, window_bounds = array<i64: 1, 10, 96>}, {pipeline_mode = #tpu.pipeline_mode<synchronous>, transform_indices = @transform_1, window_bounds = array<i64: 3, 96, 96>}, {pipeline_mode = #tpu.pipeline_mode<synchronous>, transform_indices = @transform_2, window_bounds = array<i64: 1, 96>}, {transform_indices = @transform_3, window_bounds = array<i64: 1, 8, 96>}]} {
    %c0 = arith.constant 0 : index
    %c0_0 = arith.constant 0 : index
    %c0_1 = arith.constant 0 : index
    %0 = vector.load %arg1[%c0, %c0_0, %c0_1] : memref<1x10x96xbf16, #tpu.memory_space<vmem>>, vector<1x10x96xbf16>
    %1 = vector.shape_cast %0 : vector<1x10x96xbf16> to vector<10x96xbf16>
    %c0_2 = arith.constant 0 : index
    %c0_3 = arith.constant 0 : index
    %c0_4 = arith.constant 0 : index
    %2 = vector.load %arg2[%c0_2, %c0_3, %c0_4] : memref<3x96x96xbf16, #tpu.memory_space<vmem>>, vector<3x96x96xbf16>
    %cst = arith.constant 0.000000e+00 : f32
    %3 = vector.broadcast %cst : f32 to vector<8x96xf32>
    %4 = vector.extract_strided_slice %1 {offsets = [0, 0], sizes = [8, 96], strides = [1, 1]} : vector<10x96xbf16> to vector<8x96xbf16>
    %5 = vector.extract_strided_slice %2 {offsets = [0, 0, 0], sizes = [1, 96, 96], strides = [1, 1, 1]} : vector<3x96x96xbf16> to vector<1x96x96xbf16>
    %6 = vector.shape_cast %5 : vector<1x96x96xbf16> to vector<96x96xbf16>
    %cst_5 = arith.constant dense<0.000000e+00> : vector<8x96xf32>
    %7 = tpu.matmul %4, %6, %cst_5 {dimension_numbers = #tpu.dot_dimension_numbers<[1], [0], [0], [1], [0, 0, 1, 1], [], []>} : vector<8x96xbf16>, vector<96x96xbf16>, vector<8x96xf32> -> vector<8x96xf32>
    %8 = arith.addf %3, %7 : vector<8x96xf32>
    %9 = vector.extract_strided_slice %1 {offsets = [1, 0], sizes = [8, 96], strides = [1, 1]} : vector<10x96xbf16> to vector<8x96xbf16>
    %10 = vector.extract_strided_slice %2 {offsets = [1, 0, 0], sizes = [1, 96, 96], strides = [1, 1, 1]} : vector<3x96x96xbf16> to vector<1x96x96xbf16>
    %11 = vector.shape_cast %10 : vector<1x96x96xbf16> to vector<96x96xbf16>
    %cst_6 = arith.constant dense<0.000000e+00> : vector<8x96xf32>
    %12 = tpu.matmul %9, %11, %cst_6 {dimension_numbers = #tpu.dot_dimension_numbers<[1], [0], [0], [1], [0, 0, 1, 1], [], []>} : vector<8x96xbf16>, vector<96x96xbf16>, vector<8x96xf32> -> vector<8x96xf32>
    %13 = arith.addf %8, %12 : vector<8x96xf32>
    %14 = vector.extract_strided_slice %1 {offsets = [2, 0], sizes = [8, 96], strides = [1, 1]} : vector<10x96xbf16> to vector<8x96xbf16>
    %15 = vector.extract_strided_slice %2 {offsets = [2, 0, 0], sizes = [1, 96, 96], strides = [1, 1, 1]} : vector<3x96x96xbf16> to vector<1x96x96xbf16>
    %16 = vector.shape_cast %15 : vector<1x96x96xbf16> to vector<96x96xbf16>
    %cst_7 = arith.constant dense<0.000000e+00> : vector<8x96xf32>
    %17 = tpu.matmul %14, %16, %cst_7 {dimension_numbers = #tpu.dot_dimension_numbers<[1], [0], [0], [1], [0, 0, 1, 1], [], []>} : vector<8x96xbf16>, vector<96x96xbf16>, vector<8x96xf32> -> vector<8x96xf32>
    %18 = arith.addf %13, %17 : vector<8x96xf32>
    %c0_8 = arith.constant 0 : index
    %c0_9 = arith.constant 0 : index
    %19 = vector.load %arg3[%c0_8, %c0_9] : memref<1x96xf32, #tpu.memory_space<vmem>>, vector<1x96xf32>
    %20 = vector.broadcast %19 : vector<1x96xf32> to vector<8x96xf32>
    %21 = arith.addf %18, %20 : vector<8x96xf32>
    %cst_10 = arith.constant 0.000000e+00 : f32
    %22 = vector.broadcast %cst_10 : f32 to vector<8x96xf32>
    %23 = arith.maximumf %21, %22 : vector<8x96xf32>
    %24 = arith.truncf %23 : vector<8x96xf32> to vector<8x96xbf16>
    %c0_11 = arith.constant 0 : index
    %c0_12 = arith.constant 0 : index
    %c0_13 = arith.constant 0 : index
    %25 = vector.load %arg4[%c0_11, %c0_12, %c0_13] : memref<1x8x96xbf16, #tpu.memory_space<vmem>>, vector<1x8x96xbf16>
    %26 = vector.shape_cast %25 : vector<1x8x96xbf16> to vector<8x96xbf16>
    %27 = vector.shape_cast %24 : vector<8x96xbf16> to vector<1x8x96xbf16>
    tpu.vector_store %arg4[%c0_11, %c0_12, %c0_13], %27 {strides = array<i32>} : memref<1x8x96xbf16, #tpu.memory_space<vmem>>, vector<1x8x96xbf16>,
    return
  }
  func.func @transform_0(%arg0: i32) -> (i32, i32, i32) {
    %c0_i32 = arith.constant 0 : i32
    %c0_i32_0 = arith.constant 0 : i32
    %c0_i32_1 = arith.constant 0 : i32
    return %arg0, %c0_i32, %c0_i32_0 : i32, i32, i32
  }
  func.func @transform_1(%arg0: i32) -> (i32, i32, i32) {
    %c0_i32 = arith.constant 0 : i32
    %c0_i32_0 = arith.constant 0 : i32
    %c0_i32_1 = arith.constant 0 : i32
    %c0_i32_2 = arith.constant 0 : i32
    return %c0_i32, %c0_i32_0, %c0_i32_1 : i32, i32, i32
  }
  func.func @transform_2(%arg0: i32) -> (i32, i32) {
    %c0_i32 = arith.constant 0 : i32
    %c0_i32_0 = arith.constant 0 : i32
    %c0_i32_1 = arith.constant 0 : i32
    return %c0_i32, %c0_i32_0 : i32, i32
  }
  func.func @transform_3(%arg0: i32) -> (i32, i32, i32) {
    %c0_i32 = arith.constant 0 : i32
    %c0_i32_0 = arith.constant 0 : i32
    %c0_i32_1 = arith.constant 0 : i32
    return %arg0, %c0_i32, %c0_i32_0 : i32, i32, i32
  }
}

module attributes {stable_mosaic.version = 11 : i64} {
  func.func @_linear_kernel(%arg0: i32, %arg1: i32, %arg2: memref<16x96xbf16, #tpu.memory_space<vmem>>, %arg3: memref<96x3xbf16, #tpu.memory_space<vmem>>, %arg4: memref<1x3xf32, #tpu.memory_space<vmem>>, %arg5: memref<16x3xf32, #tpu.memory_space<vmem>>) attributes {dimension_semantics = [#tpu.dimension_semantics<parallel>, #tpu.dimension_semantics<parallel>], iteration_bounds = array<i64: 1, 1>, scalar_prefetch = 0 : i64, scratch_operands = 0 : i64, tpu.core_type = #tpu.core_type<tc>, window_params = [{transform_indices = @transform_0, window_bounds = array<i64: 16, 96>}, {transform_indices = @transform_1, window_bounds = array<i64: 96, 3>}, {transform_indices = @transform_2, window_bounds = array<i64: 1, 3>}, {transform_indices = @transform_3, window_bounds = array<i64: 16, 3>}]} {
    %c0 = arith.constant 0 : index
    %c0_0 = arith.constant 0 : index
    %0 = vector.load %arg2[%c0, %c0_0] : memref<16x96xbf16, #tpu.memory_space<vmem>>, vector<16x96xbf16>
    %c0_1 = arith.constant 0 : index
    %c0_2 = arith.constant 0 : index
    %1 = vector.load %arg3[%c0_1, %c0_2] : memref<96x3xbf16, #tpu.memory_space<vmem>>, vector<96x3xbf16>
    %cst = arith.constant dense<0.000000e+00> : vector<16x3xf32>
    %2 = tpu.matmul %0, %1, %cst {dimension_numbers = #tpu.dot_dimension_numbers<[1], [0], [0], [1], [0, 0, 1, 1], [], []>} : vector<16x96xbf16>, vector<96x3xbf16>, vector<16x3xf32> -> vector<16x3xf32>
    %c0_3 = arith.constant 0 : index
    %c0_4 = arith.constant 0 : index
    %3 = vector.load %arg4[%c0_3, %c0_4] : memref<1x3xf32, #tpu.memory_space<vmem>>, vector<1x3xf32>
    %4 = vector.broadcast %3 : vector<1x3xf32> to vector<16x3xf32>
    %5 = arith.addf %2, %4 : vector<16x3xf32>
    %c0_5 = arith.constant 0 : index
    %c0_6 = arith.constant 0 : index
    %6 = vector.load %arg5[%c0_5, %c0_6] : memref<16x3xf32, #tpu.memory_space<vmem>>, vector<16x3xf32>
    tpu.vector_store %arg5[%c0_5, %c0_6], %5 {strides = array<i32>} : memref<16x3xf32, #tpu.memory_space<vmem>>, vector<16x3xf32>,
    return
  }
  func.func @transform_0(%arg0: i32, %arg1: i32) -> (i32, i32) {
    %c0_i32 = arith.constant 0 : i32
    %c0_i32_0 = arith.constant 0 : i32
    return %arg0, %c0_i32 : i32, i32
  }
  func.func @transform_1(%arg0: i32, %arg1: i32) -> (i32, i32) {
    %c0_i32 = arith.constant 0 : i32
    %c0_i32_0 = arith.constant 0 : i32
    return %c0_i32, %arg1 : i32, i32
  }
  func.func @transform_2(%arg0: i32, %arg1: i32) -> (i32, i32) {
    %c0_i32 = arith.constant 0 : i32
    %c0_i32_0 = arith.constant 0 : i32
    return %c0_i32, %arg1 : i32, i32
  }
  func.func @transform_3(%arg0: i32, %arg1: i32) -> (i32, i32) {
    %c0_i32 = arith.constant 0 : i32
    return %arg0, %arg1 : i32, i32
  }
}

module attributes {stable_mosaic.version = 11 : i64} {
  func.func @_linear_kernel(%arg0: i32, %arg1: i32, %arg2: memref<96x32xbf16, #tpu.memory_space<vmem>>, %arg3: memref<32x32xbf16, #tpu.memory_space<vmem>>, %arg4: memref<1x32xf32, #tpu.memory_space<vmem>>, %arg5: memref<96x32xbf16, #tpu.memory_space<vmem>>) attributes {dimension_semantics = [#tpu.dimension_semantics<parallel>, #tpu.dimension_semantics<parallel>], iteration_bounds = array<i64: 1, 1>, scalar_prefetch = 0 : i64, scratch_operands = 0 : i64, tpu.core_type = #tpu.core_type<tc>, window_params = [{transform_indices = @transform_0, window_bounds = array<i64: 96, 32>}, {transform_indices = @transform_1, window_bounds = array<i64: 32, 32>}, {transform_indices = @transform_2, window_bounds = array<i64: 1, 32>}, {transform_indices = @transform_3, window_bounds = array<i64: 96, 32>}]} {
    %c0 = arith.constant 0 : index
    %c0_0 = arith.constant 0 : index
    %0 = vector.load %arg2[%c0, %c0_0] : memref<96x32xbf16, #tpu.memory_space<vmem>>, vector<96x32xbf16>
    %c0_1 = arith.constant 0 : index
    %c0_2 = arith.constant 0 : index
    %1 = vector.load %arg3[%c0_1, %c0_2] : memref<32x32xbf16, #tpu.memory_space<vmem>>, vector<32x32xbf16>
    %cst = arith.constant dense<0.000000e+00> : vector<96x32xf32>
    %2 = tpu.matmul %0, %1, %cst {dimension_numbers = #tpu.dot_dimension_numbers<[1], [0], [0], [1], [0, 0, 1, 1], [], []>} : vector<96x32xbf16>, vector<32x32xbf16>, vector<96x32xf32> -> vector<96x32xf32>
    %c0_3 = arith.constant 0 : index
    %c0_4 = arith.constant 0 : index
    %3 = vector.load %arg4[%c0_3, %c0_4] : memref<1x32xf32, #tpu.memory_space<vmem>>, vector<1x32xf32>
    %4 = vector.broadcast %3 : vector<1x32xf32> to vector<96x32xf32>
    %5 = arith.addf %2, %4 : vector<96x32xf32>
    %6 = arith.truncf %5 : vector<96x32xf32> to vector<96x32xbf16>
    %c0_5 = arith.constant 0 : index
    %c0_6 = arith.constant 0 : index
    %7 = vector.load %arg5[%c0_5, %c0_6] : memref<96x32xbf16, #tpu.memory_space<vmem>>, vector<96x32xbf16>
    tpu.vector_store %arg5[%c0_5, %c0_6], %6 {strides = array<i32>} : memref<96x32xbf16, #tpu.memory_space<vmem>>, vector<96x32xbf16>,
    return
  }
  func.func @transform_0(%arg0: i32, %arg1: i32) -> (i32, i32) {
    %c0_i32 = arith.constant 0 : i32
    %c0_i32_0 = arith.constant 0 : i32
    return %arg0, %c0_i32 : i32, i32
  }
  func.func @transform_1(%arg0: i32, %arg1: i32) -> (i32, i32) {
    %c0_i32 = arith.constant 0 : i32
    %c0_i32_0 = arith.constant 0 : i32
    return %c0_i32, %arg1 : i32, i32
  }
  func.func @transform_2(%arg0: i32, %arg1: i32) -> (i32, i32) {
    %c0_i32 = arith.constant 0 : i32
    %c0_i32_0 = arith.constant 0 : i32
    return %c0_i32, %arg1 : i32, i32
  }
  func.func @transform_3(%arg0: i32, %arg1: i32) -> (i32, i32) {
    %c0_i32 = arith.constant 0 : i32
    return %arg0, %arg1 : i32, i32
  }
}

module attributes {stable_mosaic.version = 11 : i64} {
  func.func @_linear_kernel(%arg0: i32, %arg1: i32, %arg2: memref<96x32xbf16, #tpu.memory_space<vmem>>, %arg3: memref<32x64xbf16, #tpu.memory_space<vmem>>, %arg4: memref<1x64xf32, #tpu.memory_space<vmem>>, %arg5: memref<96x64xbf16, #tpu.memory_space<vmem>>) attributes {dimension_semantics = [#tpu.dimension_semantics<parallel>, #tpu.dimension_semantics<parallel>], iteration_bounds = array<i64: 1, 1>, scalar_prefetch = 0 : i64, scratch_operands = 0 : i64, tpu.core_type = #tpu.core_type<tc>, window_params = [{transform_indices = @transform_0, window_bounds = array<i64: 96, 32>}, {transform_indices = @transform_1, window_bounds = array<i64: 32, 64>}, {transform_indices = @transform_2, window_bounds = array<i64: 1, 64>}, {transform_indices = @transform_3, window_bounds = array<i64: 96, 64>}]} {
    %c0 = arith.constant 0 : index
    %c0_0 = arith.constant 0 : index
    %0 = vector.load %arg2[%c0, %c0_0] : memref<96x32xbf16, #tpu.memory_space<vmem>>, vector<96x32xbf16>
    %c0_1 = arith.constant 0 : index
    %c0_2 = arith.constant 0 : index
    %1 = vector.load %arg3[%c0_1, %c0_2] : memref<32x64xbf16, #tpu.memory_space<vmem>>, vector<32x64xbf16>
    %cst = arith.constant dense<0.000000e+00> : vector<96x64xf32>
    %2 = tpu.matmul %0, %1, %cst {dimension_numbers = #tpu.dot_dimension_numbers<[1], [0], [0], [1], [0, 0, 1, 1], [], []>} : vector<96x32xbf16>, vector<32x64xbf16>, vector<96x64xf32> -> vector<96x64xf32>
    %c0_3 = arith.constant 0 : index
    %c0_4 = arith.constant 0 : index
    %3 = vector.load %arg4[%c0_3, %c0_4] : memref<1x64xf32, #tpu.memory_space<vmem>>, vector<1x64xf32>
    %4 = vector.broadcast %3 : vector<1x64xf32> to vector<96x64xf32>
    %5 = arith.addf %2, %4 : vector<96x64xf32>
    %6 = arith.truncf %5 : vector<96x64xf32> to vector<96x64xbf16>
    %c0_5 = arith.constant 0 : index
    %c0_6 = arith.constant 0 : index
    %7 = vector.load %arg5[%c0_5, %c0_6] : memref<96x64xbf16, #tpu.memory_space<vmem>>, vector<96x64xbf16>
    tpu.vector_store %arg5[%c0_5, %c0_6], %6 {strides = array<i32>} : memref<96x64xbf16, #tpu.memory_space<vmem>>, vector<96x64xbf16>,
    return
  }
  func.func @transform_0(%arg0: i32, %arg1: i32) -> (i32, i32) {
    %c0_i32 = arith.constant 0 : i32
    %c0_i32_0 = arith.constant 0 : i32
    return %arg0, %c0_i32 : i32, i32
  }
  func.func @transform_1(%arg0: i32, %arg1: i32) -> (i32, i32) {
    %c0_i32 = arith.constant 0 : i32
    %c0_i32_0 = arith.constant 0 : i32
    return %c0_i32, %arg1 : i32, i32
  }
  func.func @transform_2(%arg0: i32, %arg1: i32) -> (i32, i32) {
    %c0_i32 = arith.constant 0 : i32
    %c0_i32_0 = arith.constant 0 : i32
    return %c0_i32, %arg1 : i32, i32
  }
  func.func @transform_3(%arg0: i32, %arg1: i32) -> (i32, i32) {
    %c0_i32 = arith.constant 0 : i32
    return %arg0, %arg1 : i32, i32
  }
}

module attributes {stable_mosaic.version = 11 : i64} {
  func.func @_attn_kernel(%arg0: i32, %arg1: i32, %arg2: i32, %arg3: memref<1x48x32xbf16, #tpu.memory_space<vmem>>, %arg4: memref<1x48x64xbf16, #tpu.memory_space<vmem>>, %arg5: memref<1x1x48xf32, #tpu.memory_space<vmem>>, %arg6: memref<1x48x32xbf16, #tpu.memory_space<vmem>>, %arg7: memref<48x2xf32, #tpu.memory_space<vmem>>, %arg8: memref<48x2xf32, #tpu.memory_space<vmem>>, %arg9: memref<48x32xf32, #tpu.memory_space<vmem>>) attributes {dimension_semantics = [#tpu.dimension_semantics<parallel>, #tpu.dimension_semantics<parallel>, #tpu.dimension_semantics<arbitrary>], iteration_bounds = array<i64: 2, 1, 1>, scalar_prefetch = 0 : i64, scratch_operands = 3 : i64, tpu.core_type = #tpu.core_type<tc>, window_params = [{transform_indices = @transform_0, window_bounds = array<i64: 1, 48, 32>}, {transform_indices = @transform_1, window_bounds = array<i64: 1, 48, 64>}, {transform_indices = @transform_2, window_bounds = array<i64: 1, 1, 48>}, {transform_indices = @transform_3, window_bounds = array<i64: 1, 48, 32>}]} {
    %c0_i32 = arith.constant 0 : i32
    %0 = arith.cmpi eq, %arg2, %c0_i32 : i32
    %1 = arith.extui %0 : i1 to i32
    %c0_i32_0 = arith.constant 0 : i32
    %2 = arith.cmpi ne, %1, %c0_i32_0 : i32
    scf.if %2 {
      %cst_40 = arith.constant 0xFF800000 : f32
      %72 = vector.broadcast %cst_40 : f32 to vector<48x2xf32>
      %c0_41 = arith.constant 0 : index
      %c0_42 = arith.constant 0 : index
      %73 = vector.load %arg7[%c0_41, %c0_42] : memref<48x2xf32, #tpu.memory_space<vmem>>, vector<48x2xf32>
      tpu.vector_store %arg7[%c0_41, %c0_42], %72 {strides = array<i32>} : memref<48x2xf32, #tpu.memory_space<vmem>>, vector<48x2xf32>,
      %cst_43 = arith.constant 0.000000e+00 : f32
      %74 = vector.broadcast %cst_43 : f32 to vector<48x2xf32>
      %c0_44 = arith.constant 0 : index
      %c0_45 = arith.constant 0 : index
      %75 = vector.load %arg8[%c0_44, %c0_45] : memref<48x2xf32, #tpu.memory_space<vmem>>, vector<48x2xf32>
      tpu.vector_store %arg8[%c0_44, %c0_45], %74 {strides = array<i32>} : memref<48x2xf32, #tpu.memory_space<vmem>>, vector<48x2xf32>,
      %cst_46 = arith.constant 0.000000e+00 : f32
      %76 = vector.broadcast %cst_46 : f32 to vector<48x32xf32>
      %c0_47 = arith.constant 0 : index
      %c0_48 = arith.constant 0 : index
      %77 = vector.load %arg9[%c0_47, %c0_48] : memref<48x32xf32, #tpu.memory_space<vmem>>, vector<48x32xf32>
      tpu.vector_store %arg9[%c0_47, %c0_48], %76 {strides = array<i32>} : memref<48x32xf32, #tpu.memory_space<vmem>>, vector<48x32xf32>,
    } else {
    }
    %c0 = arith.constant 0 : index
    %c0_1 = arith.constant 0 : index
    %c0_2 = arith.constant 0 : index
    %3 = vector.load %arg3[%c0, %c0_1, %c0_2] : memref<1x48x32xbf16, #tpu.memory_space<vmem>>, vector<1x48x32xbf16>
    %4 = vector.shape_cast %3 : vector<1x48x32xbf16> to vector<48x32xbf16>
    %c0_3 = arith.constant 0 : index
    %c0_4 = arith.constant 0 : index
    %c0_5 = arith.constant 0 : index
    %5 = vector.load %arg4[%c0_3, %c0_4, %c0_5] : memref<1x48x64xbf16, #tpu.memory_space<vmem>>, vector<1x48x64xbf16>
    %6 = vector.shape_cast %5 : vector<1x48x64xbf16> to vector<48x64xbf16>
    %c0_6 = arith.constant 0 : index
    %c0_7 = arith.constant 0 : index
    %c0_8 = arith.constant 0 : index
    %7 = vector.load %arg5[%c0_6, %c0_7, %c0_8] : memref<1x1x48xf32, #tpu.memory_space<vmem>>, vector<1x1x48xf32>
    %8 = vector.shape_cast %7 : vector<1x1x48xf32> to vector<1x48xf32>
    %9 = vector.extract_strided_slice %4 {offsets = [0, 0], sizes = [48, 16], strides = [1, 1]} : vector<48x32xbf16> to vector<48x16xbf16>
    %10 = vector.extract_strided_slice %6 {offsets = [0, 0], sizes = [48, 16], strides = [1, 1]} : vector<48x64xbf16> to vector<48x16xbf16>
    %11 = vector.extract_strided_slice %6 {offsets = [0, 32], sizes = [48, 16], strides = [1, 1]} : vector<48x64xbf16> to vector<48x16xbf16>
    %12 = tpu.transpose %10, [1, 0] : vector<48x16xbf16> -> vector<16x48xbf16>
    %cst = arith.constant dense<0.000000e+00> : vector<48x48xf32>
    %13 = tpu.matmul %9, %12, %cst {dimension_numbers = #tpu.dot_dimension_numbers<[1], [0], [0], [1], [0, 0, 1, 1], [], []>} : vector<48x16xbf16>, vector<16x48xbf16>, vector<48x48xf32> -> vector<48x48xf32>
    %14 = vector.broadcast %8 : vector<1x48xf32> to vector<48x48xf32>
    %15 = arith.addf %13, %14 : vector<48x48xf32>
    %c0_9 = arith.constant 0 : index
    %c0_10 = arith.constant 0 : index
    %16 = vector.load %arg7[%c0_9, %c0_10] : memref<48x2xf32, #tpu.memory_space<vmem>>, vector<48x1xf32>
    %cst_11 = arith.constant dense<0xFF800000> : vector<48xf32>
    %17 = vector.multi_reduction <maximumf>, %15, %cst_11 [1] : vector<48x48xf32> to vector<48xf32>
    %18 = vector.shape_cast %17 : vector<48xf32> to vector<48x1xf32>
    %19 = arith.maximumf %16, %18 : vector<48x1xf32>
    %20 = arith.subf %16, %19 : vector<48x1xf32>
    %21 = math.exp %20 : vector<48x1xf32>
    %22 = vector.broadcast %19 : vector<48x1xf32> to vector<48x48xf32>
    %23 = arith.subf %15, %22 : vector<48x48xf32>
    %24 = math.exp %23 : vector<48x48xf32>
    %c0_12 = arith.constant 0 : index
    %c0_13 = arith.constant 0 : index
    %25 = vector.load %arg8[%c0_12, %c0_13] : memref<48x2xf32, #tpu.memory_space<vmem>>, vector<48x1xf32>
    %26 = arith.mulf %21, %25 : vector<48x1xf32>
    %cst_14 = arith.constant dense<0.000000e+00> : vector<48xf32>
    %27 = vector.multi_reduction <add>, %24, %cst_14 [1] : vector<48x48xf32> to vector<48xf32>
    %28 = vector.shape_cast %27 : vector<48xf32> to vector<48x1xf32>
    %29 = arith.addf %26, %28 : vector<48x1xf32>
    %c0_15 = arith.constant 0 : index
    %c0_16 = arith.constant 0 : index
    %30 = vector.load %arg8[%c0_15, %c0_16] : memref<48x2xf32, #tpu.memory_space<vmem>>, vector<48x1xf32>
    tpu.vector_store %arg8[%c0_15, %c0_16], %29 {strides = array<i32>} : memref<48x2xf32, #tpu.memory_space<vmem>>, vector<48x1xf32>,
    %c0_17 = arith.constant 0 : index
    %c0_18 = arith.constant 0 : index
    %31 = vector.load %arg9[%c0_17, %c0_18] : memref<48x32xf32, #tpu.memory_space<vmem>>, vector<48x16xf32>
    %32 = vector.broadcast %21 : vector<48x1xf32> to vector<48x16xf32>
    %33 = arith.mulf %32, %31 : vector<48x16xf32>
    %34 = arith.truncf %24 : vector<48x48xf32> to vector<48x48xbf16>
    %cst_19 = arith.constant dense<0.000000e+00> : vector<48x16xf32>
    %35 = tpu.matmul %34, %11, %cst_19 {dimension_numbers = #tpu.dot_dimension_numbers<[1], [0], [0], [1], [0, 0, 1, 1], [], []>} : vector<48x48xbf16>, vector<48x16xbf16>, vector<48x16xf32> -> vector<48x16xf32>
    %36 = arith.addf %33, %35 : vector<48x16xf32>
    %c0_20 = arith.constant 0 : index
    %c0_21 = arith.constant 0 : index
    %37 = vector.load %arg9[%c0_20, %c0_21] : memref<48x32xf32, #tpu.memory_space<vmem>>, vector<48x16xf32>
    tpu.vector_store %arg9[%c0_20, %c0_21], %36 {strides = array<i32>} : memref<48x32xf32, #tpu.memory_space<vmem>>, vector<48x16xf32>,
    %c0_22 = arith.constant 0 : index
    %c0_23 = arith.constant 0 : index
    %38 = vector.load %arg7[%c0_22, %c0_23] : memref<48x2xf32, #tpu.memory_space<vmem>>, vector<48x1xf32>
    tpu.vector_store %arg7[%c0_22, %c0_23], %19 {strides = array<i32>} : memref<48x2xf32, #tpu.memory_space<vmem>>, vector<48x1xf32>,
    %39 = vector.extract_strided_slice %4 {offsets = [0, 16], sizes = [48, 16], strides = [1, 1]} : vector<48x32xbf16> to vector<48x16xbf16>
    %40 = vector.extract_strided_slice %6 {offsets = [0, 16], sizes = [48, 16], strides = [1, 1]} : vector<48x64xbf16> to vector<48x16xbf16>
    %41 = vector.extract_strided_slice %6 {offsets = [0, 48], sizes = [48, 16], strides = [1, 1]} : vector<48x64xbf16> to vector<48x16xbf16>
    %42 = tpu.transpose %40, [1, 0] : vector<48x16xbf16> -> vector<16x48xbf16>
    %cst_24 = arith.constant dense<0.000000e+00> : vector<48x48xf32>
    %43 = tpu.matmul %39, %42, %cst_24 {dimension_numbers = #tpu.dot_dimension_numbers<[1], [0], [0], [1], [0, 0, 1, 1], [], []>} : vector<48x16xbf16>, vector<16x48xbf16>, vector<48x48xf32> -> vector<48x48xf32>
    %44 = vector.broadcast %8 : vector<1x48xf32> to vector<48x48xf32>
    %45 = arith.addf %43, %44 : vector<48x48xf32>
    %c0_25 = arith.constant 0 : index
    %c1 = arith.constant 1 : index
    %46 = vector.load %arg7[%c0_25, %c1] : memref<48x2xf32, #tpu.memory_space<vmem>>, vector<48x1xf32>
    %cst_26 = arith.constant dense<0xFF800000> : vector<48xf32>
    %47 = vector.multi_reduction <maximumf>, %45, %cst_26 [1] : vector<48x48xf32> to vector<48xf32>
    %48 = vector.shape_cast %47 : vector<48xf32> to vector<48x1xf32>
    %49 = arith.maximumf %46, %48 : vector<48x1xf32>
    %50 = arith.subf %46, %49 : vector<48x1xf32>
    %51 = math.exp %50 : vector<48x1xf32>
    %52 = vector.broadcast %49 : vector<48x1xf32> to vector<48x48xf32>
    %53 = arith.subf %45, %52 : vector<48x48xf32>
    %54 = math.exp %53 : vector<48x48xf32>
    %c0_27 = arith.constant 0 : index
    %c1_28 = arith.constant 1 : index
    %55 = vector.load %arg8[%c0_27, %c1_28] : memref<48x2xf32, #tpu.memory_space<vmem>>, vector<48x1xf32>
    %56 = arith.mulf %51, %55 : vector<48x1xf32>
    %cst_29 = arith.constant dense<0.000000e+00> : vector<48xf32>
    %57 = vector.multi_reduction <add>, %54, %cst_29 [1] : vector<48x48xf32> to vector<48xf32>
    %58 = vector.shape_cast %57 : vector<48xf32> to vector<48x1xf32>
    %59 = arith.addf %56, %58 : vector<48x1xf32>
    %c0_30 = arith.constant 0 : index
    %c1_31 = arith.constant 1 : index
    %60 = vector.load %arg8[%c0_30, %c1_31] : memref<48x2xf32, #tpu.memory_space<vmem>>, vector<48x1xf32>
    tpu.vector_store %arg8[%c0_30, %c1_31], %59 {strides = array<i32>} : memref<48x2xf32, #tpu.memory_space<vmem>>, vector<48x1xf32>,
    %c0_32 = arith.constant 0 : index
    %c16 = arith.constant 16 : index
    %61 = vector.load %arg9[%c0_32, %c16] : memref<48x32xf32, #tpu.memory_space<vmem>>, vector<48x16xf32>
    %62 = vector.broadcast %51 : vector<48x1xf32> to vector<48x16xf32>
    %63 = arith.mulf %62, %61 : vector<48x16xf32>
    %64 = arith.truncf %54 : vector<48x48xf32> to vector<48x48xbf16>
    %cst_33 = arith.constant dense<0.000000e+00> : vector<48x16xf32>
    %65 = tpu.matmul %64, %41, %cst_33 {dimension_numbers = #tpu.dot_dimension_numbers<[1], [0], [0], [1], [0, 0, 1, 1], [], []>} : vector<48x48xbf16>, vector<48x16xbf16>, vector<48x16xf32> -> vector<48x16xf32>
    %66 = arith.addf %63, %65 : vector<48x16xf32>
    %c0_34 = arith.constant 0 : index
    %c16_35 = arith.constant 16 : index
    %67 = vector.load %arg9[%c0_34, %c16_35] : memref<48x32xf32, #tpu.memory_space<vmem>>, vector<48x16xf32>
    tpu.vector_store %arg9[%c0_34, %c16_35], %66 {strides = array<i32>} : memref<48x32xf32, #tpu.memory_space<vmem>>, vector<48x16xf32>,
    %c0_36 = arith.constant 0 : index
    %c1_37 = arith.constant 1 : index
    %68 = vector.load %arg7[%c0_36, %c1_37] : memref<48x2xf32, #tpu.memory_space<vmem>>, vector<48x1xf32>
    tpu.vector_store %arg7[%c0_36, %c1_37], %49 {strides = array<i32>} : memref<48x2xf32, #tpu.memory_space<vmem>>, vector<48x1xf32>,
    %c0_i32_38 = arith.constant 0 : i32
    %69 = arith.cmpi eq, %arg2, %c0_i32_38 : i32
    %70 = arith.extui %69 : i1 to i32
    %c0_i32_39 = arith.constant 0 : i32
    %71 = arith.cmpi ne, %70, %c0_i32_39 : i32
    scf.if %71 {
      %c0_40 = arith.constant 0 : index
      %c0_41 = arith.constant 0 : index
      %72 = vector.load %arg8[%c0_40, %c0_41] : memref<48x2xf32, #tpu.memory_space<vmem>>, vector<48x1xf32>
      %73 = tpu.reciprocal %72 {approx = true} : vector<48x1xf32> -> vector<48x1xf32>
      %c0_42 = arith.constant 0 : index
      %c0_43 = arith.constant 0 : index
      %74 = vector.load %arg9[%c0_42, %c0_43] : memref<48x32xf32, #tpu.memory_space<vmem>>, vector<48x16xf32>
      %75 = vector.broadcast %73 : vector<48x1xf32> to vector<48x16xf32>
      %76 = arith.mulf %74, %75 : vector<48x16xf32>
      %77 = arith.truncf %76 : vector<48x16xf32> to vector<48x16xbf16>
      %c0_44 = arith.constant 0 : index
      %c0_45 = arith.constant 0 : index
      %c0_46 = arith.constant 0 : index
      %78 = vector.load %arg6[%c0_44, %c0_45, %c0_46] : memref<1x48x32xbf16, #tpu.memory_space<vmem>>, vector<1x48x16xbf16>
      %79 = vector.shape_cast %78 : vector<1x48x16xbf16> to vector<48x16xbf16>
      %80 = vector.shape_cast %77 : vector<48x16xbf16> to vector<1x48x16xbf16>
      tpu.vector_store %arg6[%c0_44, %c0_45, %c0_46], %80 {strides = array<i32>} : memref<1x48x32xbf16, #tpu.memory_space<vmem>>, vector<1x48x16xbf16>,
      %c0_47 = arith.constant 0 : index
      %c1_48 = arith.constant 1 : index
      %81 = vector.load %arg8[%c0_47, %c1_48] : memref<48x2xf32, #tpu.memory_space<vmem>>, vector<48x1xf32>
      %82 = tpu.reciprocal %81 {approx = true} : vector<48x1xf32> -> vector<48x1xf32>
      %c0_49 = arith.constant 0 : index
      %c16_50 = arith.constant 16 : index
      %83 = vector.load %arg9[%c0_49, %c16_50] : memref<48x32xf32, #tpu.memory_space<vmem>>, vector<48x16xf32>
      %84 = vector.broadcast %82 : vector<48x1xf32> to vector<48x16xf32>
      %85 = arith.mulf %83, %84 : vector<48x16xf32>
      %86 = arith.truncf %85 : vector<48x16xf32> to vector<48x16xbf16>
      %c0_51 = arith.constant 0 : index
      %c0_52 = arith.constant 0 : index
      %c16_53 = arith.constant 16 : index
      %87 = vector.load %arg6[%c0_51, %c0_52, %c16_53] : memref<1x48x32xbf16, #tpu.memory_space<vmem>>, vector<1x48x16xbf16>
      %88 = vector.shape_cast %87 : vector<1x48x16xbf16> to vector<48x16xbf16>
      %89 = vector.shape_cast %86 : vector<48x16xbf16> to vector<1x48x16xbf16>
      tpu.vector_store %arg6[%c0_51, %c0_52, %c16_53], %89 {strides = array<i32>} : memref<1x48x32xbf16, #tpu.memory_space<vmem>>, vector<1x48x16xbf16>,
    } else {
    }
    return
  }
  func.func @transform_0(%arg0: i32, %arg1: i32, %arg2: i32) -> (i32, i32, i32) {
    %c0_i32 = arith.constant 0 : i32
    %c0_i32_0 = arith.constant 0 : i32
    return %arg0, %arg1, %c0_i32 : i32, i32, i32
  }
  func.func @transform_1(%arg0: i32, %arg1: i32, %arg2: i32) -> (i32, i32, i32) {
    %c0_i32 = arith.constant 0 : i32
    %c0_i32_0 = arith.constant 0 : i32
    return %arg0, %arg2, %c0_i32 : i32, i32, i32
  }
  func.func @transform_2(%arg0: i32, %arg1: i32, %arg2: i32) -> (i32, i32, i32) {
    %c0_i32 = arith.constant 0 : i32
    %c0_i32_0 = arith.constant 0 : i32
    return %arg0, %c0_i32, %arg2 : i32, i32, i32
  }
  func.func @transform_3(%arg0: i32, %arg1: i32, %arg2: i32) -> (i32, i32, i32) {
    %c0_i32 = arith.constant 0 : i32
    %c0_i32_0 = arith.constant 0 : i32
    return %arg0, %arg1, %c0_i32 : i32, i32, i32
  }
}

module attributes {stable_mosaic.version = 11 : i64} {
  func.func @_add_ln_mask_kernel(%arg0: i32, %arg1: memref<96x32xbf16, #tpu.memory_space<vmem>>, %arg2: memref<96x32xbf16, #tpu.memory_space<vmem>>, %arg3: memref<96x1xf32, #tpu.memory_space<vmem>>, %arg4: memref<1x32xf32, #tpu.memory_space<vmem>>, %arg5: memref<1x32xf32, #tpu.memory_space<vmem>>, %arg6: memref<96x32xbf16, #tpu.memory_space<vmem>>) attributes {dimension_semantics = [#tpu.dimension_semantics<parallel>], iteration_bounds = array<i64: 1>, scalar_prefetch = 0 : i64, scratch_operands = 0 : i64, tpu.core_type = #tpu.core_type<tc>, window_params = [{transform_indices = @transform_0, window_bounds = array<i64: 96, 32>}, {transform_indices = @transform_1, window_bounds = array<i64: 96, 32>}, {transform_indices = @transform_2, window_bounds = array<i64: 96, 1>}, {pipeline_mode = #tpu.pipeline_mode<synchronous>, transform_indices = @transform_3, window_bounds = array<i64: 1, 32>}, {pipeline_mode = #tpu.pipeline_mode<synchronous>, transform_indices = @transform_4, window_bounds = array<i64: 1, 32>}, {transform_indices = @transform_5, window_bounds = array<i64: 96, 32>}]} {
    %c0 = arith.constant 0 : index
    %c0_0 = arith.constant 0 : index
    %0 = vector.load %arg1[%c0, %c0_0] : memref<96x32xbf16, #tpu.memory_space<vmem>>, vector<96x32xbf16>
    %1 = arith.extf %0 : vector<96x32xbf16> to vector<96x32xf32>
    %c0_1 = arith.constant 0 : index
    %c0_2 = arith.constant 0 : index
    %2 = vector.load %arg2[%c0_1, %c0_2] : memref<96x32xbf16, #tpu.memory_space<vmem>>, vector<96x32xbf16>
    %3 = arith.extf %2 : vector<96x32xbf16> to vector<96x32xf32>
    %4 = arith.addf %1, %3 : vector<96x32xf32>
    %cst = arith.constant dense<0.000000e+00> : vector<96xf32>
    %5 = vector.multi_reduction <add>, %4, %cst [1] : vector<96x32xf32> to vector<96xf32>
    %6 = vector.shape_cast %5 : vector<96xf32> to vector<96x1xf32>
    %cst_3 = arith.constant 3.200000e+01 : f32
    %7 = vector.broadcast %cst_3 : f32 to vector<96x1xf32>
    %8 = arith.divf %6, %7 : vector<96x1xf32>
    %9 = vector.broadcast %8 : vector<96x1xf32> to vector<96x32xf32>
    %10 = arith.subf %4, %9 : vector<96x32xf32>
    %11 = arith.mulf %10, %10 : vector<96x32xf32>
    %cst_4 = arith.constant dense<0.000000e+00> : vector<96xf32>
    %12 = vector.multi_reduction <add>, %11, %cst_4 [1] : vector<96x32xf32> to vector<96xf32>
    %13 = vector.shape_cast %12 : vector<96xf32> to vector<96x1xf32>
    %cst_5 = arith.constant 3.200000e+01 : f32
    %14 = vector.broadcast %cst_5 : f32 to vector<96x1xf32>
    %15 = arith.divf %13, %14 : vector<96x1xf32>
    %16 = vector.broadcast %8 : vector<96x1xf32> to vector<96x32xf32>
    %17 = arith.subf %4, %16 : vector<96x32xf32>
    %cst_6 = arith.constant 9.99999974E-6 : f32
    %18 = vector.broadcast %cst_6 : f32 to vector<96x1xf32>
    %19 = arith.addf %15, %18 : vector<96x1xf32>
    %20 = math.rsqrt %19 : vector<96x1xf32>
    %21 = vector.broadcast %20 : vector<96x1xf32> to vector<96x32xf32>
    %22 = arith.mulf %17, %21 : vector<96x32xf32>
    %c0_7 = arith.constant 0 : index
    %c0_8 = arith.constant 0 : index
    %23 = vector.load %arg4[%c0_7, %c0_8] : memref<1x32xf32, #tpu.memory_space<vmem>>, vector<1x32xf32>
    %24 = vector.broadcast %23 : vector<1x32xf32> to vector<96x32xf32>
    %25 = arith.mulf %22, %24 : vector<96x32xf32>
    %c0_9 = arith.constant 0 : index
    %c0_10 = arith.constant 0 : index
    %26 = vector.load %arg5[%c0_9, %c0_10] : memref<1x32xf32, #tpu.memory_space<vmem>>, vector<1x32xf32>
    %27 = vector.broadcast %26 : vector<1x32xf32> to vector<96x32xf32>
    %28 = arith.addf %25, %27 : vector<96x32xf32>
    %c0_11 = arith.constant 0 : index
    %c0_12 = arith.constant 0 : index
    %29 = vector.load %arg3[%c0_11, %c0_12] : memref<96x1xf32, #tpu.memory_space<vmem>>, vector<96x1xf32>
    %30 = vector.broadcast %29 : vector<96x1xf32> to vector<96x32xf32>
    %31 = arith.mulf %28, %30 : vector<96x32xf32>
    %32 = arith.truncf %31 : vector<96x32xf32> to vector<96x32xbf16>
    %c0_13 = arith.constant 0 : index
    %c0_14 = arith.constant 0 : index
    %33 = vector.load %arg6[%c0_13, %c0_14] : memref<96x32xbf16, #tpu.memory_space<vmem>>, vector<96x32xbf16>
    tpu.vector_store %arg6[%c0_13, %c0_14], %32 {strides = array<i32>} : memref<96x32xbf16, #tpu.memory_space<vmem>>, vector<96x32xbf16>,
    return
  }
  func.func @transform_0(%arg0: i32) -> (i32, i32) {
    %c0_i32 = arith.constant 0 : i32
    %c0_i32_0 = arith.constant 0 : i32
    return %arg0, %c0_i32 : i32, i32
  }
  func.func @transform_1(%arg0: i32) -> (i32, i32) {
    %c0_i32 = arith.constant 0 : i32
    %c0_i32_0 = arith.constant 0 : i32
    return %arg0, %c0_i32 : i32, i32
  }
  func.func @transform_2(%arg0: i32) -> (i32, i32) {
    %c0_i32 = arith.constant 0 : i32
    %c0_i32_0 = arith.constant 0 : i32
    return %arg0, %c0_i32 : i32, i32
  }
  func.func @transform_3(%arg0: i32) -> (i32, i32) {
    %c0_i32 = arith.constant 0 : i32
    %c0_i32_0 = arith.constant 0 : i32
    %c0_i32_1 = arith.constant 0 : i32
    return %c0_i32, %c0_i32_0 : i32, i32
  }
  func.func @transform_4(%arg0: i32) -> (i32, i32) {
    %c0_i32 = arith.constant 0 : i32
    %c0_i32_0 = arith.constant 0 : i32
    %c0_i32_1 = arith.constant 0 : i32
    return %c0_i32, %c0_i32_0 : i32, i32
  }
  func.func @transform_5(%arg0: i32) -> (i32, i32) {
    %c0_i32 = arith.constant 0 : i32
    %c0_i32_0 = arith.constant 0 : i32
    return %arg0, %c0_i32 : i32, i32
  }
}

module attributes {stable_mosaic.version = 11 : i64} {
  func.func @_conv1d_kernel(%arg0: i32, %arg1: memref<1x56x32xbf16, #tpu.memory_space<vmem>>, %arg2: memref<9x32x64xbf16, #tpu.memory_space<vmem>>, %arg3: memref<1x64xf32, #tpu.memory_space<vmem>>, %arg4: memref<1x48x64xbf16, #tpu.memory_space<vmem>>) attributes {dimension_semantics = [#tpu.dimension_semantics<parallel>], iteration_bounds = array<i64: 2>, scalar_prefetch = 0 : i64, scratch_operands = 0 : i64, tpu.core_type = #tpu.core_type<tc>, window_params = [{transform_indices = @transform_0, window_bounds = array<i64: 1, 56, 32>}, {pipeline_mode = #tpu.pipeline_mode<synchronous>, transform_indices = @transform_1, window_bounds = array<i64: 9, 32, 64>}, {pipeline_mode = #tpu.pipeline_mode<synchronous>, transform_indices = @transform_2, window_bounds = array<i64: 1, 64>}, {transform_indices = @transform_3, window_bounds = array<i64: 1, 48, 64>}]} {
    %c0 = arith.constant 0 : index
    %c0_0 = arith.constant 0 : index
    %c0_1 = arith.constant 0 : index
    %0 = vector.load %arg1[%c0, %c0_0, %c0_1] : memref<1x56x32xbf16, #tpu.memory_space<vmem>>, vector<1x56x32xbf16>
    %1 = vector.shape_cast %0 : vector<1x56x32xbf16> to vector<56x32xbf16>
    %c0_2 = arith.constant 0 : index
    %c0_3 = arith.constant 0 : index
    %c0_4 = arith.constant 0 : index
    %2 = vector.load %arg2[%c0_2, %c0_3, %c0_4] : memref<9x32x64xbf16, #tpu.memory_space<vmem>>, vector<9x32x64xbf16>
    %cst = arith.constant 0.000000e+00 : f32
    %3 = vector.broadcast %cst : f32 to vector<48x64xf32>
    %4 = vector.extract_strided_slice %1 {offsets = [0, 0], sizes = [48, 32], strides = [1, 1]} : vector<56x32xbf16> to vector<48x32xbf16>
    %5 = vector.extract_strided_slice %2 {offsets = [0, 0, 0], sizes = [1, 32, 64], strides = [1, 1, 1]} : vector<9x32x64xbf16> to vector<1x32x64xbf16>
    %6 = vector.shape_cast %5 : vector<1x32x64xbf16> to vector<32x64xbf16>
    %cst_5 = arith.constant dense<0.000000e+00> : vector<48x64xf32>
    %7 = tpu.matmul %4, %6, %cst_5 {dimension_numbers = #tpu.dot_dimension_numbers<[1], [0], [0], [1], [0, 0, 1, 1], [], []>} : vector<48x32xbf16>, vector<32x64xbf16>, vector<48x64xf32> -> vector<48x64xf32>
    %8 = arith.addf %3, %7 : vector<48x64xf32>
    %9 = vector.extract_strided_slice %1 {offsets = [1, 0], sizes = [48, 32], strides = [1, 1]} : vector<56x32xbf16> to vector<48x32xbf16>
    %10 = vector.extract_strided_slice %2 {offsets = [1, 0, 0], sizes = [1, 32, 64], strides = [1, 1, 1]} : vector<9x32x64xbf16> to vector<1x32x64xbf16>
    %11 = vector.shape_cast %10 : vector<1x32x64xbf16> to vector<32x64xbf16>
    %cst_6 = arith.constant dense<0.000000e+00> : vector<48x64xf32>
    %12 = tpu.matmul %9, %11, %cst_6 {dimension_numbers = #tpu.dot_dimension_numbers<[1], [0], [0], [1], [0, 0, 1, 1], [], []>} : vector<48x32xbf16>, vector<32x64xbf16>, vector<48x64xf32> -> vector<48x64xf32>
    %13 = arith.addf %8, %12 : vector<48x64xf32>
    %14 = vector.extract_strided_slice %1 {offsets = [2, 0], sizes = [48, 32], strides = [1, 1]} : vector<56x32xbf16> to vector<48x32xbf16>
    %15 = vector.extract_strided_slice %2 {offsets = [2, 0, 0], sizes = [1, 32, 64], strides = [1, 1, 1]} : vector<9x32x64xbf16> to vector<1x32x64xbf16>
    %16 = vector.shape_cast %15 : vector<1x32x64xbf16> to vector<32x64xbf16>
    %cst_7 = arith.constant dense<0.000000e+00> : vector<48x64xf32>
    %17 = tpu.matmul %14, %16, %cst_7 {dimension_numbers = #tpu.dot_dimension_numbers<[1], [0], [0], [1], [0, 0, 1, 1], [], []>} : vector<48x32xbf16>, vector<32x64xbf16>, vector<48x64xf32> -> vector<48x64xf32>
    %18 = arith.addf %13, %17 : vector<48x64xf32>
    %19 = vector.extract_strided_slice %1 {offsets = [3, 0], sizes = [48, 32], strides = [1, 1]} : vector<56x32xbf16> to vector<48x32xbf16>
    %20 = vector.extract_strided_slice %2 {offsets = [3, 0, 0], sizes = [1, 32, 64], strides = [1, 1, 1]} : vector<9x32x64xbf16> to vector<1x32x64xbf16>
    %21 = vector.shape_cast %20 : vector<1x32x64xbf16> to vector<32x64xbf16>
    %cst_8 = arith.constant dense<0.000000e+00> : vector<48x64xf32>
    %22 = tpu.matmul %19, %21, %cst_8 {dimension_numbers = #tpu.dot_dimension_numbers<[1], [0], [0], [1], [0, 0, 1, 1], [], []>} : vector<48x32xbf16>, vector<32x64xbf16>, vector<48x64xf32> -> vector<48x64xf32>
    %23 = arith.addf %18, %22 : vector<48x64xf32>
    %24 = vector.extract_strided_slice %1 {offsets = [4, 0], sizes = [48, 32], strides = [1, 1]} : vector<56x32xbf16> to vector<48x32xbf16>
    %25 = vector.extract_strided_slice %2 {offsets = [4, 0, 0], sizes = [1, 32, 64], strides = [1, 1, 1]} : vector<9x32x64xbf16> to vector<1x32x64xbf16>
    %26 = vector.shape_cast %25 : vector<1x32x64xbf16> to vector<32x64xbf16>
    %cst_9 = arith.constant dense<0.000000e+00> : vector<48x64xf32>
    %27 = tpu.matmul %24, %26, %cst_9 {dimension_numbers = #tpu.dot_dimension_numbers<[1], [0], [0], [1], [0, 0, 1, 1], [], []>} : vector<48x32xbf16>, vector<32x64xbf16>, vector<48x64xf32> -> vector<48x64xf32>
    %28 = arith.addf %23, %27 : vector<48x64xf32>
    %29 = vector.extract_strided_slice %1 {offsets = [5, 0], sizes = [48, 32], strides = [1, 1]} : vector<56x32xbf16> to vector<48x32xbf16>
    %30 = vector.extract_strided_slice %2 {offsets = [5, 0, 0], sizes = [1, 32, 64], strides = [1, 1, 1]} : vector<9x32x64xbf16> to vector<1x32x64xbf16>
    %31 = vector.shape_cast %30 : vector<1x32x64xbf16> to vector<32x64xbf16>
    %cst_10 = arith.constant dense<0.000000e+00> : vector<48x64xf32>
    %32 = tpu.matmul %29, %31, %cst_10 {dimension_numbers = #tpu.dot_dimension_numbers<[1], [0], [0], [1], [0, 0, 1, 1], [], []>} : vector<48x32xbf16>, vector<32x64xbf16>, vector<48x64xf32> -> vector<48x64xf32>
    %33 = arith.addf %28, %32 : vector<48x64xf32>
    %34 = vector.extract_strided_slice %1 {offsets = [6, 0], sizes = [48, 32], strides = [1, 1]} : vector<56x32xbf16> to vector<48x32xbf16>
    %35 = vector.extract_strided_slice %2 {offsets = [6, 0, 0], sizes = [1, 32, 64], strides = [1, 1, 1]} : vector<9x32x64xbf16> to vector<1x32x64xbf16>
    %36 = vector.shape_cast %35 : vector<1x32x64xbf16> to vector<32x64xbf16>
    %cst_11 = arith.constant dense<0.000000e+00> : vector<48x64xf32>
    %37 = tpu.matmul %34, %36, %cst_11 {dimension_numbers = #tpu.dot_dimension_numbers<[1], [0], [0], [1], [0, 0, 1, 1], [], []>} : vector<48x32xbf16>, vector<32x64xbf16>, vector<48x64xf32> -> vector<48x64xf32>
    %38 = arith.addf %33, %37 : vector<48x64xf32>
    %39 = vector.extract_strided_slice %1 {offsets = [7, 0], sizes = [48, 32], strides = [1, 1]} : vector<56x32xbf16> to vector<48x32xbf16>
    %40 = vector.extract_strided_slice %2 {offsets = [7, 0, 0], sizes = [1, 32, 64], strides = [1, 1, 1]} : vector<9x32x64xbf16> to vector<1x32x64xbf16>
    %41 = vector.shape_cast %40 : vector<1x32x64xbf16> to vector<32x64xbf16>
    %cst_12 = arith.constant dense<0.000000e+00> : vector<48x64xf32>
    %42 = tpu.matmul %39, %41, %cst_12 {dimension_numbers = #tpu.dot_dimension_numbers<[1], [0], [0], [1], [0, 0, 1, 1], [], []>} : vector<48x32xbf16>, vector<32x64xbf16>, vector<48x64xf32> -> vector<48x64xf32>
    %43 = arith.addf %38, %42 : vector<48x64xf32>
    %44 = vector.extract_strided_slice %1 {offsets = [8, 0], sizes = [48, 32], strides = [1, 1]} : vector<56x32xbf16> to vector<48x32xbf16>
    %45 = vector.extract_strided_slice %2 {offsets = [8, 0, 0], sizes = [1, 32, 64], strides = [1, 1, 1]} : vector<9x32x64xbf16> to vector<1x32x64xbf16>
    %46 = vector.shape_cast %45 : vector<1x32x64xbf16> to vector<32x64xbf16>
    %cst_13 = arith.constant dense<0.000000e+00> : vector<48x64xf32>
    %47 = tpu.matmul %44, %46, %cst_13 {dimension_numbers = #tpu.dot_dimension_numbers<[1], [0], [0], [1], [0, 0, 1, 1], [], []>} : vector<48x32xbf16>, vector<32x64xbf16>, vector<48x64xf32> -> vector<48x64xf32>
    %48 = arith.addf %43, %47 : vector<48x64xf32>
    %c0_14 = arith.constant 0 : index
    %c0_15 = arith.constant 0 : index
    %49 = vector.load %arg3[%c0_14, %c0_15] : memref<1x64xf32, #tpu.memory_space<vmem>>, vector<1x64xf32>
    %50 = vector.broadcast %49 : vector<1x64xf32> to vector<48x64xf32>
    %51 = arith.addf %48, %50 : vector<48x64xf32>
    %cst_16 = arith.constant 0.000000e+00 : f32
    %52 = vector.broadcast %cst_16 : f32 to vector<48x64xf32>
    %53 = arith.maximumf %51, %52 : vector<48x64xf32>
    %54 = arith.truncf %53 : vector<48x64xf32> to vector<48x64xbf16>
    %c0_17 = arith.constant 0 : index
    %c0_18 = arith.constant 0 : index
    %c0_19 = arith.constant 0 : index
    %55 = vector.load %arg4[%c0_17, %c0_18, %c0_19] : memref<1x48x64xbf16, #tpu.memory_space<vmem>>, vector<1x48x64xbf16>
    %56 = vector.shape_cast %55 : vector<1x48x64xbf16> to vector<48x64xbf16>
    %57 = vector.shape_cast %54 : vector<48x64xbf16> to vector<1x48x64xbf16>
    tpu.vector_store %arg4[%c0_17, %c0_18, %c0_19], %57 {strides = array<i32>} : memref<1x48x64xbf16, #tpu.memory_space<vmem>>, vector<1x48x64xbf16>,
    return
  }
  func.func @transform_0(%arg0: i32) -> (i32, i32, i32) {
    %c0_i32 = arith.constant 0 : i32
    %c0_i32_0 = arith.constant 0 : i32
    %c0_i32_1 = arith.constant 0 : i32
    return %arg0, %c0_i32, %c0_i32_0 : i32, i32, i32
  }
  func.func @transform_1(%arg0: i32) -> (i32, i32, i32) {
    %c0_i32 = arith.constant 0 : i32
    %c0_i32_0 = arith.constant 0 : i32
    %c0_i32_1 = arith.constant 0 : i32
    %c0_i32_2 = arith.constant 0 : i32
    return %c0_i32, %c0_i32_0, %c0_i32_1 : i32, i32, i32
  }
  func.func @transform_2(%arg0: i32) -> (i32, i32) {
    %c0_i32 = arith.constant 0 : i32
    %c0_i32_0 = arith.constant 0 : i32
    %c0_i32_1 = arith.constant 0 : i32
    return %c0_i32, %c0_i32_0 : i32, i32
  }
  func.func @transform_3(%arg0: i32) -> (i32, i32, i32) {
    %c0_i32 = arith.constant 0 : i32
    %c0_i32_0 = arith.constant 0 : i32
    %c0_i32_1 = arith.constant 0 : i32
    return %arg0, %c0_i32, %c0_i32_0 : i32, i32, i32
  }
}

module attributes {stable_mosaic.version = 11 : i64} {
  func.func @_linear_kernel(%arg0: i32, %arg1: i32, %arg2: memref<96x32xbf16, #tpu.memory_space<vmem>>, %arg3: memref<32x8xbf16, #tpu.memory_space<vmem>>, %arg4: memref<1x8xf32, #tpu.memory_space<vmem>>, %arg5: memref<96x8xf32, #tpu.memory_space<vmem>>) attributes {dimension_semantics = [#tpu.dimension_semantics<parallel>, #tpu.dimension_semantics<parallel>], iteration_bounds = array<i64: 1, 1>, scalar_prefetch = 0 : i64, scratch_operands = 0 : i64, tpu.core_type = #tpu.core_type<tc>, window_params = [{transform_indices = @transform_0, window_bounds = array<i64: 96, 32>}, {transform_indices = @transform_1, window_bounds = array<i64: 32, 8>}, {transform_indices = @transform_2, window_bounds = array<i64: 1, 8>}, {transform_indices = @transform_3, window_bounds = array<i64: 96, 8>}]} {
    %c0 = arith.constant 0 : index
    %c0_0 = arith.constant 0 : index
    %0 = vector.load %arg2[%c0, %c0_0] : memref<96x32xbf16, #tpu.memory_space<vmem>>, vector<96x32xbf16>
    %c0_1 = arith.constant 0 : index
    %c0_2 = arith.constant 0 : index
    %1 = vector.load %arg3[%c0_1, %c0_2] : memref<32x8xbf16, #tpu.memory_space<vmem>>, vector<32x8xbf16>
    %cst = arith.constant dense<0.000000e+00> : vector<96x8xf32>
    %2 = tpu.matmul %0, %1, %cst {dimension_numbers = #tpu.dot_dimension_numbers<[1], [0], [0], [1], [0, 0, 1, 1], [], []>} : vector<96x32xbf16>, vector<32x8xbf16>, vector<96x8xf32> -> vector<96x8xf32>
    %c0_3 = arith.constant 0 : index
    %c0_4 = arith.constant 0 : index
    %3 = vector.load %arg4[%c0_3, %c0_4] : memref<1x8xf32, #tpu.memory_space<vmem>>, vector<1x8xf32>
    %4 = vector.broadcast %3 : vector<1x8xf32> to vector<96x8xf32>
    %5 = arith.addf %2, %4 : vector<96x8xf32>
    %c0_5 = arith.constant 0 : index
    %c0_6 = arith.constant 0 : index
    %6 = vector.load %arg5[%c0_5, %c0_6] : memref<96x8xf32, #tpu.memory_space<vmem>>, vector<96x8xf32>
    tpu.vector_store %arg5[%c0_5, %c0_6], %5 {strides = array<i32>} : memref<96x8xf32, #tpu.memory_space<vmem>>, vector<96x8xf32>,
    return
  }
  func.func @transform_0(%arg0: i32, %arg1: i32) -> (i32, i32) {
    %c0_i32 = arith.constant 0 : i32
    %c0_i32_0 = arith.constant 0 : i32
    return %arg0, %c0_i32 : i32, i32
  }
  func.func @transform_1(%arg0: i32, %arg1: i32) -> (i32, i32) {
    %c0_i32 = arith.constant 0 : i32
    %c0_i32_0 = arith.constant 0 : i32
    return %c0_i32, %arg1 : i32, i32
  }
  func.func @transform_2(%arg0: i32, %arg1: i32) -> (i32, i32) {
    %c0_i32 = arith.constant 0 : i32
    %c0_i32_0 = arith.constant 0 : i32
    return %c0_i32, %arg1 : i32, i32
  }
  func.func @transform_3(%arg0: i32, %arg1: i32) -> (i32, i32) {
    %c0_i32 = arith.constant 0 : i32
    return %arg0, %arg1 : i32, i32
  }
}

module attributes {stable_mosaic.version = 11 : i64} {
  func.func @_linear_kernel(%arg0: i32, %arg1: i32, %arg2: memref<96x64xbf16, #tpu.memory_space<vmem>>, %arg3: memref<64x32xbf16, #tpu.memory_space<vmem>>, %arg4: memref<1x32xf32, #tpu.memory_space<vmem>>, %arg5: memref<96x32xbf16, #tpu.memory_space<vmem>>) attributes {dimension_semantics = [#tpu.dimension_semantics<parallel>, #tpu.dimension_semantics<parallel>], iteration_bounds = array<i64: 1, 1>, scalar_prefetch = 0 : i64, scratch_operands = 0 : i64, tpu.core_type = #tpu.core_type<tc>, window_params = [{transform_indices = @transform_0, window_bounds = array<i64: 96, 64>}, {transform_indices = @transform_1, window_bounds = array<i64: 64, 32>}, {transform_indices = @transform_2, window_bounds = array<i64: 1, 32>}, {transform_indices = @transform_3, window_bounds = array<i64: 96, 32>}]} {
    %c0 = arith.constant 0 : index
    %c0_0 = arith.constant 0 : index
    %0 = vector.load %arg2[%c0, %c0_0] : memref<96x64xbf16, #tpu.memory_space<vmem>>, vector<96x64xbf16>
    %c0_1 = arith.constant 0 : index
    %c0_2 = arith.constant 0 : index
    %1 = vector.load %arg3[%c0_1, %c0_2] : memref<64x32xbf16, #tpu.memory_space<vmem>>, vector<64x32xbf16>
    %cst = arith.constant dense<0.000000e+00> : vector<96x32xf32>
    %2 = tpu.matmul %0, %1, %cst {dimension_numbers = #tpu.dot_dimension_numbers<[1], [0], [0], [1], [0, 0, 1, 1], [], []>} : vector<96x64xbf16>, vector<64x32xbf16>, vector<96x32xf32> -> vector<96x32xf32>
    %c0_3 = arith.constant 0 : index
    %c0_4 = arith.constant 0 : index
    %3 = vector.load %arg4[%c0_3, %c0_4] : memref<1x32xf32, #tpu.memory_space<vmem>>, vector<1x32xf32>
    %4 = vector.broadcast %3 : vector<1x32xf32> to vector<96x32xf32>
    %5 = arith.addf %2, %4 : vector<96x32xf32>
    %6 = arith.truncf %5 : vector<96x32xf32> to vector<96x32xbf16>
    %c0_5 = arith.constant 0 : index
    %c0_6 = arith.constant 0 : index
    %7 = vector.load %arg5[%c0_5, %c0_6] : memref<96x32xbf16, #tpu.memory_space<vmem>>, vector<96x32xbf16>
    tpu.vector_store %arg5[%c0_5, %c0_6], %6 {strides = array<i32>} : memref<96x32xbf16, #tpu.memory_space<vmem>>, vector<96x32xbf16>,
    return
  }
  func.func @transform_0(%arg0: i32, %arg1: i32) -> (i32, i32) {
    %c0_i32 = arith.constant 0 : i32
    %c0_i32_0 = arith.constant 0 : i32
    return %arg0, %c0_i32 : i32, i32
  }
  func.func @transform_1(%arg0: i32, %arg1: i32) -> (i32, i32) {
    %c0_i32 = arith.constant 0 : i32
    %c0_i32_0 = arith.constant 0 : i32
    return %c0_i32, %arg1 : i32, i32
  }
  func.func @transform_2(%arg0: i32, %arg1: i32) -> (i32, i32) {
    %c0_i32 = arith.constant 0 : i32
    %c0_i32_0 = arith.constant 0 : i32
    return %c0_i32, %arg1 : i32, i32
  }
  func.func @transform_3(%arg0: i32, %arg1: i32) -> (i32, i32) {
    %c0_i32 = arith.constant 0 : i32
    return %arg0, %arg1 : i32, i32
  }
}

</mosaic_0001>

<bundles_post_ra>
// kernel: _lambda_.23
= control target key start
LH: loop header
LB: loop body
LE: loop exit
PB: predicated region body
PF: predicated region fallthrough
CT: control target
= control target key end

     0   :  { %v130_v0 = vmov 0.0   ;;  %vm131_vm0 = vmmov 0   ;;  %vm45_vm1 = vcmask 261120   ;;  %vm98_vm2 = vcmask 519168   ;;  %s170_s1 = inlined_call_operand.vmem [shape: bf16[32,64], index: 1, kind: input, shape index: {}]   ;;  %s171_s0 = inlined_call_operand.vmem [shape: bf16[16,32], index: 0, kind: input, shape index: {}]   ;;  %s172_s2 = inlined_call_operand.vmem [shape: f32[1,64], index: 2, kind: input, shape index: {}]   ;;  %s173_s3 = inlined_call_operand.vmem [shape: bf16[16,64], index: 3, kind: output, shape index: {}]  }
   0x1   :  { %117 = vmatprep.subr.bf16.mxu0 %v130_v0  ;;  %v127_v1 = vld [vmem:[%s170_s1] sm:$0xff]   ;;  %121 = vmatprep.mubr.msk.bf16.mxu0 %vm131_vm0, %v130_v0  ;;  %v128_v2 = vld [vmem:[%s170_s1 + $0x8] sm:$0xff]  }
   0x2   :  { %118 = vmatpush3.bf16.msra.mxu0 %v127_v1  ;;  %v129_v3 = vld [vmem:[%s171_s0] sm:$0xff]  }
   0x3   :  { %119 = vmatprep.subr.bf16.mxu0 %v130_v0  ;;  %v105_v4 = vld [vmem:[%s172_s2] ss:$0 sm:$0xff] }
   0x6   :  { %120 = vmatpush3.bf16.msra.mxu0 %v128_v2 }
   0x9   :  { %122 = vmatmul.mubr.msk.bf16.vlgmr.msra.gmra.mrb[0].mxu0 %vm45_vm1, %v129_v3 }
  0xdc   :  { %v83_v5 = vpop.f32.mrb[0].mxu0 }
  0xdd   :  { %v84_v6 = vadd.f32 %v105_v4, %v83_v5  ;;  %v123_v7 = vpop.f32.mrb[1].mxu0 }
  0xde   :  { %v86_v8 = vpop.f32.mrb[2].mxu0 }
  0xdf   :  { %v112_v9 = vpack.c.bf16 %v84_v6, %v84_v6  ;;  %v87_v10 = vadd.f32 %v105_v4, %v86_v8  ;;  %v124_v11 = vpop.f32.mrb[3].mxu0 }
  0xe1   :  { %99 = vst.msk [vmem:[%s173_s3] sm:$0xf] %vm98_vm2, %v112_v9  ;;  %v113_v12 = vpack.c.bf16 %v87_v10, %v87_v10 }
  0xe3   :  { %100 = vst.msk [vmem:[%s173_s3 + $0x4] sm:$0xf] %vm98_vm2, %v113_v12 }

// kernel: _lambda_.26
= control target key start
LH: loop header
LB: loop body
LE: loop exit
PB: predicated region body
PF: predicated region fallthrough
CT: control target
= control target key end

     0   :  { %vm30_vm0 = vcmask 261120   ;;  %v126_v10 = vmov 0   ;;  %vm98_vm1 = vcmask 257024   ;;  %s185_s0 = inlined_call_operand.vmem [shape: bf16[16,32], index: 0, kind: input, shape index: {}]   ;;  %s186_s1 = inlined_call_operand.vmem [shape: bf16[16,32], index: 1, kind: input, shape index: {}]   ;;  %s187_s2 = inlined_call_operand.vmem [shape: f32[16,1], index: 2, kind: input, shape index: {}]   ;;  %s188_s3 = inlined_call_operand.vmem [shape: f32[1,32], index: 3, kind: input, shape index: {}]   ;;  %s189_s4 = inlined_call_operand.vmem [shape: f32[1,32], index: 4, kind: input, shape index: {}]   ;;  %s190_s5 = inlined_call_operand.vmem [shape: bf16[16,32], index: 5, kind: output, shape index: {}]  }
   0x1   :  { %v112_v0 = vld [vmem:[%s185_s0] sm:$0xff]   ;;  %120 = vset.pattern.permute.xlu0 %v126_v10  ;;  %121 = vset.pattern.permute.xlu1 %v126_v10  ;;  %v77_v22 = vld [vmem:[%s187_s2 + $0x8] sm:$0xff] }
   0x2   :  { %v116_v1 = vld [vmem:[%s186_s1] sm:$0xff]   ;;  %v113_v2 = vunpack.c.l.bf16 %v112_v0  ;;  %v114_v4 = vunpack.c.h.bf16 %v112_v0 }
   0x3   :  { %v117_v3 = vunpack.c.l.bf16 %v116_v1  ;;  %v118_v5 = vunpack.c.h.bf16 %v116_v1  ;;  %v76_v11 = vld [vmem:[%s187_s2] sm:$0xff] }
   0x4   :  { %v105_v30 = vld [vmem:[%s188_s3] ss:$0 sm:$0xff] }
   0x5   :  { %v28_v6 = vadd.f32 %v117_v3, %v113_v2  ;;  %v29_v7 = vadd.f32 %v118_v5, %v114_v4  ;;  %v106_v32 = vld [vmem:[%s189_s4] ss:$0 sm:$0xff] }
   0x7   :  { %v31_v8 = vsel %vm30_vm0, %v28_v6, 0.0  ;;  %v34_v9 = vsel %vm30_vm0, %v29_v7, 0.0 }
   0x8   :  { %32 = vadd.xlane.f32.xlu0 %v31_v8 }
   0xc   :  { %35 = vadd.xlane.f32.xlu0 %v34_v9 }
  0x22   :  { %80 = vperm.xlu0 %120, %v76_v11  }
  0x95   :  { %v33_v12 = vpop.xlane.xlu0 %32 }
  0x96   :  { %v38_v13 = vmul.f32 0.03125, %v33_v12 }
  0x98   :  { %v40_v14 = vsub.f32 %v28_v6, %v38_v13 }
  0x99   :  { %v36_v15 = vpop.xlane.xlu0 %35 }
  0x9a   :  { %v39_v16 = vmul.f32 0.03125, %v36_v15  ;;  %v42_v17 = vmul.f32 %v40_v14, %v40_v14 }
  0x9c   :  { %v41_v18 = vsub.f32 %v29_v7, %v39_v16  ;;  %v44_v19 = vsel %vm30_vm0, %v42_v17, 0.0 }
  0x9d   :  { %45 = vadd.xlane.f32.xlu1 %v44_v19 }
  0x9e   :  { %v43_v20 = vmul.f32 %v41_v18, %v41_v18 }
  0xa0   :  { %v47_v21 = vsel %vm30_vm0, %v43_v20, 0.0 }
  0xa1   :  { %48 = vadd.xlane.f32.xlu1 %v47_v21  ;;  %v81_v35 = vpop.permute.xlu0 %80 }
  0xb2   :  { %85 = vperm.xlu1 %121, %v77_v22  }
 0x12a   :  { %v46_v23 = vpop.xlane.xlu1 %45 }
 0x12b   :  { %v50_v24 = vmul.f32 0.03125, %v46_v23 }
 0x12d   :  { %v52_v25 = vadd.f32 1e-05, %v50_v24 }
 0x12e   :  { %v49_v26 = vpop.xlane.xlu1 %48 }
 0x12f   :  { %122 = vrsqrt.f32 %v52_v25  ;;  %v51_v27 = vmul.f32 0.03125, %v49_v26 }
 0x131   :  { %v53_v28 = vadd.f32 1e-05, %v51_v27 }
 0x132   :  { %v86_v40 = vpop.permute.xlu1 %85 }
 0x133   :  { %124 = vrsqrt.f32 %v53_v28 }
 0x139   :  { %v123_v29 = vpop.eup %122 }
 0x13a   :  { %v56_v31 = vmul.f32 %v123_v29, %v40_v14 }
 0x13c   :  { %v65_v33 = vmul.f32 %v105_v30, %v56_v31 }
 0x13d   :  { %v125_v34 = vpop.eup %124 }
 0x13e   :  { %v74_v36 = vadd.f32 %v106_v32, %v65_v33  ;;  %v57_v37 = vmul.f32 %v125_v34, %v41_v18 }
 0x140   :  { %v88_v38 = vmul.f32 %v81_v35, %v74_v36  ;;  %v66_v39 = vmul.f32 %v105_v30, %v57_v37 }
 0x142   :  { %v109_v41 = vpack.c.bf16 %v88_v38, %v88_v38  ;;  %v75_v42 = vadd.f32 %v106_v32, %v66_v39 }
 0x144   :  { %99 = vst.msk [vmem:[%s190_s5] sm:$0xf] %vm98_vm1, %v109_v41  ;;  %v89_v43 = vmul.f32 %v86_v40, %v75_v42 }
 0x146   :  { %v110_v44 = vpack.c.bf16 %v89_v43, %v89_v43 }
 0x148   :  { %100 = vst.msk [vmem:[%s190_s5 + $0x4] sm:$0xf] %vm98_vm1, %v110_v44 }

// kernel: _lambda_.22
= control target key start
LH: loop header
LB: loop body
LE: loop exit
PB: predicated region body
PF: predicated region fallthrough
CT: control target
= control target key end

     0   :  { %v130_v0 = vmov 0.0   ;;  %vm131_vm0 = vmmov 0   ;;  %vm45_vm1 = vcmask 261120   ;;  %vm98_vm2 = vcmask 257024   ;;  %s170_s1 = inlined_call_operand.vmem [shape: bf16[32,32], index: 1, kind: input, shape index: {}]   ;;  %s171_s0 = inlined_call_operand.vmem [shape: bf16[16,32], index: 0, kind: input, shape index: {}]   ;;  %s172_s2 = inlined_call_operand.vmem [shape: f32[1,32], index: 2, kind: input, shape index: {}]   ;;  %s173_s3 = inlined_call_operand.vmem [shape: bf16[16,32], index: 3, kind: output, shape index: {}]  }
   0x1   :  { %117 = vmatprep.subr.bf16.mxu0 %v130_v0  ;;  %v127_v1 = vld [vmem:[%s170_s1] sm:$0xff]   ;;  %121 = vmatprep.mubr.msk.bf16.mxu0 %vm131_vm0, %v130_v0  ;;  %v128_v2 = vld [vmem:[%s170_s1 + $0x8] sm:$0xff]  }
   0x2   :  { %118 = vmatpush3.bf16.msra.mxu0 %v127_v1  ;;  %v129_v3 = vld [vmem:[%s171_s0] sm:$0xff]  }
   0x3   :  { %119 = vmatprep.subr.bf16.mxu0 %v130_v0  ;;  %v105_v4 = vld [vmem:[%s172_s2] ss:$0 sm:$0xff] }
   0x6   :  { %120 = vmatpush3.bf16.msra.mxu0 %v128_v2 }
   0x9   :  { %122 = vmatmul.mubr.msk.bf16.vlgmr.msra.gmra.mrb[0].mxu0 %vm45_vm1, %v129_v3 }
  0xdc   :  { %v83_v5 = vpop.f32.mrb[0].mxu0 }
  0xdd   :  { %v84_v6 = vadd.f32 %v105_v4, %v83_v5  ;;  %v123_v7 = vpop.f32.mrb[1].mxu0 }
  0xde   :  { %v86_v8 = vpop.f32.mrb[2].mxu0 }
  0xdf   :  { %v112_v9 = vpack.c.bf16 %v84_v6, %v84_v6  ;;  %v87_v10 = vadd.f32 %v105_v4, %v86_v8  ;;  %v124_v11 = vpop.f32.mrb[3].mxu0 }
  0xe1   :  { %99 = vst.msk [vmem:[%s173_s3] sm:$0xf] %vm98_vm2, %v112_v9  ;;  %v113_v12 = vpack.c.bf16 %v87_v10, %v87_v10 }
  0xe3   :  { %100 = vst.msk [vmem:[%s173_s3 + $0x4] sm:$0xf] %vm98_vm2, %v113_v12 }

// kernel: _lambda_.24
= control target key start
LH: loop header
LB: loop body
LE: loop exit
PB: predicated region body
PF: predicated region fallthrough
CT: control target
= control target key end

     0   :  { %s836_s12 = smov 0   ;;  %s838_s13 = smov 0   ;;  %s914_s0 = inlined_call_operand.vmem [shape: bf16[2,8,32], index: 0, kind: input, shape index: {}]   ;;  %s915_s1 = inlined_call_operand.vmem [shape: bf16[2,8,64], index: 1, kind: input, shape index: {}]   ;;  %s916_s2 = inlined_call_operand.vmem [shape: f32[2,1,8], index: 2, kind: input, shape index: {}]   ;;  %s917_s3 = inlined_call_operand.vmem [shape: bf16[2,8,32], index: 3, kind: output, shape index: {}]  }
   0x1   :  { %s840_s14 = smov 0  }
   0x2 LB: > { %s32_s15 = sadd.s32 1, %s801_s13  ;;  %p687_p0 = scmp.ge.s32.totalorder %s805_s14, 1  ;;  %s805_s14 = sphi %s840_s14, %s13_s14   ;;  %s801_s13 = sphi %s838_s13, %s919_s13   ;;  %s797_s12 = sphi %s836_s12, %s918_s12  }
   0x3   : > { %p34_p1 = scmp.ge.s32.totalorder %s32_s15, 2  ;;  %p189_p2 = scmp.lt.s32.totalorder %s805_s14, 3 }
   0x5   : > { %s921_s15 = smov (%p34_p1, %s32_s15), 0  ;;  %p190_p3 = pnand %p687_p0, %p189_p2 }
   0x6   : > { %p230_p4 = scmp.lt.s32.totalorder (!%p190_p3), %s797_s12, 1  ;;  %v807_v0 = vmov (!%p190_p3), 0.0   ;;  %vm808_vm0 = vmmov (!%p190_p3), 0   ;;  %vm276_vm1 = vcmask (!%p190_p3), 130048   ;;  %vm262_vm2 = vcmask (!%p190_p3), 15360   ;;  %s811_s26 = smov (!%p190_p3), 96  }
   0x7   : > { %193 = sbr.rel (%p190_p3) target bundleno = 1391 (0x56f), region = 32  ;;  %708 = vmatprep.subr.bf16.mxu0 (!%p190_p3), %v807_v0  ;;  %710 = vmatprep.mubr.msk.bf16.mxu0 (!%p190_p3), %vm808_vm0, %v807_v0  ;;  %v809_v4 = vmov (!%p190_p3), -inf   ;;  %264 = vst.msk [vmem:[#allocation3] sm:$0xff] (!%p190_p3), %vm262_vm2, %v807_v0  ;;  %vm324_vm3 = vcmask (!%p190_p3), 64512   ;;  %v810_v12 = vmov (!%p190_p3), 0   ;;  %s812_s27 = smov (!%p190_p3), 112  }
   0x8   : > { %714 = vmatprep.subr.bf16.mxu1 (!%p190_p3), %v807_v0  ;;  %716 = vmatprep.mubr.msk.bf16.mxu1 (!%p190_p3), %vm808_vm0, %v807_v0  ;;  %263 = vst.msk [vmem:[#allocation2] sm:$0xff] (!%p190_p3), %vm262_vm2, %v809_v4  ;;  %vm346_vm4 = vcmask (!%p190_p3), 7168   ;;  %vm364_vm5 = vcmask (!%p190_p3), 1043456   ;;  %v813_v39 = vmov (!%p190_p3), 1   ;;  %s814_s28 = smov (!%p190_p3), 80   ;;  %vm486_vm6 = vcmask (!%p190_p3), 15368  }
   0x9   : > { %765 = vset.pattern.permute.xlu0 (!%p190_p3), %v810_v12  ;;  %768 = vset.pattern.permute.xlu1 (!%p190_p3), %v813_v39  ;;  %vm265_vm7 = vcmask (!%p190_p3), 261120   ;;  %s815_s29 = smov (!%p190_p3), 16   ;;  %vm549_vm8 = vcmask (!%p190_p3), 261248   ;;  %vm565_vm9 = vcmask (!%p190_p3), 125952   ;;  %vm577_vm10 = vcmask (!%p190_p3), 257152  }
   0xa   : > { %266 = vst.msk [vmem:[#allocation4] sm:$0xff] (!%p190_p3), %vm265_vm7, %v807_v0 }
   0xe   : > { %s923_s12 = smov (!%p230_p4, %s797_s12), 1  ;;  %v340_v57 = vld [vmem:[#allocation3] sm:$0xff] }
   0xf   : > { %s860_s16 = sshll.u32 %s923_s12, 2  ;;  %s249_s25 = scalar_lea.vmem %s916_s2, %s923_s12  ;;  %v323_v15 = vld [vmem:[#allocation2] sm:$0xff] }
  0x10   : > { %s243_s19 = scalar_lea.vmem %s915_s1, %s860_s16  ;;  %s236_s22 = scalar_lea.vmem %s914_s0, %s860_s16  ;;  %v691_v5 = vld [vmem:[%s249_s25] ss:$0 sm:$0xff] }
  0x11   : > { %v268_v1 = vld [vmem:[%s243_s19] sm:$0xf]  ;;  %v348_v61 = vld [vmem:[#allocation4] sm:$0xff]  ;;  %s256_s5 = scalar_lea.vmem %s917_s3, %s860_s16 }
  0x12   : > { %v281_v2 = vsel %vm276_vm1, %v268_v1, 0  ;;  %v267_v3 = vld [vmem:[%s236_s22] sm:$0xf]  ;;  %v693_v13 = vcombine.low %v268_v1, %v268_v1 }
  0x13   : > { %709 = vmatpush3.bf16.xpose.msra.mxu0 %v281_v2  ;;  %v695_v14 = vcombine.low %v267_v3, %v267_v3 }
  0x14   : > { %726 = vmatprep.subr.bf16.mxu0 %v807_v0  ;;  %359 = vrot.lane.b32.xlu1 %v693_v13, %s811_s26 }
  0x18   : > { %416 = vrot.lane.b32.xlu1 %v693_v13, %s812_s27 }
  0x1a   : > { %711 = vmatmul.mubr.msk.bf16.vlgmr.msra.gmra.mrb[0].mxu0 %vm276_vm1, %v267_v3 }
  0x1b   : > { %728 = vmatprep.mubr.msk.bf16.mxu0 %vm808_vm0, %v807_v0 }
  0x1c   : > { %414 = vrot.lane.b32.xlu1 %v695_v14, %s812_s27 }
  0x86   : > { %v360_v19 = vpop.permute.xlu1 %359 }
  0x87   : > { %v366_v20 = vsel %vm364_vm5, %v360_v19, 0 }
  0x88   : > { %715 = vmatpush3.bf16.msra.mxu1 %v366_v20 }
  0x89   : > { %720 = vmatprep.subr.bf16.mxu1 %v807_v0 }
  0x8a   : > { %v417_v24 = vpop.permute.xlu1 %416 }
  0x8b   : > { %v422_v26 = vsel %vm276_vm1, %v417_v24, 0 }
  0x8e   : > { %v415_v28 = vpop.permute.xlu1 %414 }
  0xed   : > { %v317_v6 = vpop.f32.mrb[0].mxu0 }
  0xee   : > { %v318_v7 = vadd.f32 %v691_v5, %v317_v6  ;;  %v712_v8 = vpop.f32.mrb[1].mxu0 }
  0xef   : > { %v320_v9 = vpop.f32.mrb[2].mxu0 }
  0xf0   : > { %v713_v10 = vpop.f32.mrb[3].mxu0  ;;  %v325_v11 = vsel %vm324_vm3, %v318_v7, -inf }
  0xf1   : > { %326 = vmax.xlane.f32.xlu0 %v325_v11 }
 0x17e   : > { %v327_v16 = vpop.xlane.xlu0 %326 }
 0x17f   : > { %v328_v17 = vmax.f32 %v323_v15, %v327_v16 }
 0x181   : > { %v329_v18 = vsub.f32 %v323_v15, %v328_v17  ;;  %410 = vst.msk [vmem:[#allocation2] sm:$0xff] %vm346_vm4, %v328_v17  ;;  %334 = vperm.xlu0 %765, %v328_v17  }
 0x183   : > { %v330_v47 = vmul.f32 1.442695, %v329_v18 }
 0x185   : > { %766 = vset.pattern.permute.xlu0 %v813_v39 }
 0x188   : > { %v464_v41 = vld [vmem:[#allocation2] sm:$0xff] }
 0x200   : > { %v335_v21 = vpop.permute.xlu0 %334 }
 0x201   : > { %v337_v22 = vsub.f32 %v318_v7, %v335_v21 }
 0x203   : > { %v338_v23 = vmul.f32 1.442695, %v337_v22 }
 0x205   : > { %773 = vpow2.f32 %v338_v23 }
 0x206   : > { %775 = vpow2.f32 %v330_v47 }
 0x20f   : > { %v774_v25 = vpop.eup %773 }
 0x210   : > { %v355_v27 = vpack.c.bf16 %v774_v25, %v774_v25  ;;  %v342_v46 = vsel %vm324_vm3, %v774_v25, 0.0  ;;  %v776_v48 = vpop.eup %775 }
 0x211   : > { %v341_v58 = vmul.f32 %v776_v48, %v340_v57 }
 0x212   : > { %717 = vmatmul.mubr.msk.bf16.vlgmr.msra.gmra.mrb[0].mxu1 %vm324_vm3, %v355_v27 }
 0x213   : > { %721 = vmatpush3.bf16.xpose.msra.mxu1 %v422_v26  ;;  %722 = vmatprep.mubr.msk.bf16.mxu1 %vm808_vm0, %v807_v0 }
 0x21a   : > { %723 = vmatmul.mubr.msk.bf16.vlgmr.msra.gmra.mrb[4].mxu1 %vm276_vm1, %v415_v28 }
 0x2e5   : > { %v402_v29 = vpop.f32.mrb[0].mxu1 }
 0x2e6   : > { %v718_v30 = vpop.f32.mrb[1].mxu1 }
 0x2e7   : > { %v405_v31 = vpop.f32.mrb[2].mxu1 }
 0x2e8   : > { %v719_v32 = vpop.f32.mrb[3].mxu1 }
 0x2ed   : > { %v458_v33 = vpop.f32.mrb[4].mxu1 }
 0x2ee   : > { %v459_v34 = vadd.f32 %v691_v5, %v458_v33  ;;  %v724_v35 = vpop.f32.mrb[5].mxu1 }
 0x2ef   : > { %v461_v36 = vpop.f32.mrb[6].mxu1 }
 0x2f0   : > { %v725_v37 = vpop.f32.mrb[7].mxu1  ;;  %v465_v38 = vsel %vm324_vm3, %v459_v34, -inf }
 0x2f1   : > { %466 = vmax.xlane.f32.xlu1 %v465_v38 }
 0x302   : > { %496 = vrot.lane.b32.xlu1 %v693_v13, %s814_s28 }
 0x37e   : > { %v467_v40 = vpop.xlane.xlu1 %466 }
 0x37f   : > { %v468_v42 = vmax.f32 %v464_v41, %v467_v40 }
 0x381   : > { %v469_v43 = vsub.f32 %v464_v41, %v468_v42  ;;  %551 = vst.msk [vmem:[#allocation2] sm:$0xff] %vm486_vm6, %v468_v42  ;;  %474 = vperm.xlu0 %766, %v468_v42  }
 0x382   : > { %v497_v44 = vpop.permute.xlu1 %496 }
 0x383   : > { %v502_v45 = vsel %vm364_vm5, %v497_v44, 0  ;;  %v470_v55 = vmul.f32 1.442695, %v469_v43 }
 0x384   : > { %727 = vmatpush3.bf16.msra.mxu0 %v502_v45 }
 0x385   : > { %767 = vset.pattern.permute.xlu0 %v810_v12 }
 0x3a0   : > { %343 = vadd.xlane.f32.xlu0 %v342_v46 }
 0x3b6   : > { %351 = vperm.xlu0 %767, %v776_v48  }
 0x3ba   : > { %771 = vset.pattern.permute.xlu0 %v813_v39 }
 0x400   : > { %v475_v49 = vpop.permute.xlu0 %474 }
 0x401   : > { %v477_v50 = vsub.f32 %v459_v34, %v475_v49 }
 0x403   : > { %v478_v51 = vmul.f32 1.442695, %v477_v50 }
 0x405   : > { %777 = vpow2.f32 %v478_v51 }
 0x406   : > { %779 = vpow2.f32 %v470_v55 }
 0x40f   : > { %v778_v52 = vpop.eup %777 }
 0x410   : > { %v482_v53 = vsel %vm324_vm3, %v778_v52, 0.0  ;;  %v495_v54 = vpack.c.bf16 %v778_v52, %v778_v52  ;;  %v780_v56 = vpop.eup %779 }
 0x411   : > { %483 = vadd.xlane.f32.xlu1 %v482_v53 }
 0x412   : > { %729 = vmatmul.mubr.msk.bf16.vlgmr.msra.gmra.mrb[4].mxu0 %vm324_vm3, %v495_v54 }
 0x422   : > { %491 = vperm.xlu1 %768, %v780_v56  }
 0x426   : > { %769 = vset.pattern.permute.xlu1 %v810_v12 }
 0x42d   : > { %v344_v59 = vpop.xlane.xlu0 %343 }
 0x42e   : > { %v345_v60 = vadd.f32 %v344_v59, %v341_v58 }
 0x430   : > { %347 = vst.msk [vmem:[#allocation3] sm:$0xff] %vm346_vm4, %v345_v60 }
 0x435   : > { %v352_v62 = vpop.permute.xlu0 %351 }
 0x436   : > { %v354_v63 = vmul.f32 %v352_v62, %v348_v61 }
 0x437   : > { %v480_v1 = vld [vmem:[#allocation3] sm:$0xff] }
 0x438   : > { %v408_v0 = vadd.f32 %v402_v29, %v354_v63  ;;  %v481_v2 = vmul.f32 %v780_v56, %v480_v1 }
 0x43a   : > { %409 = vst.msk [vmem:[#allocation4] sm:$0xff] %vm276_vm1, %v408_v0 }
 0x441   : > { %v488_v13 = vld [vmem:[#allocation4] sm:$0xff] }
 0x49e   : > { %v484_v3 = vpop.xlane.xlu1 %483 }
 0x49f   : > { %v485_v4 = vadd.f32 %v484_v3, %v481_v2 }
 0x4a1   : > { %487 = vst.msk [vmem:[#allocation3] sm:$0xff] %vm486_vm6, %v485_v4 }
 0x4a2   : > { %v492_v11 = vpop.permute.xlu1 %491 }
 0x4a3   : > { %v494_v14 = vmul.f32 %v492_v11, %v488_v13 }
 0x4a8   : > { %v555_v5 = vld [vmem:[#allocation3] sm:$0xff] }
 0x4a9   : > { %781 = vrcp.f32 %v555_v5 }
 0x4b3   : > { %v782_v6 = vpop.eup %781 }
 0x4b4   : > { %560 = vperm.xlu1 %769, %v782_v6  }
 0x4b8   : > { %770 = vset.pattern.permute.xlu1 %v813_v39 }
 0x4e5   : > { %v538_v7 = vpop.f32.mrb[4].mxu0 }
 0x4e6   : > { %545 = vrot.lane.b32.xlu1 %v538_v7, %s815_s29  ;;  %v730_v8 = vpop.f32.mrb[5].mxu0 }
 0x4e7   : > { %v541_v9 = vpop.f32.mrb[6].mxu0 }
 0x4e8   : > { %v731_v10 = vpop.f32.mrb[7].mxu0 }
 0x4ea   : > { %572 = vperm.xlu1 %770, %v782_v6  }
 0x533   : > { %v561_v12 = vpop.permute.xlu1 %560 }
 0x558   : > { %v546_v15 = vpop.permute.xlu1 %545 }
 0x559   : > { %v548_v16 = vadd.f32 %v546_v15, %v494_v14 }
 0x55b   : > { %550 = vst.msk [vmem:[#allocation4] sm:$0xff] %vm549_vm8, %v548_v16 }
 0x562   : > { %v557_v17 = vld [vmem:[#allocation4] sm:$0xff] }
 0x563   : > { %v563_v18 = vmul.f32 %v561_v12, %v557_v17 }
 0x565   : > { %v564_v19 = vpack.c.bf16 %v563_v18, %v563_v18 }
 0x567   : > { %566 = vst.msk [vmem:[%s256_s5] sm:$0xf] %vm565_vm9, %v564_v19 }
 0x569   : > { %v573_v20 = vpop.permute.xlu1 %572 }
 0x56a   : > { %v575_v21 = vmul.f32 %v573_v20, %v557_v17 }
 0x56c   : > { %v576_v22 = vpack.c.bf16 %v575_v21, %v575_v21 }
 0x56e   : > { %578 = vst.msk [vmem:[%s256_s5] sm:$0xf] %vm577_vm10, %v576_v22 }
 0x56f PF: > { %s13_s14 = sadd.s32 1, %s805_s14   ;;  %s918_s12 = smov %s801_s13 }
 0x570   : > { %p10_p5 = scmp.ge.s32.totalorder %s13_s14, 4   ;;  %s919_s13 = smov %s921_s15 }
 0x572   :  { %12 = sbr.rel (!%p10_p5) target bundleno = 2 (0x2), region = 76 }

// kernel: _lambda_.28
= control target key start
LH: loop header
LB: loop body
LE: loop exit
PB: predicated region body
PF: predicated region fallthrough
CT: control target
= control target key end

     0   :  { %v156_v0 = vmov 0.0   ;;  %vm157_vm0 = vmmov 0   ;;  %vm61_vm1 = vcmask 523264   ;;  %vm114_vm2 = vcmask 257024   ;;  %s202_s1 = inlined_call_operand.vmem [shape: bf16[64,32], index: 1, kind: input, shape index: {}]   ;;  %s203_s0 = inlined_call_operand.vmem [shape: bf16[16,64], index: 0, kind: input, shape index: {}]   ;;  %s204_s2 = inlined_call_operand.vmem [shape: f32[1,32], index: 2, kind: input, shape index: {}]   ;;  %s205_s3 = inlined_call_operand.vmem [shape: bf16[16,32], index: 3, kind: output, shape index: {}]  }
   0x1   :  { %137 = vmatprep.subr.bf16.mxu0 %v156_v0  ;;  %v151_v1 = vld [vmem:[%s202_s1] sm:$0xff]   ;;  %145 = vmatprep.mubr.msk.bf16.mxu0 %vm157_vm0, %v156_v0  ;;  %v152_v2 = vld [vmem:[%s202_s1 + $0x8] sm:$0xff]   ;;  %v153_v3 = vld [vmem:[%s202_s1 + $0x10] sm:$0xff]  }
   0x2   :  { %138 = vmatpush3.bf16.msra.mxu0 %v151_v1  ;;  %v154_v4 = vld [vmem:[%s202_s1 + $0x18] sm:$0xff]   ;;  %v155_v5 = vld [vmem:[%s203_s0] sm:$0xff]  }
   0x3   :  { %139 = vmatprep.subr.bf16.mxu0 %v156_v0  ;;  %v121_v6 = vld [vmem:[%s204_s2] ss:$0 sm:$0xff] }
   0x6   :  { %140 = vmatpush3.bf16.msra.mxu0 %v152_v2 }
   0x7   :  { %141 = vmatprep.subr.bf16.mxu0 %v156_v0 }
   0xa   :  { %142 = vmatpush3.bf16.msra.mxu0 %v153_v3 }
   0xb   :  { %143 = vmatprep.subr.bf16.mxu0 %v156_v0 }
   0xe   :  { %144 = vmatpush3.bf16.msra.mxu0 %v154_v4 }
  0x11   :  { %146 = vmatmul.mubr.msk.bf16.vlgmr.msra.gmra.mrb[0].mxu0 %vm61_vm1, %v155_v5 }
  0xe4   :  { %v99_v7 = vpop.f32.mrb[0].mxu0 }
  0xe5   :  { %v100_v8 = vadd.f32 %v121_v6, %v99_v7  ;;  %v147_v9 = vpop.f32.mrb[1].mxu0 }
  0xe6   :  { %v102_v10 = vpop.f32.mrb[2].mxu0 }
  0xe7   :  { %v130_v11 = vpack.c.bf16 %v100_v8, %v100_v8  ;;  %v103_v12 = vadd.f32 %v121_v6, %v102_v10  ;;  %v148_v13 = vpop.f32.mrb[3].mxu0 }
  0xe9   :  { %115 = vst.msk [vmem:[%s205_s3] sm:$0xf] %vm114_vm2, %v130_v11  ;;  %v131_v14 = vpack.c.bf16 %v103_v12, %v103_v12 }
  0xeb   :  { %116 = vst.msk [vmem:[%s205_s3 + $0x4] sm:$0xf] %vm114_vm2, %v131_v14 }

// kernel: _lambda_.30
= control target key start
LH: loop header
LB: loop body
LE: loop exit
PB: predicated region body
PF: predicated region fallthrough
CT: control target
= control target key end

     0   :  { %s531_s12 = smov 0   ;;  %s579_s0 = inlined_call_operand.vmem [shape: bf16[2,10,32], index: 0, kind: input, shape index: {}]   ;;  %s580_s1 = inlined_call_operand.vmem [shape: bf16[3,32,96], index: 1, kind: input, shape index: {}]   ;;  %s581_s2 = inlined_call_operand.vmem [shape: f32[1,96], index: 2, kind: input, shape index: {}]   ;;  %s582_s3 = inlined_call_operand.vmem [shape: bf16[2,8,96], index: 3, kind: output, shape index: {}]  }
   0x1 LB: > { %s429_s13 = sadd.s32 4294967295, %s507_s12   ;;  %p433_p0 = scmp.ge.s32.totalorder %s507_s12, 1  ;;  %s507_s12 = sphi %s531_s12, %s13_s12  }
   0x2   : > { %p137_p1 = scmp.lt.s32.totalorder %s507_s12, 3 }
   0x4   : > { %p138_p2 = pnand %p433_p0, %p137_p1 }
   0x5   : > { %v494_v0 = vld [vmem:[%s580_s1 + $0x10] sm:$0xff] (!%p138_p2)   ;;  %v509_v1 = vmov (!%p138_p2), 0.0   ;;  %v495_v2 = vld [vmem:[%s580_s1] sm:$0xff] (!%p138_p2)   ;;  %v496_v3 = vld [vmem:[%s580_s1 + $0x18] sm:$0xff] (!%p138_p2)   ;;  %vm510_vm0 = vmmov (!%p138_p2), 0   ;;  %p160_p3 = scmp.lt.s32.totalorder (!%p138_p2), %s429_s13, 1 }
   0x6   : > { %141 = sbr.rel (%p138_p2) target bundleno = 254 (0xfe), region = 32  ;;  %460 = vmatprep.subr.bf16.mxu0 (!%p138_p2), %v509_v1  ;;  %468 = vmatprep.subr.bf16.mxu1 (!%p138_p2), %v509_v1  ;;  %v497_v4 = vld [vmem:[%s580_s1 + $0x8] sm:$0xff] (!%p138_p2)   ;;  %vm208_vm1 = vcmask (!%p138_p2), 261120   ;;  %v499_v11 = vld [vmem:[%s580_s1 + $0x20] sm:$0xff] (!%p138_p2)   ;;  %vm374_vm2 = vcmask (!%p138_p2), 781312  }
   0x7   : > { %461 = vmatpush3.bf16.msra.mxu0 (!%p138_p2), %v494_v0  ;;  %464 = vmatprep.mubr.msk.bf16.mxu0 (!%p138_p2), %vm510_vm0, %v509_v1  ;;  %v500_v13 = vld [vmem:[%s580_s1 + $0x28] sm:$0xff] (!%p138_p2)   ;;  %v447_v25 = vld [vmem:[%s581_s2] ss:$0 sm:$0xff] (!%p138_p2) }
   0x8   : > { %469 = vmatpush3.bf16.msra.mxu1 (!%p138_p2), %v495_v2  ;;  %462 = vmatprep.subr.bf16.mxu0 (!%p138_p2), %v509_v1 }
   0x9   : > { %470 = vmatprep.subr.bf16.mxu1 (!%p138_p2), %v509_v1  ;;  %472 = vmatprep.mubr.msk.bf16.mxu1 (!%p138_p2), %vm510_vm0, %v509_v1 }
   0xb   : > { %463 = vmatpush3.bf16.msra.mxu0 (!%p138_p2), %v496_v3 }
   0xc   : > { %471 = vmatpush3.bf16.msra.mxu1 (!%p138_p2), %v497_v4  ;;  %476 = vmatprep.subr.bf16.mxu0 (!%p138_p2), %v509_v1 }
   0xd   : > { %s584_s13 = smov (!%p160_p3, %s429_s13), 1 }
   0xe   : > { %s450_s22 = sshll.u32 %s584_s13, 3  ;;  %s436_s5 = sshll.u32 %s584_s13, 2 }
   0xf   : > { %s164_s25 = scalar_lea.vmem %s579_s0, %s450_s22  ;;  %s168_s8 = scalar_lea.vmem %s582_s3, %s436_s5 }
  0x10   : > { %v170_v5 = vld [vmem:[%s164_s25] sm:$0xf]  ;;  %v171_v6 = vld [vmem:[%s164_s25 + $0x4] sm:$0x1] }
  0x11   : > { %v437_v7 = vcombine.low %v170_v5, %v171_v6  ;;  %473 = vmatmul.mubr.msk.bf16.vlgmr.msra.gmra.mrb[0].mxu1 %vm208_vm1, %v170_v5 }
  0x13   : > { %v190_v8 = vshrl.u32 %v437_v7, 16  ;;  %v192_v9 = vshll.u32 %v437_v7, 16  ;;  %v307_v14 = vrot.slane %v437_v7, 1 }
  0x15   : > { %v194_v10 = vrot.slane %v192_v9, 1 }
  0x17   : > { %v195_v12 = vor.u32 %v194_v10, %v190_v8 }
  0x19   : > { %465 = vmatmul.mubr.msk.bf16.vlgmr.msra.gmra.mrb[0].mxu0 %vm208_vm1, %v195_v12 }
  0x1a   : > { %477 = vmatpush3.bf16.msra.mxu0 %v499_v11  ;;  %480 = vmatprep.mubr.msk.bf16.mxu0 %vm510_vm0, %v509_v1 }
  0x1b   : > { %478 = vmatprep.subr.bf16.mxu0 %v509_v1 }
  0x1e   : > { %479 = vmatpush3.bf16.msra.mxu0 %v500_v13 }
  0x21   : > { %481 = vmatmul.mubr.msk.bf16.vlgmr.msra.gmra.mrb[4].mxu0 %vm208_vm1, %v307_v14 }
  0xe4   : > { %v301_v15 = vpop.f32.mrb[0].mxu1 }
  0xe5   : > { %v474_v16 = vpop.f32.mrb[1].mxu1 }
  0xe6   : > { %v304_v17 = vpop.f32.mrb[2].mxu1 }
  0xe7   : > { %v475_v18 = vpop.f32.mrb[3].mxu1 }
  0xec   : > { %v246_v19 = vpop.f32.mrb[0].mxu0 }
  0xed   : > { %v302_v20 = vadd.f32 %v301_v15, %v246_v19  ;;  %v466_v21 = vpop.f32.mrb[1].mxu0 }
  0xee   : > { %v249_v22 = vpop.f32.mrb[2].mxu0 }
  0xef   : > { %v467_v23 = vpop.f32.mrb[3].mxu0 }
  0xf4   : > { %v357_v24 = vpop.f32.mrb[4].mxu0 }
  0xf5   : > { %v363_v26 = vadd.f32 %v357_v24, %v302_v20  ;;  %v482_v27 = vpop.f32.mrb[5].mxu0 }
  0xf6   : > { %v360_v28 = vpop.f32.mrb[6].mxu0 }
  0xf7   : > { %v371_v29 = vadd.f32 %v447_v25, %v363_v26  ;;  %v483_v30 = vpop.f32.mrb[7].mxu0 }
  0xf9   : > { %v372_v31 = vmax.f32 %v371_v29, 0.0 }
  0xfb   : > { %v373_v32 = vpack.c.bf16 %v372_v31, %v372_v31 }
  0xfd   : > { %375 = vst.msk [vmem:[%s168_s8] sm:$0xf] %vm374_vm2, %v373_v32 }
  0xfe PF: > { %s13_s12 = sadd.s32 1, %s507_s12  }
  0xff   : > { %p10_p4 = scmp.ge.s32.totalorder %s13_s12, 4  }
 0x101   :  { %12 = sbr.rel (!%p10_p4) target bundleno = 1 (0x1), region = 62 }

// kernel: _lambda_.27
= control target key start
LH: loop header
LB: loop body
LE: loop exit
PB: predicated region body
PF: predicated region fallthrough
CT: control target
= control target key end

     0   :  { %s998_s12 = smov 0   ;;  %s1132_s0 = inlined_call_operand.vmem [shape: bf16[2,16,32], index: 0, kind: input, shape index: {}]   ;;  %s1133_s1 = inlined_call_operand.vmem [shape: bf16[9,32,64], index: 1, kind: input, shape index: {}]   ;;  %s1134_s2 = inlined_call_operand.vmem [shape: f32[1,64], index: 2, kind: input, shape index: {}]   ;;  %s1135_s3 = inlined_call_operand.vmem [shape: bf16[2,8,64], index: 3, kind: output, shape index: {}]  }
   0x1 LB: > { %s800_s13 = sadd.s32 4294967295, %s974_s12   ;;  %p804_p0 = scmp.ge.s32.totalorder %s974_s12, 1  ;;  %s974_s12 = sphi %s998_s12, %s13_s12  }
   0x2   : > { %p137_p1 = scmp.lt.s32.totalorder %s974_s12, 3 }
   0x4   : > { %p138_p2 = pnand %p804_p0, %p137_p1 }
   0x5   : > { %v949_v0 = vld [vmem:[%s1133_s1 + $0x10] sm:$0xff] (!%p138_p2)   ;;  %v976_v1 = vmov (!%p138_p2), 0.0   ;;  %v950_v2 = vld [vmem:[%s1133_s1] sm:$0xff] (!%p138_p2)   ;;  %v951_v3 = vld [vmem:[%s1133_s1 + $0x18] sm:$0xff] (!%p138_p2)   ;;  %vm977_vm0 = vmmov (!%p138_p2), 0   ;;  %p160_p3 = scmp.lt.s32.totalorder (!%p138_p2), %s800_s13, 1 }
   0x6   : > { %141 = sbr.rel (%p138_p2) target bundleno = 278 (0x116), region = 32  ;;  %867 = vmatprep.subr.bf16.mxu0 (!%p138_p2), %v976_v1  ;;  %875 = vmatprep.subr.bf16.mxu1 (!%p138_p2), %v976_v1  ;;  %v952_v4 = vld [vmem:[%s1133_s1 + $0x8] sm:$0xff] (!%p138_p2)   ;;  %vm232_vm1 = vcmask (!%p138_p2), 261120   ;;  %v955_v5 = vld [vmem:[%s1133_s1 + $0x30] sm:$0xff] (!%p138_p2)   ;;  %v957_v11 = vld [vmem:[%s1133_s1 + $0x38] sm:$0xff] (!%p138_p2)   ;;  %vm745_vm2 = vcmask (!%p138_p2), 519168  }
   0x7   : > { %868 = vmatpush3.bf16.msra.mxu0 (!%p138_p2), %v949_v0  ;;  %871 = vmatprep.mubr.msk.bf16.mxu0 (!%p138_p2), %vm977_vm0, %v976_v1  ;;  %v954_v15 = vld [vmem:[%s1133_s1 + $0x20] sm:$0xff] (!%p138_p2)   ;;  %v959_v18 = vld [vmem:[%s1133_s1 + $0x50] sm:$0xff] (!%p138_p2)   ;;  %v956_v19 = vld [vmem:[%s1133_s1 + $0x28] sm:$0xff] (!%p138_p2)  }
   0x8   : > { %876 = vmatpush3.bf16.msra.mxu1 (!%p138_p2), %v950_v2  ;;  %869 = vmatprep.subr.bf16.mxu0 (!%p138_p2), %v976_v1  ;;  %v961_v22 = vld [vmem:[%s1133_s1 + $0x58] sm:$0xff] (!%p138_p2)   ;;  %v958_v24 = vld [vmem:[%s1133_s1 + $0x40] sm:$0xff] (!%p138_p2)   ;;  %v963_v26 = vld [vmem:[%s1133_s1 + $0x70] sm:$0xff] (!%p138_p2)  }
   0x9   : > { %877 = vmatprep.subr.bf16.mxu1 (!%p138_p2), %v976_v1  ;;  %879 = vmatprep.mubr.msk.bf16.mxu1 (!%p138_p2), %vm977_vm0, %v976_v1  ;;  %v960_v27 = vld [vmem:[%s1133_s1 + $0x48] sm:$0xff] (!%p138_p2)   ;;  %v965_v30 = vld [vmem:[%s1133_s1 + $0x78] sm:$0xff] (!%p138_p2)   ;;  %v962_v32 = vld [vmem:[%s1133_s1 + $0x60] sm:$0xff] (!%p138_p2)  }
   0xa   : > { %v964_v34 = vld [vmem:[%s1133_s1 + $0x68] sm:$0xff] (!%p138_p2)   ;;  %v966_v36 = vld [vmem:[%s1133_s1 + $0x80] sm:$0xff] (!%p138_p2)  }
   0xb   : > { %870 = vmatpush3.bf16.msra.mxu0 (!%p138_p2), %v951_v3  ;;  %v967_v37 = vld [vmem:[%s1133_s1 + $0x88] sm:$0xff] (!%p138_p2)  }
   0xc   : > { %878 = vmatpush3.bf16.msra.mxu1 (!%p138_p2), %v952_v4  ;;  %883 = vmatprep.subr.bf16.mxu0 (!%p138_p2), %v976_v1 }
   0xd   : > { %s1137_s13 = smov (!%p160_p3, %s800_s13), 1  ;;  %891 = vmatprep.subr.bf16.mxu1 %v976_v1 }
   0xe   : > { %s839_s22 = sshll.u32 %s1137_s13, 3  ;;  %s807_s4 = sshll.u32 %s1137_s13, 2 }
   0xf   : > { %s164_s25 = scalar_lea.vmem %s1132_s0, %s839_s22  ;;  %s168_s7 = scalar_lea.vmem %s1135_s3, %s807_s4 }
  0x10   : > { %v170_v6 = vld [vmem:[%s164_s25] sm:$0xf]  ;;  %v1036_v7 = vld [vmem:[%s164_s25 + $0x4] sm:$0xf] }
  0x11   : > { %v1040_v8 = vcombine.low %v170_v6, %v1036_v7  ;;  %880 = vmatmul.mubr.msk.bf16.vlgmr.msra.gmra.mrb[0].mxu1 %vm232_vm1, %v170_v6 }
  0x12   : > { %892 = vmatpush3.bf16.msra.mxu1 %v955_v5  ;;  %895 = vmatprep.mubr.msk.bf16.mxu1 %vm977_vm0, %v976_v1 }
  0x13   : > { %v214_v9 = vshrl.u32 %v1040_v8, 16  ;;  %v216_v10 = vshll.u32 %v1040_v8, 16  ;;  %893 = vmatprep.subr.bf16.mxu1 %v976_v1  ;;  %v331_v23 = vrot.slane %v1040_v8, 1  ;;  %v447_v31 = vrot.slane %v1040_v8, 2 }
  0x14   : > { %v563_v35 = vrot.slane %v1040_v8, 3 }
  0x15   : > { %v218_v12 = vrot.slane %v216_v10, 1  ;;  %v388_v13 = vrot.slane %v214_v9, 1  ;;  %v389_v14 = vrot.slane %v216_v10, 2  ;;  %v504_v20 = vrot.slane %v214_v9, 2 }
  0x16   : > { %894 = vmatpush3.bf16.msra.mxu1 %v957_v11  ;;  %v505_v21 = vrot.slane %v216_v10, 3  ;;  %v620_v28 = vrot.slane %v214_v9, 3  ;;  %v621_v29 = vrot.slane %v216_v10, 4 }
  0x17   : > { %v219_v16 = vor.u32 %v218_v12, %v214_v9  ;;  %v390_v17 = vor.u32 %v389_v14, %v388_v13  ;;  %907 = vmatprep.subr.bf16.mxu1 %v976_v1  ;;  %v836_v14 = vld [vmem:[%s1134_s2] ss:$0 sm:$0xff] }
  0x18   : > { %v506_v25 = vor.u32 %v505_v21, %v504_v20  ;;  %v622_v33 = vor.u32 %v621_v29, %v620_v28 }
  0x19   : > { %872 = vmatmul.mubr.msk.bf16.vlgmr.msra.gmra.mrb[0].mxu0 %vm232_vm1, %v219_v16  ;;  %896 = vmatmul.mubr.msk.bf16.vlgmr.msra.gmra.mrb[4].mxu1 %vm232_vm1, %v390_v17 }
  0x1a   : > { %884 = vmatpush3.bf16.msra.mxu0 %v954_v15  ;;  %887 = vmatprep.mubr.msk.bf16.mxu0 %vm977_vm0, %v976_v1 }
  0x1b   : > { %885 = vmatprep.subr.bf16.mxu0 %v976_v1  ;;  %908 = vmatpush3.bf16.msra.mxu1 %v959_v18 }
  0x1c   : > { %911 = vmatprep.mubr.msk.bf16.mxu1 %vm977_vm0, %v976_v1  ;;  %909 = vmatprep.subr.bf16.mxu1 %v976_v1 }
  0x1e   : > { %886 = vmatpush3.bf16.msra.mxu0 %v956_v19 }
  0x1f   : > { %899 = vmatprep.subr.bf16.mxu0 %v976_v1  ;;  %910 = vmatpush3.bf16.msra.mxu1 %v961_v22 }
  0x20   : > { %923 = vmatprep.subr.bf16.mxu1 %v976_v1 }
  0x21   : > { %888 = vmatmul.mubr.msk.bf16.vlgmr.msra.gmra.mrb[4].mxu0 %vm232_vm1, %v331_v23 }
  0x22   : > { %900 = vmatpush3.bf16.msra.mxu0 %v958_v24  ;;  %903 = vmatprep.mubr.msk.bf16.mxu0 %vm977_vm0, %v976_v1 }
  0x23   : > { %901 = vmatprep.subr.bf16.mxu0 %v976_v1  ;;  %912 = vmatmul.mubr.msk.bf16.vlgmr.msra.gmra.mrb[8].mxu1 %vm232_vm1, %v506_v25 }
  0x24   : > { %924 = vmatpush3.bf16.msra.mxu1 %v963_v26  ;;  %927 = vmatprep.mubr.msk.bf16.mxu1 %vm977_vm0, %v976_v1 }
  0x25   : > { %925 = vmatprep.subr.bf16.mxu1 %v976_v1 }
  0x26   : > { %902 = vmatpush3.bf16.msra.mxu0 %v960_v27 }
  0x27   : > { %915 = vmatprep.subr.bf16.mxu0 %v976_v1 }
  0x28   : > { %926 = vmatpush3.bf16.msra.mxu1 %v965_v30 }
  0x29   : > { %904 = vmatmul.mubr.msk.bf16.vlgmr.msra.gmra.mrb[8].mxu0 %vm232_vm1, %v447_v31 }
  0x2a   : > { %916 = vmatpush3.bf16.msra.mxu0 %v962_v32  ;;  %919 = vmatprep.mubr.msk.bf16.mxu0 %vm977_vm0, %v976_v1 }
  0x2b   : > { %917 = vmatprep.subr.bf16.mxu0 %v976_v1  ;;  %928 = vmatmul.mubr.msk.bf16.vlgmr.msra.gmra.mrb[12].mxu1 %vm232_vm1, %v622_v33 }
  0x2e   : > { %918 = vmatpush3.bf16.msra.mxu0 %v964_v34 }
  0x2f   : > { %931 = vmatprep.subr.bf16.mxu0 %v976_v1 }
  0x31   : > { %920 = vmatmul.mubr.msk.bf16.vlgmr.msra.gmra.mrb[12].mxu0 %vm232_vm1, %v563_v35 }
  0x32   : > { %932 = vmatpush3.bf16.msra.mxu0 %v966_v36  ;;  %935 = vmatprep.mubr.msk.bf16.mxu0 %vm977_vm0, %v976_v1 }
  0x33   : > { %933 = vmatprep.subr.bf16.mxu0 %v976_v1 }
  0x36   : > { %934 = vmatpush3.bf16.msra.mxu0 %v967_v37 }
  0x39   : > { %936 = vmatmul.mubr.msk.bf16.vlgmr.msra.gmra.mrb[16].mxu0 %vm232_vm1, %v1036_v7 }
  0xe4   : > { %v325_v38 = vpop.f32.mrb[0].mxu1 }
  0xe5   : > { %v881_v39 = vpop.f32.mrb[1].mxu1 }
  0xe6   : > { %v328_v40 = vpop.f32.mrb[2].mxu1 }
  0xe7   : > { %v882_v41 = vpop.f32.mrb[3].mxu1 }
  0xec   : > { %v270_v42 = vpop.f32.mrb[0].mxu0  ;;  %v440_v46 = vpop.f32.mrb[4].mxu1 }
  0xed   : > { %v326_v43 = vadd.f32 %v325_v38, %v270_v42  ;;  %v873_v44 = vpop.f32.mrb[1].mxu0  ;;  %v897_v48 = vpop.f32.mrb[5].mxu1 }
  0xee   : > { %v273_v45 = vpop.f32.mrb[2].mxu0  ;;  %v443_v49 = vpop.f32.mrb[6].mxu1 }
  0xef   : > { %v874_v47 = vpop.f32.mrb[3].mxu0  ;;  %v898_v50 = vpop.f32.mrb[7].mxu1 }
  0xf4   : > { %v381_v51 = vpop.f32.mrb[4].mxu0 }
  0xf5   : > { %v387_v52 = vadd.f32 %v381_v51, %v326_v43  ;;  %v889_v53 = vpop.f32.mrb[5].mxu0 }
  0xf6   : > { %v384_v54 = vpop.f32.mrb[6].mxu0  ;;  %v556_v55 = vpop.f32.mrb[8].mxu1 }
  0xf7   : > { %v446_v56 = vadd.f32 %v440_v46, %v387_v52  ;;  %v890_v57 = vpop.f32.mrb[7].mxu0  ;;  %v913_v58 = vpop.f32.mrb[9].mxu1 }
  0xf8   : > { %v559_v59 = vpop.f32.mrb[10].mxu1 }
  0xf9   : > { %v914_v60 = vpop.f32.mrb[11].mxu1 }
  0xfc   : > { %v497_v61 = vpop.f32.mrb[8].mxu0 }
  0xfd   : > { %v503_v62 = vadd.f32 %v497_v61, %v446_v56  ;;  %v905_v63 = vpop.f32.mrb[9].mxu0 }
  0xfe   : > { %v500_v0 = vpop.f32.mrb[10].mxu0  ;;  %v672_v1 = vpop.f32.mrb[12].mxu1 }
  0xff   : > { %v562_v2 = vadd.f32 %v556_v55, %v503_v62  ;;  %v906_v3 = vpop.f32.mrb[11].mxu0  ;;  %v929_v4 = vpop.f32.mrb[13].mxu1 }
 0x100   : > { %v675_v5 = vpop.f32.mrb[14].mxu1 }
 0x101   : > { %v930_v6 = vpop.f32.mrb[15].mxu1 }
 0x104   : > { %v613_v7 = vpop.f32.mrb[12].mxu0 }
 0x105   : > { %v619_v8 = vadd.f32 %v613_v7, %v562_v2  ;;  %v921_v9 = vpop.f32.mrb[13].mxu0 }
 0x106   : > { %v616_v10 = vpop.f32.mrb[14].mxu0 }
 0x107   : > { %v678_v11 = vadd.f32 %v672_v1, %v619_v8  ;;  %v922_v12 = vpop.f32.mrb[15].mxu0 }
 0x10c   : > { %v728_v13 = vpop.f32.mrb[16].mxu0 }
 0x10d   : > { %v734_v15 = vadd.f32 %v728_v13, %v678_v11  ;;  %v937_v16 = vpop.f32.mrb[17].mxu0 }
 0x10e   : > { %v731_v17 = vpop.f32.mrb[18].mxu0 }
 0x10f   : > { %v742_v18 = vadd.f32 %v836_v14, %v734_v15  ;;  %v938_v19 = vpop.f32.mrb[19].mxu0 }
 0x111   : > { %v743_v20 = vmax.f32 %v742_v18, 0.0 }
 0x113   : > { %v744_v21 = vpack.c.bf16 %v743_v20, %v743_v20 }
 0x115   : > { %746 = vst.msk [vmem:[%s168_s7] sm:$0xf] %vm745_vm2, %v744_v21 }
 0x116 PF: > { %s13_s12 = sadd.s32 1, %s974_s12  }
 0x117   : > { %p10_p4 = scmp.ge.s32.totalorder %s13_s12, 4  }
 0x119   :  { %12 = sbr.rel (!%p10_p4) target bundleno = 1 (0x1), region = 62 }

// kernel: _lambda_.31
= control target key start
LH: loop header
LB: loop body
LE: loop exit
PB: predicated region body
PF: predicated region fallthrough
CT: control target
= control target key end

     0   :  { %s233_s14 = smov 96   ;;  %s234_s15 = smov 64   ;;  %vm20_vm0 = vcmask 261120   ;;  %vm72_vm1 = vcmask 257024   ;;  %vm129_vm2 = vcmask 519424   ;;  %vm184_vm3 = vcmask 781824   ;;  %s320_s0 = inlined_call_operand.vmem [shape: bf16[16,96], index: 0, kind: input, shape index: {}]   ;;  %s321_s1 = inlined_call_operand.vmem [shape: f32[1,96], index: 1, kind: input, shape index: {}]   ;;  %s322_s2 = inlined_call_operand.vmem [shape: f32[1,96], index: 2, kind: input, shape index: {}]   ;;  %s323_s3 = inlined_call_operand.vmem [shape: bf16[16,96], index: 3, kind: output, shape index: {}]  }
   0x1   :  { %v206_v0 = vld [vmem:[%s320_s0] sm:$0xff]  }
   0x2   :  { %v207_v1 = vunpack.c.l.bf16 %v206_v0  ;;  %v208_v2 = vunpack.c.h.bf16 %v206_v0  ;;  %v191_v57 = vld [vmem:[%s321_s1] ss:$0 sm:$0xff] }
   0x3   :  { %v192_v59 = vld [vmem:[%s322_s2] ss:$0 sm:$0xff] }
   0x4   :  { %v211_v3 = vpack.i.bf16 %v208_v2, %v207_v1  ;;  %v21_v14 = vsel %vm20_vm0, %v207_v1, 0.0  ;;  %v24_v15 = vsel %vm20_vm0, %v208_v2, 0.0 }
   0x6   :  { %212 = vrot.lane.b32.xlu0 %v211_v3, %s233_s14 }
   0xa   :  { %217 = vrot.lane.b32.xlu0 %v211_v3, %s234_s15 }
  0x78   :  { %v213_v4 = vpop.permute.xlu0 %212 }
  0x79   :  { %v214_v5 = vunpack.i.l.bf16 %v213_v4  ;;  %v215_v6 = vunpack.i.h.bf16 %v213_v4 }
  0x7b   :  { %v83_v7 = vsel %vm20_vm0, %v214_v5, 0.0  ;;  %v86_v12 = vsel %vm20_vm0, %v215_v6, 0.0 }
  0x7c   :  { %v218_v8 = vpop.permute.xlu0 %217  ;;  %84 = vadd.xlane.f32.xlu1 %v83_v7 }
  0x7d   :  { %v220_v9 = vunpack.i.h.bf16 %v218_v8  ;;  %v219_v10 = vunpack.i.l.bf16 %v218_v8 }
  0x7f   :  { %v138_v11 = vsel %vm20_vm0, %v219_v10, 0.0  ;;  %v141_v13 = vsel %vm20_vm0, %v220_v9, 0.0 }
  0x80   :  { %139 = vadd.xlane.f32.xlu0 %v138_v11  ;;  %87 = vadd.xlane.f32.xlu1 %v86_v12 }
  0x84   :  { %142 = vadd.xlane.f32.xlu1 %v141_v13 }
  0x88   :  { %22 = vadd.xlane.f32.xlu1 %v21_v14 }
  0x8c   :  { %25 = vadd.xlane.f32.xlu1 %v24_v15 }
 0x109   :  { %v85_v16 = vpop.xlane.xlu1 %84 }
 0x10a   :  { %v89_v17 = vmul.f32 0.03125, %v85_v16 }
 0x10c   :  { %v266_v18 = vsub.f32 %v207_v1, %v89_v17 }
 0x10d   :  { %v140_v19 = vpop.xlane.xlu0 %139  ;;  %v88_v20 = vpop.xlane.xlu1 %87 }
 0x10e   :  { %v144_v21 = vmul.f32 0.03125, %v140_v19  ;;  %v90_v22 = vmul.f32 0.03125, %v88_v20  ;;  %v93_v23 = vmul.f32 %v266_v18, %v266_v18 }
 0x110   :  { %v270_v24 = vsub.f32 %v207_v1, %v144_v21  ;;  %v272_v25 = vsub.f32 %v208_v2, %v90_v22  ;;  %97 = vrot.lane.b32.xlu1 %v93_v23, %s233_s14 }
 0x111   :  { %v143_v26 = vpop.xlane.xlu1 %142 }
 0x112   :  { %v145_v27 = vmul.f32 0.03125, %v143_v26  ;;  %v148_v28 = vmul.f32 %v270_v24, %v270_v24  ;;  %v94_v29 = vmul.f32 %v272_v25, %v272_v25 }
 0x114   :  { %v279_v30 = vsub.f32 %v208_v2, %v145_v27  ;;  %152 = vrot.lane.b32.xlu0 %v148_v28, %s234_s15  ;;  %99 = vrot.lane.b32.xlu1 %v94_v29, %s233_s14 }
 0x115   :  { %v23_v32 = vpop.xlane.xlu1 %22 }
 0x116   :  { %v149_v31 = vmul.f32 %v279_v30, %v279_v30  ;;  %v28_v37 = vmul.f32 0.03125, %v23_v32 }
 0x118   :  { %154 = vrot.lane.b32.xlu1 %v149_v31, %s234_s15  ;;  %v30_v39 = vsub.f32 %v207_v1, %v28_v37 }
 0x119   :  { %v26_v33 = vpop.xlane.xlu1 %25 }
 0x11a   :  { %v29_v34 = vmul.f32 0.03125, %v26_v33  ;;  %v32_v40 = vmul.f32 %v30_v39, %v30_v39 }
 0x11c   :  { %v31_v35 = vsub.f32 %v208_v2, %v29_v34  ;;  %v34_v41 = vsel %vm20_vm0, %v32_v40, 0.0 }
 0x11e   :  { %v33_v36 = vmul.f32 %v31_v35, %v31_v35 }
 0x120   :  { %v37_v38 = vsel %vm20_vm0, %v33_v36, 0.0 }
 0x133   :  { %38 = vadd.xlane.f32.xlu0 %v37_v38 }
 0x13c   :  { %35 = vadd.xlane.f32.xlu1 %v34_v41 }
 0x182   :  { %v98_v42 = vpop.permute.xlu1 %97 }
 0x183   :  { %v103_v43 = vsel %vm20_vm0, %v98_v42, 0.0 }
 0x184   :  { %104 = vadd.xlane.f32.xlu1 %v103_v43 }
 0x186   :  { %v100_v44 = vpop.permute.xlu1 %99  ;;  %v153_v45 = vpop.permute.xlu0 %152 }
 0x187   :  { %v106_v46 = vsel %vm20_vm0, %v100_v44, 0.0  ;;  %v158_v47 = vsel %vm20_vm0, %v153_v45, 0.0 }
 0x188   :  { %107 = vadd.xlane.f32.xlu1 %v106_v46 }
 0x18a   :  { %v155_v48 = vpop.permute.xlu1 %154 }
 0x18b   :  { %v161_v49 = vsel %vm20_vm0, %v155_v48, 0.0 }
 0x18c   :  { %159 = vadd.xlane.f32.xlu1 %v158_v47  ;;  %162 = vadd.xlane.f32.xlu0 %v161_v49 }
 0x1c0   :  { %v39_v50 = vpop.xlane.xlu0 %38 }
 0x1c1   :  { %v41_v51 = vmul.f32 0.03125, %v39_v50 }
 0x1c3   :  { %v43_v52 = vadd.f32 1e-05, %v41_v51 }
 0x1c5   :  { %221 = vrsqrt.f32 %v43_v52 }
 0x1c9   :  { %v36_v53 = vpop.xlane.xlu1 %35 }
 0x1ca   :  { %v40_v54 = vmul.f32 0.03125, %v36_v53 }
 0x1cc   :  { %v42_v55 = vadd.f32 1e-05, %v40_v54 }
 0x1ce   :  { %223 = vrsqrt.f32 %v42_v55 }
 0x1cf   :  { %v222_v56 = vpop.eup %221 }
 0x1d0   :  { %v47_v58 = vmul.f32 %v222_v56, %v31_v35 }
 0x1d2   :  { %v55_v60 = vmul.f32 %v191_v57, %v47_v58 }
 0x1d4   :  { %v63_v61 = vadd.f32 %v192_v59, %v55_v60 }
 0x1d6   :  { %v200_v62 = vpack.c.bf16 %v63_v61, %v63_v61 }
 0x1d8   :  { %v224_v63 = vpop.eup %223  ;;  %74 = vst.msk [vmem:[%s323_s3 + $0x4] sm:$0xf] %vm72_vm1, %v200_v62 }
 0x1d9   :  { %v46_v0 = vmul.f32 %v224_v63, %v30_v39 }
 0x1db   :  { %v54_v1 = vmul.f32 %v191_v57, %v46_v0 }
 0x1dd   :  { %v62_v2 = vadd.f32 %v192_v59, %v54_v1 }
 0x1df   :  { %v199_v3 = vpack.c.bf16 %v62_v2, %v62_v2 }
 0x1e1   :  { %73 = vst.msk [vmem:[%s323_s3] sm:$0xf] %vm72_vm1, %v199_v3 }
 0x211   :  { %v105_v4 = vpop.xlane.xlu1 %104 }
 0x212   :  { %v109_v5 = vmul.f32 0.03125, %v105_v4 }
 0x214   :  { %v111_v6 = vadd.f32 1e-05, %v109_v5 }
 0x215   :  { %v108_v7 = vpop.xlane.xlu1 %107 }
 0x216   :  { %225 = vrsqrt.f32 %v111_v6  ;;  %v110_v8 = vmul.f32 0.03125, %v108_v7 }
 0x218   :  { %v112_v9 = vadd.f32 1e-05, %v110_v8 }
 0x219   :  { %v163_v10 = vpop.xlane.xlu0 %162  ;;  %v160_v11 = vpop.xlane.xlu1 %159 }
 0x21a   :  { %227 = vrsqrt.f32 %v112_v9  ;;  %v165_v12 = vmul.f32 0.03125, %v163_v10  ;;  %v164_v13 = vmul.f32 0.03125, %v160_v11 }
 0x21c   :  { %v167_v14 = vadd.f32 1e-05, %v165_v12  ;;  %v166_v15 = vadd.f32 1e-05, %v164_v13 }
 0x21e   :  { %229 = vrsqrt.f32 %v167_v14 }
 0x21f   :  { %231 = vrsqrt.f32 %v166_v15 }
 0x220   :  { %v226_v16 = vpop.eup %225 }
 0x221   :  { %v115_v17 = vmul.f32 %v226_v16, %v266_v18 }
 0x223   :  { %v117_v19 = vmul.f32 %v191_v57, %v115_v17 }
 0x224   :  { %v228_v20 = vpop.eup %227 }
 0x225   :  { %v119_v21 = vadd.f32 %v192_v59, %v117_v19  ;;  %v116_v22 = vmul.f32 %v228_v20, %v272_v25 }
 0x227   :  { %v201_v23 = vpack.c.bf16 %v119_v21, %v119_v21  ;;  %v118_v26 = vmul.f32 %v191_v57, %v116_v22 }
 0x228   :  { %v230_v27 = vpop.eup %229 }
 0x229   :  { %v232_v28 = vpop.eup %231  ;;  %130 = vst.msk [vmem:[%s323_s3] sm:$0xf] %vm129_vm2, %v201_v23  ;;  %v120_v29 = vadd.f32 %v192_v59, %v118_v26  ;;  %v171_v31 = vmul.f32 %v230_v27, %v279_v30 }
 0x22a   :  { %v170_v32 = vmul.f32 %v232_v28, %v270_v24 }
 0x22b   :  { %v202_v18 = vpack.c.bf16 %v120_v29, %v120_v29  ;;  %v173_v33 = vmul.f32 %v191_v57, %v171_v31 }
 0x22c   :  { %v172_v34 = vmul.f32 %v191_v57, %v170_v32 }
 0x22d   :  { %131 = vst.msk [vmem:[%s323_s3 + $0x4] sm:$0xf] %vm129_vm2, %v202_v18  ;;  %v175_v25 = vadd.f32 %v192_v59, %v173_v33 }
 0x22e   :  { %v174_v35 = vadd.f32 %v192_v59, %v172_v34 }
 0x22f   :  { %v204_v36 = vpack.c.bf16 %v175_v25, %v175_v25 }
 0x230   :  { %v203_v37 = vpack.c.bf16 %v174_v35, %v174_v35 }
 0x231   :  { %186 = vst.msk [vmem:[%s323_s3 + $0x4] sm:$0xf] %vm184_vm3, %v204_v36 }
 0x232   :  { %185 = vst.msk [vmem:[%s323_s3] sm:$0xf] %vm184_vm3, %v203_v37 }

// kernel: custom-call.16
= control target key start
LH: loop header
LB: loop body
LE: loop exit
PB: predicated region body
PF: predicated region fallthrough
CT: control target
= control target key end

     0   :  { %s6_s0 = inlined_call_operand.vmem [shape: u32[2,8], index: 0, kind: output, shape index: {}]  }

// kernel: _lambda_.32
= control target key start
LH: loop header
LB: loop body
LE: loop exit
PB: predicated region body
PF: predicated region fallthrough
CT: control target
= control target key end

     0   :  { %s687_s12 = smov 0   ;;  %s792_s0 = inlined_call_operand.vmem [shape: bf16[2,10,96], index: 0, kind: input, shape index: {}]   ;;  %s793_s1 = inlined_call_operand.vmem [shape: bf16[3,96,96], index: 1, kind: input, shape index: {}]   ;;  %s794_s2 = inlined_call_operand.vmem [shape: f32[1,96], index: 2, kind: input, shape index: {}]   ;;  %s795_s3 = inlined_call_operand.vmem [shape: bf16[2,8,96], index: 3, kind: output, shape index: {}]  }
   0x1 LB: > { %s525_s13 = sadd.s32 4294967295, %s663_s12   ;;  %p529_p0 = scmp.ge.s32.totalorder %s663_s12, 1  ;;  %s663_s12 = sphi %s687_s12, %s13_s12  }
   0x2   : > { %p137_p1 = scmp.lt.s32.totalorder %s663_s12, 3 }
   0x4   : > { %p138_p2 = pnand %p529_p0, %p137_p1 }
   0x5   : > { %v638_v0 = vld [vmem:[%s793_s1 + $0x30] sm:$0xff] (!%p138_p2)   ;;  %v665_v1 = vmov (!%p138_p2), 0.0   ;;  %v639_v2 = vld [vmem:[%s793_s1] sm:$0xff] (!%p138_p2)   ;;  %v640_v3 = vld [vmem:[%s793_s1 + $0x38] sm:$0xff] (!%p138_p2)   ;;  %vm666_vm0 = vmmov (!%p138_p2), 0   ;;  %p160_p3 = scmp.lt.s32.totalorder (!%p138_p2), %s525_s13, 1 }
   0x6   : > { %141 = sbr.rel (%p138_p2) target bundleno = 275 (0x113), region = 32  ;;  %580 = vmatprep.subr.bf16.mxu0 (!%p138_p2), %v665_v1  ;;  %596 = vmatprep.subr.bf16.mxu1 (!%p138_p2), %v665_v1  ;;  %v641_v4 = vld [vmem:[%s793_s1 + $0x8] sm:$0xff] (!%p138_p2)   ;;  %v642_v5 = vld [vmem:[%s793_s1 + $0x40] sm:$0xff] (!%p138_p2)   ;;  %v643_v6 = vld [vmem:[%s793_s1 + $0x10] sm:$0xff] (!%p138_p2)   ;;  %vm256_vm1 = vcmask (!%p138_p2), 785408   ;;  %vm470_vm2 = vcmask (!%p138_p2), 781312  }
   0x7   : > { %581 = vmatpush3.bf16.msra.mxu0 (!%p138_p2), %v638_v0  ;;  %592 = vmatprep.mubr.msk.bf16.mxu0 (!%p138_p2), %vm666_vm0, %v665_v1  ;;  %v644_v7 = vld [vmem:[%s793_s1 + $0x48] sm:$0xff] (!%p138_p2)   ;;  %v645_v8 = vld [vmem:[%s793_s1 + $0x18] sm:$0xff] (!%p138_p2)   ;;  %v646_v12 = vld [vmem:[%s793_s1 + $0x50] sm:$0xff] (!%p138_p2)  }
   0x8   : > { %597 = vmatpush3.bf16.msra.mxu1 (!%p138_p2), %v639_v2  ;;  %582 = vmatprep.subr.bf16.mxu0 (!%p138_p2), %v665_v1  ;;  %v647_v13 = vld [vmem:[%s793_s1 + $0x20] sm:$0xff] (!%p138_p2)   ;;  %v648_v17 = vld [vmem:[%s793_s1 + $0x58] sm:$0xff] (!%p138_p2)   ;;  %v649_v18 = vld [vmem:[%s793_s1 + $0x28] sm:$0xff] (!%p138_p2)  }
   0x9   : > { %598 = vmatprep.subr.bf16.mxu1 (!%p138_p2), %v665_v1  ;;  %608 = vmatprep.mubr.msk.bf16.mxu1 (!%p138_p2), %vm666_vm0, %v665_v1  ;;  %v651_v20 = vld [vmem:[%s793_s1 + $0x60] sm:$0xff] (!%p138_p2)   ;;  %v652_v21 = vld [vmem:[%s793_s1 + $0x68] sm:$0xff] (!%p138_p2)   ;;  %v653_v22 = vld [vmem:[%s793_s1 + $0x70] sm:$0xff] (!%p138_p2)  }
   0xa   : > { %v654_v23 = vld [vmem:[%s793_s1 + $0x78] sm:$0xff] (!%p138_p2)   ;;  %v655_v24 = vld [vmem:[%s793_s1 + $0x80] sm:$0xff] (!%p138_p2)   ;;  %v656_v25 = vld [vmem:[%s793_s1 + $0x88] sm:$0xff] (!%p138_p2)  }
   0xb   : > { %583 = vmatpush3.bf16.msra.mxu0 (!%p138_p2), %v640_v3  ;;  %v555_v37 = vld [vmem:[%s794_s2] ss:$0 sm:$0xff] (!%p138_p2) }
   0xc   : > { %599 = vmatpush3.bf16.msra.mxu1 (!%p138_p2), %v641_v4  ;;  %584 = vmatprep.subr.bf16.mxu0 (!%p138_p2), %v665_v1 }
   0xd   : > { %s797_s13 = smov (!%p160_p3, %s525_s13), 1  ;;  %600 = vmatprep.subr.bf16.mxu1 %v665_v1 }
   0xe   : > { %s558_s24 = sshll.u32 %s797_s13, 3  ;;  %s532_s4 = sshll.u32 %s797_s13, 2 }
   0xf   : > { %s164_s29 = scalar_lea.vmem %s792_s0, %s558_s24  ;;  %585 = vmatpush3.bf16.msra.mxu0 %v642_v5  ;;  %s168_s7 = scalar_lea.vmem %s795_s3, %s532_s4 }
  0x10   : > { %601 = vmatpush3.bf16.msra.mxu1 %v643_v6  ;;  %586 = vmatprep.subr.bf16.mxu0 %v665_v1  ;;  %v170_v9 = vld [vmem:[%s164_s29] sm:$0xf]  ;;  %v171_v10 = vld [vmem:[%s164_s29 + $0x4] sm:$0x1] }
  0x11   : > { %602 = vmatprep.subr.bf16.mxu1 %v665_v1  ;;  %v533_v11 = vcombine.low %v170_v9, %v171_v10 }
  0x13   : > { %587 = vmatpush3.bf16.msra.mxu0 %v644_v7  ;;  %v216_v14 = vshll.u32 %v533_v11, 16  ;;  %v214_v15 = vshrl.u32 %v533_v11, 16  ;;  %v379_v26 = vrot.slane %v533_v11, 1 }
  0x14   : > { %603 = vmatpush3.bf16.msra.mxu1 %v645_v8  ;;  %588 = vmatprep.subr.bf16.mxu0 %v665_v1 }
  0x15   : > { %604 = vmatprep.subr.bf16.mxu1 %v665_v1  ;;  %v218_v16 = vrot.slane %v216_v14, 1 }
  0x17   : > { %589 = vmatpush3.bf16.msra.mxu0 %v646_v12  ;;  %v219_v19 = vor.u32 %v218_v16, %v214_v15 }
  0x18   : > { %605 = vmatpush3.bf16.msra.mxu1 %v647_v13  ;;  %590 = vmatprep.subr.bf16.mxu0 %v665_v1 }
  0x19   : > { %606 = vmatprep.subr.bf16.mxu1 %v665_v1 }
  0x1b   : > { %591 = vmatpush3.bf16.msra.mxu0 %v648_v17 }
  0x1c   : > { %607 = vmatpush3.bf16.msra.mxu1 %v649_v18  ;;  %612 = vmatprep.subr.bf16.mxu0 %v665_v1 }
  0x1e   : > { %593 = vmatmul.mubr.msk.bf16.vlgmr.msra.gmra.mrb[0].mxu0 %vm256_vm1, %v219_v19 }
  0x1f   : > { %609 = vmatmul.mubr.msk.bf16.vlgmr.msra.gmra.mrb[0].mxu1 %vm256_vm1, %v170_v9  ;;  %613 = vmatpush3.bf16.msra.mxu0 %v651_v20 }
  0x20   : > { %614 = vmatprep.subr.bf16.mxu0 %v665_v1  ;;  %624 = vmatprep.mubr.msk.bf16.mxu0 %vm666_vm0, %v665_v1 }
  0x23   : > { %615 = vmatpush3.bf16.msra.mxu0 %v652_v21 }
  0x24   : > { %616 = vmatprep.subr.bf16.mxu0 %v665_v1 }
  0x27   : > { %617 = vmatpush3.bf16.msra.mxu0 %v653_v22 }
  0x28   : > { %618 = vmatprep.subr.bf16.mxu0 %v665_v1 }
  0x2b   : > { %619 = vmatpush3.bf16.msra.mxu0 %v654_v23 }
  0x2c   : > { %620 = vmatprep.subr.bf16.mxu0 %v665_v1 }
  0x2f   : > { %621 = vmatpush3.bf16.msra.mxu0 %v655_v24 }
  0x30   : > { %622 = vmatprep.subr.bf16.mxu0 %v665_v1 }
  0x33   : > { %623 = vmatpush3.bf16.msra.mxu0 %v656_v25 }
  0x36   : > { %625 = vmatmul.mubr.msk.bf16.vlgmr.msra.gmra.mrb[4].mxu0 %vm256_vm1, %v379_v26 }
  0xf1   : > { %v294_v27 = vpop.f32.mrb[0].mxu0 }
  0xf2   : > { %v594_v28 = vpop.f32.mrb[1].mxu0  ;;  %v373_v29 = vpop.f32.mrb[0].mxu1 }
  0xf3   : > { %v374_v30 = vadd.f32 %v373_v29, %v294_v27  ;;  %v297_v31 = vpop.f32.mrb[2].mxu0  ;;  %v610_v32 = vpop.f32.mrb[1].mxu1 }
  0xf4   : > { %v595_v33 = vpop.f32.mrb[3].mxu0  ;;  %v376_v34 = vpop.f32.mrb[2].mxu1 }
  0xf5   : > { %v611_v35 = vpop.f32.mrb[3].mxu1 }
 0x109   : > { %v453_v36 = vpop.f32.mrb[4].mxu0 }
 0x10a   : > { %v459_v38 = vadd.f32 %v453_v36, %v374_v30  ;;  %v626_v39 = vpop.f32.mrb[5].mxu0 }
 0x10b   : > { %v456_v40 = vpop.f32.mrb[6].mxu0 }
 0x10c   : > { %v467_v41 = vadd.f32 %v555_v37, %v459_v38  ;;  %v627_v42 = vpop.f32.mrb[7].mxu0 }
 0x10e   : > { %v468_v43 = vmax.f32 %v467_v41, 0.0 }
 0x110   : > { %v469_v44 = vpack.c.bf16 %v468_v43, %v468_v43 }
 0x112   : > { %471 = vst.msk [vmem:[%s168_s7] sm:$0xf] %vm470_vm2, %v469_v44 }
 0x113 PF: > { %s13_s12 = sadd.s32 1, %s663_s12  }
 0x114   : > { %p10_p4 = scmp.ge.s32.totalorder %s13_s12, 4  }
 0x116   :  { %12 = sbr.rel (!%p10_p4) target bundleno = 1 (0x1), region = 62 }

// kernel: _lambda_.34
= control target key start
LH: loop header
LB: loop body
LE: loop exit
PB: predicated region body
PF: predicated region fallthrough
CT: control target
= control target key end

     0   :  { %v170_v0 = vmov 0.0   ;;  %vm171_vm0 = vmmov 0   ;;  %vm77_vm1 = vcmask 785408   ;;  %vm122_vm2 = vcmask 23552   ;;  %s222_s1 = inlined_call_operand.vmem [shape: bf16[96,3], index: 1, kind: input, shape index: {}]   ;;  %s223_s0 = inlined_call_operand.vmem [shape: bf16[16,96], index: 0, kind: input, shape index: {}]   ;;  %s224_s2 = inlined_call_operand.vmem [shape: f32[1,3], index: 2, kind: input, shape index: {}]   ;;  %s225_s3 = inlined_call_operand.vmem [shape: f32[16,3], index: 3, kind: output, shape index: {}]  }
   0x1   :  { %145 = vmatprep.subr.bf16.mxu0 %v170_v0  ;;  %v163_v1 = vld [vmem:[%s222_s1] sm:$0xff]   ;;  %157 = vmatprep.mubr.msk.bf16.mxu0 %vm171_vm0, %v170_v0  ;;  %v164_v2 = vld [vmem:[%s222_s1 + $0x8] sm:$0xff]   ;;  %v165_v3 = vld [vmem:[%s222_s1 + $0x10] sm:$0xff]  }
   0x2   :  { %146 = vmatpush3.bf16.msra.mxu0 %v163_v1  ;;  %v166_v4 = vld [vmem:[%s222_s1 + $0x18] sm:$0xff]   ;;  %v167_v5 = vld [vmem:[%s222_s1 + $0x20] sm:$0xff]   ;;  %v168_v6 = vld [vmem:[%s222_s1 + $0x28] sm:$0xff]  }
   0x3   :  { %147 = vmatprep.subr.bf16.mxu0 %v170_v0  ;;  %v169_v7 = vld [vmem:[%s223_s0] sm:$0xff]  }
   0x4   :  { %v129_v8 = vld [vmem:[%s224_s2] ss:$0 sm:$0xff] }
   0x6   :  { %148 = vmatpush3.bf16.msra.mxu0 %v164_v2 }
   0x7   :  { %149 = vmatprep.subr.bf16.mxu0 %v170_v0 }
   0xa   :  { %150 = vmatpush3.bf16.msra.mxu0 %v165_v3 }
   0xb   :  { %151 = vmatprep.subr.bf16.mxu0 %v170_v0 }
   0xe   :  { %152 = vmatpush3.bf16.msra.mxu0 %v166_v4 }
   0xf   :  { %153 = vmatprep.subr.bf16.mxu0 %v170_v0 }
  0x12   :  { %154 = vmatpush3.bf16.msra.mxu0 %v167_v5 }
  0x13   :  { %155 = vmatprep.subr.bf16.mxu0 %v170_v0 }
  0x16   :  { %156 = vmatpush3.bf16.msra.mxu0 %v168_v6 }
  0x19   :  { %158 = vmatmul.mubr.msk.bf16.vlgmr.msra.gmra.mrb[0].mxu0 %vm77_vm1, %v169_v7 }
  0xec   :  { %v115_v9 = vpop.f32.mrb[0].mxu0 }
  0xed   :  { %v116_v10 = vadd.f32 %v129_v8, %v115_v9  ;;  %v159_v11 = vpop.f32.mrb[1].mxu0 }
  0xee   :  { %v118_v12 = vpop.f32.mrb[2].mxu0 }
  0xef   :  { %123 = vst.msk [vmem:[%s225_s3] sm:$0xff] %vm122_vm2, %v116_v10  ;;  %v119_v13 = vadd.f32 %v129_v8, %v118_v12  ;;  %v160_v14 = vpop.f32.mrb[3].mxu0 }
  0xf1   :  { %124 = vst.msk [vmem:[%s225_s3 + $0x8] sm:$0xff] %vm122_vm2, %v119_v13 }

// kernel: squeeze.26
= control target key start
LH: loop header
LB: loop body
LE: loop exit
PB: predicated region body
PF: predicated region fallthrough
CT: control target
= control target key end

     0   :  { %vm7_vm0 = vcmask 64512   ;;  %s39_s0 = inlined_call_operand.vmem [shape: f32[16], index: 0, kind: input, shape index: {}]   ;;  %s40_s1 = inlined_call_operand.vmem [shape: f32[2,8], index: 1, kind: output, shape index: {}]  }
   0x1   :  { %v4_v0 = vld [vmem:[%s39_s0] sm:$0x1]  ;;  %s22_s0 = smov 120  }
   0x2   :  { %5 = vst [vmem:[#allocation1] sm:$0x1] %v4_v0 }
   0x9   :  { %v9_v1 = vld [vmem:[#allocation1] sm:$0x1]  }
   0xa   :  { %v6_v2 = vld [vmem:[#allocation1] sm:$0x1]   ;;  %10 = vrot.lane.b32.xlu0 %v9_v1, %s22_s0 }
   0xb   :  { %8 = vst.msk [vmem:[#allocation0] sm:$0x1] %vm7_vm0, %v6_v2  }
  0x7c   :  { %v11_v3 = vpop.permute.xlu0 %10  }
  0x7d   :  { %14 = vst.msk [vmem:[#allocation0 + $0x1] sm:$0x1] %vm7_vm0, %v11_v3  }
  0x84   :  { %v18_v4 = vld [vmem:[#allocation0] sm:$0x3] }
  0x85   :  { %20 = vst [vmem:[%s40_s1] sm:$0x3] %v18_v4 }

// kernel: _lambda_.35
= control target key start
LH: loop header
LB: loop body
LE: loop exit
PB: predicated region body
PF: predicated region fallthrough
CT: control target
= control target key end

     0   :  { %vm80_vm0 = vcmask 261120   ;;  %vm228_vm1 = vcmask 257024   ;;  %s421_s1 = inlined_call_operand.vmem [shape: bf16[32,32], index: 1, kind: input, shape index: {}]   ;;  %s422_s0 = inlined_call_operand.vmem [shape: bf16[96,32], index: 0, kind: input, shape index: {}]   ;;  %s423_s2 = inlined_call_operand.vmem [shape: f32[1,32], index: 2, kind: input, shape index: {}]   ;;  %s424_s3 = inlined_call_operand.vmem [shape: bf16[96,32], index: 3, kind: output, shape index: {}]  }
   0x1   :  { %v312_v0 = vld [vmem:[%s421_s1] sm:$0xff]   ;;  %v313_v1 = vld [vmem:[%s421_s1 + $0x8] sm:$0xff]   ;;  %v314_v2 = vld [vmem:[%s422_s0 + $0x10] sm:$0xff]  }
   0x2   :  { %308 = vmatprep.subr.bf16.mxu1 %v312_v0  ;;  %292 = vmatprep.subr.bf16.mxu0 %v312_v0  ;;  %v316_v3 = vld [vmem:[%s422_s0] sm:$0xff]   ;;  %v315_v4 = vld [vmem:[%s422_s0 + $0x18] sm:$0xff]   ;;  %v317_v5 = vld [vmem:[%s422_s0 + $0x8] sm:$0xff]  }
   0x3   :  { %310 = vmatpush3.bf16.msra.mxu1 %v312_v0  ;;  %293 = vmatpush3.bf16.msra.mxu0 %v312_v0  ;;  %v318_v6 = vld [vmem:[%s422_s0 + $0x20] sm:$0xff]   ;;  %v319_v7 = vld [vmem:[%s422_s0 + $0x28] sm:$0xff]  }
   0x4   :  { %309 = vmatprep.subr.bf16.mxu1 %v313_v1  ;;  %300 = vmatprep.mubr.msk.bf16.mxu1 %vm80_vm0, %v314_v2  ;;  %v245_v8 = vld [vmem:[%s423_s2] ss:$0 sm:$0xff] }
   0x5   :  { %294 = vmatprep.subr.bf16.mxu0 %v313_v1  ;;  %296 = vmatprep.mubr.msk.bf16.mxu0 %vm80_vm0, %v316_v3 }
   0x7   :  { %311 = vmatpush3.bf16.msra.mxu1 %v313_v1  ;;  %295 = vmatpush3.bf16.msra.mxu0 %v313_v1 }
   0xa   :  { %301 = vmatmul.mubr.msk.bf16.vlgmr.msra.gmra.mrb[0].mxu1 %vm80_vm0, %v315_v4  ;;  %297 = vmatmul.mubr.msk.bf16.vlgmr.msra.gmra.mrb[0].mxu0 %vm80_vm0, %v317_v5 }
   0xb   :  { %304 = vmatprep.mubr.msk.bf16.mxu1 %vm80_vm0, %v318_v6 }
  0x12   :  { %305 = vmatmul.mubr.msk.bf16.gmra.mrb[4].mxu1 %vm80_vm0, %v319_v7 }
  0xdd   :  { %v302_v9 = vpop.f32.mrb[0].mxu1  ;;  %v298_v10 = vpop.f32.mrb[0].mxu0 }
  0xde   :  { %v158_v11 = vadd.f32 %v302_v9, %v245_v8  ;;  %v149_v12 = vpop.f32.mrb[1].mxu1  ;;  %v142_v13 = vadd.f32 %v298_v10, %v245_v8  ;;  %v133_v14 = vpop.f32.mrb[1].mxu0 }
  0xdf   :  { %v150_v15 = vadd.f32 %v245_v8, %v149_v12  ;;  %v303_v16 = vpop.f32.mrb[2].mxu1  ;;  %v134_v17 = vadd.f32 %v245_v8, %v133_v14  ;;  %v299_v18 = vpop.f32.mrb[2].mxu0 }
  0xe0   :  { %v278_v19 = vpack.c.bf16 %v158_v11, %v158_v11  ;;  %v161_v20 = vadd.f32 %v303_v16, %v245_v8  ;;  %v152_v21 = vpop.f32.mrb[3].mxu1  ;;  %v274_v22 = vpack.c.bf16 %v142_v13, %v142_v13  ;;  %v145_v23 = vadd.f32 %v299_v18, %v245_v8  ;;  %v136_v24 = vpop.f32.mrb[3].mxu0 }
  0xe1   :  { %v276_v25 = vpack.c.bf16 %v150_v15, %v150_v15  ;;  %v153_v26 = vadd.f32 %v245_v8, %v152_v21  ;;  %v272_v27 = vpack.c.bf16 %v134_v17, %v134_v17  ;;  %v137_v28 = vadd.f32 %v245_v8, %v136_v24 }
  0xe2   :  { %235 = vst.msk [vmem:[%s424_s3 + $0x18] sm:$0xf] %vm228_vm1, %v278_v19  ;;  %v279_v29 = vpack.c.bf16 %v161_v20, %v161_v20  ;;  %231 = vst.msk [vmem:[%s424_s3 + $0x8] sm:$0xf] %vm228_vm1, %v274_v22  ;;  %v275_v30 = vpack.c.bf16 %v145_v23, %v145_v23 }
  0xe3   :  { %233 = vst.msk [vmem:[%s424_s3 + $0x10] sm:$0xf] %vm228_vm1, %v276_v25  ;;  %v277_v31 = vpack.c.bf16 %v153_v26, %v153_v26  ;;  %229 = vst.msk [vmem:[%s424_s3] sm:$0xf] %vm228_vm1, %v272_v27  ;;  %v273_v32 = vpack.c.bf16 %v137_v28, %v137_v28 }
  0xe4   :  { %236 = vst.msk [vmem:[%s424_s3 + $0x1c] sm:$0xf] %vm228_vm1, %v279_v29  ;;  %232 = vst.msk [vmem:[%s424_s3 + $0xc] sm:$0xf] %vm228_vm1, %v275_v30 }
  0xe5   :  { %234 = vst.msk [vmem:[%s424_s3 + $0x14] sm:$0xf] %vm228_vm1, %v277_v31  ;;  %230 = vst.msk [vmem:[%s424_s3 + $0x4] sm:$0xf] %vm228_vm1, %v273_v32  ;;  %v306_v33 = vpop.f32.mrb[4].mxu1 }
  0xe6   :  { %v174_v34 = vadd.f32 %v306_v33, %v245_v8  ;;  %v165_v35 = vpop.f32.mrb[5].mxu1 }
  0xe7   :  { %v166_v36 = vadd.f32 %v245_v8, %v165_v35  ;;  %v307_v37 = vpop.f32.mrb[6].mxu1 }
  0xe8   :  { %v282_v38 = vpack.c.bf16 %v174_v34, %v174_v34  ;;  %v177_v39 = vadd.f32 %v307_v37, %v245_v8  ;;  %v168_v40 = vpop.f32.mrb[7].mxu1 }
  0xe9   :  { %v280_v41 = vpack.c.bf16 %v166_v36, %v166_v36  ;;  %v169_v42 = vadd.f32 %v245_v8, %v168_v40 }
  0xea   :  { %239 = vst.msk [vmem:[%s424_s3 + $0x28] sm:$0xf] %vm228_vm1, %v282_v38  ;;  %v283_v43 = vpack.c.bf16 %v177_v39, %v177_v39 }
  0xeb   :  { %237 = vst.msk [vmem:[%s424_s3 + $0x20] sm:$0xf] %vm228_vm1, %v280_v41  ;;  %v281_v44 = vpack.c.bf16 %v169_v42, %v169_v42 }
  0xec   :  { %240 = vst.msk [vmem:[%s424_s3 + $0x2c] sm:$0xf] %vm228_vm1, %v283_v43 }
  0xed   :  { %238 = vst.msk [vmem:[%s424_s3 + $0x24] sm:$0xf] %vm228_vm1, %v281_v44 }

// kernel: _lambda_.36
= control target key start
LH: loop header
LB: loop body
LE: loop exit
PB: predicated region body
PF: predicated region fallthrough
CT: control target
= control target key end

     0   :  { %vm80_vm0 = vcmask 261120   ;;  %vm228_vm1 = vcmask 519168   ;;  %s421_s1 = inlined_call_operand.vmem [shape: bf16[32,64], index: 1, kind: input, shape index: {}]   ;;  %s422_s0 = inlined_call_operand.vmem [shape: bf16[96,32], index: 0, kind: input, shape index: {}]   ;;  %s423_s2 = inlined_call_operand.vmem [shape: f32[1,64], index: 2, kind: input, shape index: {}]   ;;  %s424_s3 = inlined_call_operand.vmem [shape: bf16[96,64], index: 3, kind: output, shape index: {}]  }
   0x1   :  { %v312_v0 = vld [vmem:[%s421_s1] sm:$0xff]   ;;  %v313_v1 = vld [vmem:[%s421_s1 + $0x8] sm:$0xff]   ;;  %v314_v2 = vld [vmem:[%s422_s0 + $0x10] sm:$0xff]  }
   0x2   :  { %308 = vmatprep.subr.bf16.mxu1 %v312_v0  ;;  %292 = vmatprep.subr.bf16.mxu0 %v312_v0  ;;  %v316_v3 = vld [vmem:[%s422_s0] sm:$0xff]   ;;  %v315_v4 = vld [vmem:[%s422_s0 + $0x18] sm:$0xff]   ;;  %v317_v5 = vld [vmem:[%s422_s0 + $0x8] sm:$0xff]  }
   0x3   :  { %310 = vmatpush3.bf16.msra.mxu1 %v312_v0  ;;  %293 = vmatpush3.bf16.msra.mxu0 %v312_v0  ;;  %v318_v6 = vld [vmem:[%s422_s0 + $0x20] sm:$0xff]   ;;  %v319_v7 = vld [vmem:[%s422_s0 + $0x28] sm:$0xff]  }
   0x4   :  { %309 = vmatprep.subr.bf16.mxu1 %v313_v1  ;;  %300 = vmatprep.mubr.msk.bf16.mxu1 %vm80_vm0, %v314_v2  ;;  %v245_v8 = vld [vmem:[%s423_s2] ss:$0 sm:$0xff] }
   0x5   :  { %294 = vmatprep.subr.bf16.mxu0 %v313_v1  ;;  %296 = vmatprep.mubr.msk.bf16.mxu0 %vm80_vm0, %v316_v3 }
   0x7   :  { %311 = vmatpush3.bf16.msra.mxu1 %v313_v1  ;;  %295 = vmatpush3.bf16.msra.mxu0 %v313_v1 }
   0xa   :  { %301 = vmatmul.mubr.msk.bf16.vlgmr.msra.gmra.mrb[0].mxu1 %vm80_vm0, %v315_v4  ;;  %297 = vmatmul.mubr.msk.bf16.vlgmr.msra.gmra.mrb[0].mxu0 %vm80_vm0, %v317_v5 }
   0xb   :  { %304 = vmatprep.mubr.msk.bf16.mxu1 %vm80_vm0, %v318_v6 }
  0x12   :  { %305 = vmatmul.mubr.msk.bf16.gmra.mrb[4].mxu1 %vm80_vm0, %v319_v7 }
  0xdd   :  { %v302_v9 = vpop.f32.mrb[0].mxu1  ;;  %v298_v10 = vpop.f32.mrb[0].mxu0 }
  0xde   :  { %v158_v11 = vadd.f32 %v302_v9, %v245_v8  ;;  %v149_v12 = vpop.f32.mrb[1].mxu1  ;;  %v142_v13 = vadd.f32 %v298_v10, %v245_v8  ;;  %v133_v14 = vpop.f32.mrb[1].mxu0 }
  0xdf   :  { %v150_v15 = vadd.f32 %v245_v8, %v149_v12  ;;  %v303_v16 = vpop.f32.mrb[2].mxu1  ;;  %v134_v17 = vadd.f32 %v245_v8, %v133_v14  ;;  %v299_v18 = vpop.f32.mrb[2].mxu0 }
  0xe0   :  { %v278_v19 = vpack.c.bf16 %v158_v11, %v158_v11  ;;  %v161_v20 = vadd.f32 %v303_v16, %v245_v8  ;;  %v152_v21 = vpop.f32.mrb[3].mxu1  ;;  %v274_v22 = vpack.c.bf16 %v142_v13, %v142_v13  ;;  %v145_v23 = vadd.f32 %v299_v18, %v245_v8  ;;  %v136_v24 = vpop.f32.mrb[3].mxu0 }
  0xe1   :  { %v276_v25 = vpack.c.bf16 %v150_v15, %v150_v15  ;;  %v153_v26 = vadd.f32 %v245_v8, %v152_v21  ;;  %v272_v27 = vpack.c.bf16 %v134_v17, %v134_v17  ;;  %v137_v28 = vadd.f32 %v245_v8, %v136_v24 }
  0xe2   :  { %235 = vst.msk [vmem:[%s424_s3 + $0x18] sm:$0xf] %vm228_vm1, %v278_v19  ;;  %v279_v29 = vpack.c.bf16 %v161_v20, %v161_v20  ;;  %231 = vst.msk [vmem:[%s424_s3 + $0x8] sm:$0xf] %vm228_vm1, %v274_v22  ;;  %v275_v30 = vpack.c.bf16 %v145_v23, %v145_v23 }
  0xe3   :  { %233 = vst.msk [vmem:[%s424_s3 + $0x10] sm:$0xf] %vm228_vm1, %v276_v25  ;;  %v277_v31 = vpack.c.bf16 %v153_v26, %v153_v26  ;;  %229 = vst.msk [vmem:[%s424_s3] sm:$0xf] %vm228_vm1, %v272_v27  ;;  %v273_v32 = vpack.c.bf16 %v137_v28, %v137_v28 }
  0xe4   :  { %236 = vst.msk [vmem:[%s424_s3 + $0x1c] sm:$0xf] %vm228_vm1, %v279_v29  ;;  %232 = vst.msk [vmem:[%s424_s3 + $0xc] sm:$0xf] %vm228_vm1, %v275_v30 }
  0xe5   :  { %234 = vst.msk [vmem:[%s424_s3 + $0x14] sm:$0xf] %vm228_vm1, %v277_v31  ;;  %230 = vst.msk [vmem:[%s424_s3 + $0x4] sm:$0xf] %vm228_vm1, %v273_v32  ;;  %v306_v33 = vpop.f32.mrb[4].mxu1 }
  0xe6   :  { %v174_v34 = vadd.f32 %v306_v33, %v245_v8  ;;  %v165_v35 = vpop.f32.mrb[5].mxu1 }
  0xe7   :  { %v166_v36 = vadd.f32 %v245_v8, %v165_v35  ;;  %v307_v37 = vpop.f32.mrb[6].mxu1 }
  0xe8   :  { %v282_v38 = vpack.c.bf16 %v174_v34, %v174_v34  ;;  %v177_v39 = vadd.f32 %v307_v37, %v245_v8  ;;  %v168_v40 = vpop.f32.mrb[7].mxu1 }
  0xe9   :  { %v280_v41 = vpack.c.bf16 %v166_v36, %v166_v36  ;;  %v169_v42 = vadd.f32 %v245_v8, %v168_v40 }
  0xea   :  { %239 = vst.msk [vmem:[%s424_s3 + $0x28] sm:$0xf] %vm228_vm1, %v282_v38  ;;  %v283_v43 = vpack.c.bf16 %v177_v39, %v177_v39 }
  0xeb   :  { %237 = vst.msk [vmem:[%s424_s3 + $0x20] sm:$0xf] %vm228_vm1, %v280_v41  ;;  %v281_v44 = vpack.c.bf16 %v169_v42, %v169_v42 }
  0xec   :  { %240 = vst.msk [vmem:[%s424_s3 + $0x2c] sm:$0xf] %vm228_vm1, %v283_v43 }
  0xed   :  { %238 = vst.msk [vmem:[%s424_s3 + $0x24] sm:$0xf] %vm228_vm1, %v281_v44 }

// kernel: _lambda_.37
= control target key start
LH: loop header
LB: loop body
LE: loop exit
PB: predicated region body
PF: predicated region fallthrough
CT: control target
= control target key end

     0   :  { %s1704_s12 = smov 0   ;;  %s1706_s13 = smov 0   ;;  %s2221_s0 = inlined_call_operand.vmem [shape: bf16[2,48,32], index: 0, kind: input, shape index: {}]   ;;  %s2222_s1 = inlined_call_operand.vmem [shape: bf16[2,48,64], index: 1, kind: input, shape index: {}]   ;;  %s2223_s2 = inlined_call_operand.vmem [shape: f32[2,1,48], index: 2, kind: input, shape index: {}]   ;;  %s2224_s3 = inlined_call_operand.vmem [shape: bf16[2,48,32], index: 3, kind: output, shape index: {}]  }
   0x1   :  { %s1708_s14 = smov 0  }
   0x2 LB: > { %s32_s15 = sadd.s32 1, %s1669_s13  ;;  %p1392_p0 = scmp.ge.s32.totalorder %s1673_s14, 1  ;;  %s1673_s14 = sphi %s1708_s14, %s13_s14   ;;  %s1669_s13 = sphi %s1706_s13, %s2226_s13   ;;  %s1665_s12 = sphi %s1704_s12, %s2225_s12  }
   0x3   : > { %p34_p1 = scmp.ge.s32.totalorder %s32_s15, 2  ;;  %p195_p2 = scmp.lt.s32.totalorder %s1673_s14, 3 }
   0x5   : > { %s2228_s15 = smov (%p34_p1, %s32_s15), 0  ;;  %p196_p3 = pnand %p1392_p0, %p195_p2 }
   0x6   : > { %p243_p4 = scmp.lt.s32.totalorder (!%p196_p3), %s1665_s12, 1  ;;  %v1675_v0 = vmov (!%p196_p3), 0.0   ;;  %vm1676_vm0 = vmmov (!%p196_p3), 0   ;;  %vm352_vm1 = vcmask (!%p196_p3), 130048   ;;  %vm283_vm2 = vcmask (!%p196_p3), 15360   ;;  %s1679_s26 = smov (!%p196_p3), 96  }
   0x7   : > { %199 = sbr.rel (%p196_p3) target bundleno = 1471 (0x5bf), region = 32  ;;  %1465 = vmatprep.subr.bf16.mxu0 (!%p196_p3), %v1675_v0  ;;  %1471 = vmatprep.mubr.msk.bf16.mxu0 (!%p196_p3), %vm1676_vm0, %v1675_v0  ;;  %v1677_v10 = vmov (!%p196_p3), -inf   ;;  %290 = vst.msk [vmem:[#allocation3] sm:$0xff] (!%p196_p3), %vm283_vm2, %v1675_v0  ;;  %291 = vst.msk [vmem:[#allocation3 + $0x8] sm:$0xff] (!%p196_p3), %vm283_vm2, %v1675_v0  ;;  %vm434_vm3 = vcmask (!%p196_p3), 392192   ;;  %v1678_v35 = vmov (!%p196_p3), 0  }
   0x8   : > { %1483 = vmatprep.subr.bf16.mxu1 (!%p196_p3), %v1675_v0  ;;  %1489 = vmatprep.mubr.msk.bf16.mxu1 (!%p196_p3), %vm1676_vm0, %v1675_v0  ;;  %284 = vst.msk [vmem:[#allocation2] sm:$0xff] (!%p196_p3), %vm283_vm2, %v1677_v10  ;;  %285 = vst.msk [vmem:[#allocation2 + $0x8] sm:$0xff] (!%p196_p3), %vm283_vm2, %v1677_v10  ;;  %vm561_vm4 = vcmask (!%p196_p3), 7168   ;;  %s1680_s27 = smov (!%p196_p3), 112   ;;  %vm925_vm5 = vcmask (!%p196_p3), 15368   ;;  %s1682_s28 = smov (!%p196_p3), 80  }
   0x9   : > { %286 = vst.msk [vmem:[#allocation2 + $0x10] sm:$0xff] (!%p196_p3), %vm283_vm2, %v1677_v10  ;;  %287 = vst.msk [vmem:[#allocation2 + $0x18] sm:$0xff] (!%p196_p3), %vm283_vm2, %v1677_v10  ;;  %1571 = vset.pattern.permute.xlu0 (!%p196_p3), %v1678_v35  ;;  %1572 = vset.pattern.permute.xlu1 (!%p196_p3), %v1678_v35  ;;  %vm296_vm6 = vcmask (!%p196_p3), 261120   ;;  %s1683_s29 = smov (!%p196_p3), 16   ;;  %vm1082_vm7 = vcmask (!%p196_p3), 261248   ;;  %vm1176_vm8 = vcmask (!%p196_p3), 125952  }
   0xa   : > { %288 = vst.msk [vmem:[#allocation2 + $0x20] sm:$0xff] (!%p196_p3), %vm283_vm2, %v1677_v10  ;;  %289 = vst.msk [vmem:[#allocation2 + $0x28] sm:$0xff] (!%p196_p3), %vm283_vm2, %v1677_v10  ;;  %vm1261_vm9 = vcmask (!%p196_p3), 257152  }
   0xb   : > { %292 = vst.msk [vmem:[#allocation3 + $0x10] sm:$0xff] (!%p196_p3), %vm283_vm2, %v1675_v0  ;;  %293 = vst.msk [vmem:[#allocation3 + $0x18] sm:$0xff] (!%p196_p3), %vm283_vm2, %v1675_v0 }
   0xc   : > { %294 = vst.msk [vmem:[#allocation3 + $0x20] sm:$0xff] (!%p196_p3), %vm283_vm2, %v1675_v0  ;;  %295 = vst.msk [vmem:[#allocation3 + $0x28] sm:$0xff] (!%p196_p3), %vm283_vm2, %v1675_v0 }
   0xd   : > { %297 = vst.msk [vmem:[#allocation4] sm:$0xff] (!%p196_p3), %vm296_vm6, %v1675_v0  ;;  %298 = vst.msk [vmem:[#allocation4 + $0x8] sm:$0xff] (!%p196_p3), %vm296_vm6, %v1675_v0 }
   0xe   : > { %s2230_s12 = smov (!%p243_p4, %s1665_s12), 1  ;;  %299 = vst.msk [vmem:[#allocation4 + $0x10] sm:$0xff] %vm296_vm6, %v1675_v0  ;;  %300 = vst.msk [vmem:[#allocation4 + $0x18] sm:$0xff] %vm296_vm6, %v1675_v0 }
   0xf   : > { %s1731_s16 = smul.u32 24, %s2230_s12  ;;  %s267_s25 = scalar_lea.vmem %s2223_s2, %s2230_s12  ;;  %v1822_v37 = vld [vmem:[#allocation2] sm:$0xff]  ;;  %v1827_v40 = vld [vmem:[#allocation2 + $0x8] sm:$0xff]  ;;  %301 = vst.msk [vmem:[#allocation4 + $0x20] sm:$0xff] %vm296_vm6, %v1675_v0  ;;  %302 = vst.msk [vmem:[#allocation4 + $0x28] sm:$0xff] %vm296_vm6, %v1675_v0 }
  0x10   : > { %v1784_v11 = vld [vmem:[%s267_s25] ss:$0 sm:$0xff]  ;;  %v1837_v44 = vld [vmem:[#allocation2 + $0x10] sm:$0xff]  ;;  %v1849_v48 = vld [vmem:[#allocation2 + $0x18] sm:$0xff] }
  0x11   : > { %s260_s19 = scalar_lea.vmem %s2222_s1, %s1731_s16  ;;  %s250_s22 = scalar_lea.vmem %s2221_s0, %s1731_s16  ;;  %v1861_v52 = vld [vmem:[#allocation2 + $0x20] sm:$0xff]  ;;  %v1870_v55 = vld [vmem:[#allocation2 + $0x28] sm:$0xff] }
  0x12   : > { %v1737_v1 = vld [vmem:[%s260_s19] sm:$0xff]   ;;  %v1746_v3 = vld [vmem:[%s260_s19 + $0x8] sm:$0xff]   ;;  %v1751_v5 = vld [vmem:[%s260_s19 + $0x10] sm:$0xff]   ;;  %s2180_s5 = scalar_lea.vmem %s2224_s3, %s1731_s16 }
  0x13   : > { %v363_v2 = vsel %vm352_vm1, %v1737_v1, 0  ;;  %v366_v4 = vsel %vm352_vm1, %v1746_v3, 0  ;;  %v369_v6 = vsel %vm352_vm1, %v1751_v5, 0  ;;  %v1756_v7 = vld [vmem:[%s250_s22] sm:$0xff]   ;;  %v1762_v8 = vld [vmem:[%s250_s22 + $0x8] sm:$0xff]   ;;  %v1768_v9 = vld [vmem:[%s250_s22 + $0x10] sm:$0xff]  }
  0x14   : > { %1466 = vmatpush3.bf16.xpose.msra.mxu0 %v363_v2 }
  0x15   : > { %1467 = vmatprep.subr.bf16.mxu0 %v1675_v0 }
  0x1c   : > { %1468 = vmatpush3.bf16.xpose.msra.mxu0 %v366_v4 }
  0x1d   : > { %1469 = vmatprep.subr.bf16.mxu0 %v1675_v0 }
  0x24   : > { %1470 = vmatpush3.bf16.xpose.msra.mxu0 %v369_v6 }
  0x25   : > { %1519 = vmatprep.subr.bf16.mxu0 %v1675_v0 }
  0x2b   : > { %1472 = vmatmul.mubr.msk.bf16.vlgmr.msra.gmra.mrb[0].mxu0 %vm352_vm1, %v1756_v7 }
  0x2c   : > { %1475 = vmatprep.mubr.msk.bf16.mxu0 %vm1676_vm0, %v1675_v0 }
  0x33   : > { %1476 = vmatmul.mubr.msk.bf16.gmra.mrb[4].mxu0 %vm352_vm1, %v1762_v8 }
  0x34   : > { %1479 = vmatprep.mubr.msk.bf16.mxu0 %vm1676_vm0, %v1675_v0 }
  0x3b   : > { %1480 = vmatmul.mubr.msk.bf16.gmra.mrb[8].mxu0 %vm352_vm1, %v1768_v9 }
  0x3c   : > { %1525 = vmatprep.mubr.msk.bf16.mxu0 %vm1676_vm0, %v1675_v0 }
  0xfe   : > { %v405_v12 = vpop.f32.mrb[0].mxu0 }
  0xff   : > { %v1787_v13 = vadd.f32 %v1784_v11, %v405_v12  ;;  %v1473_v14 = vpop.f32.mrb[1].mxu0 }
 0x100   : > { %v408_v15 = vpop.f32.mrb[2].mxu0 }
 0x101   : > { %v1790_v16 = vadd.f32 %v1784_v11, %v408_v15  ;;  %v1474_v17 = vpop.f32.mrb[3].mxu0  ;;  %v435_v18 = vsel %vm434_vm3, %v1787_v13, -inf }
 0x102   : > { %436 = vmax.xlane.f32.xlu0 %v435_v18 }
 0x103   : > { %v438_v19 = vsel %vm434_vm3, %v1790_v16, -inf }
 0x106   : > { %439 = vmax.xlane.f32.xlu0 %v438_v19  ;;  %v413_v20 = vpop.f32.mrb[4].mxu0 }
 0x107   : > { %v1797_v21 = vadd.f32 %v1784_v11, %v413_v20  ;;  %v1477_v22 = vpop.f32.mrb[5].mxu0 }
 0x108   : > { %v416_v23 = vpop.f32.mrb[6].mxu0 }
 0x109   : > { %v1800_v24 = vadd.f32 %v1784_v11, %v416_v23  ;;  %v1478_v25 = vpop.f32.mrb[7].mxu0  ;;  %v441_v26 = vsel %vm434_vm3, %v1797_v21, -inf }
 0x10a   : > { %442 = vmax.xlane.f32.xlu1 %v441_v26 }
 0x10b   : > { %v444_v27 = vsel %vm434_vm3, %v1800_v24, -inf }
 0x10e   : > { %445 = vmax.xlane.f32.xlu1 %v444_v27  ;;  %v421_v28 = vpop.f32.mrb[8].mxu0 }
 0x10f   : > { %v1807_v29 = vadd.f32 %v1784_v11, %v421_v28  ;;  %v1481_v30 = vpop.f32.mrb[9].mxu0 }
 0x110   : > { %v424_v31 = vpop.f32.mrb[10].mxu0 }
 0x111   : > { %v1810_v32 = vadd.f32 %v1784_v11, %v424_v31  ;;  %v1482_v33 = vpop.f32.mrb[11].mxu0  ;;  %v447_v34 = vsel %vm434_vm3, %v1807_v29, -inf }
 0x112   : > { %448 = vmax.xlane.f32.xlu0 %v447_v34 }
 0x113   : > { %v450_v36 = vsel %vm434_vm3, %v1810_v32, -inf }
 0x114   : > { %451 = vmax.xlane.f32.xlu1 %v450_v36 }
 0x125   : > { %613 = vrot.lane.b32.xlu1 %v1737_v1, %s1679_s26 }
 0x129   : > { %615 = vrot.lane.b32.xlu1 %v1746_v3, %s1679_s26 }
 0x18f   : > { %v437_v38 = vpop.xlane.xlu0 %436 }
 0x190   : > { %v1825_v39 = vmax.f32 %v1822_v37, %v437_v38 }
 0x192   : > { %v459_v41 = vsub.f32 %v1822_v37, %v1825_v39  ;;  %700 = vst.msk [vmem:[#allocation2] sm:$0xff] %vm561_vm4, %v1825_v39  ;;  %479 = vperm.xlu0 %1571, %v1825_v39  }
 0x193   : > { %v440_v42 = vpop.xlane.xlu0 %439 }
 0x194   : > { %v1835_v43 = vmax.f32 %v1827_v40, %v440_v42 }
 0x196   : > { %v460_v45 = vsub.f32 %v1827_v40, %v1835_v43  ;;  %701 = vst.msk [vmem:[#allocation2 + $0x8] sm:$0xff] %vm561_vm4, %v1835_v43  ;;  %484 = vperm.xlu1 %1572, %v1835_v43   ;;  %712 = vrot.lane.b32.xlu0 %v1737_v1, %s1680_s27 }
 0x197   : > { %v443_v46 = vpop.xlane.xlu1 %442 }
 0x198   : > { %v1847_v47 = vmax.f32 %v1837_v44, %v443_v46 }
 0x19a   : > { %v461_v49 = vsub.f32 %v1837_v44, %v1847_v47  ;;  %702 = vst.msk [vmem:[#allocation2 + $0x10] sm:$0xff] %vm561_vm4, %v1847_v47  ;;  %489 = vperm.xlu1 %1572, %v1847_v47   ;;  %716 = vrot.lane.b32.xlu0 %v1751_v5, %s1680_s27 }
 0x19b   : > { %v446_v50 = vpop.xlane.xlu1 %445 }
 0x19c   : > { %v1859_v51 = vmax.f32 %v1849_v48, %v446_v50 }
 0x19e   : > { %v462_v53 = vsub.f32 %v1849_v48, %v1859_v51  ;;  %703 = vst.msk [vmem:[#allocation2 + $0x18] sm:$0xff] %vm561_vm4, %v1859_v51  ;;  %494 = vperm.xlu1 %1572, %v1859_v51   ;;  %708 = vrot.lane.b32.xlu0 %v1762_v8, %s1680_s27 }
 0x19f   : > { %v449_v54 = vpop.xlane.xlu0 %448 }
 0x1a0   : > { %v1873_v56 = vmax.f32 %v1861_v52, %v449_v54  ;;  %v471_v43 = vmul.f32 1.442695, %v462_v53 }
 0x1a1   : > { %v452_v57 = vpop.xlane.xlu1 %451 }
 0x1a2   : > { %v463_v58 = vsub.f32 %v1861_v52, %v1873_v56  ;;  %704 = vst.msk [vmem:[#allocation2 + $0x20] sm:$0xff] %vm561_vm4, %v1873_v56  ;;  %v1880_v59 = vmax.f32 %v1870_v55, %v452_v57  ;;  %499 = vperm.xlu1 %1572, %v1873_v56  }
 0x1a4   : > { %v464_v60 = vsub.f32 %v1870_v55, %v1880_v59  ;;  %705 = vst.msk [vmem:[#allocation2 + $0x28] sm:$0xff] %vm561_vm4, %v1880_v59 }
 0x1a5   : > { %v614_v61 = vpop.permute.xlu1 %613 }
 0x1a6   : > { %504 = vperm.xlu1 %1572, %v1880_v59   ;;  %1484 = vmatpush3.bf16.msra.mxu1 %v614_v61  ;;  %v475_v44 = vmul.f32 1.442695, %v464_v60 }
 0x1a7   : > { %1485 = vmatprep.subr.bf16.mxu1 %v1675_v0 }
 0x1a9   : > { %v616_v62 = vpop.permute.xlu1 %615 }
 0x1aa   : > { %617 = vrot.lane.b32.xlu1 %v1751_v5, %s1679_s26  ;;  %1486 = vmatpush3.bf16.msra.mxu1 %v616_v62 }
 0x1ab   : > { %1487 = vmatprep.subr.bf16.mxu1 %v1675_v0 }
 0x1ae   : > { %714 = vrot.lane.b32.xlu1 %v1746_v3, %s1680_s27 }
 0x1b2   : > { %706 = vrot.lane.b32.xlu1 %v1756_v7, %s1680_s27 }
 0x1b6   : > { %710 = vrot.lane.b32.xlu1 %v1768_v9, %s1680_s27 }
 0x211   : > { %v480_v63 = vpop.permute.xlu0 %479 }
 0x212   : > { %v507_v6 = vsub.f32 %v1787_v13, %v480_v63 }
 0x214   : > { %v513_v12 = vmul.f32 1.442695, %v507_v6 }
 0x215   : > { %v485_v2 = vpop.permute.xlu1 %484  ;;  %v713_v26 = vpop.permute.xlu0 %712 }
 0x216   : > { %v508_v4 = vsub.f32 %v1790_v16, %v485_v2  ;;  %v728_v28 = vsel %vm352_vm1, %v713_v26, 0 }
 0x218   : > { %v515_v10 = vmul.f32 1.442695, %v508_v4 }
 0x219   : > { %v490_v8 = vpop.permute.xlu1 %489  ;;  %v717_v38 = vpop.permute.xlu0 %716 }
 0x21a   : > { %1591 = vpow2.f32 %v515_v10  ;;  %v509_v17 = vsub.f32 %v1797_v21, %v490_v8  ;;  %v734_v42 = vsel %vm352_vm1, %v717_v38, 0 }
 0x21b   : > { %1593 = vpow2.f32 %v513_v12 }
 0x21c   : > { %v517_v19 = vmul.f32 1.442695, %v509_v17 }
 0x21d   : > { %v495_v14 = vpop.permute.xlu1 %494  ;;  %v709_v50 = vpop.permute.xlu0 %708 }
 0x21e   : > { %v510_v15 = vsub.f32 %v1800_v24, %v495_v14 }
 0x220   : > { %v519_v18 = vmul.f32 1.442695, %v510_v15 }
 0x221   : > { %v500_v7 = vpop.permute.xlu1 %499 }
 0x222   : > { %1595 = vpow2.f32 %v519_v18  ;;  %v511_v13 = vsub.f32 %v1807_v29, %v500_v7 }
 0x223   : > { %1597 = vpow2.f32 %v517_v19 }
 0x224   : > { %v1903_v16 = vpop.eup %1591  ;;  %v521_v24 = vmul.f32 1.442695, %v511_v13 }
 0x225   : > { %v505_v9 = vpop.permute.xlu1 %504  ;;  %v1906_v23 = vpop.eup %1593 }
 0x226   : > { %v512_v20 = vsub.f32 %v1810_v32, %v505_v9  ;;  %v610_v21 = vpack.c.bf16 %v1903_v16, %v1906_v23 }
 0x228   : > { %v523_v25 = vmul.f32 1.442695, %v512_v20 }
 0x229   : > { %v618_v22 = vpop.permute.xlu1 %617 }
 0x22a   : > { %1488 = vmatpush3.bf16.msra.mxu1 %v618_v22  ;;  %1599 = vpow2.f32 %v523_v25 }
 0x22b   : > { %1501 = vmatprep.subr.bf16.mxu1 %v1675_v0  ;;  %1601 = vpow2.f32 %v521_v24 }
 0x22c   : > { %v1914_v27 = vpop.eup %1595 }
 0x22d   : > { %1490 = vmatmul.mubr.msk.bf16.vlgmr.msra.gmra.mrb[0].mxu1 %vm434_vm3, %v610_v21  ;;  %v1917_v29 = vpop.eup %1597  ;;  %v715_v31 = vpop.permute.xlu1 %714 }
 0x22e   : > { %1493 = vmatprep.mubr.msk.bf16.mxu1 %vm1676_vm0, %v1675_v0  ;;  %v611_v30 = vpack.c.bf16 %v1914_v27, %v1917_v29  ;;  %v731_v33 = vsel %vm352_vm1, %v715_v31, 0 }
 0x231   : > { %v707_v46 = vpop.permute.xlu1 %706 }
 0x233   : > { %1502 = vmatpush3.bf16.xpose.msra.mxu1 %v728_v28 }
 0x234   : > { %1503 = vmatprep.subr.bf16.mxu1 %v1675_v0  ;;  %v1925_v32 = vpop.eup %1599 }
 0x235   : > { %1494 = vmatmul.mubr.msk.bf16.gmra.mrb[4].mxu1 %vm434_vm3, %v611_v30  ;;  %v1928_v34 = vpop.eup %1601  ;;  %v711_v54 = vpop.permute.xlu1 %710 }
 0x236   : > { %1497 = vmatprep.mubr.msk.bf16.mxu1 %vm1676_vm0, %v1675_v0  ;;  %v612_v36 = vpack.c.bf16 %v1925_v32, %v1928_v34 }
 0x23b   : > { %1504 = vmatpush3.bf16.xpose.msra.mxu1 %v731_v33 }
 0x23c   : > { %1505 = vmatprep.subr.bf16.mxu1 %v1675_v0 }
 0x23d   : > { %1498 = vmatmul.mubr.msk.bf16.gmra.mrb[8].mxu1 %vm434_vm3, %v612_v36 }
 0x23e   : > { %1507 = vmatprep.mubr.msk.bf16.mxu1 %vm1676_vm0, %v1675_v0 }
 0x243   : > { %1506 = vmatpush3.bf16.xpose.msra.mxu1 %v734_v42 }
 0x24a   : > { %1508 = vmatmul.mubr.msk.bf16.vlgmr.msra.gmra.mrb[12].mxu1 %vm352_vm1, %v707_v46 }
 0x24b   : > { %1511 = vmatprep.mubr.msk.bf16.mxu1 %vm1676_vm0, %v1675_v0 }
 0x252   : > { %1512 = vmatmul.mubr.msk.bf16.gmra.mrb[16].mxu1 %vm352_vm1, %v709_v50 }
 0x253   : > { %1515 = vmatprep.mubr.msk.bf16.mxu1 %vm1676_vm0, %v1675_v0 }
 0x25a   : > { %1516 = vmatmul.mubr.msk.bf16.gmra.mrb[20].mxu1 %vm352_vm1, %v711_v54 }
 0x300   : > { %v1944_v57 = vpop.f32.mrb[0].mxu1 }
 0x301   : > { %v1491_v61 = vpop.f32.mrb[1].mxu1 }
 0x302   : > { %v1946_v62 = vpop.f32.mrb[2].mxu1 }
 0x303   : > { %v1492_v63 = vpop.f32.mrb[3].mxu1 }
 0x304   : > { %v1681_v63 = vmov 1  }
 0x305   : > { %1573 = vset.pattern.permute.xlu1 %v1681_v63  ;;  %1574 = vset.pattern.permute.xlu0 %v1681_v63 }
 0x308   : > { %v1948_v2 = vpop.f32.mrb[4].mxu1 }
 0x309   : > { %v1495_v4 = vpop.f32.mrb[5].mxu1 }
 0x30a   : > { %v1950_v6 = vpop.f32.mrb[6].mxu1 }
 0x30b   : > { %v1496_v8 = vpop.f32.mrb[7].mxu1 }
 0x30c   : > { %v1988_v8 = vld [vmem:[#allocation2] sm:$0xff] }
 0x310   : > { %v1952_v10 = vpop.f32.mrb[8].mxu1 }
 0x311   : > { %v1499_v12 = vpop.f32.mrb[9].mxu1 }
 0x312   : > { %v1954_v14 = vpop.f32.mrb[10].mxu1 }
 0x313   : > { %v1500_v15 = vpop.f32.mrb[11].mxu1 }
 0x314   : > { %v1993_v15 = vld [vmem:[#allocation2 + $0x8] sm:$0xff] }
 0x31d   : > { %v770_v17 = vpop.f32.mrb[12].mxu1 }
 0x31e   : > { %v1957_v7 = vadd.f32 %v1784_v11, %v770_v17  ;;  %v1509_v18 = vpop.f32.mrb[13].mxu1 }
 0x31f   : > { %v773_v19 = vpop.f32.mrb[14].mxu1 }
 0x320   : > { %v1960_v9 = vadd.f32 %v1784_v11, %v773_v19  ;;  %v1510_v20 = vpop.f32.mrb[15].mxu1  ;;  %v799_v13 = vsel %vm434_vm3, %v1957_v7, -inf }
 0x321   : > { %800 = vmax.xlane.f32.xlu0 %v799_v13  ;;  %v2009_v13 = vld [vmem:[#allocation2 + $0x10] sm:$0xff] }
 0x322   : > { %v802_v22 = vsel %vm434_vm3, %v1960_v9, -inf }
 0x323   : > { %803 = vmax.xlane.f32.xlu1 %v802_v22 }
 0x325   : > { %v778_v25 = vpop.f32.mrb[16].mxu1 }
 0x326   : > { %v1967_v21 = vadd.f32 %v1784_v11, %v778_v25  ;;  %v1513_v24 = vpop.f32.mrb[17].mxu1 }
 0x327   : > { %v781_v26 = vpop.f32.mrb[18].mxu1 }
 0x328   : > { %v1970_v28 = vadd.f32 %v1784_v11, %v781_v26  ;;  %v1514_v30 = vpop.f32.mrb[19].mxu1  ;;  %v805_v31 = vsel %vm434_vm3, %v1967_v21, -inf  ;;  %v2019_v26 = vld [vmem:[#allocation2 + $0x18] sm:$0xff] }
 0x329   : > { %806 = vmax.xlane.f32.xlu0 %v805_v31 }
 0x32a   : > { %v808_v33 = vsel %vm434_vm3, %v1970_v28, -inf }
 0x32d   : > { %809 = vmax.xlane.f32.xlu0 %v808_v33  ;;  %v786_v36 = vpop.f32.mrb[20].mxu1  ;;  %v2029_v33 = vld [vmem:[#allocation2 + $0x20] sm:$0xff] }
 0x32e   : > { %v1977_v38 = vadd.f32 %v1784_v11, %v786_v36  ;;  %v1517_v42 = vpop.f32.mrb[21].mxu1 }
 0x32f   : > { %v789_v46 = vpop.f32.mrb[22].mxu1 }
 0x330   : > { %v1980_v50 = vadd.f32 %v1784_v11, %v789_v46  ;;  %v1518_v54 = vpop.f32.mrb[23].mxu1  ;;  %v811_v61 = vsel %vm434_vm3, %v1977_v38, -inf  ;;  %v2034_v46 = vld [vmem:[#allocation2 + $0x28] sm:$0xff] }
 0x331   : > { %812 = vmax.xlane.f32.xlu1 %v811_v61 }
 0x332   : > { %v814_v4 = vsel %vm434_vm3, %v1980_v50, -inf }
 0x333   : > { %815 = vmax.xlane.f32.xlu0 %v814_v4 }
 0x3ae   : > { %v801_v12 = vpop.xlane.xlu0 %800 }
 0x3af   : > { %v1991_v11 = vmax.f32 %v1988_v8, %v801_v12 }
 0x3b0   : > { %v804_v17 = vpop.xlane.xlu1 %803 }
 0x3b1   : > { %v823_v18 = vsub.f32 %v1988_v8, %v1991_v11  ;;  %1089 = vst.msk [vmem:[#allocation2] sm:$0xff] %vm925_vm5, %v1991_v11  ;;  %v2000_v19 = vmax.f32 %v1993_v15, %v804_v17  ;;  %843 = vperm.xlu1 %1573, %v1991_v11   ;;  %v540_v17 = vsel %vm434_vm3, %v1903_v16, 0.0  ;;  %v465_v16 = vmul.f32 1.442695, %v459_v41 }
 0x3b3   : > { %v824_v20 = vsub.f32 %v1993_v15, %v2000_v19  ;;  %1090 = vst.msk [vmem:[#allocation2 + $0x8] sm:$0xff] %vm925_vm5, %v2000_v19  ;;  %848 = vperm.xlu0 %1574, %v2000_v19   ;;  %1603 = vpow2.f32 %v465_v16  ;;  %v829_v48 = vmul.f32 1.442695, %v823_v18  ;;  %v528_v18 = vld [vmem:[#allocation3 + $0x18] sm:$0xff] }
 0x3b5   : > { %977 = vrot.lane.b32.xlu1 %v1737_v1, %s1682_s28  ;;  %v831_v51 = vmul.f32 1.442695, %v824_v20 }
 0x3b6   : > { %v807_v22 = vpop.xlane.xlu0 %806 }
 0x3b7   : > { %v2012_v25 = vmax.f32 %v2009_v13, %v807_v22  ;;  %v543_v22 = vsel %vm434_vm3, %v1917_v29, 0.0 }
 0x3b9   : > { %v825_v24 = vsub.f32 %v2009_v13, %v2012_v25  ;;  %1091 = vst.msk [vmem:[#allocation2 + $0x10] sm:$0xff] %vm925_vm5, %v2012_v25  ;;  %853 = vperm.xlu1 %1573, %v2012_v25  }
 0x3ba   : > { %v810_v30 = vpop.xlane.xlu0 %809 }
 0x3bb   : > { %v2022_v31 = vmax.f32 %v2019_v26, %v810_v30  ;;  %v546_v30 = vsel %vm434_vm3, %v1914_v27, 0.0 }
 0x3bd   : > { %v826_v1 = vsub.f32 %v2019_v26, %v2022_v31  ;;  %1092 = vst.msk [vmem:[#allocation2 + $0x18] sm:$0xff] %vm925_vm5, %v2022_v31  ;;  %858 = vperm.xlu1 %1573, %v2022_v31  }
 0x3be   : > { %v813_v36 = vpop.xlane.xlu1 %812 }
 0x3bf   : > { %v2032_v42 = vmax.f32 %v2029_v33, %v813_v36  ;;  %v552_v36 = vsel %vm434_vm3, %v1925_v32, 0.0  ;;  %v835_v19 = vmul.f32 1.442695, %v826_v1 }
 0x3c0   : > { %v816_v54 = vpop.xlane.xlu0 %815 }
 0x3c1   : > { %v827_v61 = vsub.f32 %v2029_v33, %v2032_v42  ;;  %1093 = vst.msk [vmem:[#allocation2 + $0x20] sm:$0xff] %vm925_vm5, %v2032_v42  ;;  %v2041_v4 = vmax.f32 %v2034_v46, %v816_v54  ;;  %863 = vperm.xlu1 %1573, %v2032_v42   ;;  %v530_v42 = vld [vmem:[#allocation3 + $0x28] sm:$0xff] }
 0x3c3   : > { %v828_v12 = vsub.f32 %v2034_v46, %v2041_v4  ;;  %1094 = vst.msk [vmem:[#allocation2 + $0x28] sm:$0xff] %vm925_vm5, %v2041_v4  ;;  %v837_v59 = vmul.f32 1.442695, %v827_v61 }
 0x3c5   : > { %868 = vperm.xlu1 %1573, %v2041_v4   ;;  %v839_v61 = vmul.f32 1.442695, %v828_v12  ;;  %v525_v12 = vld [vmem:[#allocation3] sm:$0xff] }
 0x3c9   : > { %979 = vrot.lane.b32.xlu1 %v1746_v3, %s1682_s28  ;;  %v537_v3 = vsel %vm434_vm3, %v1906_v23, 0.0  ;;  %v2073_v23 = vpop.eup %1603 }
 0x3ca   : > { %1575 = vset.pattern.permute.xlu1 %v1678_v35 }
 0x3cd   : > { %981 = vrot.lane.b32.xlu1 %v1751_v5, %s1682_s28  ;;  %v549_v5 = vsel %vm434_vm3, %v1928_v34, 0.0 }
 0x3d2   : > { %541 = vadd.xlane.f32.xlu0 %v540_v17 }
 0x3d6   : > { %544 = vadd.xlane.f32.xlu0 %v543_v22 }
 0x3da   : > { %547 = vadd.xlane.f32.xlu0 %v546_v30 }
 0x3de   : > { %553 = vadd.xlane.f32.xlu0 %v552_v36 }
 0x3f1   : > { %538 = vadd.xlane.f32.xlu1 %v537_v3 }
 0x3f5   : > { %550 = vadd.xlane.f32.xlu1 %v549_v5 }
 0x406   : > { %576 = vperm.xlu1 %1575, %v2073_v23  }
 0x430   : > { %v844_v37 = vpop.permute.xlu1 %843 }
 0x431   : > { %v871_v39 = vsub.f32 %v1957_v7, %v844_v37 }
 0x432   : > { %v849_v41 = vpop.permute.xlu0 %848 }
 0x433   : > { %v877_v27 = vmul.f32 1.442695, %v871_v39  ;;  %v872_v29 = vsub.f32 %v1960_v9, %v849_v41 }
 0x434   : > { %v978_v32 = vpop.permute.xlu1 %977 }
 0x435   : > { %1605 = vpow2.f32 %v877_v27  ;;  %v879_v34 = vmul.f32 1.442695, %v872_v29  ;;  %1520 = vmatpush3.bf16.msra.mxu0 %v978_v32 }
 0x436   : > { %1521 = vmatprep.subr.bf16.mxu0 %v1675_v0 }
 0x437   : > { %1607 = vpow2.f32 %v879_v34 }
 0x438   : > { %v854_v54 = vpop.permute.xlu1 %853 }
 0x439   : > { %v873_v17 = vsub.f32 %v1967_v21, %v854_v54 }
 0x43b   : > { %v881_v22 = vmul.f32 1.442695, %v873_v17 }
 0x43c   : > { %v859_v30 = vpop.permute.xlu1 %858 }
 0x43d   : > { %1609 = vpow2.f32 %v881_v22  ;;  %v874_v36 = vsub.f32 %v1970_v28, %v859_v30  ;;  %v467_v22 = vmul.f32 1.442695, %v460_v45 }
 0x43f   : > { %v1606_v7 = vpop.eup %1605  ;;  %v883_v3 = vmul.f32 1.442695, %v874_v36 }
 0x440   : > { %v864_v5 = vpop.permute.xlu1 %863  ;;  %v901_v9 = vsel %vm434_vm3, %v1606_v7, 0.0 }
 0x441   : > { %v1608_v16 = vpop.eup %1607  ;;  %1611 = vpow2.f32 %v883_v3  ;;  %v875_v37 = vsub.f32 %v1977_v38, %v864_v5  ;;  %902 = vadd.xlane.f32.xlu0 %v901_v9  ;;  %v469_v3 = vmul.f32 1.442695, %v461_v49  ;;  %v526_v49 = vld [vmem:[#allocation3 + $0x8] sm:$0xff] }
 0x442   : > { %v904_v27 = vsel %vm434_vm3, %v1608_v16, 0.0 }
 0x443   : > { %v885_v39 = vmul.f32 1.442695, %v875_v37 }
 0x444   : > { %v869_v41 = vpop.permute.xlu1 %868 }
 0x445   : > { %1613 = vpow2.f32 %v885_v39  ;;  %v876_v21 = vsub.f32 %v1980_v50, %v869_v41  ;;  %905 = vadd.xlane.f32.xlu0 %v904_v27  ;;  %v974_v50 = vpack.c.bf16 %v1608_v16, %v1606_v7  ;;  %v473_v7 = vmul.f32 1.442695, %v463_v58  ;;  %v527_v58 = vld [vmem:[#allocation3 + $0x10] sm:$0xff] }
 0x446   : > { %v531_v27 = vmul.f32 %v2073_v23, %v525_v12  ;;  %v571_v12 = vld [vmem:[#allocation4 + $0x18] sm:$0xff] }
 0x447   : > { %v1610_v29 = vpop.eup %1609  ;;  %v887_v28 = vmul.f32 1.442695, %v876_v21 }
 0x448   : > { %v980_v32 = vpop.permute.xlu1 %979  ;;  %v907_v34 = vsel %vm434_vm3, %v1610_v29, 0.0 }
 0x449   : > { %1615 = vpow2.f32 %v887_v28  ;;  %908 = vadd.xlane.f32.xlu0 %v907_v34  ;;  %1522 = vmatpush3.bf16.msra.mxu0 %v980_v32 }
 0x44a   : > { %1523 = vmatprep.subr.bf16.mxu0 %v1675_v0  ;;  %1617 = vpow2.f32 %v467_v22 }
 0x44b   : > { %v1612_v38 = vpop.eup %1611  ;;  %1619 = vpow2.f32 %v469_v3 }
 0x44c   : > { %v982_v54 = vpop.permute.xlu1 %981  ;;  %v910_v17 = vsel %vm434_vm3, %v1612_v38, 0.0  ;;  %v975_v45 = vpack.c.bf16 %v1612_v38, %v1610_v29  ;;  %1621 = vpow2.f32 %v471_v43  ;;  %v529_v29 = vld [vmem:[#allocation3 + $0x20] sm:$0xff] }
 0x44d   : > { %911 = vadd.xlane.f32.xlu0 %v910_v17  ;;  %1524 = vmatpush3.bf16.msra.mxu0 %v982_v54  ;;  %1623 = vpow2.f32 %v473_v7  ;;  %v568_v54 = vld [vmem:[#allocation4] sm:$0xff] }
 0x44e   : > { %1625 = vpow2.f32 %v475_v44 }
 0x44f   : > { %v1614_v30 = vpop.eup %1613  ;;  %1627 = vpow2.f32 %v829_v48 }
 0x450   : > { %1526 = vmatmul.mubr.msk.bf16.vlgmr.msra.gmra.mrb[12].mxu0 %vm434_vm3, %v974_v50  ;;  %v913_v36 = vsel %vm434_vm3, %v1614_v30, 0.0  ;;  %1629 = vpow2.f32 %v831_v51 }
 0x451   : > { %914 = vadd.xlane.f32.xlu1 %v913_v36  ;;  %1529 = vmatprep.mubr.msk.bf16.mxu0 %vm1676_vm0, %v1675_v0 }
 0x453   : > { %v1616_v5 = vpop.eup %1615 }
 0x454   : > { %v916_v40 = vsel %vm434_vm3, %v1616_v5, 0.0  ;;  %v1618_v47 = vpop.eup %1617  ;;  %v976_v53 = vpack.c.bf16 %v1616_v5, %v1614_v30 }
 0x455   : > { %917 = vadd.xlane.f32.xlu0 %v916_v40  ;;  %v532_v52 = vmul.f32 %v1618_v47, %v526_v49  ;;  %v1620_v56 = vpop.eup %1619 }
 0x456   : > { %v533_v8 = vmul.f32 %v1620_v56, %v527_v58  ;;  %v1622_v11 = vpop.eup %1621 }
 0x457   : > { %v1624_v13 = vpop.eup %1623  ;;  %v534_v25 = vmul.f32 %v1622_v11, %v528_v18 }
 0x458   : > { %1530 = vmatmul.mubr.msk.bf16.gmra.mrb[16].mxu0 %vm434_vm3, %v975_v45  ;;  %v535_v32 = vmul.f32 %v1624_v13, %v529_v29 }
 0x459   : > { %1533 = vmatprep.mubr.msk.bf16.mxu0 %vm1676_vm0, %v1675_v0  ;;  %v833_v0 = vmul.f32 1.442695, %v825_v24  ;;  %v1626_v24 = vpop.eup %1625 }
 0x45a   : > { %v1628_v16 = vpop.eup %1627  ;;  %v536_v26 = vmul.f32 %v1626_v24, %v530_v42 }
 0x45b   : > { %1631 = vpow2.f32 %v833_v0  ;;  %v1630_v37 = vpop.eup %1629 }
 0x45c   : > { %1633 = vpow2.f32 %v837_v59 }
 0x45d   : > { %1635 = vpow2.f32 %v835_v19 }
 0x45e   : > { %1637 = vpow2.f32 %v839_v61 }
 0x45f   : > { %v542_v55 = vpop.xlane.xlu0 %541 }
 0x460   : > { %v556_v60 = vadd.f32 %v542_v55, %v532_v52  ;;  %1534 = vmatmul.mubr.msk.bf16.gmra.mrb[20].mxu0 %vm434_vm3, %v976_v53 }
 0x462   : > { %563 = vst.msk [vmem:[#allocation3 + $0x8] sm:$0xff] %vm561_vm4, %v556_v60  ;;  %586 = vperm.xlu1 %1575, %v1620_v56  }
 0x463   : > { %v545_v15 = vpop.xlane.xlu0 %544 }
 0x464   : > { %v557_v20 = vadd.f32 %v545_v15, %v533_v8  ;;  %v570_v8 = vld [vmem:[#allocation4 + $0x10] sm:$0xff] }
 0x465   : > { %v1632_v39 = vpop.eup %1631 }
 0x466   : > { %564 = vst.msk [vmem:[#allocation3 + $0x10] sm:$0xff] %vm561_vm4, %v557_v20  ;;  %596 = vperm.xlu1 %1575, %v1624_v13   ;;  %v1634_v41 = vpop.eup %1633 }
 0x467   : > { %v548_v33 = vpop.xlane.xlu0 %547  ;;  %v1636_v46 = vpop.eup %1635 }
 0x468   : > { %v558_v9 = vadd.f32 %v548_v33, %v534_v25  ;;  %v1638_v4 = vpop.eup %1637 }
 0x469   : > { %v890_v3 = vld [vmem:[#allocation3 + $0x8] sm:$0xff] }
 0x46a   : > { %565 = vst.msk [vmem:[#allocation3 + $0x18] sm:$0xff] %vm561_vm4, %v558_v9  ;;  %1576 = vset.pattern.permute.xlu1 %v1681_v63  ;;  %v896_v40 = vmul.f32 %v1630_v37, %v890_v3 }
 0x46b   : > { %v554_v31 = vpop.xlane.xlu0 %553  ;;  %940 = vperm.xlu1 %1576, %v1628_v16   ;;  %945 = vperm.xlu0 %1574, %v1630_v37  }
 0x46c   : > { %v560_v1 = vadd.f32 %v554_v31, %v536_v26 }
 0x46d   : > { %v891_v45 = vld [vmem:[#allocation3 + $0x10] sm:$0xff] }
 0x46e   : > { %567 = vst.msk [vmem:[#allocation3 + $0x28] sm:$0xff] %vm561_vm4, %v560_v1  ;;  %v897_v44 = vmul.f32 %v1632_v39, %v891_v45 }
 0x46f   : > { %950 = vperm.xlu1 %1576, %v1632_v39   ;;  %960 = vperm.xlu0 %1574, %v1634_v41  }
 0x471   : > { %v892_v48 = vld [vmem:[#allocation3 + $0x18] sm:$0xff] }
 0x472   : > { %v898_v51 = vmul.f32 %v1636_v46, %v892_v48 }
 0x473   : > { %955 = vperm.xlu1 %1576, %v1636_v46   ;;  %1577 = vset.pattern.permute.xlu0 %v1678_v35 }
 0x474   : > { %581 = vperm.xlu0 %1577, %v1618_v47  }
 0x475   : > { %v894_v59 = vld [vmem:[#allocation3 + $0x28] sm:$0xff] }
 0x476   : > { %v900_v15 = vmul.f32 %v1638_v4, %v894_v59 }
 0x477   : > { %965 = vperm.xlu1 %1576, %v1638_v4  }
 0x478   : > { %591 = vperm.xlu0 %1577, %v1622_v11  }
 0x47c   : > { %601 = vperm.xlu0 %1577, %v1626_v24   ;;  %v572_v24 = vld [vmem:[#allocation4 + $0x20] sm:$0xff] }
 0x47e   : > { %v539_v21 = vpop.xlane.xlu1 %538 }
 0x47f   : > { %v555_v28 = vadd.f32 %v539_v21, %v531_v27 }
 0x481   : > { %562 = vst.msk [vmem:[#allocation3] sm:$0xff] %vm561_vm4, %v555_v28 }
 0x482   : > { %v551_v34 = vpop.xlane.xlu1 %550 }
 0x483   : > { %v559_v38 = vadd.f32 %v551_v34, %v535_v32  ;;  %v573_v32 = vld [vmem:[#allocation4 + $0x28] sm:$0xff] }
 0x485   : > { %566 = vst.msk [vmem:[#allocation3 + $0x20] sm:$0xff] %vm561_vm4, %v559_v38 }
 0x486   : > { %v577_v17 = vpop.permute.xlu1 %576 }
 0x487   : > { %v604_v22 = vmul.f32 %v577_v17, %v568_v54 }
 0x488   : > { %v889_v30 = vld [vmem:[#allocation3] sm:$0xff] }
 0x489   : > { %v688_v50 = vadd.f32 %v1944_v57, %v604_v22  ;;  %v895_v36 = vmul.f32 %v1628_v16, %v889_v30 }
 0x48b   : > { %694 = vst.msk [vmem:[#allocation4] sm:$0xff] %vm352_vm1, %v688_v50 }
 0x48c   : > { %v893_v53 = vld [vmem:[#allocation3 + $0x20] sm:$0xff] }
 0x48d   : > { %v899_v55 = vmul.f32 %v1634_v41, %v893_v53 }
 0x4ce   : > { %v903_v23 = vpop.xlane.xlu0 %902 }
 0x4cf   : > { %v919_v5 = vadd.f32 %v903_v23, %v895_v36 }
 0x4d1   : > { %926 = vst.msk [vmem:[#allocation3] sm:$0xff] %vm925_vm5, %v919_v5 }
 0x4d2   : > { %v906_v43 = vpop.xlane.xlu0 %905 }
 0x4d3   : > { %v920_v7 = vadd.f32 %v906_v43, %v896_v40 }
 0x4d5   : > { %927 = vst.msk [vmem:[#allocation3 + $0x8] sm:$0xff] %vm925_vm5, %v920_v7 }
 0x4d6   : > { %v909_v47 = vpop.xlane.xlu0 %908 }
 0x4d7   : > { %v921_v49 = vadd.f32 %v909_v47, %v897_v44 }
 0x4d8   : > { %v1183_v57 = vld [vmem:[#allocation3] sm:$0xff] }
 0x4d9   : > { %928 = vst.msk [vmem:[#allocation3 + $0x10] sm:$0xff] %vm925_vm5, %v921_v49  ;;  %1639 = vrcp.f32 %v1183_v57 }
 0x4da   : > { %v912_v52 = vpop.xlane.xlu0 %911 }
 0x4db   : > { %v922_v56 = vadd.f32 %v912_v52, %v898_v51 }
 0x4dc   : > { %v1099_v0 = vld [vmem:[#allocation3 + $0x8] sm:$0xff] }
 0x4dd   : > { %929 = vst.msk [vmem:[#allocation3 + $0x18] sm:$0xff] %vm925_vm5, %v922_v56  ;;  %1641 = vrcp.f32 %v1099_v0 }
 0x4de   : > { %v915_v58 = vpop.xlane.xlu1 %914 }
 0x4df   : > { %v923_v60 = vadd.f32 %v915_v58, %v899_v55  ;;  %v932_v55 = vld [vmem:[#allocation4] sm:$0xff] }
 0x4e0   : > { %v1100_v11 = vld [vmem:[#allocation3 + $0x10] sm:$0xff] }
 0x4e1   : > { %930 = vst.msk [vmem:[#allocation3 + $0x20] sm:$0xff] %vm925_vm5, %v923_v60  ;;  %1643 = vrcp.f32 %v1100_v11 }
 0x4e2   : > { %v918_v18 = vpop.xlane.xlu0 %917  ;;  %v587_v19 = vpop.permute.xlu1 %586 }
 0x4e3   : > { %v1640_v20 = vpop.eup %1639  ;;  %v924_v13 = vadd.f32 %v918_v18, %v900_v15  ;;  %v606_v25 = vmul.f32 %v587_v19, %v570_v8 }
 0x4e4   : > { %1203 = vperm.xlu1 %1576, %v1640_v20   ;;  %1118 = vperm.xlu0 %1577, %v1640_v20   ;;  %v1101_v33 = vld [vmem:[#allocation3 + $0x18] sm:$0xff] }
 0x4e5   : > { %931 = vst.msk [vmem:[#allocation3 + $0x28] sm:$0xff] %vm925_vm5, %v924_v13  ;;  %v690_v42 = vadd.f32 %v1948_v2, %v606_v25  ;;  %1645 = vrcp.f32 %v1101_v33 }
 0x4e6   : > { %v597_v61 = vpop.permute.xlu1 %596 }
 0x4e7   : > { %v1642_v9 = vpop.eup %1641  ;;  %696 = vst.msk [vmem:[#allocation4 + $0x10] sm:$0xff] %vm352_vm1, %v690_v42  ;;  %v608_v16 = vmul.f32 %v597_v61, %v572_v24 }
 0x4e8   : > { %1578 = vset.pattern.permute.xlu1 %v1678_v35  ;;  %1579 = vset.pattern.permute.xlu0 %v1681_v63  ;;  %v1102_v1 = vld [vmem:[#allocation3 + $0x20] sm:$0xff] }
 0x4e9   : > { %v692_v37 = vadd.f32 %v1952_v10, %v608_v16  ;;  %1123 = vperm.xlu1 %1578, %v1642_v9   ;;  %1208 = vperm.xlu0 %1579, %v1642_v9   ;;  %v569_v10 = vld [vmem:[#allocation4 + $0x8] sm:$0xff] }
 0x4ea   : > { %v2152_v26 = vpop.permute.xlu0 %945  ;;  %v941_v43 = vpop.permute.xlu1 %940 }
 0x4eb   : > { %v1644_v31 = vpop.eup %1643  ;;  %698 = vst.msk [vmem:[#allocation4 + $0x20] sm:$0xff] %vm352_vm1, %v692_v37  ;;  %v968_v60 = vmul.f32 %v941_v43, %v932_v55 }
 0x4ec   : > { %v1103_v2 = vld [vmem:[#allocation3 + $0x28] sm:$0xff] }
 0x4ed   : > { %1128 = vperm.xlu1 %1578, %v1644_v31   ;;  %1581 = vset.pattern.permute.xlu0 %v1678_v35  ;;  %1647 = vrcp.f32 %v1103_v2 }
 0x4ee   : > { %v2156_v39 = vpop.permute.xlu0 %960  ;;  %1649 = vrcp.f32 %v1102_v1  ;;  %v951_v45 = vpop.permute.xlu1 %950  ;;  %v934_v20 = vld [vmem:[#allocation4 + $0x10] sm:$0xff] }
 0x4ef   : > { %v1646_v41 = vpop.eup %1645  ;;  %v970_v25 = vmul.f32 %v951_v45, %v934_v20 }
 0x4f0   : > { %1133 = vperm.xlu0 %1581, %v1646_v41  }
 0x4f1   : > { %1580 = vset.pattern.permute.xlu1 %v1681_v63 }
 0x4f2   : > { %1213 = vperm.xlu1 %1580, %v1644_v31   ;;  %v956_v7 = vpop.permute.xlu1 %955  ;;  %v936_v31 = vld [vmem:[#allocation4 + $0x20] sm:$0xff] }
 0x4f3   : > { %v582_v46 = vpop.permute.xlu0 %581 }
 0x4f4   : > { %v605_v4 = vmul.f32 %v582_v46, %v569_v10 }
 0x4f6   : > { %v689_v27 = vadd.f32 %v1946_v62, %v605_v4  ;;  %1218 = vperm.xlu1 %1580, %v1646_v41   ;;  %v966_v44 = vpop.permute.xlu1 %965 }
 0x4f7   : > { %v1648_v21 = vpop.eup %1647  ;;  %v592_v29 = vpop.permute.xlu0 %591 }
 0x4f8   : > { %695 = vst.msk [vmem:[#allocation4 + $0x8] sm:$0xff] %vm352_vm1, %v689_v27  ;;  %v607_v28 = vmul.f32 %v592_v29, %v571_v12  ;;  %1143 = vperm.xlu0 %1581, %v1648_v21   ;;  %v1650_v34 = vpop.eup %1649  ;;  %v972_v12 = vmul.f32 %v2156_v39, %v936_v31 }
 0x4fa   : > { %v691_v38 = vadd.f32 %v1950_v6, %v607_v28  ;;  %1582 = vset.pattern.permute.xlu1 %v1678_v35 }
 0x4fb   : > { %v602_v54 = vpop.permute.xlu0 %601  ;;  %1138 = vperm.xlu1 %1582, %v1650_v34  }
 0x4fc   : > { %697 = vst.msk [vmem:[#allocation4 + $0x18] sm:$0xff] %vm352_vm1, %v691_v38  ;;  %v609_v17 = vmul.f32 %v602_v54, %v573_v32  ;;  %1583 = vset.pattern.permute.xlu0 %v1681_v63 }
 0x4fe   : > { %v693_v62 = vadd.f32 %v1954_v14, %v609_v17 }
 0x4ff   : > { %1584 = vset.pattern.permute.xlu1 %v1681_v63  ;;  %v933_v59 = vld [vmem:[#allocation4 + $0x8] sm:$0xff] }
 0x500   : > { %699 = vst.msk [vmem:[#allocation4 + $0x28] sm:$0xff] %vm352_vm1, %v693_v62  ;;  %v969_v15 = vmul.f32 %v2152_v26, %v933_v59 }
 0x503   : > { %v935_v13 = vld [vmem:[#allocation4 + $0x18] sm:$0xff] }
 0x504   : > { %v971_v42 = vmul.f32 %v956_v7, %v935_v13 }
 0x507   : > { %v937_v4 = vld [vmem:[#allocation4 + $0x28] sm:$0xff] }
 0x508   : > { %v973_v32 = vmul.f32 %v966_v44, %v937_v4 }
 0x523   : > { %v1029_v22 = vpop.f32.mrb[12].mxu0 }
 0x524   : > { %1058 = vrot.lane.b32.xlu0 %v1029_v22, %s1683_s29  ;;  %v1527_v50 = vpop.f32.mrb[13].mxu0 }
 0x525   : > { %v1032_v6 = vpop.f32.mrb[14].mxu0 }
 0x526   : > { %1060 = vrot.lane.b32.xlu1 %v1032_v6, %s1683_s29  ;;  %v1528_v35 = vpop.f32.mrb[15].mxu0 }
 0x52b   : > { %v1037_v30 = vpop.f32.mrb[16].mxu0 }
 0x52c   : > { %1062 = vrot.lane.b32.xlu0 %v1037_v30, %s1683_s29  ;;  %v1531_v36 = vpop.f32.mrb[17].mxu0 }
 0x52d   : > { %v1040_v23 = vpop.f32.mrb[18].mxu0 }
 0x52e   : > { %1064 = vrot.lane.b32.xlu1 %v1040_v23, %s1683_s29  ;;  %v1532_v3 = vpop.f32.mrb[19].mxu0 }
 0x533   : > { %v1045_v5 = vpop.f32.mrb[20].mxu0 }
 0x534   : > { %1066 = vrot.lane.b32.xlu0 %v1045_v5, %s1683_s29  ;;  %v1535_v14 = vpop.f32.mrb[21].mxu0 }
 0x535   : > { %v1048_v40 = vpop.f32.mrb[22].mxu0 }
 0x536   : > { %1068 = vrot.lane.b32.xlu1 %v1048_v40, %s1683_s29  ;;  %v1536_v63 = vpop.f32.mrb[23].mxu0 }
 0x538   : > { %1223 = vperm.xlu0 %1583, %v1650_v34  }
 0x53a   : > { %1228 = vperm.xlu1 %1584, %v1648_v21  }
 0x563   : > { %v1204_v47 = vpop.permute.xlu1 %1203  ;;  %v1119_v57 = vpop.permute.xlu0 %1118 }
 0x568   : > { %v1124_v48 = vpop.permute.xlu1 %1123  ;;  %v1209_v52 = vpop.permute.xlu0 %1208 }
 0x56c   : > { %v1129_v49 = vpop.permute.xlu1 %1128 }
 0x56f   : > { %v1134_v53 = vpop.permute.xlu0 %1133 }
 0x571   : > { %v1214_v51 = vpop.permute.xlu1 %1213 }
 0x575   : > { %v1219_v56 = vpop.permute.xlu1 %1218 }
 0x577   : > { %v2168_v0 = vpop.permute.xlu0 %1143 }
 0x57a   : > { %v2170_v58 = vpop.permute.xlu1 %1138 }
 0x596   : > { %v1059_v8 = vpop.permute.xlu0 %1058 }
 0x597   : > { %v1076_v11 = vadd.f32 %v1059_v8, %v968_v60 }
 0x598   : > { %v1061_v18 = vpop.permute.xlu1 %1060 }
 0x599   : > { %1083 = vst.msk [vmem:[#allocation4] sm:$0xff] %vm1082_vm7, %v1076_v11  ;;  %v1077_v19 = vadd.f32 %v1061_v18, %v969_v15 }
 0x59b   : > { %1084 = vst.msk [vmem:[#allocation4 + $0x8] sm:$0xff] %vm1082_vm7, %v1077_v19 }
 0x59e   : > { %v1063_v24 = vpop.permute.xlu0 %1062 }
 0x59f   : > { %v1078_v33 = vadd.f32 %v1063_v24, %v970_v25 }
 0x5a0   : > { %v1065_v61 = vpop.permute.xlu1 %1064  ;;  %v1110_v9 = vld [vmem:[#allocation4] sm:$0xff] }
 0x5a1   : > { %1085 = vst.msk [vmem:[#allocation4 + $0x10] sm:$0xff] %vm1082_vm7, %v1078_v33  ;;  %v1079_v16 = vadd.f32 %v1065_v61, %v971_v42  ;;  %v1146_v37 = vmul.f32 %v1119_v57, %v1110_v9  ;;  %v1231_v26 = vmul.f32 %v1204_v47, %v1110_v9 }
 0x5a2   : > { %v1111_v2 = vld [vmem:[#allocation4 + $0x8] sm:$0xff] }
 0x5a3   : > { %1086 = vst.msk [vmem:[#allocation4 + $0x18] sm:$0xff] %vm1082_vm7, %v1079_v16  ;;  %v1147_v1 = vmul.f32 %v1124_v48, %v1111_v2  ;;  %v1429_v41 = vpack.c.bf16 %v1146_v37, %v1146_v37  ;;  %v1232_v10 = vmul.f32 %v1209_v52, %v1111_v2  ;;  %v1435_v46 = vpack.c.bf16 %v1231_v26, %v1231_v26 }
 0x5a5   : > { %v1430_v27 = vpack.c.bf16 %v1147_v1, %v1147_v1  ;;  %1177 = vst.msk [vmem:[%s2180_s5] sm:$0xf] %vm1176_vm8, %v1429_v41  ;;  %v1436_v21 = vpack.c.bf16 %v1232_v10, %v1232_v10 }
 0x5a6   : > { %v1067_v29 = vpop.permute.xlu0 %1066  ;;  %1262 = vst.msk [vmem:[%s2180_s5] sm:$0xf] %vm1261_vm9, %v1435_v46 }
 0x5a7   : > { %v1080_v28 = vadd.f32 %v1067_v29, %v972_v12  ;;  %1178 = vst.msk [vmem:[%s2180_s5 + $0x4] sm:$0xf] %vm1176_vm8, %v1430_v27 }
 0x5a8   : > { %v1069_v34 = vpop.permute.xlu1 %1068  ;;  %v1112_v38 = vld [vmem:[#allocation4 + $0x10] sm:$0xff]  ;;  %1263 = vst.msk [vmem:[%s2180_s5 + $0x4] sm:$0xf] %vm1261_vm9, %v1436_v21 }
 0x5a9   : > { %1087 = vst.msk [vmem:[#allocation4 + $0x20] sm:$0xff] %vm1082_vm7, %v1080_v28  ;;  %v1081_v39 = vadd.f32 %v1069_v34, %v973_v32  ;;  %v1148_v54 = vmul.f32 %v1129_v49, %v1112_v38  ;;  %v1233_v17 = vmul.f32 %v1214_v51, %v1112_v38 }
 0x5aa   : > { %v1113_v62 = vld [vmem:[#allocation4 + $0x18] sm:$0xff] }
 0x5ab   : > { %1088 = vst.msk [vmem:[#allocation4 + $0x28] sm:$0xff] %vm1082_vm7, %v1081_v39  ;;  %v1149_v22 = vmul.f32 %v1134_v53, %v1113_v62  ;;  %v1431_v50 = vpack.c.bf16 %v1148_v54, %v1148_v54  ;;  %v1234_v6 = vmul.f32 %v1219_v56, %v1113_v62  ;;  %v1437_v35 = vpack.c.bf16 %v1233_v17, %v1233_v17 }
 0x5ad   : > { %v1432_v30 = vpack.c.bf16 %v1149_v22, %v1149_v22  ;;  %1179 = vst.msk [vmem:[%s2180_s5 + $0x8] sm:$0xf] %vm1176_vm8, %v1431_v50  ;;  %v1438_v36 = vpack.c.bf16 %v1234_v6, %v1234_v6 }
 0x5ae   : > { %1264 = vst.msk [vmem:[%s2180_s5 + $0x8] sm:$0xf] %vm1261_vm9, %v1437_v35 }
 0x5af   : > { %1180 = vst.msk [vmem:[%s2180_s5 + $0xc] sm:$0xf] %vm1176_vm8, %v1432_v30 }
 0x5b0   : > { %v1114_v23 = vld [vmem:[#allocation4 + $0x20] sm:$0xff]  ;;  %1265 = vst.msk [vmem:[%s2180_s5 + $0xc] sm:$0xf] %vm1261_vm9, %v1438_v36 }
 0x5b1   : > { %v1150_v3 = vmul.f32 %v2170_v58, %v1114_v23 }
 0x5b2   : > { %v1115_v5 = vld [vmem:[#allocation4 + $0x28] sm:$0xff] }
 0x5b3   : > { %v1433_v14 = vpack.c.bf16 %v1150_v3, %v1150_v3  ;;  %v1151_v40 = vmul.f32 %v2168_v0, %v1115_v5 }
 0x5b5   : > { %1181 = vst.msk [vmem:[%s2180_s5 + $0x10] sm:$0xf] %vm1176_vm8, %v1433_v14  ;;  %v1434_v63 = vpack.c.bf16 %v1151_v40, %v1151_v40 }
 0x5b7   : > { %v1224_v43 = vpop.permute.xlu0 %1223  ;;  %1182 = vst.msk [vmem:[%s2180_s5 + $0x14] sm:$0xf] %vm1176_vm8, %v1434_v63 }
 0x5b8   : > { %v1235_v45 = vmul.f32 %v1224_v43, %v1114_v23 }
 0x5b9   : > { %v1229_v7 = vpop.permute.xlu1 %1228 }
 0x5ba   : > { %v1439_v44 = vpack.c.bf16 %v1235_v45, %v1235_v45  ;;  %v1236_v47 = vmul.f32 %v1229_v7, %v1115_v5 }
 0x5bc   : > { %1266 = vst.msk [vmem:[%s2180_s5 + $0x10] sm:$0xf] %vm1261_vm9, %v1439_v44  ;;  %v1440_v48 = vpack.c.bf16 %v1236_v47, %v1236_v47 }
 0x5be   : > { %1267 = vst.msk [vmem:[%s2180_s5 + $0x14] sm:$0xf] %vm1261_vm9, %v1440_v48 }
 0x5bf PF: > { %s13_s14 = sadd.s32 1, %s1673_s14   ;;  %s2225_s12 = smov %s1669_s13 }
 0x5c0   : > { %p10_p5 = scmp.ge.s32.totalorder %s13_s14, 4   ;;  %s2226_s13 = smov %s2228_s15 }
 0x5c2   :  { %12 = sbr.rel (!%p10_p5) target bundleno = 2 (0x2), region = 76 }

// kernel: _lambda_.39
= control target key start
LH: loop header
LB: loop body
LE: loop exit
PB: predicated region body
PF: predicated region fallthrough
CT: control target
= control target key end

     0   :  { %vm80_vm0 = vcmask 261120   ;;  %v536_v3 = vmov 0   ;;  %vm408_vm1 = vcmask 257024   ;;  %s880_s0 = inlined_call_operand.vmem [shape: bf16[96,32], index: 0, kind: input, shape index: {}]   ;;  %s881_s1 = inlined_call_operand.vmem [shape: bf16[96,32], index: 1, kind: input, shape index: {}]   ;;  %s882_s2 = inlined_call_operand.vmem [shape: f32[96,1], index: 2, kind: input, shape index: {}]   ;;  %s883_s3 = inlined_call_operand.vmem [shape: f32[1,32], index: 3, kind: input, shape index: {}]   ;;  %s884_s4 = inlined_call_operand.vmem [shape: f32[1,32], index: 4, kind: input, shape index: {}]   ;;  %s885_s5 = inlined_call_operand.vmem [shape: bf16[96,32], index: 5, kind: output, shape index: {}]  }
   0x1   :  { %v452_v0 = vld [vmem:[%s880_s0] sm:$0xff]   ;;  %v499_v2 = vld [vmem:[%s880_s0 + $0x8] sm:$0xff]   ;;  %511 = vset.pattern.permute.xlu1 %v536_v3  ;;  %510 = vset.pattern.permute.xlu0 %v536_v3  ;;  %v500_v9 = vld [vmem:[%s880_s0 + $0x10] sm:$0xff]  }
   0x2   :  { %v476_v1 = vld [vmem:[%s881_s1] sm:$0xff]   ;;  %v453_v4 = vunpack.c.l.bf16 %v452_v0  ;;  %v457_v6 = vunpack.c.l.bf16 %v499_v2  ;;  %v504_v7 = vld [vmem:[%s881_s1 + $0x8] sm:$0xff]   ;;  %v454_v8 = vunpack.c.h.bf16 %v452_v0  ;;  %v505_v10 = vld [vmem:[%s881_s1 + $0x10] sm:$0xff]   ;;  %v458_v13 = vunpack.c.h.bf16 %v499_v2 }
   0x3   :  { %v477_v5 = vunpack.c.l.bf16 %v476_v1  ;;  %v481_v11 = vunpack.c.l.bf16 %v504_v7  ;;  %v478_v12 = vunpack.c.h.bf16 %v476_v1  ;;  %v482_v14 = vunpack.c.h.bf16 %v504_v7  ;;  %v501_v23 = vld [vmem:[%s880_s0 + $0x18] sm:$0xff]   ;;  %v502_v35 = vld [vmem:[%s880_s0 + $0x20] sm:$0xff]   ;;  %v503_v45 = vld [vmem:[%s880_s0 + $0x28] sm:$0xff]  }
   0x4   :  { %v461_v16 = vunpack.c.l.bf16 %v500_v9  ;;  %v485_v17 = vunpack.c.l.bf16 %v505_v10  ;;  %v462_v18 = vunpack.c.h.bf16 %v500_v9  ;;  %v486_v22 = vunpack.c.h.bf16 %v505_v10  ;;  %v506_v24 = vld [vmem:[%s881_s1 + $0x18] sm:$0xff]   ;;  %v507_v36 = vld [vmem:[%s881_s1 + $0x20] sm:$0xff]   ;;  %v508_v46 = vld [vmem:[%s881_s1 + $0x28] sm:$0xff]  }
   0x5   :  { %v585_v15 = vadd.f32 %v477_v5, %v453_v4  ;;  %v587_v19 = vadd.f32 %v481_v11, %v457_v6  ;;  %v589_v20 = vadd.f32 %v478_v12, %v454_v8  ;;  %v591_v21 = vadd.f32 %v482_v14, %v458_v13  ;;  %v277_v61 = vld [vmem:[%s882_s2 + $0x8] sm:$0xff]  ;;  %v278_v62 = vld [vmem:[%s882_s2 + $0x10] sm:$0xff]  ;;  %v276_v63 = vld [vmem:[%s882_s2] sm:$0xff] }
   0x6   :  { %v605_v28 = vadd.f32 %v485_v17, %v461_v16  ;;  %v465_v29 = vunpack.c.l.bf16 %v501_v23  ;;  %v489_v30 = vunpack.c.l.bf16 %v506_v24  ;;  %v609_v32 = vadd.f32 %v486_v22, %v462_v18  ;;  %v279_v0 = vld [vmem:[%s882_s2 + $0x18] sm:$0xff]  ;;  %v285_v1 = vld [vmem:[%s882_s2 + $0x48] sm:$0xff]  ;;  %v280_v2 = vld [vmem:[%s882_s2 + $0x20] sm:$0xff] }
   0x7   :  { %v81_v25 = vsel %vm80_vm0, %v585_v15, 0.0  ;;  %v87_v26 = vsel %vm80_vm0, %v587_v19, 0.0  ;;  %v84_v27 = vsel %vm80_vm0, %v589_v20, 0.0  ;;  %v90_v31 = vsel %vm80_vm0, %v591_v21, 0.0  ;;  %v281_v3 = vld [vmem:[%s882_s2 + $0x28] sm:$0xff]  ;;  %v282_v4 = vld [vmem:[%s882_s2 + $0x30] sm:$0xff] }
   0x8   :  { %82 = vadd.xlane.f32.xlu0 %v81_v25  ;;  %88 = vadd.xlane.f32.xlu1 %v87_v26  ;;  %v466_v33 = vunpack.c.h.bf16 %v501_v23  ;;  %v490_v34 = vunpack.c.h.bf16 %v506_v24  ;;  %v93_v37 = vsel %vm80_vm0, %v605_v28, 0.0  ;;  %v619_v38 = vadd.f32 %v489_v30, %v465_v29  ;;  %v283_v5 = vld [vmem:[%s882_s2 + $0x38] sm:$0xff]  ;;  %v284_v6 = vld [vmem:[%s882_s2 + $0x40] sm:$0xff] }
   0x9   :  { %v469_v39 = vunpack.c.l.bf16 %v502_v35  ;;  %v493_v40 = vunpack.c.l.bf16 %v507_v36  ;;  %v96_v41 = vsel %vm80_vm0, %v609_v32, 0.0  ;;  %v470_v43 = vunpack.c.h.bf16 %v502_v35 }
   0xa   :  { %v623_v42 = vadd.f32 %v490_v34, %v466_v33  ;;  %v494_v44 = vunpack.c.h.bf16 %v507_v36  ;;  %v99_v47 = vsel %vm80_vm0, %v619_v38, 0.0  ;;  %v473_v49 = vunpack.c.l.bf16 %v503_v45 }
   0xb   :  { %v633_v48 = vadd.f32 %v493_v40, %v469_v39  ;;  %v497_v50 = vunpack.c.l.bf16 %v508_v46  ;;  %v474_v53 = vunpack.c.h.bf16 %v503_v45  ;;  %v498_v54 = vunpack.c.h.bf16 %v508_v46 }
   0xc   :  { %85 = vadd.xlane.f32.xlu0 %v84_v27  ;;  %91 = vadd.xlane.f32.xlu1 %v90_v31  ;;  %v102_v51 = vsel %vm80_vm0, %v623_v42, 0.0  ;;  %v637_v52 = vadd.f32 %v494_v44, %v470_v43 }
   0xd   :  { %v105_v55 = vsel %vm80_vm0, %v633_v48, 0.0  ;;  %v641_v56 = vadd.f32 %v497_v50, %v473_v49  ;;  %v645_v58 = vadd.f32 %v498_v54, %v474_v53 }
   0xe   :  { %v108_v57 = vsel %vm80_vm0, %v637_v52, 0.0 }
   0xf   :  { %v111_v59 = vsel %vm80_vm0, %v641_v56, 0.0  ;;  %v114_v60 = vsel %vm80_vm0, %v645_v58, 0.0 }
  0x10   :  { %94 = vadd.xlane.f32.xlu0 %v93_v37  ;;  %97 = vadd.xlane.f32.xlu1 %v96_v41 }
  0x14   :  { %100 = vadd.xlane.f32.xlu0 %v99_v47  ;;  %103 = vadd.xlane.f32.xlu1 %v102_v51 }
  0x18   :  { %106 = vadd.xlane.f32.xlu0 %v105_v55  ;;  %109 = vadd.xlane.f32.xlu1 %v108_v57 }
  0x1c   :  { %112 = vadd.xlane.f32.xlu0 %v111_v59  ;;  %115 = vadd.xlane.f32.xlu1 %v114_v60 }
  0x2d   :  { %295 = vperm.xlu1 %511, %v277_v61  }
  0x31   :  { %300 = vperm.xlu1 %511, %v278_v62  }
  0x32   :  { %290 = vperm.xlu0 %510, %v276_v63  }
  0x35   :  { %305 = vperm.xlu1 %511, %v279_v0  }
  0x36   :  { %335 = vperm.xlu0 %510, %v285_v1  }
  0x39   :  { %310 = vperm.xlu1 %511, %v280_v2  }
  0x3d   :  { %315 = vperm.xlu1 %511, %v281_v3  }
  0x41   :  { %320 = vperm.xlu1 %511, %v282_v4   ;;  %v287_v4 = vld [vmem:[%s882_s2 + $0x58] sm:$0xff] }
  0x45   :  { %325 = vperm.xlu1 %511, %v283_v5  }
  0x49   :  { %330 = vperm.xlu1 %511, %v284_v6  }
  0x95   :  { %v83_v7 = vpop.xlane.xlu0 %82  ;;  %v89_v9 = vpop.xlane.xlu1 %88 }
  0x96   :  { %v118_v8 = vmul.f32 0.03125, %v83_v7  ;;  %v120_v10 = vmul.f32 0.03125, %v89_v9 }
  0x98   :  { %v682_v11 = vsub.f32 %v585_v15, %v118_v8  ;;  %v685_v12 = vsub.f32 %v587_v19, %v120_v10 }
  0x99   :  { %v86_v13 = vpop.xlane.xlu0 %85  ;;  %v92_v16 = vpop.xlane.xlu1 %91 }
  0x9a   :  { %v119_v14 = vmul.f32 0.03125, %v86_v13  ;;  %v142_v17 = vmul.f32 %v682_v11, %v682_v11  ;;  %v121_v18 = vmul.f32 0.03125, %v92_v16  ;;  %v144_v22 = vmul.f32 %v685_v12, %v685_v12 }
  0x9c   :  { %v692_v23 = vsub.f32 %v589_v20, %v119_v14  ;;  %v154_v24 = vsel %vm80_vm0, %v142_v17, 0.0  ;;  %v696_v15 = vsub.f32 %v591_v21, %v121_v18  ;;  %v160_v27 = vsel %vm80_vm0, %v144_v22, 0.0 }
  0x9d   :  { %155 = vadd.xlane.f32.xlu0 %v154_v24  ;;  %v95_v19 = vpop.xlane.xlu0 %94  ;;  %v98_v26 = vpop.xlane.xlu1 %97 }
  0x9e   :  { %v122_v25 = vmul.f32 0.03125, %v95_v19  ;;  %v143_v29 = vmul.f32 %v692_v23, %v692_v23  ;;  %v123_v30 = vmul.f32 0.03125, %v98_v26  ;;  %v145_v31 = vmul.f32 %v696_v15, %v696_v15 }
  0xa0   :  { %v704_v20 = vsub.f32 %v605_v28, %v122_v25  ;;  %v157_v33 = vsel %vm80_vm0, %v143_v29, 0.0  ;;  %v708_v21 = vsub.f32 %v609_v32, %v123_v30  ;;  %v163_v37 = vsel %vm80_vm0, %v145_v31, 0.0 }
  0xa1   :  { %161 = vadd.xlane.f32.xlu0 %v160_v27  ;;  %158 = vadd.xlane.f32.xlu1 %v157_v33  ;;  %v101_v34 = vpop.xlane.xlu0 %100  ;;  %v104_v36 = vpop.xlane.xlu1 %103 }
  0xa2   :  { %v124_v35 = vmul.f32 0.03125, %v101_v34  ;;  %v146_v39 = vmul.f32 %v704_v20, %v704_v20  ;;  %v125_v40 = vmul.f32 0.03125, %v104_v36  ;;  %v147_v28 = vmul.f32 %v708_v21, %v708_v21 }
  0xa4   :  { %v716_v41 = vsub.f32 %v619_v38, %v124_v35  ;;  %v166_v32 = vsel %vm80_vm0, %v146_v39, 0.0  ;;  %v720_v43 = vsub.f32 %v623_v42, %v125_v40  ;;  %v169_v47 = vsel %vm80_vm0, %v147_v28, 0.0 }
  0xa5   :  { %164 = vadd.xlane.f32.xlu1 %v163_v37  ;;  %167 = vadd.xlane.f32.xlu0 %v166_v32  ;;  %v107_v44 = vpop.xlane.xlu0 %106  ;;  %v110_v46 = vpop.xlane.xlu1 %109 }
  0xa6   :  { %v126_v45 = vmul.f32 0.03125, %v107_v44  ;;  %v148_v49 = vmul.f32 %v716_v41, %v716_v41  ;;  %v127_v50 = vmul.f32 0.03125, %v110_v46  ;;  %v149_v38 = vmul.f32 %v720_v43, %v720_v43 }
  0xa8   :  { %v728_v51 = vsub.f32 %v633_v48, %v126_v45  ;;  %v172_v42 = vsel %vm80_vm0, %v148_v49, 0.0  ;;  %v732_v53 = vsub.f32 %v637_v52, %v127_v50  ;;  %v175_v59 = vsel %vm80_vm0, %v149_v38, 0.0  ;;  %v780_v45 = vld [vmem:[%s883_s3] ss:$0 sm:$0xff] }
  0xa9   :  { %170 = vadd.xlane.f32.xlu1 %v169_v47  ;;  %173 = vadd.xlane.f32.xlu0 %v172_v42  ;;  %v113_v54 = vpop.xlane.xlu0 %112  ;;  %v116_v57 = vpop.xlane.xlu1 %115  ;;  %v786_v42 = vld [vmem:[%s884_s4] ss:$0 sm:$0xff] }
  0xaa   :  { %v128_v55 = vmul.f32 0.03125, %v113_v54  ;;  %v150_v60 = vmul.f32 %v728_v51, %v728_v51  ;;  %v129_v61 = vmul.f32 0.03125, %v116_v57  ;;  %v151_v48 = vmul.f32 %v732_v53, %v732_v53 }
  0xac   :  { %v740_v62 = vsub.f32 %v641_v56, %v128_v55  ;;  %v178_v52 = vsel %vm80_vm0, %v150_v60, 0.0  ;;  %v744_v63 = vsub.f32 %v645_v58, %v129_v61  ;;  %v181_v0 = vsel %vm80_vm0, %v151_v48, 0.0  ;;  %v286_v58 = vld [vmem:[%s882_s2 + $0x50] sm:$0xff] }
  0xad   :  { %176 = vadd.xlane.f32.xlu1 %v175_v59  ;;  %179 = vadd.xlane.f32.xlu0 %v178_v52  ;;  %v759_v5 = vpop.permute.xlu1 %295 }
  0xae   :  { %v152_v1 = vmul.f32 %v740_v62, %v740_v62  ;;  %v153_v2 = vmul.f32 %v744_v63, %v744_v63 }
  0xb0   :  { %v184_v3 = vsel %vm80_vm0, %v152_v1, 0.0  ;;  %v187_v56 = vsel %vm80_vm0, %v153_v2, 0.0 }
  0xb1   :  { %182 = vadd.xlane.f32.xlu1 %v181_v0  ;;  %185 = vadd.xlane.f32.xlu0 %v184_v3  ;;  %v761_v6 = vpop.permute.xlu1 %300  ;;  %v291_v13 = vpop.permute.xlu0 %290 }
  0xb5   :  { %188 = vadd.xlane.f32.xlu1 %v187_v56  ;;  %v763_v7 = vpop.permute.xlu1 %305  ;;  %v773_v16 = vpop.permute.xlu0 %335 }
  0xb9   :  { %v765_v8 = vpop.permute.xlu1 %310 }
  0xbd   :  { %v767_v9 = vpop.permute.xlu1 %315 }
  0xc1   :  { %v769_v10 = vpop.permute.xlu1 %320 }
  0xc5   :  { %v771_v14 = vpop.permute.xlu1 %325 }
  0xc6   :  { %340 = vperm.xlu1 %511, %v286_v58  }
  0xc7   :  { %345 = vperm.xlu0 %510, %v287_v4  }
  0xc9   :  { %v775_v17 = vpop.permute.xlu1 %330 }
 0x12a   :  { %v156_v18 = vpop.xlane.xlu0 %155 }
 0x12b   :  { %v190_v22 = vmul.f32 0.03125, %v156_v18 }
 0x12d   :  { %v202_v24 = vadd.f32 1e-05, %v190_v22 }
 0x12e   :  { %v159_v19 = vpop.xlane.xlu1 %158  ;;  %v162_v25 = vpop.xlane.xlu0 %161 }
 0x12f   :  { %512 = vrsqrt.f32 %v202_v24  ;;  %v191_v26 = vmul.f32 0.03125, %v159_v19  ;;  %v192_v27 = vmul.f32 0.03125, %v162_v25 }
 0x131   :  { %v203_v29 = vadd.f32 1e-05, %v191_v26  ;;  %v204_v30 = vadd.f32 1e-05, %v192_v27 }
 0x132   :  { %v165_v31 = vpop.xlane.xlu1 %164  ;;  %v168_v33 = vpop.xlane.xlu0 %167 }
 0x133   :  { %514 = vrsqrt.f32 %v203_v29  ;;  %v193_v34 = vmul.f32 0.03125, %v165_v31  ;;  %v194_v35 = vmul.f32 0.03125, %v168_v33 }
 0x134   :  { %516 = vrsqrt.f32 %v204_v30 }
 0x135   :  { %v205_v36 = vadd.f32 1e-05, %v193_v34  ;;  %v206_v37 = vadd.f32 1e-05, %v194_v35 }
 0x136   :  { %v171_v39 = vpop.xlane.xlu1 %170  ;;  %v174_v40 = vpop.xlane.xlu0 %173 }
 0x137   :  { %518 = vrsqrt.f32 %v205_v36  ;;  %v195_v28 = vmul.f32 0.03125, %v171_v39  ;;  %v196_v32 = vmul.f32 0.03125, %v174_v40 }
 0x138   :  { %520 = vrsqrt.f32 %v206_v37 }
 0x139   :  { %v513_v44 = vpop.eup %512  ;;  %v207_v46 = vadd.f32 1e-05, %v195_v28  ;;  %v208_v47 = vadd.f32 1e-05, %v196_v32 }
 0x13a   :  { %v226_v49 = vmul.f32 %v513_v44, %v682_v11  ;;  %v177_v50 = vpop.xlane.xlu1 %176  ;;  %v180_v38 = vpop.xlane.xlu0 %179 }
 0x13b   :  { %522 = vrsqrt.f32 %v207_v46  ;;  %v197_v54 = vmul.f32 0.03125, %v177_v50  ;;  %v198_v55 = vmul.f32 0.03125, %v180_v38 }
 0x13c   :  { %v245_v57 = vmul.f32 %v780_v45, %v226_v49  ;;  %524 = vrsqrt.f32 %v208_v47 }
 0x13d   :  { %v515_v59 = vpop.eup %514  ;;  %v209_v60 = vadd.f32 1e-05, %v197_v54  ;;  %v210_v61 = vadd.f32 1e-05, %v198_v55 }
 0x13e   :  { %v517_v48 = vpop.eup %516  ;;  %v264_v52 = vadd.f32 %v786_v42, %v245_v57  ;;  %v227_v11 = vmul.f32 %v515_v59, %v692_v23  ;;  %v183_v0 = vpop.xlane.xlu1 %182 }
 0x13f   :  { %v186_v1 = vpop.xlane.xlu0 %185  ;;  %v228_v2 = vmul.f32 %v517_v48, %v685_v12  ;;  %526 = vrsqrt.f32 %v209_v60  ;;  %v199_v3 = vmul.f32 0.03125, %v183_v0 }
 0x140   :  { %v200_v56 = vmul.f32 0.03125, %v186_v1  ;;  %v348_v58 = vmul.f32 %v291_v13, %v264_v52  ;;  %v246_v4 = vmul.f32 %v780_v45, %v227_v11  ;;  %528 = vrsqrt.f32 %v210_v61 }
 0x141   :  { %v519_v18 = vpop.eup %518  ;;  %v247_v22 = vmul.f32 %v780_v45, %v228_v2  ;;  %v211_v24 = vadd.f32 1e-05, %v199_v3 }
 0x142   :  { %v212_v19 = vadd.f32 1e-05, %v200_v56  ;;  %v521_v25 = vpop.eup %520  ;;  %v439_v26 = vpack.c.bf16 %v348_v58, %v348_v58  ;;  %v265_v23 = vadd.f32 %v786_v42, %v246_v4  ;;  %v229_v27 = vmul.f32 %v519_v18, %v696_v15  ;;  %v189_v12 = vpop.xlane.xlu1 %188 }
 0x143   :  { %v266_v29 = vadd.f32 %v786_v42, %v247_v22  ;;  %v230_v13 = vmul.f32 %v521_v25, %v704_v20  ;;  %530 = vrsqrt.f32 %v211_v24  ;;  %v201_v30 = vmul.f32 0.03125, %v189_v12 }
 0x144   :  { %409 = vst.msk [vmem:[%s885_s5] sm:$0xf] %vm408_vm1, %v439_v26  ;;  %v349_v31 = vmul.f32 %v759_v5, %v265_v23  ;;  %v248_v33 = vmul.f32 %v780_v45, %v229_v27  ;;  %532 = vrsqrt.f32 %v212_v19 }
 0x145   :  { %v523_v34 = vpop.eup %522  ;;  %v350_v15 = vmul.f32 %v761_v6, %v266_v29  ;;  %v249_v35 = vmul.f32 %v780_v45, %v230_v13  ;;  %v213_v36 = vadd.f32 1e-05, %v201_v30 }
 0x146   :  { %v525_v37 = vpop.eup %524  ;;  %v440_v20 = vpack.c.bf16 %v349_v31, %v349_v31  ;;  %v267_v39 = vadd.f32 %v786_v42, %v248_v33  ;;  %v231_v40 = vmul.f32 %v523_v34, %v708_v21  ;;  %v341_v22 = vpop.permute.xlu1 %340 }
 0x147   :  { %v441_v28 = vpack.c.bf16 %v350_v15, %v350_v15  ;;  %v268_v32 = vadd.f32 %v786_v42, %v249_v35  ;;  %v232_v5 = vmul.f32 %v525_v37, %v716_v41  ;;  %534 = vrsqrt.f32 %v213_v36  ;;  %v346_v26 = vpop.permute.xlu0 %345 }
 0x148   :  { %410 = vst.msk [vmem:[%s885_s5 + $0x4] sm:$0xf] %vm408_vm1, %v440_v20  ;;  %v351_v6 = vmul.f32 %v763_v7, %v267_v39  ;;  %v250_v44 = vmul.f32 %v780_v45, %v231_v40 }
 0x149   :  { %v527_v46 = vpop.eup %526  ;;  %411 = vst.msk [vmem:[%s885_s5 + $0x8] sm:$0xf] %vm408_vm1, %v441_v28  ;;  %v352_v21 = vmul.f32 %v765_v8, %v268_v32  ;;  %v251_v41 = vmul.f32 %v780_v45, %v232_v5 }
 0x14a   :  { %v529_v47 = vpop.eup %528  ;;  %v442_v49 = vpack.c.bf16 %v351_v6, %v351_v6  ;;  %v269_v50 = vadd.f32 %v786_v42, %v250_v44  ;;  %v233_v38 = vmul.f32 %v527_v46, %v720_v43 }
 0x14b   :  { %v443_v54 = vpack.c.bf16 %v352_v21, %v352_v21  ;;  %v270_v7 = vadd.f32 %v786_v42, %v251_v41  ;;  %v234_v55 = vmul.f32 %v529_v47, %v728_v51 }
 0x14c   :  { %412 = vst.msk [vmem:[%s885_s5 + $0xc] sm:$0xf] %vm408_vm1, %v442_v49  ;;  %v353_v8 = vmul.f32 %v767_v9, %v269_v50  ;;  %v252_v57 = vmul.f32 %v780_v45, %v233_v38 }
 0x14d   :  { %v531_v59 = vpop.eup %530  ;;  %413 = vst.msk [vmem:[%s885_s5 + $0x10] sm:$0xf] %vm408_vm1, %v443_v54  ;;  %v354_v43 = vmul.f32 %v769_v10, %v270_v7  ;;  %v253_v60 = vmul.f32 %v780_v45, %v234_v55 }
 0x14e   :  { %v533_v51 = vpop.eup %532  ;;  %v444_v61 = vpack.c.bf16 %v353_v8, %v353_v8  ;;  %v271_v48 = vadd.f32 %v786_v42, %v252_v57  ;;  %v235_v52 = vmul.f32 %v531_v59, %v732_v53 }
 0x14f   :  { %v445_v11 = vpack.c.bf16 %v354_v43, %v354_v43  ;;  %v272_v9 = vadd.f32 %v786_v42, %v253_v60  ;;  %v236_v0 = vmul.f32 %v533_v51, %v740_v62 }
 0x150   :  { %414 = vst.msk [vmem:[%s885_s5 + $0x14] sm:$0xf] %vm408_vm1, %v444_v61  ;;  %v355_v10 = vmul.f32 %v771_v14, %v271_v48  ;;  %v254_v1 = vmul.f32 %v780_v45, %v235_v52 }
 0x151   :  { %v535_v2 = vpop.eup %534  ;;  %415 = vst.msk [vmem:[%s885_s5 + $0x18] sm:$0xf] %vm408_vm1, %v445_v11  ;;  %v356_v53 = vmul.f32 %v775_v17, %v272_v9  ;;  %v255_v3 = vmul.f32 %v780_v45, %v236_v0 }
 0x152   :  { %v446_v62 = vpack.c.bf16 %v355_v10, %v355_v10  ;;  %v273_v56 = vadd.f32 %v786_v42, %v254_v1  ;;  %v237_v58 = vmul.f32 %v535_v2, %v744_v63 }
 0x153   :  { %v447_v4 = vpack.c.bf16 %v356_v53, %v356_v53  ;;  %v274_v14 = vadd.f32 %v786_v42, %v255_v3 }
 0x154   :  { %416 = vst.msk [vmem:[%s885_s5 + $0x1c] sm:$0xf] %vm408_vm1, %v446_v62  ;;  %v357_v18 = vmul.f32 %v773_v16, %v273_v56  ;;  %v256_v17 = vmul.f32 %v780_v45, %v237_v58 }
 0x155   :  { %417 = vst.msk [vmem:[%s885_s5 + $0x20] sm:$0xf] %vm408_vm1, %v447_v4  ;;  %v358_v24 = vmul.f32 %v341_v22, %v274_v14 }
 0x156   :  { %v448_v63 = vpack.c.bf16 %v357_v18, %v357_v18  ;;  %v275_v19 = vadd.f32 %v786_v42, %v256_v17 }
 0x157   :  { %v449_v25 = vpack.c.bf16 %v358_v24, %v358_v24 }
 0x158   :  { %418 = vst.msk [vmem:[%s885_s5 + $0x24] sm:$0xf] %vm408_vm1, %v448_v63  ;;  %v359_v16 = vmul.f32 %v346_v26, %v275_v19 }
 0x159   :  { %419 = vst.msk [vmem:[%s885_s5 + $0x28] sm:$0xf] %vm408_vm1, %v449_v25 }
 0x15a   :  { %v450_v45 = vpack.c.bf16 %v359_v16, %v359_v16 }
 0x15c   :  { %420 = vst.msk [vmem:[%s885_s5 + $0x2c] sm:$0xf] %vm408_vm1, %v450_v45 }

// kernel: _lambda_.40
= control target key start
LH: loop header
LB: loop body
LE: loop exit
PB: predicated region body
PF: predicated region fallthrough
CT: control target
= control target key end

     0   :  { %s1520_s12 = smov 0   ;;  %s1871_s0 = inlined_call_operand.vmem [shape: bf16[2,56,32], index: 0, kind: input, shape index: {}]   ;;  %s1872_s1 = inlined_call_operand.vmem [shape: bf16[9,32,64], index: 1, kind: input, shape index: {}]   ;;  %s1873_s2 = inlined_call_operand.vmem [shape: f32[1,64], index: 2, kind: input, shape index: {}]   ;;  %s1874_s3 = inlined_call_operand.vmem [shape: bf16[2,48,64], index: 3, kind: output, shape index: {}]  }
   0x1 LB: > { %s1186_s13 = sadd.s32 4294967295, %s1496_s12   ;;  %p1190_p0 = scmp.ge.s32.totalorder %s1496_s12, 1  ;;  %s1496_s12 = sphi %s1520_s12, %s13_s12  }
   0x2   : > { %p137_p1 = scmp.lt.s32.totalorder %s1496_s12, 3 }
   0x4   : > { %p138_p2 = pnand %p1190_p0, %p137_p1 }
   0x5   : > { %v1465_v0 = vld [vmem:[%s1872_s1 + $0x10] sm:$0xff] (!%p138_p2)   ;;  %v1498_v1 = vmov (!%p138_p2), 0.0   ;;  %v1466_v2 = vld [vmem:[%s1872_s1 + $0x18] sm:$0xff] (!%p138_p2)   ;;  %vm1499_vm0 = vmmov (!%p138_p2), 0   ;;  %p161_p3 = scmp.lt.s32.totalorder (!%p138_p2), %s1186_s13, 1  ;;  %vm274_vm2 = vcmask (!%p138_p2), 261120  }
   0x6   : > { %141 = sbr.rel (%p138_p2) target bundleno = 356 (0x164), region = 32  ;;  %1449 = vmatprep.subr.bf16.mxu1 (!%p138_p2), %v1498_v1  ;;  %1305 = vmatprep.subr.bf16.mxu0 (!%p138_p2), %v1498_v1  ;;  %vm233_vm1 = vsmask.f32 (!%p138_p2), 7424  ;;  %v1469_v23 = vld [vmem:[%s1872_s1] sm:$0xff] (!%p138_p2)   ;;  %v1472_v34 = vld [vmem:[%s1872_s1 + $0x8] sm:$0xff] (!%p138_p2)   ;;  %vm416_vm3 = vcmask (!%p138_p2), 1046528  }
   0x7   : > { %1451 = vmatpush3.bf16.msra.mxu1 (!%p138_p2), %v1465_v0  ;;  %1313 = vmatprep.mubr.msk.bf16.mxu1 (!%p138_p2), %vm1499_vm0, %v1498_v1  ;;  %v1473_v30 = vld [vmem:[%s1872_s1 + $0x20] sm:$0xff] (!%p138_p2)   ;;  %v1474_v37 = vld [vmem:[%s1872_s1 + $0x28] sm:$0xff] (!%p138_p2)   ;;  %vm802_vm4 = vcmask (!%p138_p2), 1044480   ;;  %vm702_vm5 = vsmask.f32 (!%p138_p2), 5376  ;;  %vm610_vm7 = vcmask (!%p138_p2), 1045504  }
   0x8   : > { %1450 = vmatprep.subr.bf16.mxu1 (!%p138_p2), %v1498_v1  ;;  %1306 = vmatpush3.bf16.msra.mxu0 (!%p138_p2), %v1465_v0  ;;  %v1476_v45 = vld [vmem:[%s1872_s1 + $0x40] sm:$0xff] (!%p138_p2)   ;;  %vm894_vm6 = vsmask.f32 (!%p138_p2), 4352  ;;  %v1478_v60 = vld [vmem:[%s1872_s1 + $0x48] sm:$0xff] (!%p138_p2)   ;;  %vm508_vm8 = vsmask.f32 (!%p138_p2), 6400 }
   0x9   : > { %1307 = vmatprep.subr.bf16.mxu0 (!%p138_p2), %v1498_v1  ;;  %1309 = vmatprep.mubr.msk.bf16.mxu0 (!%p138_p2), %vm1499_vm0, %v1498_v1  ;;  %vm1124_vm9 = vcmask (!%p138_p2), 519168  }
   0xb   : > { %1452 = vmatpush3.bf16.msra.mxu1 (!%p138_p2), %v1466_v2 }
   0xc   : > { %1321 = vmatprep.subr.bf16.mxu1 (!%p138_p2), %v1498_v1  ;;  %1308 = vmatpush3.bf16.msra.mxu0 (!%p138_p2), %v1466_v2 }
   0xd   : > { %s1876_s13 = smov (!%p161_p3, %s1186_s13), 1  ;;  %1337 = vmatprep.subr.bf16.mxu0 %v1498_v1 }
   0xe   : > { %s1453_s18 = smul.u32 28, %s1876_s13 }
   0xf   : > { %s1454_s4 = smul.u32 24, %s1876_s13 }
  0x10   : > { %s165_s21 = scalar_lea.vmem %s1871_s0, %s1453_s18 }
  0x11   : > { %v1550_v3 = vld [vmem:[%s165_s21 + $0x8] sm:$0xf]  ;;  %v1552_v4 = vld [vmem:[%s165_s21 + $0xc] sm:$0xf]  ;;  %v1554_v5 = vld [vmem:[%s165_s21 + $0x10] sm:$0xf]  ;;  %s1854_s7 = scalar_lea.vmem %s1874_s3, %s1454_s4 }
  0x12   : > { %v1556_v6 = vld [vmem:[%s165_s21 + $0x14] sm:$0xf]  ;;  %v1560_v7 = vcombine.low %v1550_v3, %v1552_v4  ;;  %v172_v8 = vld [vmem:[%s165_s21] sm:$0xf]  ;;  %v1562_v9 = vld [vmem:[%s165_s21 + $0x4] sm:$0xf]  ;;  %v1238_v10 = vcombine.low %v1552_v4, %v1554_v5 }
  0x13   : > { %v1568_v11 = vcombine.low %v1554_v5, %v1556_v6  ;;  %v1571_v12 = vcombine.low %v172_v8, %v1562_v9  ;;  %v1573_v13 = vld [vmem:[%s165_s21 + $0x18] sm:$0xf]  ;;  %v1237_v14 = vcombine.low %v1562_v9, %v1550_v3 }
  0x14   : > { %v1578_v15 = vshll.u32 %v1560_v7, 16  ;;  %v1581_v16 = vshrl.u32 %v1560_v7, 16  ;;  %v1585_v17 = vcombine.low %v1573_v13, %v1573_v13  ;;  %v418_v36 = vrot.slane %v1560_v7, 1 }
  0x15   : > { %v1588_v18 = vshll.u32 %v1568_v11, 16  ;;  %v1591_v19 = vshrl.u32 %v1571_v12, 16  ;;  %v1594_v20 = vshll.u32 %v1571_v12, 16  ;;  %v1604_v26 = vshrl.u32 %v1568_v11, 16 }
  0x16   : > { %v244_v21 = vrot.slane %v1578_v15, 1  ;;  %v1607_v27 = vshll.u32 %v1585_v17, 16  ;;  %v417_v35 = vrot.slane %v1571_v12, 1  ;;  %v1639_v42 = vshrl.u32 %v1585_v17, 16 }
  0x17   : > { %v252_v22 = vrot.slane %v1588_v18, 1  ;;  %v239_v24 = vrot.slane %v1594_v20, 1  ;;  %v703_v39 = vrot.slane %v1591_v19, 2  ;;  %v704_v40 = vrot.slane %v1594_v20, 3 }
  0x18   : > { %v248_v25 = vor.u32 %v1581_v16, %v244_v21  ;;  %v260_v33 = vrot.slane %v1607_v27, 1  ;;  %v419_v41 = vsel %vm416_vm3, %v417_v35, %v418_v36  ;;  %v706_v43 = vrot.slane %v1581_v16, 2  ;;  %v1477_v35 = vld [vmem:[%s1872_s1 + $0x38] sm:$0xff]  }
  0x19   : > { %v240_v28 = vor.u32 %v239_v24, %v1591_v19  ;;  %v256_v32 = vor.u32 %v1604_v26, %v252_v22  ;;  %v707_v44 = vrot.slane %v1578_v15, 3  ;;  %v705_v46 = vor.u32 %v704_v40, %v703_v39 }
  0x1a   : > { %v253_v29 = vsel %vm233_vm1, %v248_v25, %v252_v22  ;;  %v710_v47 = vrot.slane %v1604_v26, 2  ;;  %v711_v48 = vrot.slane %v1588_v18, 3  ;;  %v806_v50 = vrot.slane %v1568_v11, 3 }
  0x1b   : > { %1314 = vmatmul.mubr.msk.bf16.vlgmr.msra.gmra.mrb[0].mxu1 %vm274_vm2, %v253_v29  ;;  %v245_v31 = vsel %vm233_vm1, %v240_v28, %v244_v21  ;;  %v261_v38 = vsel %vm233_vm1, %v256_v32, %v260_v33  ;;  %v708_v49 = vor.u32 %v707_v44, %v706_v43  ;;  %v808_v51 = vrot.slane %v1585_v17, 3 }
  0x1c   : > { %1322 = vmatpush3.bf16.msra.mxu1 %v1469_v23  ;;  %1310 = vmatmul.mubr.msk.bf16.vlgmr.msra.gmra.mrb[0].mxu0 %vm274_vm2, %v245_v31  ;;  %v714_v52 = vrot.slane %v1639_v42, 2  ;;  %v420_v53 = vrot.slane %v1568_v11, 1  ;;  %v712_v54 = vor.u32 %v711_v48, %v710_v47  ;;  %v715_v55 = vrot.slane %v1607_v27, 3  ;;  %v1475_v23 = vld [vmem:[%s1872_s1 + $0x30] sm:$0xff]   ;;  %v1480_v47 = vld [vmem:[%s1872_s1 + $0x60] sm:$0xff]  }
  0x1d   : > { %1317 = vmatprep.mubr.msk.bf16.mxu1 %vm1499_vm0, %v1498_v1  ;;  %1323 = vmatprep.subr.bf16.mxu1 %v1498_v1  ;;  %v1659_v56 = vsel %vm702_vm5, %v705_v46, %v708_v49  ;;  %v1664_v57 = vsel %vm802_vm4, %v806_v50, %v808_v51  ;;  %v895_v58 = vrot.slane %v1591_v19, 3  ;;  %v896_v59 = vrot.slane %v1594_v20, 4 }
  0x1e   : > { %1338 = vmatpush3.bf16.msra.mxu0 %v1473_v30  ;;  %1341 = vmatprep.mubr.msk.bf16.mxu0 %vm1499_vm0, %v1498_v1  ;;  %v1674_v61 = vsel %vm702_vm5, %v708_v49, %v712_v54  ;;  %v716_v62 = vor.u32 %v715_v55, %v714_v52  ;;  %v898_v63 = vrot.slane %v1581_v16, 3  ;;  %v899_v0 = vrot.slane %v1578_v15, 4  ;;  %v1479_v49 = vld [vmem:[%s1872_s1 + $0x50] sm:$0xff]   ;;  %v1481_v55 = vld [vmem:[%s1872_s1 + $0x58] sm:$0xff]  }
  0x1f   : > { %1339 = vmatprep.subr.bf16.mxu0 %v1498_v1  ;;  %v897_v2 = vor.u32 %v896_v59, %v895_v58  ;;  %v902_v8 = vrot.slane %v1604_v26, 3  ;;  %v903_v21 = vrot.slane %v1588_v18, 4  ;;  %v1239_v22 = vcombine.low %v1556_v6, %v1573_v13 }
  0x20   : > { %1324 = vmatpush3.bf16.msra.mxu1 %v1472_v34  ;;  %v1687_v24 = vsel %vm702_vm5, %v712_v54, %v716_v62  ;;  %v900_v25 = vor.u32 %v899_v0, %v898_v63  ;;  %v906_v28 = vrot.slane %v1639_v42, 3  ;;  %v907_v29 = vrot.slane %v1607_v27, 4  ;;  %v1484_v0 = vld [vmem:[%s1872_s1 + $0x80] sm:$0xff]  }
  0x21   : > { %1353 = vmatprep.subr.bf16.mxu1 %v1498_v1  ;;  %v904_v30 = vor.u32 %v903_v21, %v902_v8  ;;  %v421_v31 = vsel %vm416_vm3, %v418_v36, %v420_v53  ;;  %v611_v39 = vrot.slane %v1571_v12, 2  ;;  %v612_v40 = vrot.slane %v1560_v7, 2  ;;  %v1485_v8 = vld [vmem:[%s1872_s1 + $0x78] sm:$0xff]  }
  0x22   : > { %1340 = vmatpush3.bf16.msra.mxu0 %v1474_v37  ;;  %v1693_v32 = vsel %vm894_vm6, %v897_v2, %v900_v25  ;;  %v908_v33 = vor.u32 %v907_v29, %v906_v28  ;;  %v422_v37 = vrot.slane %v1585_v17, 1  ;;  %v510_v43 = vrot.slane %v1594_v20, 2 }
  0x23   : > { %1318 = vmatmul.mubr.msk.bf16.gmra.mrb[4].mxu1 %vm274_vm2, %v261_v38  ;;  %1369 = vmatprep.subr.bf16.mxu0 %v1498_v1  ;;  %v1699_v34 = vsel %vm894_vm6, %v900_v25, %v904_v30  ;;  %v512_v44 = vrot.slane %v1581_v16, 1  ;;  %v613_v46 = vsel %vm610_vm7, %v611_v39, %v612_v40  ;;  %v1482_v16 = vld [vmem:[%s1872_s1 + $0x68] sm:$0xff]   ;;  %v516_v51 = vrot.slane %v1604_v26, 1 }
  0x24   : > { %1325 = vmatprep.mubr.msk.bf16.mxu1 %vm1499_vm0, %v1498_v1  ;;  %v1707_v36 = vsel %vm894_vm6, %v904_v30, %v908_v33  ;;  %v423_v38 = vsel %vm416_vm3, %v420_v53, %v422_v37  ;;  %v517_v52 = vrot.slane %v1588_v18, 2  ;;  %v616_v18 = vrot.slane %v1585_v17, 2 }
  0x25   : > { %1342 = vmatmul.mubr.msk.bf16.vlgmr.msra.gmra.mrb[4].mxu0 %vm274_vm2, %v419_v41  ;;  %v509_v41 = vrot.slane %v1591_v19, 1  ;;  %v522_v58 = vrot.slane %v1639_v42, 1  ;;  %v523_v59 = vrot.slane %v1607_v27, 2  ;;  %v803_v17 = vrot.slane %v1571_v12, 3 }
  0x26   : > { %1370 = vmatpush3.bf16.msra.mxu0 %v1476_v45  ;;  %1345 = vmatprep.mubr.msk.bf16.mxu0 %vm1499_vm0, %v1498_v1  ;;  %v513_v45 = vrot.slane %v1578_v15, 2  ;;  %v614_v15 = vrot.slane %v1568_v11, 2  ;;  %v518_v54 = vor.u32 %v517_v52, %v516_v51  ;;  %v804_v42 = vrot.slane %v1560_v7, 3 }
  0x27   : > { %1371 = vmatprep.subr.bf16.mxu0 %v1498_v1  ;;  %v511_v48 = vor.u32 %v510_v43, %v509_v41  ;;  %v524_v62 = vor.u32 %v523_v59, %v522_v58 }
  0x28   : > { %v514_v19 = vor.u32 %v513_v45, %v512_v44  ;;  %v615_v53 = vsel %vm610_vm7, %v612_v40, %v614_v15  ;;  %v805_v63 = vsel %vm802_vm4, %v803_v17, %v804_v42  ;;  %v807_v2 = vsel %vm802_vm4, %v804_v42, %v806_v50 }
  0x29   : > { %v525_v27 = vsel %vm508_vm8, %v518_v54, %v524_v62 }
  0x2a   : > { %1372 = vmatpush3.bf16.msra.mxu0 %v1478_v60  ;;  %v515_v20 = vsel %vm508_vm8, %v511_v48, %v514_v19  ;;  %v519_v26 = vsel %vm508_vm8, %v514_v19, %v518_v54  ;;  %v617_v60 = vsel %vm610_vm7, %v614_v15, %v616_v18 }
  0x2b   : > { %1326 = vmatmul.mubr.msk.bf16.vlgmr.msra.gmra.mrb[8].mxu1 %vm274_vm2, %v1571_v12  ;;  %1401 = vmatprep.subr.bf16.mxu0 %v1498_v1  ;;  %v1483_v12 = vld [vmem:[%s1872_s1 + $0x70] sm:$0xff]  }
  0x2c   : > { %1354 = vmatpush3.bf16.msra.mxu1 %v1475_v23  ;;  %1329 = vmatprep.mubr.msk.bf16.mxu1 %vm1499_vm0, %v1498_v1 }
  0x2d   : > { %1346 = vmatmul.mubr.msk.bf16.gmra.mrb[8].mxu0 %vm274_vm2, %v421_v31  ;;  %1355 = vmatprep.subr.bf16.mxu1 %v1498_v1 }
  0x2e   : > { %1349 = vmatprep.mubr.msk.bf16.mxu0 %vm1499_vm0, %v1498_v1 }
  0x30   : > { %1356 = vmatpush3.bf16.msra.mxu1 %v1477_v35 }
  0x31   : > { %1385 = vmatprep.subr.bf16.mxu1 %v1498_v1 }
  0x33   : > { %1330 = vmatmul.mubr.msk.bf16.gmra.mrb[12].mxu1 %vm274_vm2, %v1560_v7  ;;  %v1486_v7 = vld [vmem:[%s1872_s1 + $0x88] sm:$0xff]  }
  0x34   : > { %1333 = vmatprep.mubr.msk.bf16.mxu1 %vm1499_vm0, %v1498_v1 }
  0x35   : > { %1350 = vmatmul.mubr.msk.bf16.gmra.mrb[12].mxu0 %vm274_vm2, %v423_v38 }
  0x36   : > { %1373 = vmatprep.mubr.msk.bf16.mxu0 %vm1499_vm0, %v1498_v1 }
  0x3b   : > { %1334 = vmatmul.mubr.msk.bf16.gmra.mrb[16].mxu1 %vm274_vm2, %v1568_v11 }
  0x3c   : > { %1357 = vmatprep.mubr.msk.bf16.mxu1 %vm1499_vm0, %v1498_v1 }
  0x3d   : > { %1374 = vmatmul.mubr.msk.bf16.vlgmr.msra.gmra.mrb[16].mxu0 %vm274_vm2, %v613_v46 }
  0x3e   : > { %1402 = vmatpush3.bf16.msra.mxu0 %v1480_v47  ;;  %1377 = vmatprep.mubr.msk.bf16.mxu0 %vm1499_vm0, %v1498_v1 }
  0x3f   : > { %1403 = vmatprep.subr.bf16.mxu0 %v1498_v1 }
  0x42   : > { %1404 = vmatpush3.bf16.msra.mxu0 %v1482_v16 }
  0x43   : > { %1358 = vmatmul.mubr.msk.bf16.vlgmr.msra.gmra.mrb[20].mxu1 %vm274_vm2, %v515_v20  ;;  %1433 = vmatprep.subr.bf16.mxu0 %v1498_v1 }
  0x44   : > { %1386 = vmatpush3.bf16.msra.mxu1 %v1479_v49  ;;  %1361 = vmatprep.mubr.msk.bf16.mxu1 %vm1499_vm0, %v1498_v1 }
  0x45   : > { %1378 = vmatmul.mubr.msk.bf16.gmra.mrb[20].mxu0 %vm274_vm2, %v615_v53  ;;  %1387 = vmatprep.subr.bf16.mxu1 %v1498_v1 }
  0x46   : > { %1381 = vmatprep.mubr.msk.bf16.mxu0 %vm1499_vm0, %v1498_v1 }
  0x48   : > { %1388 = vmatpush3.bf16.msra.mxu1 %v1481_v55 }
  0x49   : > { %1417 = vmatprep.subr.bf16.mxu1 %v1498_v1 }
  0x4b   : > { %1362 = vmatmul.mubr.msk.bf16.gmra.mrb[24].mxu1 %vm274_vm2, %v519_v26 }
  0x4c   : > { %1365 = vmatprep.mubr.msk.bf16.mxu1 %vm1499_vm0, %v1498_v1 }
  0x4d   : > { %1382 = vmatmul.mubr.msk.bf16.gmra.mrb[24].mxu0 %vm274_vm2, %v617_v60 }
  0x4e   : > { %1405 = vmatprep.mubr.msk.bf16.mxu0 %vm1499_vm0, %v1498_v1 }
  0x53   : > { %1366 = vmatmul.mubr.msk.bf16.gmra.mrb[28].mxu1 %vm274_vm2, %v525_v27 }
  0x54   : > { %1389 = vmatprep.mubr.msk.bf16.mxu1 %vm1499_vm0, %v1498_v1 }
  0x55   : > { %1406 = vmatmul.mubr.msk.bf16.vlgmr.msra.gmra.mrb[28].mxu0 %vm274_vm2, %v805_v63 }
  0x56   : > { %1434 = vmatpush3.bf16.msra.mxu0 %v1484_v0  ;;  %1409 = vmatprep.mubr.msk.bf16.mxu0 %vm1499_vm0, %v1498_v1 }
  0x57   : > { %1435 = vmatprep.subr.bf16.mxu0 %v1498_v1 }
  0x5a   : > { %1436 = vmatpush3.bf16.msra.mxu0 %v1486_v7 }
  0x5b   : > { %1390 = vmatmul.mubr.msk.bf16.vlgmr.msra.gmra.mrb[32].mxu1 %vm274_vm2, %v1659_v56 }
  0x5c   : > { %1418 = vmatpush3.bf16.msra.mxu1 %v1483_v12  ;;  %1393 = vmatprep.mubr.msk.bf16.mxu1 %vm1499_vm0, %v1498_v1 }
  0x5d   : > { %1410 = vmatmul.mubr.msk.bf16.gmra.mrb[32].mxu0 %vm274_vm2, %v807_v2  ;;  %1419 = vmatprep.subr.bf16.mxu1 %v1498_v1 }
  0x5e   : > { %1413 = vmatprep.mubr.msk.bf16.mxu0 %vm1499_vm0, %v1498_v1 }
  0x60   : > { %1420 = vmatpush3.bf16.msra.mxu1 %v1485_v8 }
  0x63   : > { %1394 = vmatmul.mubr.msk.bf16.gmra.mrb[36].mxu1 %vm274_vm2, %v1674_v61 }
  0x64   : > { %1397 = vmatprep.mubr.msk.bf16.mxu1 %vm1499_vm0, %v1498_v1 }
  0x65   : > { %1414 = vmatmul.mubr.msk.bf16.gmra.mrb[36].mxu0 %vm274_vm2, %v1664_v57 }
  0x66   : > { %1437 = vmatprep.mubr.msk.bf16.mxu0 %vm1499_vm0, %v1498_v1 }
  0x6b   : > { %1398 = vmatmul.mubr.msk.bf16.gmra.mrb[40].mxu1 %vm274_vm2, %v1687_v24 }
  0x6c   : > { %1421 = vmatprep.mubr.msk.bf16.mxu1 %vm1499_vm0, %v1498_v1 }
  0x6d   : > { %1438 = vmatmul.mubr.msk.bf16.vlgmr.msra.gmra.mrb[40].mxu0 %vm274_vm2, %v1237_v14 }
  0x6e   : > { %1441 = vmatprep.mubr.msk.bf16.mxu0 %vm1499_vm0, %v1498_v1 }
  0x73   : > { %1422 = vmatmul.mubr.msk.bf16.vlgmr.msra.gmra.mrb[44].mxu1 %vm274_vm2, %v1693_v32 }
  0x74   : > { %1425 = vmatprep.mubr.msk.bf16.mxu1 %vm1499_vm0, %v1498_v1 }
  0x75   : > { %1442 = vmatmul.mubr.msk.bf16.gmra.mrb[44].mxu0 %vm274_vm2, %v1238_v10 }
  0x76   : > { %1445 = vmatprep.mubr.msk.bf16.mxu0 %vm1499_vm0, %v1498_v1 }
  0x7b   : > { %1426 = vmatmul.mubr.msk.bf16.gmra.mrb[48].mxu1 %vm274_vm2, %v1699_v34 }
  0x7c   : > { %1429 = vmatprep.mubr.msk.bf16.mxu1 %vm1499_vm0, %v1498_v1 }
  0x7d   : > { %1446 = vmatmul.mubr.msk.bf16.gmra.mrb[48].mxu0 %vm274_vm2, %v1239_v22 }
  0x83   : > { %1430 = vmatmul.mubr.msk.bf16.gmra.mrb[52].mxu1 %vm274_vm2, %v1707_v36 }
  0xee   : > { %v326_v3 = vpop.f32.mrb[0].mxu1 }
  0xef   : > { %v1315_v4 = vpop.f32.mrb[1].mxu1  ;;  %v318_v5 = vpop.f32.mrb[0].mxu0 }
  0xf0   : > { %v329_v9 = vpop.f32.mrb[2].mxu1  ;;  %v1311_v10 = vpop.f32.mrb[1].mxu0 }
  0xf1   : > { %v1316_v11 = vpop.f32.mrb[3].mxu1  ;;  %v321_v14 = vpop.f32.mrb[2].mxu0 }
  0xf2   : > { %v1312_v50 = vpop.f32.mrb[3].mxu0 }
  0xf6   : > { %v334_v56 = vpop.f32.mrb[4].mxu1 }
  0xf7   : > { %v1319_v57 = vpop.f32.mrb[5].mxu1 }
  0xf8   : > { %v337_v61 = vpop.f32.mrb[6].mxu1  ;;  %v479_v1 = vpop.f32.mrb[4].mxu0 }
  0xf9   : > { %v1320_v21 = vpop.f32.mrb[7].mxu1  ;;  %v1343_v23 = vpop.f32.mrb[5].mxu0 }
  0xfa   : > { %v482_v6 = vpop.f32.mrb[6].mxu0 }
  0xfb   : > { %v1344_v13 = vpop.f32.mrb[7].mxu0 }
  0xfe   : > { %v393_v22 = vpop.f32.mrb[8].mxu1 }
  0xff   : > { %v394_v24 = vadd.f32 %v393_v22, %v318_v5  ;;  %v1327_v25 = vpop.f32.mrb[9].mxu1 }
 0x100   : > { %v396_v28 = vpop.f32.mrb[10].mxu1  ;;  %v487_v29 = vpop.f32.mrb[8].mxu0 }
 0x101   : > { %v397_v30 = vadd.f32 %v396_v28, %v321_v14  ;;  %v1328_v31 = vpop.f32.mrb[11].mxu1  ;;  %v1347_v32 = vpop.f32.mrb[9].mxu0  ;;  %v502_v33 = vadd.f32 %v479_v1, %v394_v24 }
 0x102   : > { %v490_v34 = vpop.f32.mrb[10].mxu0 }
 0x103   : > { %v1348_v35 = vpop.f32.mrb[11].mxu0  ;;  %v503_v36 = vadd.f32 %v482_v6, %v397_v30 }
 0x106   : > { %v401_v37 = vpop.f32.mrb[12].mxu1 }
 0x107   : > { %v402_v38 = vadd.f32 %v401_v37, %v326_v3  ;;  %v1331_v39 = vpop.f32.mrb[13].mxu1 }
 0x108   : > { %v404_v40 = vpop.f32.mrb[14].mxu1  ;;  %v495_v41 = vpop.f32.mrb[12].mxu0 }
 0x109   : > { %v405_v43 = vadd.f32 %v404_v40, %v329_v9  ;;  %v1332_v44 = vpop.f32.mrb[15].mxu1  ;;  %v1351_v45 = vpop.f32.mrb[13].mxu0  ;;  %v504_v46 = vadd.f32 %v487_v29, %v402_v38 }
 0x10a   : > { %v498_v47 = vpop.f32.mrb[14].mxu0 }
 0x10b   : > { %v1352_v48 = vpop.f32.mrb[15].mxu0  ;;  %v505_v19 = vadd.f32 %v490_v34, %v405_v43 }
 0x10e   : > { %v409_v15 = vpop.f32.mrb[16].mxu1 }
 0x10f   : > { %v410_v16 = vadd.f32 %v409_v15, %v334_v56  ;;  %v1335_v20 = vpop.f32.mrb[17].mxu1 }
 0x110   : > { %v412_v49 = vpop.f32.mrb[18].mxu1  ;;  %v673_v51 = vpop.f32.mrb[16].mxu0 }
 0x111   : > { %v413_v52 = vadd.f32 %v412_v49, %v337_v61  ;;  %v1336_v53 = vpop.f32.mrb[19].mxu1  ;;  %v1375_v54 = vpop.f32.mrb[17].mxu0  ;;  %v506_v55 = vadd.f32 %v495_v41, %v410_v16 }
 0x112   : > { %v676_v18 = vpop.f32.mrb[18].mxu0 }
 0x113   : > { %v1376_v26 = vpop.f32.mrb[19].mxu0  ;;  %v507_v58 = vadd.f32 %v498_v47, %v413_v52 }
 0x116   : > { %v581_v59 = vpop.f32.mrb[20].mxu1 }
 0x117   : > { %v604_v60 = vadd.f32 %v581_v59, %v502_v33  ;;  %v1359_v62 = vpop.f32.mrb[21].mxu1 }
 0x118   : > { %v584_v17 = vpop.f32.mrb[22].mxu1  ;;  %v681_v42 = vpop.f32.mrb[20].mxu0 }
 0x119   : > { %v605_v27 = vadd.f32 %v584_v17, %v503_v36  ;;  %v1360_v63 = vpop.f32.mrb[23].mxu1  ;;  %v1379_v0 = vpop.f32.mrb[21].mxu0  ;;  %v696_v7 = vadd.f32 %v673_v51, %v604_v60 }
 0x11a   : > { %v684_v12 = vpop.f32.mrb[22].mxu0 }
 0x11b   : > { %v1380_v2 = vpop.f32.mrb[23].mxu0  ;;  %v697_v8 = vadd.f32 %v676_v18, %v605_v27 }
 0x11e   : > { %v589_v3 = vpop.f32.mrb[24].mxu1 }
 0x11f   : > { %v606_v4 = vadd.f32 %v589_v3, %v504_v46  ;;  %v1363_v5 = vpop.f32.mrb[25].mxu1 }
 0x120   : > { %v592_v9 = vpop.f32.mrb[26].mxu1  ;;  %v689_v10 = vpop.f32.mrb[24].mxu0 }
 0x121   : > { %v607_v11 = vadd.f32 %v592_v9, %v505_v19  ;;  %v1364_v14 = vpop.f32.mrb[27].mxu1  ;;  %v1383_v50 = vpop.f32.mrb[25].mxu0  ;;  %v698_v56 = vadd.f32 %v681_v42, %v606_v4 }
 0x122   : > { %v692_v57 = vpop.f32.mrb[26].mxu0 }
 0x123   : > { %v1384_v61 = vpop.f32.mrb[27].mxu0  ;;  %v699_v1 = vadd.f32 %v684_v12, %v607_v11 }
 0x126   : > { %v597_v21 = vpop.f32.mrb[28].mxu1 }
 0x127   : > { %v608_v23 = vadd.f32 %v597_v21, %v506_v55  ;;  %v1367_v6 = vpop.f32.mrb[29].mxu1 }
 0x128   : > { %v600_v13 = vpop.f32.mrb[30].mxu1  ;;  %v865_v22 = vpop.f32.mrb[28].mxu0 }
 0x129   : > { %v609_v24 = vadd.f32 %v600_v13, %v507_v58  ;;  %v1368_v25 = vpop.f32.mrb[31].mxu1  ;;  %v1407_v28 = vpop.f32.mrb[29].mxu0  ;;  %v700_v29 = vadd.f32 %v689_v10, %v608_v23 }
 0x12a   : > { %v868_v30 = vpop.f32.mrb[30].mxu0 }
 0x12b   : > { %v1408_v31 = vpop.f32.mrb[31].mxu0  ;;  %v701_v32 = vadd.f32 %v692_v57, %v609_v24 }
 0x12e   : > { %v773_v33 = vpop.f32.mrb[32].mxu1 }
 0x12f   : > { %v796_v34 = vadd.f32 %v773_v33, %v696_v7  ;;  %v1391_v35 = vpop.f32.mrb[33].mxu1 }
 0x130   : > { %v776_v36 = vpop.f32.mrb[34].mxu1  ;;  %v873_v37 = vpop.f32.mrb[32].mxu0 }
 0x131   : > { %v797_v38 = vadd.f32 %v776_v36, %v697_v8  ;;  %v1392_v39 = vpop.f32.mrb[35].mxu1  ;;  %v1411_v40 = vpop.f32.mrb[33].mxu0  ;;  %v888_v41 = vadd.f32 %v865_v22, %v796_v34  ;;  %v1245_v8 = vld [vmem:[%s1873_s2] ss:$0 sm:$0xff] }
 0x132   : > { %v876_v43 = vpop.f32.mrb[34].mxu0 }
 0x133   : > { %v1412_v44 = vpop.f32.mrb[35].mxu0  ;;  %v889_v45 = vadd.f32 %v868_v30, %v797_v38 }
 0x136   : > { %v781_v46 = vpop.f32.mrb[36].mxu1 }
 0x137   : > { %v798_v47 = vadd.f32 %v781_v46, %v698_v56  ;;  %v1395_v48 = vpop.f32.mrb[37].mxu1 }
 0x138   : > { %v784_v19 = vpop.f32.mrb[38].mxu1  ;;  %v881_v15 = vpop.f32.mrb[36].mxu0 }
 0x139   : > { %v799_v16 = vadd.f32 %v784_v19, %v699_v1  ;;  %v1396_v20 = vpop.f32.mrb[39].mxu1  ;;  %v1415_v49 = vpop.f32.mrb[37].mxu0  ;;  %v890_v51 = vadd.f32 %v873_v37, %v798_v47 }
 0x13a   : > { %v884_v52 = vpop.f32.mrb[38].mxu0 }
 0x13b   : > { %v1416_v53 = vpop.f32.mrb[39].mxu0  ;;  %v891_v54 = vadd.f32 %v876_v43, %v799_v16 }
 0x13e   : > { %v789_v55 = vpop.f32.mrb[40].mxu1 }
 0x13f   : > { %v800_v18 = vadd.f32 %v789_v55, %v700_v29  ;;  %v1399_v26 = vpop.f32.mrb[41].mxu1 }
 0x140   : > { %v792_v58 = vpop.f32.mrb[42].mxu1  ;;  %v1052_v59 = vpop.f32.mrb[40].mxu0 }
 0x141   : > { %v801_v60 = vadd.f32 %v792_v58, %v701_v32  ;;  %v1400_v62 = vpop.f32.mrb[43].mxu1  ;;  %v1439_v17 = vpop.f32.mrb[41].mxu0  ;;  %v892_v42 = vadd.f32 %v881_v15, %v800_v18 }
 0x142   : > { %v1055_v27 = vpop.f32.mrb[42].mxu0 }
 0x143   : > { %v1440_v63 = vpop.f32.mrb[43].mxu0  ;;  %v893_v0 = vadd.f32 %v884_v52, %v801_v60 }
 0x146   : > { %v965_v7 = vpop.f32.mrb[44].mxu1 }
 0x147   : > { %v988_v12 = vadd.f32 %v965_v7, %v888_v41  ;;  %v1423_v2 = vpop.f32.mrb[45].mxu1 }
 0x148   : > { %v968_v3 = vpop.f32.mrb[46].mxu1  ;;  %v1060_v4 = vpop.f32.mrb[44].mxu0 }
 0x149   : > { %v1075_v5 = vadd.f32 %v1052_v59, %v988_v12  ;;  %v989_v9 = vadd.f32 %v968_v3, %v889_v45  ;;  %v1424_v10 = vpop.f32.mrb[47].mxu1  ;;  %v1443_v11 = vpop.f32.mrb[45].mxu0 }
 0x14a   : > { %v1063_v14 = vpop.f32.mrb[46].mxu0 }
 0x14b   : > { %v1088_v50 = vadd.f32 %v1245_v8, %v1075_v5  ;;  %v1076_v56 = vadd.f32 %v1055_v27, %v989_v9  ;;  %v1444_v57 = vpop.f32.mrb[47].mxu0 }
 0x14d   : > { %v1094_v61 = vmax.f32 %v1088_v50, 0.0  ;;  %v1089_v1 = vadd.f32 %v1245_v8, %v1076_v56 }
 0x14e   : > { %v973_v21 = vpop.f32.mrb[48].mxu1 }
 0x14f   : > { %v1254_v23 = vpack.c.bf16 %v1094_v61, %v1094_v61  ;;  %v1095_v6 = vmax.f32 %v1089_v1, 0.0  ;;  %v990_v13 = vadd.f32 %v973_v21, %v890_v51  ;;  %v1427_v22 = vpop.f32.mrb[49].mxu1 }
 0x150   : > { %v976_v24 = vpop.f32.mrb[50].mxu1  ;;  %v1068_v25 = vpop.f32.mrb[48].mxu0 }
 0x151   : > { %1125 = vst.msk [vmem:[%s1854_s7] sm:$0xf] %vm1124_vm9, %v1254_v23  ;;  %v1255_v28 = vpack.c.bf16 %v1095_v6, %v1095_v6  ;;  %v1077_v29 = vadd.f32 %v1060_v4, %v990_v13  ;;  %v991_v30 = vadd.f32 %v976_v24, %v891_v54  ;;  %v1428_v31 = vpop.f32.mrb[51].mxu1  ;;  %v1447_v32 = vpop.f32.mrb[49].mxu0 }
 0x152   : > { %v1071_v33 = vpop.f32.mrb[50].mxu0 }
 0x153   : > { %1126 = vst.msk [vmem:[%s1854_s7 + $0x4] sm:$0xf] %vm1124_vm9, %v1255_v28  ;;  %v1090_v34 = vadd.f32 %v1245_v8, %v1077_v29  ;;  %v1078_v35 = vadd.f32 %v1063_v14, %v991_v30  ;;  %v1448_v36 = vpop.f32.mrb[51].mxu0 }
 0x155   : > { %v1096_v37 = vmax.f32 %v1090_v34, 0.0  ;;  %v1091_v38 = vadd.f32 %v1245_v8, %v1078_v35 }
 0x156   : > { %v981_v39 = vpop.f32.mrb[52].mxu1 }
 0x157   : > { %v1256_v40 = vpack.c.bf16 %v1096_v37, %v1096_v37  ;;  %v1097_v41 = vmax.f32 %v1091_v38, 0.0  ;;  %v992_v43 = vadd.f32 %v981_v39, %v892_v42  ;;  %v1431_v44 = vpop.f32.mrb[53].mxu1 }
 0x158   : > { %v984_v45 = vpop.f32.mrb[54].mxu1 }
 0x159   : > { %1127 = vst.msk [vmem:[%s1854_s7 + $0x8] sm:$0xf] %vm1124_vm9, %v1256_v40  ;;  %v1257_v46 = vpack.c.bf16 %v1097_v41, %v1097_v41  ;;  %v1079_v47 = vadd.f32 %v1068_v25, %v992_v43  ;;  %v993_v48 = vadd.f32 %v984_v45, %v893_v0  ;;  %v1432_v19 = vpop.f32.mrb[55].mxu1 }
 0x15b   : > { %1128 = vst.msk [vmem:[%s1854_s7 + $0xc] sm:$0xf] %vm1124_vm9, %v1257_v46  ;;  %v1092_v15 = vadd.f32 %v1245_v8, %v1079_v47  ;;  %v1080_v16 = vadd.f32 %v1071_v33, %v993_v48 }
 0x15d   : > { %v1098_v20 = vmax.f32 %v1092_v15, 0.0  ;;  %v1093_v49 = vadd.f32 %v1245_v8, %v1080_v16 }
 0x15f   : > { %v1258_v51 = vpack.c.bf16 %v1098_v20, %v1098_v20  ;;  %v1099_v52 = vmax.f32 %v1093_v49, 0.0 }
 0x161   : > { %1129 = vst.msk [vmem:[%s1854_s7 + $0x10] sm:$0xf] %vm1124_vm9, %v1258_v51  ;;  %v1259_v53 = vpack.c.bf16 %v1099_v52, %v1099_v52 }
 0x163   : > { %1130 = vst.msk [vmem:[%s1854_s7 + $0x14] sm:$0xf] %vm1124_vm9, %v1259_v53 }
 0x164 PF: > { %s13_s12 = sadd.s32 1, %s1496_s12  }
 0x165   : > { %p10_p4 = scmp.ge.s32.totalorder %s13_s12, 4  }
 0x167   :  { %12 = sbr.rel (!%p10_p4) target bundleno = 1 (0x1), region = 62 }

// kernel: _lambda_.43
= control target key start
LH: loop header
LB: loop body
LE: loop exit
PB: predicated region body
PF: predicated region fallthrough
CT: control target
= control target key end

     0   :  { %vm80_vm0 = vcmask 261120   ;;  %vm180_vm1 = vcmask 64512   ;;  %s349_s1 = inlined_call_operand.vmem [shape: bf16[32,8], index: 1, kind: input, shape index: {}]   ;;  %s350_s0 = inlined_call_operand.vmem [shape: bf16[96,32], index: 0, kind: input, shape index: {}]   ;;  %s351_s2 = inlined_call_operand.vmem [shape: f32[1,8], index: 2, kind: input, shape index: {}]   ;;  %s352_s3 = inlined_call_operand.vmem [shape: f32[96,8], index: 3, kind: output, shape index: {}]  }
   0x1   :  { %v240_v0 = vld [vmem:[%s349_s1] sm:$0xff]   ;;  %v241_v1 = vld [vmem:[%s349_s1 + $0x8] sm:$0xff]   ;;  %v242_v2 = vld [vmem:[%s350_s0 + $0x10] sm:$0xff]  }
   0x2   :  { %236 = vmatprep.subr.bf16.mxu1 %v240_v0  ;;  %220 = vmatprep.subr.bf16.mxu0 %v240_v0  ;;  %v244_v3 = vld [vmem:[%s350_s0] sm:$0xff]   ;;  %v243_v4 = vld [vmem:[%s350_s0 + $0x18] sm:$0xff]   ;;  %v245_v5 = vld [vmem:[%s350_s0 + $0x8] sm:$0xff]  }
   0x3   :  { %238 = vmatpush3.bf16.msra.mxu1 %v240_v0  ;;  %221 = vmatpush3.bf16.msra.mxu0 %v240_v0  ;;  %v246_v6 = vld [vmem:[%s350_s0 + $0x20] sm:$0xff]   ;;  %v247_v7 = vld [vmem:[%s350_s0 + $0x28] sm:$0xff]  }
   0x4   :  { %237 = vmatprep.subr.bf16.mxu1 %v241_v1  ;;  %228 = vmatprep.mubr.msk.bf16.mxu1 %vm80_vm0, %v242_v2  ;;  %v197_v8 = vld [vmem:[%s351_s2] ss:$0 sm:$0xff] }
   0x5   :  { %222 = vmatprep.subr.bf16.mxu0 %v241_v1  ;;  %224 = vmatprep.mubr.msk.bf16.mxu0 %vm80_vm0, %v244_v3 }
   0x7   :  { %239 = vmatpush3.bf16.msra.mxu1 %v241_v1  ;;  %223 = vmatpush3.bf16.msra.mxu0 %v241_v1 }
   0xa   :  { %229 = vmatmul.mubr.msk.bf16.vlgmr.msra.gmra.mrb[0].mxu1 %vm80_vm0, %v243_v4  ;;  %225 = vmatmul.mubr.msk.bf16.vlgmr.msra.gmra.mrb[0].mxu0 %vm80_vm0, %v245_v5 }
   0xb   :  { %232 = vmatprep.mubr.msk.bf16.mxu1 %vm80_vm0, %v246_v6 }
  0x12   :  { %233 = vmatmul.mubr.msk.bf16.gmra.mrb[4].mxu1 %vm80_vm0, %v247_v7 }
  0xdd   :  { %v230_v9 = vpop.f32.mrb[0].mxu1  ;;  %v226_v10 = vpop.f32.mrb[0].mxu0 }
  0xde   :  { %v158_v11 = vadd.f32 %v230_v9, %v197_v8  ;;  %v149_v12 = vpop.f32.mrb[1].mxu1  ;;  %v142_v13 = vadd.f32 %v226_v10, %v197_v8  ;;  %v133_v14 = vpop.f32.mrb[1].mxu0 }
  0xdf   :  { %v150_v15 = vadd.f32 %v197_v8, %v149_v12  ;;  %v231_v16 = vpop.f32.mrb[2].mxu1  ;;  %v134_v17 = vadd.f32 %v197_v8, %v133_v14  ;;  %v227_v18 = vpop.f32.mrb[2].mxu0 }
  0xe0   :  { %187 = vst.msk [vmem:[%s352_s3 + $0x30] sm:$0xff] %vm180_vm1, %v158_v11  ;;  %v161_v19 = vadd.f32 %v231_v16, %v197_v8  ;;  %v152_v20 = vpop.f32.mrb[3].mxu1  ;;  %183 = vst.msk [vmem:[%s352_s3 + $0x10] sm:$0xff] %vm180_vm1, %v142_v13  ;;  %v145_v21 = vadd.f32 %v227_v18, %v197_v8  ;;  %v136_v22 = vpop.f32.mrb[3].mxu0 }
  0xe1   :  { %185 = vst.msk [vmem:[%s352_s3 + $0x20] sm:$0xff] %vm180_vm1, %v150_v15  ;;  %v153_v23 = vadd.f32 %v197_v8, %v152_v20  ;;  %181 = vst.msk [vmem:[%s352_s3] sm:$0xff] %vm180_vm1, %v134_v17  ;;  %v137_v24 = vadd.f32 %v197_v8, %v136_v22 }
  0xe2   :  { %188 = vst.msk [vmem:[%s352_s3 + $0x38] sm:$0xff] %vm180_vm1, %v161_v19  ;;  %184 = vst.msk [vmem:[%s352_s3 + $0x18] sm:$0xff] %vm180_vm1, %v145_v21 }
  0xe3   :  { %186 = vst.msk [vmem:[%s352_s3 + $0x28] sm:$0xff] %vm180_vm1, %v153_v23  ;;  %182 = vst.msk [vmem:[%s352_s3 + $0x8] sm:$0xff] %vm180_vm1, %v137_v24 }
  0xe5   :  { %v234_v25 = vpop.f32.mrb[4].mxu1 }
  0xe6   :  { %v174_v26 = vadd.f32 %v234_v25, %v197_v8  ;;  %v165_v27 = vpop.f32.mrb[5].mxu1 }
  0xe7   :  { %v166_v28 = vadd.f32 %v197_v8, %v165_v27  ;;  %v235_v29 = vpop.f32.mrb[6].mxu1 }
  0xe8   :  { %191 = vst.msk [vmem:[%s352_s3 + $0x50] sm:$0xff] %vm180_vm1, %v174_v26  ;;  %v177_v30 = vadd.f32 %v235_v29, %v197_v8  ;;  %v168_v31 = vpop.f32.mrb[7].mxu1 }
  0xe9   :  { %189 = vst.msk [vmem:[%s352_s3 + $0x40] sm:$0xff] %vm180_vm1, %v166_v28  ;;  %v169_v32 = vadd.f32 %v197_v8, %v168_v31 }
  0xea   :  { %192 = vst.msk [vmem:[%s352_s3 + $0x58] sm:$0xff] %vm180_vm1, %v177_v30 }
  0xeb   :  { %190 = vst.msk [vmem:[%s352_s3 + $0x48] sm:$0xff] %vm180_vm1, %v169_v32 }

// kernel: _lambda_.41
= control target key start
LH: loop header
LB: loop body
LE: loop exit
PB: predicated region body
PF: predicated region fallthrough
CT: control target
= control target key end

     0   :  { %vm96_vm0 = vcmask 523264   ;;  %vm244_vm1 = vcmask 257024   ;;  %s457_s1 = inlined_call_operand.vmem [shape: bf16[64,32], index: 1, kind: input, shape index: {}]   ;;  %s458_s0 = inlined_call_operand.vmem [shape: bf16[96,64], index: 0, kind: input, shape index: {}]   ;;  %s459_s2 = inlined_call_operand.vmem [shape: f32[1,32], index: 2, kind: input, shape index: {}]   ;;  %s460_s3 = inlined_call_operand.vmem [shape: bf16[96,32], index: 3, kind: output, shape index: {}]  }
   0x1   :  { %v340_v0 = vld [vmem:[%s457_s1] sm:$0xff]   ;;  %v341_v1 = vld [vmem:[%s457_s1 + $0x8] sm:$0xff]   ;;  %v342_v2 = vld [vmem:[%s457_s1 + $0x10] sm:$0xff]  }
   0x2   :  { %332 = vmatprep.subr.bf16.mxu1 %v340_v0  ;;  %312 = vmatprep.subr.bf16.mxu0 %v340_v0  ;;  %v344_v3 = vld [vmem:[%s458_s0 + $0x10] sm:$0xff]   ;;  %v346_v4 = vld [vmem:[%s458_s0] sm:$0xff]   ;;  %v343_v5 = vld [vmem:[%s457_s1 + $0x18] sm:$0xff]  }
   0x3   :  { %336 = vmatpush3.bf16.msra.mxu1 %v340_v0  ;;  %313 = vmatpush3.bf16.msra.mxu0 %v340_v0  ;;  %v345_v6 = vld [vmem:[%s458_s0 + $0x18] sm:$0xff]   ;;  %v347_v7 = vld [vmem:[%s458_s0 + $0x8] sm:$0xff]   ;;  %v348_v8 = vld [vmem:[%s458_s0 + $0x20] sm:$0xff]  }
   0x4   :  { %333 = vmatprep.subr.bf16.mxu1 %v341_v1  ;;  %314 = vmatprep.subr.bf16.mxu0 %v341_v1  ;;  %v349_v9 = vld [vmem:[%s458_s0 + $0x28] sm:$0xff]   ;;  %v261_v10 = vld [vmem:[%s459_s2] ss:$0 sm:$0xff] }
   0x5   :  { %324 = vmatprep.mubr.msk.bf16.mxu1 %vm96_vm0, %v344_v3  ;;  %320 = vmatprep.mubr.msk.bf16.mxu0 %vm96_vm0, %v346_v4 }
   0x7   :  { %337 = vmatpush3.bf16.msra.mxu1 %v341_v1  ;;  %315 = vmatpush3.bf16.msra.mxu0 %v341_v1 }
   0x8   :  { %334 = vmatprep.subr.bf16.mxu1 %v342_v2  ;;  %316 = vmatprep.subr.bf16.mxu0 %v342_v2 }
   0xb   :  { %338 = vmatpush3.bf16.msra.mxu1 %v342_v2  ;;  %317 = vmatpush3.bf16.msra.mxu0 %v342_v2 }
   0xc   :  { %335 = vmatprep.subr.bf16.mxu1 %v343_v5  ;;  %318 = vmatprep.subr.bf16.mxu0 %v343_v5 }
   0xf   :  { %339 = vmatpush3.bf16.msra.mxu1 %v343_v5  ;;  %319 = vmatpush3.bf16.msra.mxu0 %v343_v5 }
  0x12   :  { %325 = vmatmul.mubr.msk.bf16.vlgmr.msra.gmra.mrb[0].mxu1 %vm96_vm0, %v345_v6  ;;  %321 = vmatmul.mubr.msk.bf16.vlgmr.msra.gmra.mrb[0].mxu0 %vm96_vm0, %v347_v7 }
  0x13   :  { %328 = vmatprep.mubr.msk.bf16.mxu1 %vm96_vm0, %v348_v8 }
  0x1a   :  { %329 = vmatmul.mubr.msk.bf16.gmra.mrb[4].mxu1 %vm96_vm0, %v349_v9 }
  0xe5   :  { %v326_v11 = vpop.f32.mrb[0].mxu1  ;;  %v322_v12 = vpop.f32.mrb[0].mxu0 }
  0xe6   :  { %v174_v13 = vadd.f32 %v326_v11, %v261_v10  ;;  %v165_v14 = vpop.f32.mrb[1].mxu1  ;;  %v158_v15 = vadd.f32 %v322_v12, %v261_v10  ;;  %v149_v16 = vpop.f32.mrb[1].mxu0 }
  0xe7   :  { %v166_v17 = vadd.f32 %v261_v10, %v165_v14  ;;  %v327_v18 = vpop.f32.mrb[2].mxu1  ;;  %v150_v19 = vadd.f32 %v261_v10, %v149_v16  ;;  %v323_v20 = vpop.f32.mrb[2].mxu0 }
  0xe8   :  { %v296_v21 = vpack.c.bf16 %v174_v13, %v174_v13  ;;  %v177_v22 = vadd.f32 %v327_v18, %v261_v10  ;;  %v168_v23 = vpop.f32.mrb[3].mxu1  ;;  %v292_v24 = vpack.c.bf16 %v158_v15, %v158_v15  ;;  %v161_v25 = vadd.f32 %v323_v20, %v261_v10  ;;  %v152_v26 = vpop.f32.mrb[3].mxu0 }
  0xe9   :  { %v294_v27 = vpack.c.bf16 %v166_v17, %v166_v17  ;;  %v169_v28 = vadd.f32 %v261_v10, %v168_v23  ;;  %v290_v29 = vpack.c.bf16 %v150_v19, %v150_v19  ;;  %v153_v30 = vadd.f32 %v261_v10, %v152_v26 }
  0xea   :  { %251 = vst.msk [vmem:[%s460_s3 + $0x18] sm:$0xf] %vm244_vm1, %v296_v21  ;;  %v297_v31 = vpack.c.bf16 %v177_v22, %v177_v22  ;;  %247 = vst.msk [vmem:[%s460_s3 + $0x8] sm:$0xf] %vm244_vm1, %v292_v24  ;;  %v293_v32 = vpack.c.bf16 %v161_v25, %v161_v25 }
  0xeb   :  { %249 = vst.msk [vmem:[%s460_s3 + $0x10] sm:$0xf] %vm244_vm1, %v294_v27  ;;  %v295_v33 = vpack.c.bf16 %v169_v28, %v169_v28  ;;  %245 = vst.msk [vmem:[%s460_s3] sm:$0xf] %vm244_vm1, %v290_v29  ;;  %v291_v34 = vpack.c.bf16 %v153_v30, %v153_v30 }
  0xec   :  { %252 = vst.msk [vmem:[%s460_s3 + $0x1c] sm:$0xf] %vm244_vm1, %v297_v31  ;;  %248 = vst.msk [vmem:[%s460_s3 + $0xc] sm:$0xf] %vm244_vm1, %v293_v32 }
  0xed   :  { %250 = vst.msk [vmem:[%s460_s3 + $0x14] sm:$0xf] %vm244_vm1, %v295_v33  ;;  %246 = vst.msk [vmem:[%s460_s3 + $0x4] sm:$0xf] %vm244_vm1, %v291_v34  ;;  %v330_v35 = vpop.f32.mrb[4].mxu1 }
  0xee   :  { %v190_v36 = vadd.f32 %v330_v35, %v261_v10  ;;  %v181_v37 = vpop.f32.mrb[5].mxu1 }
  0xef   :  { %v182_v38 = vadd.f32 %v261_v10, %v181_v37  ;;  %v331_v39 = vpop.f32.mrb[6].mxu1 }
  0xf0   :  { %v300_v40 = vpack.c.bf16 %v190_v36, %v190_v36  ;;  %v193_v41 = vadd.f32 %v331_v39, %v261_v10  ;;  %v184_v42 = vpop.f32.mrb[7].mxu1 }
  0xf1   :  { %v298_v43 = vpack.c.bf16 %v182_v38, %v182_v38  ;;  %v185_v44 = vadd.f32 %v261_v10, %v184_v42 }
  0xf2   :  { %255 = vst.msk [vmem:[%s460_s3 + $0x28] sm:$0xf] %vm244_vm1, %v300_v40  ;;  %v301_v45 = vpack.c.bf16 %v193_v41, %v193_v41 }
  0xf3   :  { %253 = vst.msk [vmem:[%s460_s3 + $0x20] sm:$0xf] %vm244_vm1, %v298_v43  ;;  %v299_v46 = vpack.c.bf16 %v185_v44, %v185_v44 }
  0xf4   :  { %256 = vst.msk [vmem:[%s460_s3 + $0x2c] sm:$0xf] %vm244_vm1, %v301_v45 }
  0xf5   :  { %254 = vst.msk [vmem:[%s460_s3 + $0x24] sm:$0xf] %vm244_vm1, %v299_v46 }

</bundles_post_ra>
